<compile_context>
chip_gen: v6e
topology: v6e:2x2x1
jax: 0.10.0
libtpu: 0.0.40
codegen_flags: <defaults>
</compile_context>

<pallas_src>
import functools

import jax
import jax.numpy as jnp
from jax.experimental import pallas as pl
from jax.experimental.pallas import tpu as pltpu


def _round_up(x, m):
    return ((x + m - 1) // m) * m


def _pad_axis(a, axis, target):
    pad = target - a.shape[axis]
    if pad == 0:
        return a
    cfg = [(0, 0)] * a.ndim
    cfg[axis] = (0, pad)
    return jnp.pad(a, cfg)


def _is_dual_tensorcore_chip():
    """True on v7x-style chips (2 TCs / 64 MiB VMEM per TC)."""
    try:
        kind = jax.devices()[0].device_kind.lower().replace(" ", "")
    except Exception:
        return False
    return ("v7" in kind) or ("tpu7" in kind)


# ----------------------------------------------------------------------------
# Path A (single-TC chips): one fully fused kernel.
#   grid = (M tiles ["parallel"], K tiles ["arbitrary", last]).
#   W1 streamed in (tk, 2048) bf16 blocks; W2/W3/biases resident (constant
#   index maps).  f32 accumulator in VMEM scratch; bias+ReLU+layers2/3 applied
#   in the k==last epilogue; only the final (tm, 512) block is written to HBM.
# ----------------------------------------------------------------------------
def _fused_encoder_kernel(x_ref, w1_ref, b1_ref, w2_ref, b2_ref, w3_ref, b3_ref,
                          o_ref, acc_ref):
    k = pl.program_id(1)

    @pl.when(k == 0)
    def _():
        acc_ref[...] = jnp.zeros_like(acc_ref)

    acc_ref[...] += jnp.dot(x_ref[...], w1_ref[...],
                            preferred_element_type=jnp.float32)

    @pl.when(k == pl.num_programs(1) - 1)
    def _():
        h1 = jnp.maximum(acc_ref[...] + b1_ref[...], 0.0).astype(jnp.bfloat16)
        h2 = jnp.dot(h1, w2_ref[...], preferred_element_type=jnp.float32)
        h2 = jnp.maximum(h2 + b2_ref[...], 0.0).astype(jnp.bfloat16)
        o_ref[...] = (jnp.dot(h2, w3_ref[...],
                              preferred_element_type=jnp.float32)
                      + b3_ref[...])


def _encoder_fused_call(xp, w1, b1, w2, b2, w3, b3, *, tm, tk, vmem_limit):
    Mp, Kp = xp.shape
    N1, N2, N3 = w1.shape[1], w2.shape[1], w3.shape[1]
    assert Mp % tm == 0 and Kp % tk == 0
    grid = (Mp // tm, Kp // tk)

    cost = pl.CostEstimate(
        flops=2 * Mp * (Kp * N1 + N1 * N2 + N2 * N3),
        transcendentals=0,
        bytes_accessed=(Kp * N1 + N1 * N2 + N2 * N3) * 2
        + Mp * Kp * 2 + Mp * N3 * 4 + (N1 + N2 + N3) * 4,
    )
    return pl.pallas_call(
        _fused_encoder_kernel,
        out_shape=jax.ShapeDtypeStruct((Mp, N3), jnp.float32),
        grid_spec=pltpu.PrefetchScalarGridSpec(
            num_scalar_prefetch=0,
            grid=grid,
            in_specs=[
                pl.BlockSpec((tm, tk), lambda i, k: (i, k)),    # x (bf16)
                pl.BlockSpec((tk, N1), lambda i, k: (k, 0)),    # W1 stream (bf16)
                pl.BlockSpec((1, N1), lambda i, k: (0, 0)),     # b1 (resident)
                pl.BlockSpec((N1, N2), lambda i, k: (0, 0)),    # W2 (resident)
                pl.BlockSpec((1, N2), lambda i, k: (0, 0)),     # b2
                pl.BlockSpec((N2, N3), lambda i, k: (0, 0)),    # W3 (resident)
                pl.BlockSpec((1, N3), lambda i, k: (0, 0)),     # b3
            ],
            out_specs=pl.BlockSpec((tm, N3), lambda i, k: (i, 0)),
            scratch_shapes=[pltpu.VMEM((tm, N1), jnp.float32)],
        ),
        compiler_params=pltpu.CompilerParams(
            dimension_semantics=("parallel", "arbitrary"),
            vmem_limit_bytes=vmem_limit,
        ),
        cost_estimate=cost,
    )(xp, w1, b1, w2, b2, w3, b3)


# ----------------------------------------------------------------------------
# Path B (v7x): layer-1 GEMM with 2-way N split (one tile per TensorCore),
# then a small fused tail kernel for layers 2 + 3.
# ----------------------------------------------------------------------------
def _l1_kernel_resident_x(x_ref, w_ref, b_ref, o_ref, *, tk):
    k = pl.program_id(2)

    @pl.when(k == 0)
    def _():
        o_ref[...] = jnp.zeros_like(o_ref)

    xk = x_ref[:, pl.ds(pl.multiple_of(k * tk, 128), tk)]
    o_ref[...] += jnp.dot(xk, w_ref[...], preferred_element_type=jnp.float32)

    @pl.when(k == pl.num_programs(2) - 1)
    def _():
        o_ref[...] = jnp.maximum(o_ref[...] + b_ref[...], 0.0)


def _l1_kernel_streamed_x(x_ref, w_ref, b_ref, o_ref):
    k = pl.program_id(2)

    @pl.when(k == 0)
    def _():
        o_ref[...] = jnp.zeros_like(o_ref)

    o_ref[...] += jnp.dot(x_ref[...], w_ref[...],
                          preferred_element_type=jnp.float32)

    @pl.when(k == pl.num_programs(2) - 1)
    def _():
        o_ref[...] = jnp.maximum(o_ref[...] + b_ref[...], 0.0)


def _l1_call(xp, w1, b1, *, tm, tn, tk, x_resident, vmem_limit):
    Mp, Kp = xp.shape
    N1 = w1.shape[1]
    assert Mp % tm == 0 and N1 % tn == 0 and Kp % tk == 0
    grid = (Mp // tm, N1 // tn, Kp // tk)

    if x_resident:
        kernel = functools.partial(_l1_kernel_resident_x, tk=tk)
        x_spec = pl.BlockSpec((tm, Kp), lambda i, j, k: (i, 0))   # VMEM-resident
    else:
        kernel = _l1_kernel_streamed_x
        x_spec = pl.BlockSpec((tm, tk), lambda i, j, k: (i, k))

    cost = pl.CostEstimate(
        flops=2 * Mp * Kp * N1,
        transcendentals=0,
        bytes_accessed=Kp * N1 * 2 + Mp * Kp * 2 + Mp * N1 * 4 + N1 * 4,
    )
    return pl.pallas_call(
        kernel,
        out_shape=jax.ShapeDtypeStruct((Mp, N1), jnp.float32),
        grid_spec=pltpu.PrefetchScalarGridSpec(
            num_scalar_prefetch=0,
            grid=grid,
            in_specs=[
                x_spec,
                pl.BlockSpec((tk, tn), lambda i, j, k: (k, j)),   # W1 stream
                pl.BlockSpec((1, tn), lambda i, j, k: (0, j)),    # bias
            ],
            out_specs=pl.BlockSpec((tm, tn), lambda i, j, k: (i, j)),
        ),
        compiler_params=pltpu.CompilerParams(
            dimension_semantics=("parallel", "parallel", "arbitrary"),
            vmem_limit_bytes=vmem_limit,
        ),
        cost_estimate=cost,
    )(xp, w1, b1)


def _fused_tail_kernel(h_ref, w2_ref, b2_ref, w3_ref, b3_ref, o_ref):
    h = jnp.dot(h_ref[...].astype(jnp.bfloat16), w2_ref[...],
                preferred_element_type=jnp.float32)
    h = jnp.maximum(h + b2_ref[...], 0.0).astype(jnp.bfloat16)
    o_ref[...] = (jnp.dot(h, w3_ref[...], preferred_element_type=jnp.float32)
                  + b3_ref[...])


def _tail_call(h, w2, b2, w3, b3, *, tm, vmem_limit):
    Mp, N1 = h.shape
    N2, N3 = w2.shape[1], w3.shape[1]
    assert Mp % tm == 0
    cost = pl.CostEstimate(
        flops=2 * Mp * (N1 * N2 + N2 * N3),
        transcendentals=0,
        bytes_accessed=(N1 * N2 + N2 * N3) * 2 + Mp * N1 * 4 + Mp * N3 * 4,
    )
    return pl.pallas_call(
        _fused_tail_kernel,
        out_shape=jax.ShapeDtypeStruct((Mp, N3), jnp.float32),
        grid_spec=pltpu.PrefetchScalarGridSpec(
            num_scalar_prefetch=0,
            grid=(Mp // tm,),
            in_specs=[
                pl.BlockSpec((tm, N1), lambda i: (i, 0)),
                pl.BlockSpec((N1, N2), lambda i: (0, 0)),
                pl.BlockSpec((1, N2), lambda i: (0, 0)),
                pl.BlockSpec((N2, N3), lambda i: (0, 0)),
                pl.BlockSpec((1, N3), lambda i: (0, 0)),
            ],
            out_specs=pl.BlockSpec((tm, N3), lambda i: (i, 0)),
        ),
        compiler_params=pltpu.CompilerParams(
            dimension_semantics=("parallel",),
            vmem_limit_bytes=vmem_limit,
        ),
        cost_estimate=cost,
    )(h, w2, b2, w3, b3)


# ----------------------------------------------------------------------------
# Parameter init (PyTorch-Linear-style uniform, f32 master copy) and one-time
# preparation (K padding + bf16 cast + bias reshape).  NOT on the forward path.
# ----------------------------------------------------------------------------
def init_encoder_params(key, input_size):
    dims = [(input_size, 2048), (2048, 1024), (1024, 512)]
    params = []
    for i, (fan_in, fan_out) in enumerate(dims):
        kw, kb = jax.random.split(jax.random.fold_in(key, i))
        bound = 1.0 / float(fan_in) ** 0.5
        w = jax.random.uniform(kw, (fan_in, fan_out), jnp.float32, -bound, bound)
        b = jax.random.uniform(kb, (fan_out,), jnp.float32, -bound, bound)
        params.append((w, b))
    return params


def prepare_encoder_params(params, *, tk=6144):
    """Done once: pad layer-1 K dim to a tk multiple, cast weights to bf16."""
    (w1, b1), (w2, b2), (w3, b3) = params
    K = w1.shape[0]
    tk = min(tk, _round_up(K, 256))   # tk stays a multiple of 256 (>=128-aligned)
    Kp = _round_up(K, tk)             # keep padding minimal (30000 -> 30720)
    return {
        "K": K, "Kp": Kp, "tk": tk,
        "w1": _pad_axis(w1, 0, Kp).astype(jnp.bfloat16),
        "b1": b1.reshape(1, -1).astype(jnp.float32),
        "w2": w2.astype(jnp.bfloat16),
        "b2": b2.reshape(1, -1).astype(jnp.float32),
        "w3": w3.astype(jnp.bfloat16),
        "b3": b3.reshape(1, -1).astype(jnp.float32),
    }


def encoder_forward(prepared, image, *, force_path=None):
    """force_path: None (auto-detect), "fused" (single-TC), "split" (v7x)."""
    B = image.shape[0]
    x = image.reshape(B, -1)          # NCHW -> Flatten, row-major like nn.Flatten
    assert x.shape[1] == prepared["K"]

    tm = min(256, _round_up(B, 16))   # M tile: caps VMEM use for large batches
    Mp = _round_up(B, tm)
    xp = _pad_axis(_pad_axis(x.astype(jnp.bfloat16), 0, Mp), 1, prepared["Kp"])

    tk, Kp = prepared["tk"], prepared["Kp"]
    w1, b1 = prepared["w1"], prepared["b1"]
    w2, b2 = prepared["w2"], prepared["b2"]
    w3, b3 = prepared["w3"], prepared["b3"]
    N1, N2, N3 = w1.shape[1], w2.shape[1], w3.shape[1]

    path = force_path or ("split" if _is_dual_tensorcore_chip() else "fused")

    if path == "fused":
        # v5e / v6e (1 TC, 128 MiB physical VMEM): full-N contiguous W1 blocks,
        # layers 2+3 folded into the last-K epilogue.
        vmem_need = (2 * tk * N1 * 2              # W1 double buffer (bf16)
                     + 2 * tm * tk * 2            # x double buffer (bf16)
                     + tm * N1 * 4                # f32 accumulator scratch
                     + 2 * (N1 * N2 + N2 * N3) * 2  # resident W2/W3 (+ buffer slack)
                     + 2 * tm * N3 * 4            # output blocks
                     + (4 << 20))                 # headroom
        vmem_limit = int(min(max(vmem_need, 32 << 20), 100 << 20))
        out = _encoder_fused_call(xp, w1, b1, w2, b2, w3, b3,
                                  tm=tm, tk=tk, vmem_limit=vmem_limit)
    else:
        # v7x (2 TCs, 64 MiB VMEM each): split N across cores, small tail call.
        tn = N1 // 2
        x_resident = (2 * tm * Kp * 2) <= (4 << 20)   # keep x off the re-stream path
        h1 = _l1_call(xp, w1, b1, tm=tm, tn=tn, tk=tk,
                      x_resident=x_resident, vmem_limit=32 << 20)
        out = _tail_call(h1, w2, b2, w3, b3, tm=tm, vmem_limit=32 << 20)

    return out[:B] if Mp != B else out


def encoder_reference(prepared, image):
    """Pure-JAX reference using the same bf16-quantized weights / activations."""
    B = image.shape[0]
    x = image.reshape(B, -1).astype(jnp.bfloat16)
    w1 = prepared["w1"][: prepared["K"]]
    h = jnp.dot(x, w1, preferred_element_type=jnp.float32) + prepared["b1"]
    h = jnp.maximum(h, 0.0)
    h = jnp.dot(h.astype(jnp.bfloat16), prepared["w2"],
                preferred_element_type=jnp.float32) + prepared["b2"]
    h = jnp.maximum(h, 0.0)
    out = jnp.dot(h.astype(jnp.bfloat16), prepared["w3"],
                  preferred_element_type=jnp.float32) + prepared["b3"]
    return out


if __name__ == "__main__":
    # Small but structure-faithful shapes: batch=2, NCHW with 3 channels.
    # (The original module uses image_size=100 -> input_size=30000; the kernels
    # handle any size via the one-time zero-padded K tiling.)
    batch, channels, image_size = 2, 3, 16
    input_size = channels * image_size * image_size

    key = jax.random.PRNGKey(0)
    k_img, k_par = jax.random.split(key)
    image = jax.random.normal(
        k_img, (batch, channels, image_size, image_size), jnp.float32
    )

    params = init_encoder_params(k_par, input_size)
    prepared = prepare_encoder_params(params)

    ref = jax.block_until_ready(encoder_reference(prepared, image))

    # Auto-selected path for this chip, plus both explicit paths (so both the
    # single-TC fused kernel and the v7x split kernels are exercised).
    for fp in (None, "fused", "split"):
        fwd = jax.jit(lambda img, fp=fp: encoder_forward(prepared, img, force_path=fp))
        out = jax.block_until_ready(fwd(image))
        assert out.shape == (batch, 512), out.shape
        assert out.dtype == jnp.float32
        # bf16 weight streaming -> tolerance appropriate for bf16 matmuls.
        assert jnp.allclose(out, ref, atol=1e-2, rtol=1e-2), f"mismatch ({fp})"

    print("KERNEL_OK")
</pallas_src>

<mosaic_0001>
module attributes {stable_mosaic.version = 11 : i64} {
  func.func @_fused_encoder_kernel(%arg0: i32, %arg1: i32, %arg2: memref<16x768xbf16, #tpu.memory_space<vmem>>, %arg3: memref<768x2048xbf16, #tpu.memory_space<vmem>>, %arg4: memref<1x2048xf32, #tpu.memory_space<vmem>>, %arg5: memref<2048x1024xbf16, #tpu.memory_space<vmem>>, %arg6: memref<1x1024xf32, #tpu.memory_space<vmem>>, %arg7: memref<1024x512xbf16, #tpu.memory_space<vmem>>, %arg8: memref<1x512xf32, #tpu.memory_space<vmem>>, %arg9: memref<16x512xf32, #tpu.memory_space<vmem>>, %arg10: memref<16x2048xf32, #tpu.memory_space<vmem>>) attributes {dimension_semantics = [#tpu.dimension_semantics<parallel>, #tpu.dimension_semantics<arbitrary>], iteration_bounds = array<i64: 1, 1>, scalar_prefetch = 0 : i64, scratch_operands = 1 : i64, tpu.core_type = #tpu.core_type<tc>, window_params = [{transform_indices = @transform_0, window_bounds = array<i64: 16, 768>}, {transform_indices = @transform_1, window_bounds = array<i64: 768, 2048>}, {pipeline_mode = #tpu.pipeline_mode<synchronous>, transform_indices = @transform_2, window_bounds = array<i64: 1, 2048>}, {pipeline_mode = #tpu.pipeline_mode<synchronous>, transform_indices = @transform_3, window_bounds = array<i64: 2048, 1024>}, {pipeline_mode = #tpu.pipeline_mode<synchronous>, transform_indices = @transform_4, window_bounds = array<i64: 1, 1024>}, {pipeline_mode = #tpu.pipeline_mode<synchronous>, transform_indices = @transform_5, window_bounds = array<i64: 1024, 512>}, {pipeline_mode = #tpu.pipeline_mode<synchronous>, transform_indices = @transform_6, window_bounds = array<i64: 1, 512>}, {transform_indices = @transform_7, window_bounds = array<i64: 16, 512>}]} {
    %c0_i32 = arith.constant 0 : i32
    %0 = arith.cmpi eq, %arg1, %c0_i32 : i32
    %1 = arith.extui %0 : i1 to i32
    %c0_i32_0 = arith.constant 0 : i32
    %2 = arith.cmpi ne, %1, %c0_i32_0 : i32
    scf.if %2 {
      %cst_10 = arith.constant 0.000000e+00 : f32
      %12 = vector.broadcast %cst_10 : f32 to vector<16x2048xf32>
      %c0_11 = arith.constant 0 : index
      %c0_12 = arith.constant 0 : index
      %13 = vector.load %arg10[%c0_11, %c0_12] : memref<16x2048xf32, #tpu.memory_space<vmem>>, vector<16x2048xf32>
      tpu.vector_store %arg10[%c0_11, %c0_12], %12 {strides = array<i32>} : memref<16x2048xf32, #tpu.memory_space<vmem>>, vector<16x2048xf32>,
    } else {
    }
    %c0 = arith.constant 0 : index
    %c0_1 = arith.constant 0 : index
    %3 = vector.load %arg10[%c0, %c0_1] : memref<16x2048xf32, #tpu.memory_space<vmem>>, vector<16x2048xf32>
    %c0_2 = arith.constant 0 : index
    %c0_3 = arith.constant 0 : index
    %4 = vector.load %arg2[%c0_2, %c0_3] : memref<16x768xbf16, #tpu.memory_space<vmem>>, vector<16x768xbf16>
    %c0_4 = arith.constant 0 : index
    %c0_5 = arith.constant 0 : index
    %5 = vector.load %arg3[%c0_4, %c0_5] : memref<768x2048xbf16, #tpu.memory_space<vmem>>, vector<768x2048xbf16>
    %cst = arith.constant dense<0.000000e+00> : vector<16x2048xf32>
    %6 = tpu.matmul %4, %5, %cst {dimension_numbers = #tpu.dot_dimension_numbers<[1], [0], [0], [1], [0, 0, 1, 1], [], []>} : vector<16x768xbf16>, vector<768x2048xbf16>, vector<16x2048xf32> -> vector<16x2048xf32>
    %7 = arith.addf %3, %6 : vector<16x2048xf32>
    %c0_6 = arith.constant 0 : index
    %c0_7 = arith.constant 0 : index
    %8 = vector.load %arg10[%c0_6, %c0_7] : memref<16x2048xf32, #tpu.memory_space<vmem>>, vector<16x2048xf32>
    tpu.vector_store %arg10[%c0_6, %c0_7], %7 {strides = array<i32>} : memref<16x2048xf32, #tpu.memory_space<vmem>>, vector<16x2048xf32>,
    %c0_i32_8 = arith.constant 0 : i32
    %9 = arith.cmpi eq, %arg1, %c0_i32_8 : i32
    %10 = arith.extui %9 : i1 to i32
    %c0_i32_9 = arith.constant 0 : i32
    %11 = arith.cmpi ne, %10, %c0_i32_9 : i32
    scf.if %11 {
      %c0_10 = arith.constant 0 : index
      %c0_11 = arith.constant 0 : index
      %12 = vector.load %arg10[%c0_10, %c0_11] : memref<16x2048xf32, #tpu.memory_space<vmem>>, vector<16x2048xf32>
      %c0_12 = arith.constant 0 : index
      %c0_13 = arith.constant 0 : index
      %13 = vector.load %arg4[%c0_12, %c0_13] : memref<1x2048xf32, #tpu.memory_space<vmem>>, vector<1x2048xf32>
      %14 = vector.broadcast %13 : vector<1x2048xf32> to vector<16x2048xf32>
      %15 = arith.addf %12, %14 : vector<16x2048xf32>
      %cst_14 = arith.constant 0.000000e+00 : f32
      %16 = vector.broadcast %cst_14 : f32 to vector<16x2048xf32>
      %17 = arith.maximumf %15, %16 : vector<16x2048xf32>
      %18 = arith.truncf %17 : vector<16x2048xf32> to vector<16x2048xbf16>
      %c0_15 = arith.constant 0 : index
      %c0_16 = arith.constant 0 : index
      %19 = vector.load %arg5[%c0_15, %c0_16] : memref<2048x1024xbf16, #tpu.memory_space<vmem>>, vector<2048x1024xbf16>
      %cst_17 = arith.constant dense<0.000000e+00> : vector<16x1024xf32>
      %20 = tpu.matmul %18, %19, %cst_17 {dimension_numbers = #tpu.dot_dimension_numbers<[1], [0], [0], [1], [0, 0, 1, 1], [], []>} : vector<16x2048xbf16>, vector<2048x1024xbf16>, vector<16x1024xf32> -> vector<16x1024xf32>
      %c0_18 = arith.constant 0 : index
      %c0_19 = arith.constant 0 : index
      %21 = vector.load %arg6[%c0_18, %c0_19] : memref<1x1024xf32, #tpu.memory_space<vmem>>, vector<1x1024xf32>
      %22 = vector.broadcast %21 : vector<1x1024xf32> to vector<16x1024xf32>
      %23 = arith.addf %20, %22 : vector<16x1024xf32>
      %cst_20 = arith.constant 0.000000e+00 : f32
      %24 = vector.broadcast %cst_20 : f32 to vector<16x1024xf32>
      %25 = arith.maximumf %23, %24 : vector<16x1024xf32>
      %26 = arith.truncf %25 : vector<16x1024xf32> to vector<16x1024xbf16>
      %c0_21 = arith.constant 0 : index
      %c0_22 = arith.constant 0 : index
      %27 = vector.load %arg7[%c0_21, %c0_22] : memref<1024x512xbf16, #tpu.memory_space<vmem>>, vector<1024x512xbf16>
      %cst_23 = arith.constant dense<0.000000e+00> : vector<16x512xf32>
      %28 = tpu.matmul %26, %27, %cst_23 {dimension_numbers = #tpu.dot_dimension_numbers<[1], [0], [0], [1], [0, 0, 1, 1], [], []>} : vector<16x1024xbf16>, vector<1024x512xbf16>, vector<16x512xf32> -> vector<16x512xf32>
      %c0_24 = arith.constant 0 : index
      %c0_25 = arith.constant 0 : index
      %29 = vector.load %arg8[%c0_24, %c0_25] : memref<1x512xf32, #tpu.memory_space<vmem>>, vector<1x512xf32>
      %30 = vector.broadcast %29 : vector<1x512xf32> to vector<16x512xf32>
      %31 = arith.addf %28, %30 : vector<16x512xf32>
      %c0_26 = arith.constant 0 : index
      %c0_27 = arith.constant 0 : index
      %32 = vector.load %arg9[%c0_26, %c0_27] : memref<16x512xf32, #tpu.memory_space<vmem>>, vector<16x512xf32>
      tpu.vector_store %arg9[%c0_26, %c0_27], %31 {strides = array<i32>} : memref<16x512xf32, #tpu.memory_space<vmem>>, vector<16x512xf32>,
    } else {
    }
    return
  }
  func.func @transform_0(%arg0: i32, %arg1: i32) -> (i32, i32) {
    %c0_i32 = arith.constant 0 : i32
    return %arg0, %arg1 : i32, i32
  }
  func.func @transform_1(%arg0: i32, %arg1: i32) -> (i32, i32) {
    %c0_i32 = arith.constant 0 : i32
    %c0_i32_0 = arith.constant 0 : i32
    return %arg1, %c0_i32 : i32, i32
  }
  func.func @transform_2(%arg0: i32, %arg1: i32) -> (i32, i32) {
    %c0_i32 = arith.constant 0 : i32
    %c0_i32_0 = arith.constant 0 : i32
    %c0_i32_1 = arith.constant 0 : i32
    return %c0_i32, %c0_i32_0 : i32, i32
  }
  func.func @transform_3(%arg0: i32, %arg1: i32) -> (i32, i32) {
    %c0_i32 = arith.constant 0 : i32
    %c0_i32_0 = arith.constant 0 : i32
    %c0_i32_1 = arith.constant 0 : i32
    return %c0_i32, %c0_i32_0 : i32, i32
  }
  func.func @transform_4(%arg0: i32, %arg1: i32) -> (i32, i32) {
    %c0_i32 = arith.constant 0 : i32
    %c0_i32_0 = arith.constant 0 : i32
    %c0_i32_1 = arith.constant 0 : i32
    return %c0_i32, %c0_i32_0 : i32, i32
  }
  func.func @transform_5(%arg0: i32, %arg1: i32) -> (i32, i32) {
    %c0_i32 = arith.constant 0 : i32
    %c0_i32_0 = arith.constant 0 : i32
    %c0_i32_1 = arith.constant 0 : i32
    return %c0_i32, %c0_i32_0 : i32, i32
  }
  func.func @transform_6(%arg0: i32, %arg1: i32) -> (i32, i32) {
    %c0_i32 = arith.constant 0 : i32
    %c0_i32_0 = arith.constant 0 : i32
    %c0_i32_1 = arith.constant 0 : i32
    return %c0_i32, %c0_i32_0 : i32, i32
  }
  func.func @transform_7(%arg0: i32, %arg1: i32) -> (i32, i32) {
    %c0_i32 = arith.constant 0 : i32
    %c0_i32_0 = arith.constant 0 : i32
    return %arg0, %c0_i32 : i32, i32
  }
}

</mosaic_0001>

<bundles_post_ra>
// kernel: _lambda_.1
= control target key start
LH: loop header
LB: loop body
LE: loop exit
PB: predicated region body
PF: predicated region fallthrough
CT: control target
= control target key end

     0   :  { %12 = vsyncpa [#allocation4], 0  ;;  %s19058_s0 = inlined_call_operand.vmem [shape: bf16[16,768], index: 0, kind: input, shape index: {}]   ;;  %s19059_s1 = inlined_call_operand.hbm [shape: bf16[768,2048], index: 1, kind: input, shape index: {}]   ;;  %s19060_s2 = inlined_call_operand.hbm [shape: f32[1,2048], index: 2, kind: input, shape index: {}]   ;;  %s19061_s3 = inlined_call_operand.hbm [shape: bf16[2048,1024], index: 3, kind: input, shape index: {}]   ;;  %s19062_s4 = inlined_call_operand.hbm [shape: f32[1,1024], index: 4, kind: input, shape index: {}]   ;;  %s19063_s5 = inlined_call_operand.hbm [shape: bf16[1024,512], index: 5, kind: input, shape index: {}]   ;;  %s19064_s6 = inlined_call_operand.hbm [shape: f32[1,512], index: 6, kind: input, shape index: {}]   ;;  %s19065_s7 = inlined_call_operand.vmem [shape: f32[16,512], index: 7, kind: output, shape index: {}]  }
   0x1   :  { %13 = vsyncpa [#allocation6], 0 }
   0x2   :  { %14 = vsyncpa [#allocation9], 0 }
   0x3   :  { %15 = vsyncpa [#allocation12], 0  ;;  %s18225_s24 = smov [#allocation5]   ;;  %s18226_s26 = smov [#allocation8]  }
   0x4   :  { %s36_s25 = sshll.u32 %s18225_s24, 4  ;;  %s58_s27 = sshll.u32 %s18226_s26, 4  ;;  %s37_s25 = int_to_ptr.vmem [resolvable:$true] %s36_s25  ;;  %s59_s27 = int_to_ptr.vmem [resolvable:$true] %s58_s27 }
   0x5   :  { %s18105_s28 = scalar_lea.vmem %s37_s25, 256  ;;  %p18110_p1 = scmp.lt.s32.totalorder %s37_s25, %s37_s25 }
   0x6   :  { %p18106_p0 = scmp.ne.s32.totalorder %s37_s25, %s18105_s28  ;;  %p18111_p2 = scmp.lt.s32.totalorder %s18105_s28, %s18105_s28 }
   0x8   :  { %p18112_p3 = por %p18111_p2, %p18110_p1 }
   0xa   :  { %p18113_p4 = pnand %p18112_p3, %p18106_p0 }
   0xc   :  { %18116 = shalt.err (!%p18113_p4)
}
   0xd   :  { %39 = dma.hbm_to_vmem [thread:$0]  %s19060_s2, 256, %s37_s25, [#allocation6]  }
   0xe   :  { %s18125_s8 = scalar_lea.vmem %s59_s27, 128  ;;  %p18130_p6 = scmp.lt.s32.totalorder %s59_s27, %s59_s27 }
   0xf   :  { %p18126_p5 = scmp.ne.s32.totalorder %s59_s27, %s18125_s8  ;;  %p18131_p7 = scmp.lt.s32.totalorder %s18125_s8, %s18125_s8 }
  0x11   :  { %p18132_p8 = por %p18131_p7, %p18130_p6 }
  0x13   :  { %p18133_p9 = pnand %p18132_p8, %p18126_p5 }
  0x15   :  { %18136 = shalt.err (!%p18133_p9)
}
  0x16   :  { %61 = dma.hbm_to_vmem [thread:$0]  %s19062_s4, 128, %s59_s27, [#allocation9]  }
  0x17   :  { %s18227_s11 = smov [#allocation3]  }
  0x18   :  { %s23_s12 = sshll.u32 %s18227_s11, 4  ;;  %s24_s12 = int_to_ptr.vmem [resolvable:$true] %s23_s12 }
  0x19   :  { %s18145_s13 = scalar_lea.vmem %s24_s12, 98304  ;;  %p18150_p11 = scmp.lt.s32.totalorder %s24_s12, %s24_s12 }
  0x1a   :  { %p18146_p10 = scmp.ne.s32.totalorder %s24_s12, %s18145_s13  ;;  %p18151_p12 = scmp.lt.s32.totalorder %s18145_s13, %s18145_s13 }
  0x1c   :  { %p18152_p13 = por %p18151_p12, %p18150_p11 }
  0x1e   :  { %p18153_p0 = pnand %p18152_p13, %p18146_p10 }
  0x20   :  { %18156 = shalt.err (!%p18153_p0)
}
  0x21   :  { %s18228_s2 = smov 1024   ;;  %s18229_s14 = smov 64  }
  0x22   :  { %29 = dma.hbm_to_vmem [thread:$0]  %s19059_s1, 98304, %s24_s12, [#allocation4], %s18228_s2, %s18228_s2, %s18229_s14  }
  0x23   :  { %s18230_s17 = smov [#allocation7]  }
  0x24   :  { %s45_s18 = sshll.u32 %s18230_s17, 4  ;;  %s46_s18 = int_to_ptr.vmem [resolvable:$true] %s45_s18 }
  0x25   :  { %s18165_s4 = scalar_lea.vmem %s46_s18, 131072  ;;  %p18170_p2 = scmp.lt.s32.totalorder %s46_s18, %s46_s18 }
  0x26   :  { %p18166_p1 = scmp.ne.s32.totalorder %s46_s18, %s18165_s4  ;;  %p18171_p3 = scmp.lt.s32.totalorder %s18165_s4, %s18165_s4 }
  0x28   :  { %p18172_p4 = por %p18171_p3, %p18170_p2 }
  0x2a   :  { %p18173_p5 = pnand %p18172_p4, %p18166_p1 }
  0x2c   :  { %18176 = shalt.err (!%p18173_p5)
}
  0x2d   :  { %s18231_s19 = smov 512   ;;  %s18232_s20 = smov 32  }
  0x2e   :  { %51 = dma.hbm_to_vmem [thread:$0]  %s19061_s3, 131072, %s46_s18, [#allocation6], %s18231_s19, %s18231_s19, %s18232_s20  }
  0x2f   :  { %s18233_s23 = smov [#allocation10]  }
  0x30   :  { %s67_s24 = sshll.u32 %s18233_s23, 4  ;;  %s68_s24 = int_to_ptr.vmem [resolvable:$true] %s67_s24 }
  0x31   :  { %s18185_s1 = scalar_lea.vmem %s68_s24, 32768  ;;  %p18190_p7 = scmp.lt.s32.totalorder %s68_s24, %s68_s24 }
  0x32   :  { %p18186_p6 = scmp.ne.s32.totalorder %s68_s24, %s18185_s1  ;;  %p18191_p8 = scmp.lt.s32.totalorder %s18185_s1, %s18185_s1 }
  0x34   :  { %p18192_p9 = por %p18191_p8, %p18190_p7 }
  0x36   :  { %p18193_p10 = pnand %p18192_p9, %p18186_p6 }
  0x38   :  { %18196 = shalt.err (!%p18193_p10)
}
  0x39   :  { %s18234_s25 = smov 256   ;;  %s18235_s26 = smov 16  }
  0x3a   :  { %73 = dma.hbm_to_vmem [thread:$0]  %s19063_s5, 32768, %s68_s24, [#allocation9], %s18234_s25, %s18234_s25, %s18235_s26  }
  0x3b   :  { %s18236_s29 = smov [#allocation11]  }
  0x3c   :  { %s80_s30 = sshll.u32 %s18236_s29, 4  ;;  %s81_s30 = int_to_ptr.vmem [resolvable:$true] %s80_s30 }
  0x3d   :  { %s18205_s3 = scalar_lea.vmem %s81_s30, 64  ;;  %p18210_p12 = scmp.lt.s32.totalorder %s81_s30, %s81_s30 }
  0x3e   :  { %p18206_p11 = scmp.ne.s32.totalorder %s81_s30, %s18205_s3  ;;  %p18211_p13 = scmp.lt.s32.totalorder %s18205_s3, %s18205_s3 }
  0x40   :  { %p18212_p0 = por %p18211_p13, %p18210_p12 }
  0x42   :  { %p18213_p1 = pnand %p18212_p0, %p18206_p11 }
  0x44   :  { %18216 = shalt.err (!%p18213_p1)
}
  0x45   :  { %83 = dma.hbm_to_vmem [thread:$0]  %s19064_s6, 64, %s81_s30, [#allocation12]  }
  0x46   :  { %18217 = dma.done.wait [#allocation4], 98304  }
  0x47   :  { %18218 = vsyncadd [#allocation4], 4294868992 }
  0x48   :  { %18219 = dma.done.wait [#allocation6], 131328  }
  0x49   :  { %18220 = vsyncadd [#allocation6], 4294835968 }
  0x4a   :  { %18221 = dma.done.wait [#allocation9], 32896  }
  0x4b   :  { %18222 = vsyncadd [#allocation9], 4294934400 }
  0x4c   :  { %18223 = dma.done.wait [#allocation12], 64  }
  0x4d   :  { %18224 = vsyncadd [#allocation12], 4294967232  ;;  %v288_v0 = vld [vmem:[#allocation3 + $0x380] sm:$0xff] }
  0x4e   :  { %v296_v1 = vld [vmem:[#allocation3 + $0x3c0] sm:$0xff] }
  0x4f   :  { %v544_v2 = vld [vmem:[#allocation3 + $0xb80] sm:$0xff]  ;;  %v15732_v3 = vcombine.high %v288_v0, %v296_v1  ;;  %v15731_v5 = vcombine.low %v288_v0, %v296_v1 }
  0x50   :  { %v552_v4 = vld [vmem:[#allocation3 + $0xbc0] sm:$0xff] }
  0x51   :  { %v272_v6 = vld [vmem:[#allocation3 + $0x300] sm:$0xff]  ;;  %v15988_v8 = vcombine.high %v544_v2, %v552_v4  ;;  %v15987_v9 = vcombine.low %v544_v2, %v552_v4  ;;  %4814 = vmatprep.subr.bf16.mxu0 %v15732_v3 }
  0x52   :  { %v280_v7 = vld [vmem:[#allocation3 + $0x340] sm:$0xff]  ;;  %4815 = vmatpush1.bf16.msra.mxu0 %v15731_v5 }
  0x53   :  { %v15716_v10 = vcombine.high %v272_v6, %v280_v7  ;;  %v528_v11 = vld [vmem:[#allocation3 + $0xb00] sm:$0xff]  ;;  %4857 = vmatprep.subr.bf16.mxu1 %v15988_v8  ;;  %v15715_v18 = vcombine.low %v272_v6, %v280_v7 }
  0x54   :  { %v536_v12 = vld [vmem:[#allocation3 + $0xb40] sm:$0xff]  ;;  %4858 = vmatpush1.bf16.msra.mxu1 %v15987_v9 }
  0x55   :  { %v256_v13 = vld [vmem:[#allocation3 + $0x280] sm:$0xff]  ;;  %v15972_v14 = vcombine.high %v528_v11, %v536_v12  ;;  %4816 = vmatprep.subr.bf16.mxu0 %v15716_v10  ;;  %v15971_v19 = vcombine.low %v528_v11, %v536_v12 }
  0x56   :  { %v264_v15 = vld [vmem:[#allocation3 + $0x2c0] sm:$0xff]  ;;  %4817 = vmatpush1.bf16.msra.mxu0 %v15715_v18 }
  0x57   :  { %v512_v16 = vld [vmem:[#allocation3 + $0xa80] sm:$0xff]  ;;  %v15700_v20 = vcombine.high %v256_v13, %v264_v15  ;;  %4859 = vmatprep.subr.bf16.mxu1 %v15972_v14  ;;  %v15699_v26 = vcombine.low %v256_v13, %v264_v15 }
  0x58   :  { %v520_v17 = vld [vmem:[#allocation3 + $0xac0] sm:$0xff]  ;;  %4860 = vmatpush1.bf16.msra.mxu1 %v15971_v19 }
  0x59   :  { %v15956_v21 = vcombine.high %v512_v16, %v520_v17  ;;  %v240_v22 = vld [vmem:[#allocation3 + $0x200] sm:$0xff]  ;;  %4818 = vmatprep.subr.bf16.mxu0 %v15700_v20  ;;  %v15955_v27 = vcombine.low %v512_v16, %v520_v17 }
  0x5a   :  { %v248_v23 = vld [vmem:[#allocation3 + $0x240] sm:$0xff]  ;;  %4819 = vmatpush1.bf16.msra.mxu0 %v15699_v26 }
  0x5b   :  { %v496_v24 = vld [vmem:[#allocation3 + $0xa00] sm:$0xff]  ;;  %v15684_v28 = vcombine.high %v240_v22, %v248_v23  ;;  %4861 = vmatprep.subr.bf16.mxu1 %v15956_v21  ;;  %v15683_v34 = vcombine.low %v240_v22, %v248_v23 }
  0x5c   :  { %v504_v25 = vld [vmem:[#allocation3 + $0xa40] sm:$0xff]  ;;  %4862 = vmatpush1.bf16.msra.mxu1 %v15955_v27 }
  0x5d   :  { %v15940_v29 = vcombine.high %v496_v24, %v504_v25  ;;  %v224_v30 = vld [vmem:[#allocation3 + $0x180] sm:$0xff]  ;;  %4820 = vmatprep.subr.bf16.mxu0 %v15684_v28  ;;  %v15939_v35 = vcombine.low %v496_v24, %v504_v25 }
  0x5e   :  { %v232_v31 = vld [vmem:[#allocation3 + $0x1c0] sm:$0xff]  ;;  %4821 = vmatpush1.bf16.msra.mxu0 %v15683_v34 }
  0x5f   :  { %v480_v32 = vld [vmem:[#allocation3 + $0x980] sm:$0xff]  ;;  %v15668_v36 = vcombine.high %v224_v30, %v232_v31  ;;  %4863 = vmatprep.subr.bf16.mxu1 %v15940_v29  ;;  %v15667_v42 = vcombine.low %v224_v30, %v232_v31 }
  0x60   :  { %v488_v33 = vld [vmem:[#allocation3 + $0x9c0] sm:$0xff]  ;;  %4864 = vmatpush1.bf16.msra.mxu1 %v15939_v35 }
  0x61   :  { %v15924_v37 = vcombine.high %v480_v32, %v488_v33  ;;  %v208_v38 = vld [vmem:[#allocation3 + $0x100] sm:$0xff]  ;;  %4822 = vmatprep.subr.bf16.mxu0 %v15668_v36  ;;  %v15923_v43 = vcombine.low %v480_v32, %v488_v33 }
  0x62   :  { %v216_v39 = vld [vmem:[#allocation3 + $0x140] sm:$0xff]  ;;  %4823 = vmatpush1.bf16.msra.mxu0 %v15667_v42 }
  0x63   :  { %v464_v40 = vld [vmem:[#allocation3 + $0x900] sm:$0xff]  ;;  %v15652_v44 = vcombine.high %v208_v38, %v216_v39  ;;  %4865 = vmatprep.subr.bf16.mxu1 %v15924_v37  ;;  %v15651_v50 = vcombine.low %v208_v38, %v216_v39 }
  0x64   :  { %v472_v41 = vld [vmem:[#allocation3 + $0x940] sm:$0xff]  ;;  %4866 = vmatpush1.bf16.msra.mxu1 %v15923_v43 }
  0x65   :  { %v15908_v45 = vcombine.high %v464_v40, %v472_v41  ;;  %v192_v46 = vld [vmem:[#allocation3 + $0x80] sm:$0xff]  ;;  %4824 = vmatprep.subr.bf16.mxu0 %v15652_v44  ;;  %v15907_v52 = vcombine.low %v464_v40, %v472_v41 }
  0x66   :  { %v200_v47 = vld [vmem:[#allocation3 + $0xc0] sm:$0xff]  ;;  %4825 = vmatpush1.bf16.msra.mxu0 %v15651_v50 }
  0x67   :  { %v448_v48 = vld [vmem:[#allocation3 + $0x880] sm:$0xff]  ;;  %v15636_v53 = vcombine.high %v192_v46, %v200_v47  ;;  %4867 = vmatprep.subr.bf16.mxu1 %v15908_v45  ;;  %v15635_v60 = vcombine.low %v192_v46, %v200_v47 }
  0x68   :  { %v456_v49 = vld [vmem:[#allocation3 + $0x8c0] sm:$0xff]  ;;  %4868 = vmatpush1.bf16.msra.mxu1 %v15907_v52 }
  0x69   :  { %v176_v51 = vld [vmem:[#allocation3] sm:$0xff]  ;;  %v15892_v55 = vcombine.high %v448_v48, %v456_v49  ;;  %4826 = vmatprep.subr.bf16.mxu0 %v15636_v53  ;;  %v15891_v61 = vcombine.low %v448_v48, %v456_v49 }
  0x6a   :  { %v184_v54 = vld [vmem:[#allocation3 + $0x40] sm:$0xff]  ;;  %4827 = vmatpush1.bf16.msra.mxu0 %v15635_v60 }
  0x6b   :  { %v18298_v56 = vld [vmem:[%s19058_s0 + $0x4] ss:$24 sps:$4 sm:$0xff]   ;;  %v15620_v62 = vcombine.high %v176_v51, %v184_v54  ;;  %4869 = vmatprep.subr.bf16.mxu1 %v15892_v55  ;;  %v15619_v4 = vcombine.low %v176_v51, %v184_v54 }
  0x6c   :  { %v432_v57 = vld [vmem:[#allocation3 + $0x800] sm:$0xff]  ;;  %4846 = vmatprep.mubr.bf16.mxu0 %v18298_v56  ;;  %4870 = vmatpush1.bf16.msra.mxu1 %v15891_v61 }
  0x6d   :  { %v440_v58 = vld [vmem:[#allocation3 + $0x840] sm:$0xff]  ;;  %4828 = vmatprep.subr.bf16.mxu0 %v15620_v62 }
  0x6e   :  { %v18303_v59 = vld [vmem:[%s19058_s0 + $0xc] ss:$24 sps:$4 sm:$0xff]   ;;  %v15876_v63 = vcombine.high %v432_v57, %v440_v58  ;;  %v15875_v5 = vcombine.low %v432_v57, %v440_v58  ;;  %4829 = vmatpush1.bf16.msra.mxu0 %v15619_v4 }
  0x6f   :  { %v416_v0 = vld [vmem:[#allocation3 + $0x780] sm:$0xff]  ;;  %4889 = vmatprep.mubr.bf16.mxu1 %v18303_v59  ;;  %v289_v4 = vld [vmem:[#allocation3 + $0x388] sm:$0xff] }
  0x70   :  { %v424_v1 = vld [vmem:[#allocation3 + $0x7c0] sm:$0xff]  ;;  %4871 = vmatprep.subr.bf16.mxu1 %v15876_v63 }
  0x71   :  { %v672_v2 = vld [vmem:[#allocation3 + $0xf80] sm:$0xff]  ;;  %v15860_v6 = vcombine.high %v416_v0, %v424_v1  ;;  %v15859_v12 = vcombine.low %v416_v0, %v424_v1  ;;  %4872 = vmatpush1.bf16.msra.mxu1 %v15875_v5  ;;  %v297_v5 = vld [vmem:[#allocation3 + $0x3c8] sm:$0xff] }
  0x72   :  { %v680_v3 = vld [vmem:[#allocation3 + $0xfc0] sm:$0xff] }
  0x73   :  { %v16116_v7 = vcombine.high %v672_v2, %v680_v3  ;;  %v400_v8 = vld [vmem:[#allocation3 + $0x700] sm:$0xff]  ;;  %4830 = vmatprep.subr.bf16.mxu0 %v15860_v6  ;;  %v16115_v13 = vcombine.low %v672_v2, %v680_v3 }
  0x74   :  { %v408_v9 = vld [vmem:[#allocation3 + $0x740] sm:$0xff]  ;;  %4831 = vmatpush2.bf16.msra.mxu0 %v15859_v12 }
  0x75   :  { %v656_v10 = vld [vmem:[#allocation3 + $0xf00] sm:$0xff]  ;;  %v15844_v14 = vcombine.high %v400_v8, %v408_v9  ;;  %4873 = vmatprep.subr.bf16.mxu1 %v16116_v7  ;;  %v15843_v20 = vcombine.low %v400_v8, %v408_v9  ;;  %v15734_v9 = vcombine.high %v289_v4, %v297_v5 }
  0x76   :  { %v664_v11 = vld [vmem:[#allocation3 + $0xf40] sm:$0xff]  ;;  %4874 = vmatpush2.bf16.msra.mxu1 %v16115_v13  ;;  %v273_v13 = vld [vmem:[#allocation3 + $0x308] sm:$0xff] }
  0x77   :  { %v16100_v15 = vcombine.high %v656_v10, %v664_v11  ;;  %v384_v16 = vld [vmem:[#allocation3 + $0x680] sm:$0xff]  ;;  %4832 = vmatprep.subr.bf16.mxu0 %v15844_v14  ;;  %v16099_v21 = vcombine.low %v656_v10, %v664_v11  ;;  %v281_v14 = vld [vmem:[#allocation3 + $0x348] sm:$0xff] }
  0x78   :  { %v392_v17 = vld [vmem:[#allocation3 + $0x6c0] sm:$0xff]  ;;  %4833 = vmatpush2.bf16.msra.mxu0 %v15843_v20 }
  0x79   :  { %v640_v18 = vld [vmem:[#allocation3 + $0xe80] sm:$0xff]  ;;  %v15828_v22 = vcombine.high %v384_v16, %v392_v17  ;;  %4875 = vmatprep.subr.bf16.mxu1 %v16100_v15  ;;  %v15827_v28 = vcombine.low %v384_v16, %v392_v17  ;;  %v15733_v17 = vcombine.low %v289_v4, %v297_v5 }
  0x7a   :  { %v648_v19 = vld [vmem:[#allocation3 + $0xec0] sm:$0xff]  ;;  %4876 = vmatpush2.bf16.msra.mxu1 %v16099_v21 }
  0x7b   :  { %v16084_v23 = vcombine.high %v640_v18, %v648_v19  ;;  %v368_v24 = vld [vmem:[#allocation3 + $0x600] sm:$0xff]  ;;  %4834 = vmatprep.subr.bf16.mxu0 %v15828_v22  ;;  %v16083_v29 = vcombine.low %v640_v18, %v648_v19  ;;  %v15718_v19 = vcombine.high %v273_v13, %v281_v14  ;;  %v18318_v22 = vld [vmem:[%s19058_s0 + $0x14] ss:$24 sps:$4 sm:$0xff]  }
  0x7c   :  { %v376_v25 = vld [vmem:[#allocation3 + $0x640] sm:$0xff]  ;;  %4835 = vmatpush2.bf16.msra.mxu0 %v15827_v28 }
  0x7d   :  { %v624_v26 = vld [vmem:[#allocation3 + $0xe00] sm:$0xff]  ;;  %v15812_v30 = vcombine.high %v368_v24, %v376_v25  ;;  %4877 = vmatprep.subr.bf16.mxu1 %v16084_v23  ;;  %v15811_v36 = vcombine.low %v368_v24, %v376_v25  ;;  %v257_v23 = vld [vmem:[#allocation3 + $0x288] sm:$0xff] }
  0x7e   :  { %v632_v27 = vld [vmem:[#allocation3 + $0xe40] sm:$0xff]  ;;  %4878 = vmatpush2.bf16.msra.mxu1 %v16083_v29  ;;  %v265_v24 = vld [vmem:[#allocation3 + $0x2c8] sm:$0xff] }
  0x7f   :  { %v16068_v31 = vcombine.high %v624_v26, %v632_v27  ;;  %v352_v32 = vld [vmem:[#allocation3 + $0x580] sm:$0xff]  ;;  %4836 = vmatprep.subr.bf16.mxu0 %v15812_v30  ;;  %v16067_v37 = vcombine.low %v624_v26, %v632_v27  ;;  %v15717_v26 = vcombine.low %v273_v13, %v281_v14  ;;  %v15702_v30 = vcombine.high %v257_v23, %v265_v24 }
  0x80   :  { %v360_v33 = vld [vmem:[#allocation3 + $0x5c0] sm:$0xff]  ;;  %4837 = vmatpush2.bf16.msra.mxu0 %v15811_v36 }
  0x81   :  { %v608_v34 = vld [vmem:[#allocation3 + $0xd80] sm:$0xff]  ;;  %v15796_v38 = vcombine.high %v352_v32, %v360_v33  ;;  %4879 = vmatprep.subr.bf16.mxu1 %v16068_v31  ;;  %v15795_v44 = vcombine.low %v352_v32, %v360_v33  ;;  %v241_v31 = vld [vmem:[#allocation3 + $0x208] sm:$0xff] }
  0x82   :  { %v616_v35 = vld [vmem:[#allocation3 + $0xdc0] sm:$0xff]  ;;  %4880 = vmatpush2.bf16.msra.mxu1 %v16067_v37  ;;  %v249_v32 = vld [vmem:[#allocation3 + $0x248] sm:$0xff] }
  0x83   :  { %v16052_v39 = vcombine.high %v608_v34, %v616_v35  ;;  %v336_v40 = vld [vmem:[#allocation3 + $0x500] sm:$0xff]  ;;  %4838 = vmatprep.subr.bf16.mxu0 %v15796_v38  ;;  %v16051_v45 = vcombine.low %v608_v34, %v616_v35  ;;  %v15701_v34 = vcombine.low %v257_v23, %v265_v24  ;;  %v225_v38 = vld [vmem:[#allocation3 + $0x188] sm:$0xff] }
  0x84   :  { %v344_v41 = vld [vmem:[#allocation3 + $0x540] sm:$0xff]  ;;  %4839 = vmatpush2.bf16.msra.mxu0 %v15795_v44 }
  0x85   :  { %v592_v42 = vld [vmem:[#allocation3 + $0xd00] sm:$0xff]  ;;  %v15780_v46 = vcombine.high %v336_v40, %v344_v41  ;;  %4881 = vmatprep.subr.bf16.mxu1 %v16052_v39  ;;  %v15779_v52 = vcombine.low %v336_v40, %v344_v41  ;;  %v15686_v39 = vcombine.high %v241_v31, %v249_v32  ;;  %v233_v40 = vld [vmem:[#allocation3 + $0x1c8] sm:$0xff] }
  0x86   :  { %v600_v43 = vld [vmem:[#allocation3 + $0xd40] sm:$0xff]  ;;  %4882 = vmatpush2.bf16.msra.mxu1 %v16051_v45  ;;  %v209_v45 = vld [vmem:[#allocation3 + $0x108] sm:$0xff] }
  0x87   :  { %v16036_v47 = vcombine.high %v592_v42, %v600_v43  ;;  %v320_v48 = vld [vmem:[#allocation3 + $0x480] sm:$0xff]  ;;  %4840 = vmatprep.subr.bf16.mxu0 %v15780_v46  ;;  %v16035_v53 = vcombine.low %v592_v42, %v600_v43  ;;  %v15685_v42 = vcombine.low %v241_v31, %v249_v32  ;;  %v15670_v46 = vcombine.high %v225_v38, %v233_v40 }
  0x88   :  { %v328_v49 = vld [vmem:[#allocation3 + $0x4c0] sm:$0xff]  ;;  %4841 = vmatpush2.bf16.msra.mxu0 %v15779_v52 }
  0x89   :  { %v576_v50 = vld [vmem:[#allocation3 + $0xc80] sm:$0xff]  ;;  %v15764_v54 = vcombine.high %v320_v48, %v328_v49  ;;  %4883 = vmatprep.subr.bf16.mxu1 %v16036_v47  ;;  %v15763_v62 = vcombine.low %v320_v48, %v328_v49  ;;  %v217_v47 = vld [vmem:[#allocation3 + $0x148] sm:$0xff]  ;;  %v15669_v49 = vcombine.low %v225_v38, %v233_v40 }
  0x8a   :  { %v584_v51 = vld [vmem:[#allocation3 + $0xcc0] sm:$0xff]  ;;  %4884 = vmatpush2.bf16.msra.mxu1 %v16035_v53  ;;  %v193_v53 = vld [vmem:[#allocation3 + $0x88] sm:$0xff] }
  0x8b   :  { %v16020_v55 = vcombine.high %v576_v50, %v584_v51  ;;  %v304_v57 = vld [vmem:[#allocation3 + $0x400] sm:$0xff]  ;;  %4842 = vmatprep.subr.bf16.mxu0 %v15764_v54  ;;  %v16019_v63 = vcombine.low %v576_v50, %v584_v51  ;;  %v15654_v54 = vcombine.high %v209_v45, %v217_v47 }
  0x8c   :  { %v312_v58 = vld [vmem:[#allocation3 + $0x440] sm:$0xff]  ;;  %4843 = vmatpush2.bf16.msra.mxu0 %v15763_v62 }
  0x8d   :  { %v560_v60 = vld [vmem:[#allocation3 + $0xc00] sm:$0xff]  ;;  %v15748_v0 = vcombine.high %v304_v57, %v312_v58  ;;  %4885 = vmatprep.subr.bf16.mxu1 %v16020_v55  ;;  %v15747_v6 = vcombine.low %v304_v57, %v312_v58  ;;  %v201_v55 = vld [vmem:[#allocation3 + $0xc8] sm:$0xff]  ;;  %v15653_v58 = vcombine.low %v209_v45, %v217_v47 }
  0x8e   :  { %v568_v61 = vld [vmem:[#allocation3 + $0xc40] sm:$0xff]  ;;  %4886 = vmatpush2.bf16.msra.mxu1 %v16019_v63  ;;  %v177_v63 = vld [vmem:[#allocation3 + $0x8] sm:$0xff] }
  0x8f   :  { %v16004_v1 = vcombine.high %v560_v60, %v568_v61  ;;  %v800_v2 = vld [vmem:[#allocation3 + $0x1380] sm:$0xff]  ;;  %4844 = vmatprep.subr.bf16.mxu0 %v15748_v0  ;;  %v16003_v7 = vcombine.low %v560_v60, %v568_v61  ;;  %v15638_v0 = vcombine.high %v193_v53, %v201_v55 }
  0x90   :  { %v808_v3 = vld [vmem:[#allocation3 + $0x13c0] sm:$0xff]  ;;  %4845 = vmatpush2.bf16.msra.mxu0 %v15747_v6 }
  0x91   :  { %v16244_v8 = vcombine.high %v800_v2, %v808_v3  ;;  %4887 = vmatprep.subr.bf16.mxu1 %v16004_v1  ;;  %v784_v10 = vld [vmem:[#allocation3 + $0x1300] sm:$0xff]  ;;  %v16243_v16 = vcombine.low %v800_v2, %v808_v3  ;;  %v185_v1 = vld [vmem:[#allocation3 + $0x48] sm:$0xff]  ;;  %v15637_v3 = vcombine.low %v193_v53, %v201_v55 }
  0x92   :  { %v792_v11 = vld [vmem:[#allocation3 + $0x1340] sm:$0xff]  ;;  %4888 = vmatpush2.bf16.msra.mxu1 %v16003_v7  ;;  %v417_v7 = vld [vmem:[#allocation3 + $0x788] sm:$0xff] }
  0x93   :  { %v18310_v12 = vld [vmem:[%s19058_s0] ss:$24 sps:$4 sm:$0xff]   ;;  %4900 = vmatprep.subr.bf16.mxu0 %v16244_v8  ;;  %v16228_v18 = vcombine.high %v784_v10, %v792_v11  ;;  %4943 = vmatprep.subr.bf16.mxu1 %v15734_v9  ;;  %v16227_v25 = vcombine.low %v784_v10, %v792_v11  ;;  %v15622_v8 = vcombine.high %v177_v63, %v185_v1  ;;  %v425_v9 = vld [vmem:[#allocation3 + $0x7c8] sm:$0xff] }
  0x94   :  { %v17684_v15 = vld [vmem:[%s19058_s0 + $0x8] ss:$24 sps:$4 sm:$0xff]   ;;  %4847 = vmatmul.mubr.bf16.vlgmr.msra.gmra.mxu0 %v18310_v12  ;;  %v15621_v11 = vcombine.low %v177_v63, %v185_v1 }
  0x95   :  { %v768_v20 = vld [vmem:[#allocation3 + $0x1280] sm:$0xff]  ;;  %4890 = vmatmul.mubr.bf16.vlgmr.msra.gmra.mxu1 %v17684_v15  ;;  %4901 = vmatpush1.bf16.msra.mxu0 %v16243_v16  ;;  %v401_v16 = vld [vmem:[#allocation3 + $0x708] sm:$0xff] }
  0x96   :  { %v776_v21 = vld [vmem:[#allocation3 + $0x12c0] sm:$0xff]  ;;  %4944 = vmatpush1.bf16.msra.mxu1 %v15733_v17  ;;  %4902 = vmatprep.subr.bf16.mxu0 %v16228_v18  ;;  %v15862_v17 = vcombine.high %v417_v7, %v425_v9  ;;  %v409_v18 = vld [vmem:[#allocation3 + $0x748] sm:$0xff] }
  0x97   :  { %v16212_v27 = vcombine.high %v768_v20, %v776_v21  ;;  %v752_v28 = vld [vmem:[#allocation3 + $0x1200] sm:$0xff]  ;;  %4945 = vmatprep.subr.bf16.mxu1 %v15718_v19  ;;  %4932 = vmatprep.mubr.bf16.mxu0 %v18318_v22  ;;  %v16211_v33 = vcombine.low %v768_v20, %v776_v21  ;;  %v15861_v20 = vcombine.low %v417_v7, %v425_v9  ;;  %v553_v9 = vld [vmem:[#allocation3 + $0xbc8] sm:$0xff] }
  0x98   :  { %v760_v29 = vld [vmem:[#allocation3 + $0x1240] sm:$0xff]  ;;  %4975 = vmatprep.mubr.bf16.mxu1 %v18298_v56 }
  0x99   :  { %4903 = vmatpush1.bf16.msra.mxu0 %v16227_v25  ;;  %v16196_v35 = vcombine.high %v752_v28, %v760_v29  ;;  %v736_v36 = vld [vmem:[#allocation3 + $0x1180] sm:$0xff]  ;;  %v16195_v41 = vcombine.low %v752_v28, %v760_v29  ;;  %v385_v25 = vld [vmem:[#allocation3 + $0x688] sm:$0xff]  ;;  %v15845_v29 = vcombine.low %v401_v16, %v409_v18 }
  0x9a   :  { %4946 = vmatpush1.bf16.msra.mxu1 %v15717_v26  ;;  %4904 = vmatprep.subr.bf16.mxu0 %v16212_v27  ;;  %v744_v37 = vld [vmem:[#allocation3 + $0x11c0] sm:$0xff]  ;;  %v15846_v26 = vcombine.high %v401_v16, %v409_v18  ;;  %v393_v27 = vld [vmem:[#allocation3 + $0x6c8] sm:$0xff] }
  0x9b   :  { %4947 = vmatprep.subr.bf16.mxu1 %v15702_v30  ;;  %v16180_v43 = vcombine.high %v736_v36, %v744_v37  ;;  %v720_v44 = vld [vmem:[#allocation3 + $0x1100] sm:$0xff]  ;;  %v16179_v48 = vcombine.low %v736_v36, %v744_v37  ;;  %v15829_v37 = vcombine.low %v385_v25, %v393_v27  ;;  %v18326_v16 = vld [vmem:[%s19058_s0 + $0x10] ss:$24 sps:$4 sm:$0xff]  }
  0x9c   :  { %v728_v56 = vld [vmem:[#allocation3 + $0x1140] sm:$0xff]  ;;  %v529_v18 = vld [vmem:[#allocation3 + $0xb08] sm:$0xff] }
  0x9d   :  { %4905 = vmatpush1.bf16.msra.mxu0 %v16211_v33  ;;  %v16164_v50 = vcombine.high %v720_v44, %v728_v56  ;;  %v704_v51 = vld [vmem:[#allocation3 + $0x1080] sm:$0xff]  ;;  %v16163_v57 = vcombine.low %v720_v44, %v728_v56  ;;  %v369_v33 = vld [vmem:[#allocation3 + $0x608] sm:$0xff] }
  0x9e   :  { %4948 = vmatpush1.bf16.msra.mxu1 %v15701_v34  ;;  %4906 = vmatprep.subr.bf16.mxu0 %v16196_v35  ;;  %v712_v52 = vld [vmem:[#allocation3 + $0x10c0] sm:$0xff]  ;;  %v15830_v34 = vcombine.high %v385_v25, %v393_v27  ;;  %v377_v35 = vld [vmem:[#allocation3 + $0x648] sm:$0xff] }
  0x9f   :  { %4949 = vmatprep.subr.bf16.mxu1 %v15686_v39  ;;  %v16148_v60 = vcombine.high %v704_v51, %v712_v52  ;;  %v688_v61 = vld [vmem:[#allocation3 + $0x1000] sm:$0xff]  ;;  %v16147_v2 = vcombine.low %v704_v51, %v712_v52  ;;  %v15813_v56 = vcombine.low %v369_v33, %v377_v35  ;;  %v513_v27 = vld [vmem:[#allocation3 + $0xa88] sm:$0xff] }
  0xa0   :  { %v696_v62 = vld [vmem:[#allocation3 + $0x1040] sm:$0xff] }
  0xa1   :  { %4907 = vmatpush1.bf16.msra.mxu0 %v16195_v41  ;;  %v16132_v4 = vcombine.high %v688_v61, %v696_v62  ;;  %v928_v5 = vld [vmem:[#allocation3 + $0x1780] sm:$0xff]  ;;  %v16131_v10 = vcombine.low %v688_v61, %v696_v62  ;;  %v353_v41 = vld [vmem:[#allocation3 + $0x588] sm:$0xff] }
  0xa2   :  { %4950 = vmatpush1.bf16.msra.mxu1 %v15685_v42  ;;  %4908 = vmatprep.subr.bf16.mxu0 %v16180_v43  ;;  %v936_v6 = vld [vmem:[#allocation3 + $0x17c0] sm:$0xff]  ;;  %v15814_v42 = vcombine.high %v369_v33, %v377_v35  ;;  %v361_v43 = vld [vmem:[#allocation3 + $0x5c8] sm:$0xff] }
  0xa3   :  { %4951 = vmatprep.subr.bf16.mxu1 %v15670_v46  ;;  %v16372_v13 = vcombine.high %v928_v5, %v936_v6  ;;  %v912_v14 = vld [vmem:[#allocation3 + $0x1700] sm:$0xff]  ;;  %v16371_v19 = vcombine.low %v928_v5, %v936_v6  ;;  %v15797_v52 = vcombine.low %v353_v41, %v361_v43  ;;  %v497_v35 = vld [vmem:[#allocation3 + $0xa08] sm:$0xff] }
  0xa4   :  { %v920_v15 = vld [vmem:[#allocation3 + $0x1740] sm:$0xff] }
  0xa5   :  { %4909 = vmatpush1.bf16.msra.mxu0 %v16179_v48  ;;  %v16356_v21 = vcombine.high %v912_v14, %v920_v15  ;;  %v896_v23 = vld [vmem:[#allocation3 + $0x1680] sm:$0xff]  ;;  %v16355_v28 = vcombine.low %v912_v14, %v920_v15  ;;  %v337_v48 = vld [vmem:[#allocation3 + $0x508] sm:$0xff] }
  0xa6   :  { %4952 = vmatpush1.bf16.msra.mxu1 %v15669_v49  ;;  %4910 = vmatprep.subr.bf16.mxu0 %v16164_v50  ;;  %v904_v24 = vld [vmem:[#allocation3 + $0x16c0] sm:$0xff]  ;;  %v15798_v49 = vcombine.high %v353_v41, %v361_v43  ;;  %v345_v50 = vld [vmem:[#allocation3 + $0x548] sm:$0xff] }
  0xa7   :  { %4953 = vmatprep.subr.bf16.mxu1 %v15654_v54  ;;  %v16340_v30 = vcombine.high %v896_v23, %v904_v24  ;;  %v880_v31 = vld [vmem:[#allocation3 + $0x1600] sm:$0xff]  ;;  %v16339_v36 = vcombine.low %v896_v23, %v904_v24  ;;  %v15781_v62 = vcombine.low %v337_v48, %v345_v50  ;;  %v793_v23 = vld [vmem:[#allocation3 + $0x1348] sm:$0xff] }
  0xa8   :  { %v888_v32 = vld [vmem:[#allocation3 + $0x1640] sm:$0xff]  ;;  %v489_v43 = vld [vmem:[#allocation3 + $0x9c8] sm:$0xff] }
  0xa9   :  { %4911 = vmatpush1.bf16.msra.mxu0 %v16163_v57  ;;  %v16324_v38 = vcombine.high %v880_v31, %v888_v32  ;;  %v864_v39 = vld [vmem:[#allocation3 + $0x1580] sm:$0xff]  ;;  %v16323_v44 = vcombine.low %v880_v31, %v888_v32  ;;  %v321_v57 = vld [vmem:[#allocation3 + $0x488] sm:$0xff] }
  0xaa   :  { %4954 = vmatpush1.bf16.msra.mxu1 %v15653_v58  ;;  %4912 = vmatprep.subr.bf16.mxu0 %v16148_v60  ;;  %v872_v40 = vld [vmem:[#allocation3 + $0x15c0] sm:$0xff]  ;;  %v15782_v58 = vcombine.high %v337_v48, %v345_v50  ;;  %v329_v60 = vld [vmem:[#allocation3 + $0x4c8] sm:$0xff] }
  0xab   :  { %4955 = vmatprep.subr.bf16.mxu1 %v15638_v0  ;;  %v16308_v45 = vcombine.high %v864_v39, %v872_v40  ;;  %v848_v46 = vld [vmem:[#allocation3 + $0x1500] sm:$0xff]  ;;  %v16307_v51 = vcombine.low %v864_v39, %v872_v40  ;;  %v15765_v6 = vcombine.low %v321_v57, %v329_v60  ;;  %v777_v31 = vld [vmem:[#allocation3 + $0x12c8] sm:$0xff] }
  0xac   :  { %v856_v47 = vld [vmem:[#allocation3 + $0x1540] sm:$0xff]  ;;  %v761_v39 = vld [vmem:[#allocation3 + $0x1248] sm:$0xff] }
  0xad   :  { %4913 = vmatpush1.bf16.msra.mxu0 %v16147_v2  ;;  %v16292_v53 = vcombine.high %v848_v46, %v856_v47  ;;  %v832_v54 = vld [vmem:[#allocation3 + $0x1480] sm:$0xff]  ;;  %v16291_v61 = vcombine.low %v848_v46, %v856_v47  ;;  %v305_v2 = vld [vmem:[#allocation3 + $0x408] sm:$0xff] }
  0xae   :  { %4956 = vmatpush1.bf16.msra.mxu1 %v15637_v3  ;;  %4914 = vmatprep.subr.bf16.mxu0 %v16132_v4  ;;  %v840_v55 = vld [vmem:[#allocation3 + $0x14c0] sm:$0xff]  ;;  %v15766_v3 = vcombine.high %v321_v57, %v329_v60  ;;  %v313_v4 = vld [vmem:[#allocation3 + $0x448] sm:$0xff] }
  0xaf   :  { %4957 = vmatprep.subr.bf16.mxu1 %v15622_v8  ;;  %v16276_v63 = vcombine.high %v832_v54, %v840_v55  ;;  %v816_v0 = vld [vmem:[#allocation3 + $0x1400] sm:$0xff]  ;;  %v16275_v5 = vcombine.low %v832_v54, %v840_v55  ;;  %v545_v8 = vld [vmem:[#allocation3 + $0xb88] sm:$0xff]  ;;  %v15749_v15 = vcombine.low %v305_v2, %v313_v4 }
  0xb0   :  { %v824_v1 = vld [vmem:[#allocation3 + $0x1440] sm:$0xff]  ;;  %v15989_v24 = vcombine.low %v545_v8, %v553_v9  ;;  %v465_v48 = vld [vmem:[#allocation3 + $0x908] sm:$0xff] }
  0xb1   :  { %4915 = vmatpush1.bf16.msra.mxu0 %v16131_v10  ;;  %v16260_v7 = vcombine.high %v816_v0, %v824_v1  ;;  %v801_v10 = vld [vmem:[#allocation3 + $0x1388] sm:$0xff]  ;;  %v16259_v14 = vcombine.low %v816_v0, %v824_v1 }
  0xb2   :  { %4958 = vmatpush1.bf16.msra.mxu1 %v15621_v11  ;;  %4916 = vmatprep.subr.bf16.mxu0 %v16372_v13  ;;  %v15750_v11 = vcombine.high %v305_v2, %v313_v4  ;;  %v809_v13 = vld [vmem:[#allocation3 + $0x13c8] sm:$0xff] }
  0xb3   :  { %4959 = vmatprep.subr.bf16.mxu1 %v15862_v17  ;;  %v15990_v17 = vcombine.high %v545_v8, %v553_v9  ;;  %v16245_v25 = vcombine.low %v801_v10, %v809_v13  ;;  %v449_v55 = vld [vmem:[#allocation3 + $0x888] sm:$0xff] }
  0xb4   :  { %v457_v57 = vld [vmem:[#allocation3 + $0x8c8] sm:$0xff] }
  0xb5   :  { %4917 = vmatpush2.bf16.msra.mxu0 %v16371_v19  ;;  %v537_v19 = vld [vmem:[#allocation3 + $0xb48] sm:$0xff]  ;;  %v15894_v0 = vcombine.high %v449_v55, %v457_v57 }
  0xb6   :  { %4960 = vmatpush2.bf16.msra.mxu1 %v15861_v20  ;;  %4918 = vmatprep.subr.bf16.mxu0 %v16356_v21  ;;  %v785_v20 = vld [vmem:[#allocation3 + $0x1308] sm:$0xff]  ;;  %v16246_v21 = vcombine.high %v801_v10, %v809_v13  ;;  %v15973_v32 = vcombine.low %v529_v18, %v537_v19 }
  0xb7   :  { %4961 = vmatprep.subr.bf16.mxu1 %v15846_v26  ;;  %v15974_v26 = vcombine.high %v529_v18, %v537_v19  ;;  %v16229_v33 = vcombine.low %v785_v20, %v793_v23  ;;  %v433_v1 = vld [vmem:[#allocation3 + $0x808] sm:$0xff] }
  0xb8   :  { %v441_v2 = vld [vmem:[#allocation3 + $0x848] sm:$0xff] }
  0xb9   :  { %4919 = vmatpush2.bf16.msra.mxu0 %v16355_v28  ;;  %v521_v28 = vld [vmem:[#allocation3 + $0xac8] sm:$0xff]  ;;  %v15878_v8 = vcombine.high %v433_v1, %v441_v2 }
  0xba   :  { %4962 = vmatpush2.bf16.msra.mxu1 %v15845_v29  ;;  %4920 = vmatprep.subr.bf16.mxu0 %v16340_v30  ;;  %v769_v29 = vld [vmem:[#allocation3 + $0x1288] sm:$0xff]  ;;  %v16230_v30 = vcombine.high %v785_v20, %v793_v23  ;;  %v15957_v40 = vcombine.low %v513_v27, %v521_v28 }
  0xbb   :  { %4963 = vmatprep.subr.bf16.mxu1 %v15830_v34  ;;  %v15958_v34 = vcombine.high %v513_v27, %v521_v28  ;;  %v673_v9 = vld [vmem:[#allocation3 + $0xf88] sm:$0xff] }
  0xbc   :  { %v681_v10 = vld [vmem:[#allocation3 + $0xfc8] sm:$0xff] }
  0xbd   :  { %4921 = vmatpush2.bf16.msra.mxu0 %v16339_v36  ;;  %v505_v36 = vld [vmem:[#allocation3 + $0xa48] sm:$0xff]  ;;  %v16118_v18 = vcombine.high %v673_v9, %v681_v10 }
  0xbe   :  { %4964 = vmatpush2.bf16.msra.mxu1 %v15829_v37  ;;  %4922 = vmatprep.subr.bf16.mxu0 %v16324_v38  ;;  %v753_v37 = vld [vmem:[#allocation3 + $0x1208] sm:$0xff]  ;;  %v16214_v38 = vcombine.high %v769_v29, %v777_v31  ;;  %v15942_v41 = vcombine.high %v497_v35, %v505_v36  ;;  %v15941_v46 = vcombine.low %v497_v35, %v505_v36 }
  0xbf   :  { %4965 = vmatprep.subr.bf16.mxu1 %v15814_v42  ;;  %v481_v42 = vld [vmem:[#allocation3 + $0x988] sm:$0xff]  ;;  %v16197_v47 = vcombine.low %v753_v37, %v761_v39 }
  0xc0   :  { %v657_v19 = vld [vmem:[#allocation3 + $0xf08] sm:$0xff] }
  0xc1   :  { %4923 = vmatpush2.bf16.msra.mxu0 %v16323_v44  ;;  %v737_v44 = vld [vmem:[#allocation3 + $0x1188] sm:$0xff] }
  0xc2   :  { %4966 = vmatpush2.bf16.msra.mxu1 %v15813_v56  ;;  %4924 = vmatprep.subr.bf16.mxu0 %v16308_v45  ;;  %v16198_v56 = vcombine.high %v753_v37, %v761_v39  ;;  %v745_v45 = vld [vmem:[#allocation3 + $0x11c8] sm:$0xff] }
  0xc3   :  { %4967 = vmatprep.subr.bf16.mxu1 %v15798_v49  ;;  %v721_v49 = vld [vmem:[#allocation3 + $0x1108] sm:$0xff]  ;;  %v16182_v50 = vcombine.high %v737_v44, %v745_v45 }
  0xc4   :  { %v665_v20 = vld [vmem:[#allocation3 + $0xf48] sm:$0xff] }
  0xc5   :  { %4925 = vmatpush2.bf16.msra.mxu0 %v16307_v51  ;;  %v729_v51 = vld [vmem:[#allocation3 + $0x1148] sm:$0xff]  ;;  %v16102_v27 = vcombine.high %v657_v19, %v665_v20 }
  0xc6   :  { %4968 = vmatpush2.bf16.msra.mxu1 %v15797_v52  ;;  %4926 = vmatprep.subr.bf16.mxu0 %v16292_v53  ;;  %v15925_v52 = vcombine.low %v481_v42, %v489_v43  ;;  %v16181_v53 = vcombine.low %v737_v44, %v745_v45  ;;  %v16166_v60 = vcombine.high %v721_v49, %v729_v51  ;;  %v641_v28 = vld [vmem:[#allocation3 + $0xe88] sm:$0xff] }
  0xc7   :  { %4969 = vmatprep.subr.bf16.mxu1 %v15782_v58  ;;  %v705_v58 = vld [vmem:[#allocation3 + $0x1088] sm:$0xff] }
  0xc8   :  { %v625_v36 = vld [vmem:[#allocation3 + $0xe08] sm:$0xff] }
  0xc9   :  { %4927 = vmatpush2.bf16.msra.mxu0 %v16291_v61  ;;  %v713_v61 = vld [vmem:[#allocation3 + $0x10c8] sm:$0xff] }
  0xca   :  { %4970 = vmatpush2.bf16.msra.mxu1 %v15781_v62  ;;  %4928 = vmatprep.subr.bf16.mxu0 %v16276_v63  ;;  %v16165_v63 = vcombine.low %v721_v49, %v729_v51  ;;  %v16150_v4 = vcombine.high %v705_v58, %v713_v61  ;;  %v633_v37 = vld [vmem:[#allocation3 + $0xe48] sm:$0xff] }
  0xcb   :  { %4971 = vmatprep.subr.bf16.mxu1 %v15766_v3  ;;  %v689_v3 = vld [vmem:[#allocation3 + $0x1008] sm:$0xff] }
  0xcc   :  { %v617_v44 = vld [vmem:[#allocation3 + $0xdc8] sm:$0xff] }
  0xcd   :  { %4929 = vmatpush2.bf16.msra.mxu0 %v16275_v5  ;;  %v697_v5 = vld [vmem:[#allocation3 + $0x1048] sm:$0xff] }
  0xce   :  { %4972 = vmatpush2.bf16.msra.mxu1 %v15765_v6  ;;  %4930 = vmatprep.subr.bf16.mxu0 %v16260_v7  ;;  %v15893_v6 = vcombine.low %v449_v55, %v457_v57  ;;  %v16149_v7 = vcombine.low %v705_v58, %v713_v61  ;;  %v16134_v13 = vcombine.high %v689_v3, %v697_v5  ;;  %v601_v49 = vld [vmem:[#allocation3 + $0xd48] sm:$0xff] }
  0xcf   :  { %4973 = vmatprep.subr.bf16.mxu1 %v15750_v11  ;;  %v929_v11 = vld [vmem:[#allocation3 + $0x1788] sm:$0xff] }
  0xd0   :  { %v577_v57 = vld [vmem:[#allocation3 + $0xc88] sm:$0xff] }
  0xd1   :  { %4931 = vmatpush2.bf16.msra.mxu0 %v16259_v14  ;;  %v937_v14 = vld [vmem:[#allocation3 + $0x17c8] sm:$0xff] }
  0xd2   :  { %4974 = vmatpush2.bf16.msra.mxu1 %v15749_v15  ;;  %4986 = vmatprep.subr.bf16.mxu0 %v15990_v17  ;;  %v15877_v15 = vcombine.low %v433_v1, %v441_v2  ;;  %v16133_v17 = vcombine.low %v689_v3, %v697_v5  ;;  %v16374_v23 = vcombine.high %v929_v11, %v937_v14  ;;  %v585_v58 = vld [vmem:[#allocation3 + $0xcc8] sm:$0xff] }
  0xd3   :  { %5029 = vmatprep.subr.bf16.mxu1 %v16246_v21  ;;  %v913_v21 = vld [vmem:[#allocation3 + $0x1708] sm:$0xff]  ;;  %v16022_v1 = vcombine.high %v577_v57, %v585_v58 }
  0xd4   :  { %4933 = vmatmul.mubr.bf16.vlgmr.msra.gmra.mxu0 %v18326_v16  ;;  %v561_v2 = vld [vmem:[#allocation3 + $0xc08] sm:$0xff] }
  0xd5   :  { %4976 = vmatmul.mubr.bf16.vlgmr.msra.gmra.mxu1 %v18310_v12  ;;  %4987 = vmatpush1.bf16.msra.mxu0 %v15989_v24  ;;  %v16213_v12 = vcombine.low %v769_v29, %v777_v31  ;;  %v921_v24 = vld [vmem:[#allocation3 + $0x1748] sm:$0xff] }
  0xd6   :  { %5030 = vmatpush1.bf16.msra.mxu1 %v16245_v25  ;;  %4988 = vmatprep.subr.bf16.mxu0 %v15974_v26  ;;  %v16117_v25 = vcombine.low %v673_v9, %v681_v10  ;;  %v16373_v26 = vcombine.low %v929_v11, %v937_v14  ;;  %v649_v29 = vld [vmem:[#allocation3 + $0xec8] sm:$0xff]  ;;  %v16358_v31 = vcombine.high %v913_v21, %v921_v24  ;;  %v290_v10 = vld [vmem:[#allocation3 + $0x390] sm:$0xff] }
  0xd7   :  { %5031 = vmatprep.subr.bf16.mxu1 %v16230_v30  ;;  %5018 = vmatprep.mubr.bf16.mxu0 %v18303_v59  ;;  %v15926_v59 = vcombine.high %v481_v42, %v489_v43  ;;  %v897_v30 = vld [vmem:[#allocation3 + $0x1688] sm:$0xff]  ;;  %v16086_v35 = vcombine.high %v641_v28, %v649_v29  ;;  %v16070_v42 = vcombine.high %v625_v36, %v633_v37  ;;  %v298_v11 = vld [vmem:[#allocation3 + $0x3d0] sm:$0xff] }
  0xd8   :  { %5061 = vmatprep.mubr.bf16.mxu1 %v18318_v22  ;;  %v473_v22 = vld [vmem:[#allocation3 + $0x948] sm:$0xff] }
  0xd9   :  { %4989 = vmatpush1.bf16.msra.mxu0 %v15973_v32  ;;  %v15910_v54 = vcombine.high %v465_v48, %v473_v22  ;;  %v15909_v62 = vcombine.low %v465_v48, %v473_v22  ;;  %v905_v32 = vld [vmem:[#allocation3 + $0x16c8] sm:$0xff] }
  0xda   :  { %5032 = vmatpush1.bf16.msra.mxu1 %v16229_v33  ;;  %4990 = vmatprep.subr.bf16.mxu0 %v15958_v34  ;;  %v16101_v33 = vcombine.low %v657_v19, %v665_v20  ;;  %v16357_v34 = vcombine.low %v913_v21, %v921_v24  ;;  %v16342_v39 = vcombine.high %v897_v30, %v905_v32  ;;  %v609_v43 = vld [vmem:[#allocation3 + $0xd88] sm:$0xff]  ;;  %v274_v20 = vld [vmem:[#allocation3 + $0x310] sm:$0xff] }
  0xdb   :  { %5033 = vmatprep.subr.bf16.mxu1 %v16214_v38  ;;  %v881_v38 = vld [vmem:[#allocation3 + $0x1608] sm:$0xff]  ;;  %v16054_v48 = vcombine.high %v609_v43, %v617_v44  ;;  %v15736_v19 = vcombine.high %v290_v10, %v298_v11  ;;  %v282_v21 = vld [vmem:[#allocation3 + $0x350] sm:$0xff] }
  0xdc   :  { %v593_v22 = vld [vmem:[#allocation3 + $0xd08] sm:$0xff] }
  0xdd   :  { %4991 = vmatpush1.bf16.msra.mxu0 %v15957_v40  ;;  %v889_v40 = vld [vmem:[#allocation3 + $0x1648] sm:$0xff]  ;;  %v16038_v55 = vcombine.high %v593_v22, %v601_v49 }
  0xde   :  { %5034 = vmatpush1.bf16.msra.mxu1 %v16213_v12  ;;  %4992 = vmatprep.subr.bf16.mxu0 %v15942_v41  ;;  %v16085_v12 = vcombine.low %v641_v28, %v649_v29  ;;  %v16341_v41 = vcombine.low %v897_v30, %v905_v32  ;;  %v16326_v45 = vcombine.high %v881_v38, %v889_v40  ;;  %v569_v3 = vld [vmem:[#allocation3 + $0xc48] sm:$0xff]  ;;  %v258_v29 = vld [vmem:[#allocation3 + $0x290] sm:$0xff] }
  0xdf   :  { %5035 = vmatprep.subr.bf16.mxu1 %v16198_v56  ;;  %v865_v56 = vld [vmem:[#allocation3 + $0x1588] sm:$0xff]  ;;  %v16006_v9 = vcombine.high %v561_v2, %v569_v3  ;;  %v15720_v28 = vcombine.high %v274_v20, %v282_v21  ;;  %v266_v30 = vld [vmem:[#allocation3 + $0x2d0] sm:$0xff] }
  0xe1   :  { %4993 = vmatpush1.bf16.msra.mxu0 %v15941_v46  ;;  %v873_v46 = vld [vmem:[#allocation3 + $0x15c8] sm:$0xff] }
  0xe2   :  { %5036 = vmatpush1.bf16.msra.mxu1 %v16197_v47  ;;  %4994 = vmatprep.subr.bf16.mxu0 %v15926_v59  ;;  %v16069_v47 = vcombine.low %v625_v36, %v633_v37  ;;  %v16325_v59 = vcombine.low %v881_v38, %v889_v40  ;;  %v16310_v51 = vcombine.high %v865_v56, %v873_v46  ;;  %v242_v38 = vld [vmem:[#allocation3 + $0x210] sm:$0xff] }
  0xe3   :  { %5037 = vmatprep.subr.bf16.mxu1 %v16182_v50  ;;  %v849_v50 = vld [vmem:[#allocation3 + $0x1508] sm:$0xff]  ;;  %v15704_v37 = vcombine.high %v258_v29, %v266_v30  ;;  %v250_v40 = vld [vmem:[#allocation3 + $0x250] sm:$0xff] }
  0xe5   :  { %4995 = vmatpush1.bf16.msra.mxu0 %v15925_v52  ;;  %v857_v52 = vld [vmem:[#allocation3 + $0x1548] sm:$0xff] }
  0xe6   :  { %5038 = vmatpush1.bf16.msra.mxu1 %v16181_v53  ;;  %4996 = vmatprep.subr.bf16.mxu0 %v15910_v54  ;;  %v16053_v53 = vcombine.low %v609_v43, %v617_v44  ;;  %v16309_v54 = vcombine.low %v865_v56, %v873_v46  ;;  %v16294_v61 = vcombine.high %v849_v50, %v857_v52  ;;  %v226_v46 = vld [vmem:[#allocation3 + $0x190] sm:$0xff] }
  0xe7   :  { %5039 = vmatprep.subr.bf16.mxu1 %v16166_v60  ;;  %v833_v60 = vld [vmem:[#allocation3 + $0x1488] sm:$0xff]  ;;  %v15703_v43 = vcombine.low %v258_v29, %v266_v30  ;;  %v15688_v56 = vcombine.high %v242_v38, %v250_v40 }
  0xe9   :  { %4997 = vmatpush1.bf16.msra.mxu0 %v15909_v62  ;;  %v841_v62 = vld [vmem:[#allocation3 + $0x14c8] sm:$0xff] }
  0xea   :  { %5040 = vmatpush1.bf16.msra.mxu1 %v16165_v63  ;;  %4998 = vmatprep.subr.bf16.mxu0 %v15894_v0  ;;  %v16037_v63 = vcombine.low %v593_v22, %v601_v49  ;;  %v16293_v0 = vcombine.low %v849_v50, %v857_v52  ;;  %v16278_v5 = vcombine.high %v833_v60, %v841_v62  ;;  %v210_v52 = vld [vmem:[#allocation3 + $0x110] sm:$0xff] }
  0xeb   :  { %5041 = vmatprep.subr.bf16.mxu1 %v16150_v4  ;;  %v817_v4 = vld [vmem:[#allocation3 + $0x1408] sm:$0xff]  ;;  %v15687_v22 = vcombine.low %v242_v38, %v250_v40 }
  0xed   :  { %4999 = vmatpush1.bf16.msra.mxu0 %v15893_v6  ;;  %v825_v6 = vld [vmem:[#allocation3 + $0x1448] sm:$0xff] }
  0xee   :  { %5042 = vmatpush1.bf16.msra.mxu1 %v16149_v7  ;;  %5000 = vmatprep.subr.bf16.mxu0 %v15878_v8  ;;  %v16021_v7 = vcombine.low %v577_v57, %v585_v58  ;;  %v16277_v8 = vcombine.low %v833_v60, %v841_v62  ;;  %v16262_v14 = vcombine.high %v817_v4, %v825_v6  ;;  %v194_v62 = vld [vmem:[#allocation3 + $0x90] sm:$0xff] }
  0xef   :  { %5043 = vmatprep.subr.bf16.mxu1 %v16134_v13  ;;  %v546_v13 = vld [vmem:[#allocation3 + $0xb90] sm:$0xff] }
  0xf1   :  { %5001 = vmatpush1.bf16.msra.mxu0 %v15877_v15  ;;  %v554_v15 = vld [vmem:[#allocation3 + $0xbd0] sm:$0xff] }
  0xf2   :  { %5044 = vmatpush1.bf16.msra.mxu1 %v16133_v17  ;;  %5002 = vmatprep.subr.bf16.mxu0 %v16118_v18  ;;  %v16005_v17 = vcombine.low %v561_v2, %v569_v3  ;;  %v16261_v18 = vcombine.low %v817_v4, %v825_v6  ;;  %v15992_v24 = vcombine.high %v546_v13, %v554_v15  ;;  %v178_v6 = vld [vmem:[#allocation3 + $0x10] sm:$0xff] }
  0xf3   :  { %5045 = vmatprep.subr.bf16.mxu1 %v16374_v23  ;;  %v530_v23 = vld [vmem:[#allocation3 + $0xb10] sm:$0xff] }
  0xf5   :  { %5003 = vmatpush2.bf16.msra.mxu0 %v16117_v25  ;;  %v538_v25 = vld [vmem:[#allocation3 + $0xb50] sm:$0xff] }
  0xf6   :  { %5046 = vmatpush2.bf16.msra.mxu1 %v16373_v26  ;;  %5004 = vmatprep.subr.bf16.mxu0 %v16102_v27  ;;  %v15735_v26 = vcombine.low %v290_v10, %v298_v11  ;;  %v15991_v27 = vcombine.low %v546_v13, %v554_v15  ;;  %v15976_v32 = vcombine.high %v530_v23, %v538_v25  ;;  %v418_v15 = vld [vmem:[#allocation3 + $0x790] sm:$0xff] }
  0xf7   :  { %5047 = vmatprep.subr.bf16.mxu1 %v16358_v31  ;;  %v514_v31 = vld [vmem:[#allocation3 + $0xa90] sm:$0xff]  ;;  %v15975_v36 = vcombine.low %v530_v23, %v538_v25 }
  0xf8   :  { %v402_v25 = vld [vmem:[#allocation3 + $0x710] sm:$0xff] }
  0xf9   :  { %5005 = vmatpush2.bf16.msra.mxu0 %v16101_v33  ;;  %v522_v33 = vld [vmem:[#allocation3 + $0xad0] sm:$0xff] }
  0xfa   :  { %5048 = vmatpush2.bf16.msra.mxu1 %v16357_v34  ;;  %5006 = vmatprep.subr.bf16.mxu0 %v16086_v35  ;;  %v18335_v34 = vld [vmem:[%s19058_s0 + $0x8] ss:$24 sps:$4 sm:$0xff]   ;;  %v15719_v35 = vcombine.low %v274_v20, %v282_v21  ;;  %v15959_v44 = vcombine.low %v514_v31, %v522_v33 }
  0xfb   :  { %5049 = vmatprep.subr.bf16.mxu1 %v16342_v39  ;;  %v15960_v39 = vcombine.high %v514_v31, %v522_v33  ;;  %v386_v33 = vld [vmem:[#allocation3 + $0x690] sm:$0xff] }
  0xfd   :  { %5007 = vmatpush2.bf16.msra.mxu0 %v16085_v12  ;;  %v18342_v12 = vld [vmem:[%s19058_s0 + $0x4] ss:$24 sps:$4 sm:$0xff]  }
  0xfe   :  { %5050 = vmatpush2.bf16.msra.mxu1 %v16341_v41  ;;  %5008 = vmatprep.subr.bf16.mxu0 %v16070_v42  ;;  %v498_v41 = vld [vmem:[#allocation3 + $0xa10] sm:$0xff] }
  0xff   :  { %5051 = vmatprep.subr.bf16.mxu1 %v16326_v45  ;;  %v506_v42 = vld [vmem:[#allocation3 + $0xa50] sm:$0xff] }
 0x100   :  { %v15944_v45 = vcombine.high %v498_v41, %v506_v42  ;;  %v15943_v49 = vcombine.low %v498_v41, %v506_v42  ;;  %v370_v42 = vld [vmem:[#allocation3 + $0x610] sm:$0xff] }
 0x101   :  { %5009 = vmatpush2.bf16.msra.mxu0 %v16069_v47  ;;  %v234_v47 = vld [vmem:[#allocation3 + $0x1d0] sm:$0xff] }
 0x102   :  { %5052 = vmatpush2.bf16.msra.mxu1 %v16325_v59  ;;  %5010 = vmatprep.subr.bf16.mxu0 %v16054_v48  ;;  %v482_v59 = vld [vmem:[#allocation3 + $0x990] sm:$0xff]  ;;  %v15672_v50 = vcombine.high %v226_v46, %v234_v47  ;;  %v15671_v57 = vcombine.low %v226_v46, %v234_v47 }
 0x103   :  { %5053 = vmatprep.subr.bf16.mxu1 %v16310_v51  ;;  %v490_v48 = vld [vmem:[#allocation3 + $0x9d0] sm:$0xff] }
 0x104   :  { %v15928_v51 = vcombine.high %v482_v59, %v490_v48  ;;  %v15927_v58 = vcombine.low %v482_v59, %v490_v48  ;;  %v354_v48 = vld [vmem:[#allocation3 + $0x590] sm:$0xff] }
 0x105   :  { %5011 = vmatpush2.bf16.msra.mxu0 %v16053_v53  ;;  %v218_v53 = vld [vmem:[#allocation3 + $0x150] sm:$0xff] }
 0x106   :  { %5054 = vmatpush2.bf16.msra.mxu1 %v16309_v54  ;;  %5012 = vmatprep.subr.bf16.mxu0 %v16038_v55  ;;  %v466_v54 = vld [vmem:[#allocation3 + $0x910] sm:$0xff]  ;;  %v15656_v60 = vcombine.high %v210_v52, %v218_v53  ;;  %v15655_v2 = vcombine.low %v210_v52, %v218_v53 }
 0x107   :  { %5055 = vmatprep.subr.bf16.mxu1 %v16294_v61  ;;  %v474_v55 = vld [vmem:[#allocation3 + $0x950] sm:$0xff] }
 0x108   :  { %v15912_v61 = vcombine.high %v466_v54, %v474_v55  ;;  %v15911_v3 = vcombine.low %v466_v54, %v474_v55  ;;  %v338_v55 = vld [vmem:[#allocation3 + $0x510] sm:$0xff] }
 0x109   :  { %5013 = vmatpush2.bf16.msra.mxu0 %v16037_v63  ;;  %v202_v63 = vld [vmem:[#allocation3 + $0xd0] sm:$0xff] }
 0x10a   :  { %5056 = vmatpush2.bf16.msra.mxu1 %v16293_v0  ;;  %5014 = vmatprep.subr.bf16.mxu0 %v16022_v1  ;;  %v450_v0 = vld [vmem:[#allocation3 + $0x890] sm:$0xff]  ;;  %v15640_v4 = vcombine.high %v194_v62, %v202_v63  ;;  %v15639_v10 = vcombine.low %v194_v62, %v202_v63 }
 0x10b   :  { %5057 = vmatprep.subr.bf16.mxu1 %v16278_v5  ;;  %v458_v1 = vld [vmem:[#allocation3 + $0x8d0] sm:$0xff] }
 0x10c   :  { %v15896_v5 = vcombine.high %v450_v0, %v458_v1  ;;  %v15895_v11 = vcombine.low %v450_v0, %v458_v1  ;;  %v322_v1 = vld [vmem:[#allocation3 + $0x490] sm:$0xff] }
 0x10d   :  { %5015 = vmatpush2.bf16.msra.mxu0 %v16021_v7  ;;  %v186_v7 = vld [vmem:[#allocation3 + $0x50] sm:$0xff] }
 0x10e   :  { %5058 = vmatpush2.bf16.msra.mxu1 %v16277_v8  ;;  %5016 = vmatprep.subr.bf16.mxu0 %v16006_v9  ;;  %v434_v8 = vld [vmem:[#allocation3 + $0x810] sm:$0xff]  ;;  %v15624_v13 = vcombine.high %v178_v6, %v186_v7  ;;  %v15623_v20 = vcombine.low %v178_v6, %v186_v7 }
 0x10f   :  { %5059 = vmatprep.subr.bf16.mxu1 %v16262_v14  ;;  %v442_v9 = vld [vmem:[#allocation3 + $0x850] sm:$0xff] }
 0x110   :  { %v15880_v14 = vcombine.high %v434_v8, %v442_v9  ;;  %v15879_v21 = vcombine.low %v434_v8, %v442_v9  ;;  %v306_v9 = vld [vmem:[#allocation3 + $0x410] sm:$0xff] }
 0x111   :  { %5017 = vmatpush2.bf16.msra.mxu0 %v16005_v17  ;;  %v426_v17 = vld [vmem:[#allocation3 + $0x7d0] sm:$0xff] }
 0x112   :  { %5060 = vmatpush2.bf16.msra.mxu1 %v16261_v18  ;;  %5072 = vmatprep.subr.bf16.mxu0 %v15736_v19  ;;  %v674_v18 = vld [vmem:[#allocation3 + $0xf90] sm:$0xff]  ;;  %v15864_v23 = vcombine.high %v418_v15, %v426_v17  ;;  %v15863_v29 = vcombine.low %v418_v15, %v426_v17 }
 0x113   :  { %5115 = vmatprep.subr.bf16.mxu1 %v15992_v24  ;;  %v682_v19 = vld [vmem:[#allocation3 + $0xfd0] sm:$0xff] }
 0x114   :  { %5019 = vmatmul.mubr.bf16.vlgmr.msra.gmra.mxu0 %v18335_v34  ;;  %v16120_v24 = vcombine.high %v674_v18, %v682_v19  ;;  %v16119_v30 = vcombine.low %v674_v18, %v682_v19  ;;  %v802_v19 = vld [vmem:[#allocation3 + $0x1390] sm:$0xff] }
 0x115   :  { %5062 = vmatmul.mubr.bf16.vlgmr.msra.gmra.mxu1 %v18326_v16  ;;  %5073 = vmatpush1.bf16.msra.mxu0 %v15735_v26  ;;  %v18348_v16 = vld [vmem:[%s19058_s0 + $0xc] ss:$24 sps:$4 sm:$0xff]   ;;  %v410_v26 = vld [vmem:[#allocation3 + $0x750] sm:$0xff] }
 0x116   :  { %5116 = vmatpush1.bf16.msra.mxu1 %v15991_v27  ;;  %5074 = vmatprep.subr.bf16.mxu0 %v15720_v28  ;;  %v658_v27 = vld [vmem:[#allocation3 + $0xf10] sm:$0xff]  ;;  %v15848_v31 = vcombine.high %v402_v25, %v410_v26  ;;  %v15847_v38 = vcombine.low %v402_v25, %v410_v26 }
 0x117   :  { %5117 = vmatprep.subr.bf16.mxu1 %v15976_v32  ;;  %5104 = vmatprep.mubr.bf16.mxu0 %v18342_v12  ;;  %v666_v28 = vld [vmem:[#allocation3 + $0xf50] sm:$0xff] }
 0x118   :  { %5147 = vmatprep.mubr.bf16.mxu1 %v18348_v16  ;;  %v16104_v32 = vcombine.high %v658_v27, %v666_v28 }
 0x119   :  { %5075 = vmatpush1.bf16.msra.mxu0 %v15719_v35  ;;  %v394_v35 = vld [vmem:[#allocation3 + $0x6d0] sm:$0xff] }
 0x11a   :  { %5118 = vmatpush1.bf16.msra.mxu1 %v15975_v36  ;;  %5076 = vmatprep.subr.bf16.mxu0 %v15704_v37  ;;  %v642_v36 = vld [vmem:[#allocation3 + $0xe90] sm:$0xff]  ;;  %v15832_v40 = vcombine.high %v386_v33, %v394_v35 }
 0x11b   :  { %5119 = vmatprep.subr.bf16.mxu1 %v15960_v39  ;;  %v650_v37 = vld [vmem:[#allocation3 + $0xed0] sm:$0xff]  ;;  %v16103_v39 = vcombine.low %v658_v27, %v666_v28 }
 0x11c   :  { %v16088_v41 = vcombine.high %v642_v36, %v650_v37  ;;  %v16087_v46 = vcombine.low %v642_v36, %v650_v37  ;;  %v786_v28 = vld [vmem:[#allocation3 + $0x1310] sm:$0xff] }
 0x11d   :  { %5077 = vmatpush1.bf16.msra.mxu0 %v15703_v43  ;;  %v378_v43 = vld [vmem:[#allocation3 + $0x650] sm:$0xff] }
 0x11e   :  { %5120 = vmatpush1.bf16.msra.mxu1 %v15959_v44  ;;  %5078 = vmatprep.subr.bf16.mxu0 %v15688_v56  ;;  %v626_v44 = vld [vmem:[#allocation3 + $0xe10] sm:$0xff]  ;;  %v15816_v47 = vcombine.high %v370_v42, %v378_v43 }
 0x11f   :  { %5121 = vmatprep.subr.bf16.mxu1 %v15944_v45  ;;  %v634_v56 = vld [vmem:[#allocation3 + $0xe50] sm:$0xff]  ;;  %v15831_v45 = vcombine.low %v386_v33, %v394_v35 }
 0x120   :  { %v16072_v59 = vcombine.high %v626_v44, %v634_v56  ;;  %v16071_v52 = vcombine.low %v626_v44, %v634_v56  ;;  %v770_v37 = vld [vmem:[#allocation3 + $0x1290] sm:$0xff] }
 0x121   :  { %5079 = vmatpush1.bf16.msra.mxu0 %v15687_v22  ;;  %v362_v22 = vld [vmem:[#allocation3 + $0x5d0] sm:$0xff] }
 0x122   :  { %5122 = vmatpush1.bf16.msra.mxu1 %v15943_v49  ;;  %5080 = vmatprep.subr.bf16.mxu0 %v15672_v50  ;;  %v610_v49 = vld [vmem:[#allocation3 + $0xd90] sm:$0xff]  ;;  %v15800_v53 = vcombine.high %v354_v48, %v362_v22 }
 0x123   :  { %5123 = vmatprep.subr.bf16.mxu1 %v15928_v51  ;;  %v618_v50 = vld [vmem:[#allocation3 + $0xdd0] sm:$0xff]  ;;  %v15815_v51 = vcombine.low %v370_v42, %v378_v43  ;;  %v267_v42 = vld [vmem:[#allocation3 + $0x2d8] sm:$0xff] }
 0x124   :  { %v16056_v54 = vcombine.high %v610_v49, %v618_v50  ;;  %v16055_v62 = vcombine.low %v610_v49, %v618_v50  ;;  %v762_v49 = vld [vmem:[#allocation3 + $0x1250] sm:$0xff] }
 0x125   :  { %5081 = vmatpush1.bf16.msra.mxu0 %v15671_v57  ;;  %v346_v57 = vld [vmem:[#allocation3 + $0x550] sm:$0xff] }
 0x126   :  { %5124 = vmatpush1.bf16.msra.mxu1 %v15927_v58  ;;  %5082 = vmatprep.subr.bf16.mxu0 %v15656_v60  ;;  %v594_v58 = vld [vmem:[#allocation3 + $0xd10] sm:$0xff]  ;;  %v15784_v63 = vcombine.high %v338_v55, %v346_v57 }
 0x127   :  { %5125 = vmatprep.subr.bf16.mxu1 %v15912_v61  ;;  %v602_v60 = vld [vmem:[#allocation3 + $0xd50] sm:$0xff]  ;;  %v15799_v61 = vcombine.low %v354_v48, %v362_v22 }
 0x128   :  { %v16040_v0 = vcombine.high %v594_v58, %v602_v60  ;;  %v16039_v6 = vcombine.low %v594_v58, %v602_v60  ;;  %v754_v22 = vld [vmem:[#allocation3 + $0x1210] sm:$0xff] }
 0x129   :  { %5083 = vmatpush1.bf16.msra.mxu0 %v15655_v2  ;;  %v330_v2 = vld [vmem:[#allocation3 + $0x4d0] sm:$0xff]  ;;  %v16200_v58 = vcombine.high %v754_v22, %v762_v49 }
 0x12a   :  { %5126 = vmatpush1.bf16.msra.mxu1 %v15911_v3  ;;  %5084 = vmatprep.subr.bf16.mxu0 %v15640_v4  ;;  %v578_v3 = vld [vmem:[#allocation3 + $0xc90] sm:$0xff]  ;;  %v15768_v7 = vcombine.high %v322_v1, %v330_v2 }
 0x12b   :  { %5127 = vmatprep.subr.bf16.mxu1 %v15896_v5  ;;  %v586_v4 = vld [vmem:[#allocation3 + $0xcd0] sm:$0xff]  ;;  %v15783_v5 = vcombine.low %v338_v55, %v346_v57 }
 0x12c   :  { %v16024_v8 = vcombine.high %v578_v3, %v586_v4  ;;  %v16023_v15 = vcombine.low %v578_v3, %v586_v4  ;;  %v722_v4 = vld [vmem:[#allocation3 + $0x1110] sm:$0xff] }
 0x12d   :  { %5085 = vmatpush1.bf16.msra.mxu0 %v15639_v10  ;;  %v314_v10 = vld [vmem:[#allocation3 + $0x450] sm:$0xff] }
 0x12e   :  { %5128 = vmatpush1.bf16.msra.mxu1 %v15895_v11  ;;  %5086 = vmatprep.subr.bf16.mxu0 %v15624_v13  ;;  %v562_v11 = vld [vmem:[#allocation3 + $0xc10] sm:$0xff]  ;;  %v15752_v17 = vcombine.high %v306_v9, %v314_v10 }
 0x12f   :  { %5129 = vmatprep.subr.bf16.mxu1 %v15880_v14  ;;  %v570_v13 = vld [vmem:[#allocation3 + $0xc50] sm:$0xff]  ;;  %v15767_v14 = vcombine.low %v322_v1, %v330_v2  ;;  %v16199_v1 = vcombine.low %v754_v22, %v762_v49 }
 0x130   :  { %v16008_v18 = vcombine.high %v562_v11, %v570_v13  ;;  %v16007_v25 = vcombine.low %v562_v11, %v570_v13  ;;  %v706_v13 = vld [vmem:[#allocation3 + $0x1090] sm:$0xff] }
 0x131   :  { %5087 = vmatpush1.bf16.msra.mxu0 %v15623_v20  ;;  %v810_v20 = vld [vmem:[#allocation3 + $0x13d0] sm:$0xff] }
 0x132   :  { %5130 = vmatpush1.bf16.msra.mxu1 %v15879_v21  ;;  %5088 = vmatprep.subr.bf16.mxu0 %v15864_v23  ;;  %v291_v21 = vld [vmem:[#allocation3 + $0x398] sm:$0xff]  ;;  %v16248_v26 = vcombine.high %v802_v19, %v810_v20  ;;  %v898_v49 = vld [vmem:[#allocation3 + $0x1690] sm:$0xff] }
 0x133   :  { %5131 = vmatprep.subr.bf16.mxu1 %v16120_v24  ;;  %v299_v23 = vld [vmem:[#allocation3 + $0x3d8] sm:$0xff]  ;;  %v15751_v24 = vcombine.low %v306_v9, %v314_v10 }
 0x134   :  { %v15738_v27 = vcombine.high %v291_v21, %v299_v23  ;;  %v15737_v33 = vcombine.low %v291_v21, %v299_v23  ;;  %v690_v23 = vld [vmem:[#allocation3 + $0x1010] sm:$0xff] }
 0x135   :  { %5089 = vmatpush2.bf16.msra.mxu0 %v15863_v29  ;;  %v794_v29 = vld [vmem:[#allocation3 + $0x1350] sm:$0xff] }
 0x136   :  { %5132 = vmatpush2.bf16.msra.mxu1 %v16119_v30  ;;  %5090 = vmatprep.subr.bf16.mxu0 %v15848_v31  ;;  %v275_v30 = vld [vmem:[#allocation3 + $0x318] sm:$0xff]  ;;  %v16232_v35 = vcombine.high %v786_v28, %v794_v29  ;;  %v16231_v44 = vcombine.low %v786_v28, %v794_v29 }
 0x137   :  { %5133 = vmatprep.subr.bf16.mxu1 %v16104_v32  ;;  %v283_v31 = vld [vmem:[#allocation3 + $0x358] sm:$0xff]  ;;  %v16247_v32 = vcombine.low %v802_v19, %v810_v20 }
 0x138   :  { %v15722_v36 = vcombine.high %v275_v30, %v283_v31 }
 0x139   :  { %5091 = vmatpush2.bf16.msra.mxu0 %v15847_v38  ;;  %v778_v38 = vld [vmem:[#allocation3 + $0x12d0] sm:$0xff] }
 0x13a   :  { %5134 = vmatpush2.bf16.msra.mxu1 %v16103_v39  ;;  %5092 = vmatprep.subr.bf16.mxu0 %v15832_v40  ;;  %v18354_v40 = vld [vmem:[%s19058_s0] ss:$24 sps:$4 sm:$0xff]  }
 0x13b   :  { %5135 = vmatprep.subr.bf16.mxu1 %v16088_v41  ;;  %v259_v41 = vld [vmem:[#allocation3 + $0x298] sm:$0xff] }
 0x13c   :  { %v15706_v48 = vcombine.high %v259_v41, %v267_v42  ;;  %v15705_v57 = vcombine.low %v259_v41, %v267_v42  ;;  %v914_v41 = vld [vmem:[#allocation3 + $0x1710] sm:$0xff] }
 0x13d   :  { %5093 = vmatpush2.bf16.msra.mxu0 %v15831_v45  ;;  %v922_v42 = vld [vmem:[#allocation3 + $0x1750] sm:$0xff] }
 0x13e   :  { %5136 = vmatpush2.bf16.msra.mxu1 %v16087_v46  ;;  %5094 = vmatprep.subr.bf16.mxu0 %v15816_v47  ;;  %v15721_v46 = vcombine.low %v275_v30, %v283_v31  ;;  %v16216_v47 = vcombine.high %v770_v37, %v778_v38  ;;  %v930_v31 = vld [vmem:[#allocation3 + $0x1790] sm:$0xff] }
 0x13f   :  { %5137 = vmatprep.subr.bf16.mxu1 %v16072_v59 }
 0x141   :  { %5095 = vmatpush2.bf16.msra.mxu0 %v15815_v51  ;;  %v243_v51 = vld [vmem:[#allocation3 + $0x218] sm:$0xff] }
 0x142   :  { %5138 = vmatpush2.bf16.msra.mxu1 %v16071_v52  ;;  %5096 = vmatprep.subr.bf16.mxu0 %v15800_v53  ;;  %v251_v52 = vld [vmem:[#allocation3 + $0x258] sm:$0xff] }
 0x143   :  { %5139 = vmatprep.subr.bf16.mxu1 %v16056_v54  ;;  %v16215_v54 = vcombine.low %v770_v37, %v778_v38  ;;  %v15690_v60 = vcombine.high %v243_v51, %v251_v52 }
 0x145   :  { %5097 = vmatpush2.bf16.msra.mxu0 %v15799_v61  ;;  %v738_v61 = vld [vmem:[#allocation3 + $0x1190] sm:$0xff] }
 0x146   :  { %5140 = vmatpush2.bf16.msra.mxu1 %v16055_v62  ;;  %5098 = vmatprep.subr.bf16.mxu0 %v15784_v63  ;;  %v746_v62 = vld [vmem:[#allocation3 + $0x11d0] sm:$0xff]  ;;  %v227_v63 = vld [vmem:[#allocation3 + $0x198] sm:$0xff] }
 0x147   :  { %5141 = vmatprep.subr.bf16.mxu1 %v16040_v0  ;;  %v235_v0 = vld [vmem:[#allocation3 + $0x1d8] sm:$0xff]  ;;  %v16184_v2 = vcombine.high %v738_v61, %v746_v62 }
 0x148   :  { %v15674_v3 = vcombine.high %v227_v63, %v235_v0  ;;  %v15673_v9 = vcombine.low %v227_v63, %v235_v0  ;;  %v379_v63 = vld [vmem:[#allocation3 + $0x658] sm:$0xff] }
 0x149   :  { %5099 = vmatpush2.bf16.msra.mxu0 %v15783_v5  ;;  %v730_v5 = vld [vmem:[#allocation3 + $0x1150] sm:$0xff] }
 0x14a   :  { %5142 = vmatpush2.bf16.msra.mxu1 %v16039_v6  ;;  %5100 = vmatprep.subr.bf16.mxu0 %v15768_v7  ;;  %v211_v6 = vld [vmem:[#allocation3 + $0x118] sm:$0xff]  ;;  %v16168_v10 = vcombine.high %v722_v4, %v730_v5 }
 0x14b   :  { %5143 = vmatprep.subr.bf16.mxu1 %v16024_v8  ;;  %v219_v7 = vld [vmem:[#allocation3 + $0x158] sm:$0xff]  ;;  %v16183_v8 = vcombine.low %v738_v61, %v746_v62  ;;  %v890_v61 = vld [vmem:[#allocation3 + $0x1650] sm:$0xff] }
 0x14c   :  { %v15658_v11 = vcombine.high %v211_v6, %v219_v7  ;;  %v15657_v19 = vcombine.low %v211_v6, %v219_v7  ;;  %v371_v62 = vld [vmem:[#allocation3 + $0x618] sm:$0xff] }
 0x14d   :  { %5101 = vmatpush2.bf16.msra.mxu0 %v15767_v14  ;;  %v714_v14 = vld [vmem:[#allocation3 + $0x10d0] sm:$0xff]  ;;  %v363_v6 = vld [vmem:[#allocation3 + $0x5d8] sm:$0xff] }
 0x14e   :  { %5144 = vmatpush2.bf16.msra.mxu1 %v16023_v15  ;;  %5102 = vmatprep.subr.bf16.mxu0 %v15752_v17  ;;  %v195_v15 = vld [vmem:[#allocation3 + $0x98] sm:$0xff]  ;;  %v16152_v20 = vcombine.high %v706_v13, %v714_v14 }
 0x14f   :  { %5145 = vmatprep.subr.bf16.mxu1 %v16008_v18  ;;  %v203_v17 = vld [vmem:[#allocation3 + $0xd8] sm:$0xff]  ;;  %v16167_v18 = vcombine.low %v722_v4, %v730_v5  ;;  %v874_v4 = vld [vmem:[#allocation3 + $0x15d0] sm:$0xff] }
 0x150   :  { %v15642_v21 = vcombine.high %v195_v15, %v203_v17  ;;  %v15641_v28 = vcombine.low %v195_v15, %v203_v17  ;;  %v355_v5 = vld [vmem:[#allocation3 + $0x598] sm:$0xff] }
 0x151   :  { %5103 = vmatpush2.bf16.msra.mxu0 %v15751_v24  ;;  %v698_v24 = vld [vmem:[#allocation3 + $0x1050] sm:$0xff]  ;;  %v347_v15 = vld [vmem:[#allocation3 + $0x558] sm:$0xff] }
 0x152   :  { %5146 = vmatpush2.bf16.msra.mxu1 %v16007_v25  ;;  %5158 = vmatprep.subr.bf16.mxu0 %v16248_v26  ;;  %v179_v25 = vld [vmem:[#allocation3 + $0x18] sm:$0xff]  ;;  %v16136_v29 = vcombine.high %v690_v23, %v698_v24 }
 0x153   :  { %5201 = vmatprep.subr.bf16.mxu1 %v15738_v27  ;;  %v187_v26 = vld [vmem:[#allocation3 + $0x58] sm:$0xff]  ;;  %v16151_v27 = vcombine.low %v706_v13, %v714_v14  ;;  %v858_v13 = vld [vmem:[#allocation3 + $0x1550] sm:$0xff] }
 0x154   :  { %v4848_v39 = vpop.f32.mrf.mxu0  ;;  %5105 = vmatmul.mubr.bf16.vlgmr.msra.gmra.mxu0 %v18354_v40  ;;  %v15626_v30 = vcombine.high %v179_v25, %v187_v26  ;;  %v15625_v37 = vcombine.low %v179_v25, %v187_v26  ;;  %v339_v14 = vld [vmem:[#allocation3 + $0x518] sm:$0xff] }
 0x155   :  { %v4891_v43 = vpop.f32.mrf.mxu1  ;;  %5148 = vmatmul.mubr.bf16.vlgmr.msra.gmra.mxu1 %v18335_v34  ;;  %5159 = vmatpush1.bf16.msra.mxu0 %v16247_v32  ;;  %v18367_v34 = vld [vmem:[%s19058_s0 + $0x14] ss:$24 sps:$4 sm:$0xff]   ;;  %v331_v25 = vld [vmem:[#allocation3 + $0x4d8] sm:$0xff] }
 0x156   :  { %v18358_v56 = vadd.f32 %v4891_v43, %v4848_v39  ;;  %5202 = vmatpush1.bf16.msra.mxu1 %v15737_v33  ;;  %v18360_v45 = vpop.f32.mrf.mxu0  ;;  %5160 = vmatprep.subr.bf16.mxu0 %v16232_v35  ;;  %v938_v32 = vld [vmem:[#allocation3 + $0x17d0] sm:$0xff]  ;;  %v419_v33 = vld [vmem:[#allocation3 + $0x798] sm:$0xff] }
 0x157   :  { %v18362_v59 = vpop.f32.mrf.mxu1  ;;  %5203 = vmatprep.subr.bf16.mxu1 %v15722_v36  ;;  %5190 = vmatprep.mubr.bf16.mxu0 %v18367_v34  ;;  %v427_v35 = vld [vmem:[#allocation3 + $0x7d8] sm:$0xff]  ;;  %v16135_v36 = vcombine.low %v690_v23, %v698_v24  ;;  %v16376_v38 = vcombine.high %v930_v31, %v938_v32  ;;  %v842_v23 = vld [vmem:[#allocation3 + $0x14d0] sm:$0xff] }
 0x158   :  { %v4852_v50 = vpop.f32.mrf.mxu0  ;;  %5233 = vmatprep.mubr.bf16.mxu1 %v18342_v12  ;;  %v15689_v12 = vcombine.low %v243_v51, %v251_v52  ;;  %v15866_v39 = vcombine.high %v419_v33, %v427_v35  ;;  %v403_v43 = vld [vmem:[#allocation3 + $0x718] sm:$0xff] }
 0x159   :  { %v4895_v53 = vpop.f32.mrf.mxu1  ;;  %5161 = vmatpush1.bf16.msra.mxu0 %v16231_v44  ;;  %v411_v44 = vld [vmem:[#allocation3 + $0x758] sm:$0xff] }
 0x15a   :  { %v18371_v55 = vadd.f32 %v4895_v53, %v4852_v50  ;;  %5204 = vmatpush1.bf16.msra.mxu1 %v15721_v46  ;;  %5162 = vmatprep.subr.bf16.mxu0 %v16216_v47  ;;  %v16375_v46 = vcombine.low %v930_v31, %v938_v32  ;;  %v15865_v47 = vcombine.low %v419_v33, %v427_v35  ;;  %v906_v50 = vld [vmem:[#allocation3 + $0x16d0] sm:$0xff]  ;;  %v387_v51 = vld [vmem:[#allocation3 + $0x698] sm:$0xff] }
 0x15b   :  { %5205 = vmatprep.subr.bf16.mxu1 %v15706_v48  ;;  %v16360_v48 = vcombine.high %v914_v41, %v922_v42  ;;  %v15850_v22 = vcombine.high %v403_v43, %v411_v44  ;;  %v395_v52 = vld [vmem:[#allocation3 + $0x6d8] sm:$0xff]  ;;  %v16359_v53 = vcombine.low %v914_v41, %v922_v42  ;;  %v16343_v0 = vcombine.low %v898_v49, %v906_v50  ;;  %v826_v31 = vld [vmem:[#allocation3 + $0x1450] sm:$0xff] }
 0x15c   :  { %v323_v24 = vld [vmem:[#allocation3 + $0x498] sm:$0xff] }
 0x15d   :  { %5163 = vmatpush1.bf16.msra.mxu0 %v16215_v54  ;;  %v15849_v54 = vcombine.low %v403_v43, %v411_v44  ;;  %v307_v32 = vld [vmem:[#allocation3 + $0x418] sm:$0xff] }
 0x15e   :  { %5206 = vmatpush1.bf16.msra.mxu1 %v15705_v57  ;;  %5164 = vmatprep.subr.bf16.mxu0 %v16200_v58  ;;  %v16344_v57 = vcombine.high %v898_v49, %v906_v50  ;;  %v15834_v58 = vcombine.high %v387_v51, %v395_v52  ;;  %v315_v33 = vld [vmem:[#allocation3 + $0x458] sm:$0xff] }
 0x15f   :  { %5207 = vmatprep.subr.bf16.mxu1 %v15690_v60  ;;  %v882_v60 = vld [vmem:[#allocation3 + $0x1610] sm:$0xff]  ;;  %v547_v41 = vld [vmem:[#allocation3 + $0xb98] sm:$0xff] }
 0x160   :  { %v16327_v7 = vcombine.low %v882_v60, %v890_v61  ;;  %v555_v42 = vld [vmem:[#allocation3 + $0xbd8] sm:$0xff] }
 0x161   :  { %5165 = vmatpush1.bf16.msra.mxu0 %v16199_v1  ;;  %v15833_v1 = vcombine.low %v387_v51, %v395_v52  ;;  %v803_v43 = vld [vmem:[#allocation3 + $0x1398] sm:$0xff] }
 0x162   :  { %5208 = vmatpush1.bf16.msra.mxu1 %v15689_v12  ;;  %5166 = vmatprep.subr.bf16.mxu0 %v16184_v2  ;;  %v16328_v12 = vcombine.high %v882_v60, %v890_v61  ;;  %v15818_v2 = vcombine.high %v371_v62, %v379_v63  ;;  %v811_v44 = vld [vmem:[#allocation3 + $0x13d8] sm:$0xff]  ;;  %v18380_v60 = vld [vmem:[#allocation5] sm:$0xff] }
 0x163   :  { %5209 = vmatprep.subr.bf16.mxu1 %v15674_v3  ;;  %v866_v3 = vld [vmem:[#allocation3 + $0x1590] sm:$0xff]  ;;  %v16250_v49 = vcombine.high %v803_v43, %v811_v44  ;;  %v531_v50 = vld [vmem:[#allocation3 + $0xb18] sm:$0xff]  ;;  %v16249_v61 = vcombine.low %v803_v43, %v811_v44 }
 0x164   :  { %v16311_v17 = vcombine.low %v866_v3, %v874_v4  ;;  %v539_v51 = vld [vmem:[#allocation3 + $0xb58] sm:$0xff] }
 0x165   :  { %5167 = vmatpush1.bf16.msra.mxu0 %v16183_v8  ;;  %v15817_v8 = vcombine.low %v371_v62, %v379_v63  ;;  %v787_v52 = vld [vmem:[#allocation3 + $0x1318] sm:$0xff]  ;;  %v15978_v62 = vcombine.high %v531_v50, %v539_v51 }
 0x166   :  { %5210 = vmatpush1.bf16.msra.mxu1 %v15673_v9  ;;  %5168 = vmatprep.subr.bf16.mxu0 %v16168_v10  ;;  %v16312_v9 = vcombine.high %v866_v3, %v874_v4  ;;  %v15802_v10 = vcombine.high %v355_v5, %v363_v6  ;;  %v771_v3 = vld [vmem:[#allocation3 + $0x1298] sm:$0xff] }
 0x167   :  { %5211 = vmatprep.subr.bf16.mxu1 %v15658_v11  ;;  %v850_v11 = vld [vmem:[#allocation3 + $0x1510] sm:$0xff]  ;;  %v779_v4 = vld [vmem:[#allocation3 + $0x12d8] sm:$0xff] }
 0x168   :  { %v16295_v26 = vcombine.low %v850_v11, %v858_v13  ;;  %v451_v43 = vld [vmem:[#allocation3 + $0x898] sm:$0xff] }
 0x169   :  { %5169 = vmatpush1.bf16.msra.mxu0 %v16167_v18  ;;  %v15801_v18 = vcombine.low %v355_v5, %v363_v6  ;;  %v459_v44 = vld [vmem:[#allocation3 + $0x8d8] sm:$0xff] }
 0x16a   :  { %5212 = vmatpush1.bf16.msra.mxu1 %v15657_v19  ;;  %5170 = vmatprep.subr.bf16.mxu0 %v16152_v20  ;;  %v16296_v19 = vcombine.high %v850_v11, %v858_v13  ;;  %v15786_v20 = vcombine.high %v339_v14, %v347_v15  ;;  %v16218_v11 = vcombine.high %v771_v3, %v779_v4  ;;  %v499_v13 = vld [vmem:[#allocation3 + $0xa18] sm:$0xff] }
 0x16b   :  { %5213 = vmatprep.subr.bf16.mxu1 %v15642_v21  ;;  %v834_v21 = vld [vmem:[#allocation3 + $0x1490] sm:$0xff] }
 0x16c   :  { %v16279_v35 = vcombine.low %v834_v21, %v842_v23 }
 0x16d   :  { %5171 = vmatpush1.bf16.msra.mxu0 %v16151_v27  ;;  %v15785_v27 = vcombine.low %v339_v14, %v347_v15  ;;  %v507_v14 = vld [vmem:[#allocation3 + $0xa58] sm:$0xff] }
 0x16e   :  { %5214 = vmatpush1.bf16.msra.mxu1 %v15641_v28  ;;  %5172 = vmatprep.subr.bf16.mxu0 %v16136_v29  ;;  %v16280_v28 = vcombine.high %v834_v21, %v842_v23  ;;  %v15770_v29 = vcombine.high %v323_v24, %v331_v25  ;;  %v755_v15 = vld [vmem:[#allocation3 + $0x1218] sm:$0xff]  ;;  %v15946_v21 = vcombine.high %v499_v13, %v507_v14 }
 0x16f   :  { %5215 = vmatprep.subr.bf16.mxu1 %v15626_v30  ;;  %v818_v30 = vld [vmem:[#allocation3 + $0x1410] sm:$0xff] }
 0x171   :  { %5173 = vmatpush1.bf16.msra.mxu0 %v16135_v36  ;;  %v5949_v36 = vlaneseq }
 0x172   :  { %5216 = vmatpush1.bf16.msra.mxu1 %v15625_v37  ;;  %5174 = vmatprep.subr.bf16.mxu0 %v16376_v38  ;;  %v15769_v37 = vcombine.low %v323_v24, %v331_v25  ;;  %v16264_v38 = vcombine.high %v818_v30, %v826_v31  ;;  %v483_v25 = vld [vmem:[#allocation3 + $0x998] sm:$0xff] }
 0x173   :  { %5217 = vmatprep.subr.bf16.mxu1 %v15866_v39  ;;  %v15754_v39 = vcombine.high %v307_v32, %v315_v33 }
 0x175   :  { %5175 = vmatpush2.bf16.msra.mxu0 %v16375_v46  ;;  %v16263_v46 = vcombine.low %v818_v30, %v826_v31 }
 0x176   :  { %5218 = vmatpush2.bf16.msra.mxu1 %v15865_v47  ;;  %5176 = vmatprep.subr.bf16.mxu0 %v16360_v48  ;;  %v18373_v47 = vshrl.u32 %v5949_v36, 7  ;;  %v15753_v48 = vcombine.low %v307_v32, %v315_v33  ;;  %v467_v33 = vld [vmem:[#allocation3 + $0x918] sm:$0xff] }
 0x177   :  { %5219 = vmatprep.subr.bf16.mxu1 %v15850_v22  ;;  %v15994_v22 = vcombine.high %v547_v41, %v555_v42  ;;  %v723_v36 = vld [vmem:[#allocation3 + $0x1118] sm:$0xff] }
 0x179   :  { %5177 = vmatpush2.bf16.msra.mxu0 %v16359_v53  ;;  %v795_v53 = vld [vmem:[#allocation3 + $0x1358] sm:$0xff] }
 0x17a   :  { %5220 = vmatpush2.bf16.msra.mxu1 %v15849_v54  ;;  %5178 = vmatprep.subr.bf16.mxu0 %v16344_v57  ;;  %v18376_v54 = vsub.s32 0, %v18373_v47  ;;  %v15993_v57 = vcombine.low %v547_v41, %v555_v42  ;;  %v16234_v63 = vcombine.high %v787_v52, %v795_v53 }
 0x17b   :  { %5221 = vmatprep.subr.bf16.mxu1 %v15834_v58  ;;  %v18378_v58 = vpop.f32.mrf.mxu0 }
 0x17c   :  { %19079 = vst [vmem:[#allocation17_spill] sm:$0xff] %v18376_v54  ;;  %v5952_v6 = vrot.slane %v18380_v60, %v18376_v54 }
 0x17d   :  { %5179 = vmatpush2.bf16.msra.mxu0 %v16343_v0  ;;  %v515_v0 = vld [vmem:[#allocation3 + $0xa98] sm:$0xff] }
 0x17e   :  { %5222 = vmatpush2.bf16.msra.mxu1 %v15833_v1  ;;  %5180 = vmatprep.subr.bf16.mxu0 %v16328_v12  ;;  %v523_v1 = vld [vmem:[#allocation3 + $0xad8] sm:$0xff] }
 0x17f   :  { %5223 = vmatprep.subr.bf16.mxu1 %v15818_v2  ;;  %v18385_v2 = vld [vmem:[%s19058_s0 + $0x10] ss:$24 sps:$4 sm:$0xff]  }
 0x181   :  { %5181 = vmatpush2.bf16.msra.mxu0 %v16327_v7  ;;  %v15977_v7 = vcombine.low %v531_v50, %v539_v51  ;;  %v15898_v50 = vcombine.high %v451_v43, %v459_v44 }
 0x182   :  { %5224 = vmatpush2.bf16.msra.mxu1 %v15817_v8  ;;  %5182 = vmatprep.subr.bf16.mxu0 %v16312_v9  ;;  %v16233_v9 = vcombine.low %v787_v52, %v795_v53  ;;  %v435_v52 = vld [vmem:[#allocation3 + $0x818] sm:$0xff] }
 0x183   :  { %5225 = vmatprep.subr.bf16.mxu1 %v15802_v10  ;;  %v15962_v10 = vcombine.high %v515_v0, %v523_v1  ;;  %v443_v53 = vld [vmem:[#allocation3 + $0x858] sm:$0xff] }
 0x185   :  { %5183 = vmatpush2.bf16.msra.mxu0 %v16311_v17  ;;  %v763_v17 = vld [vmem:[#allocation3 + $0x1258] sm:$0xff] }
 0x186   :  { %5226 = vmatpush2.bf16.msra.mxu1 %v15801_v18  ;;  %5184 = vmatprep.subr.bf16.mxu0 %v16296_v19  ;;  %v15961_v19 = vcombine.low %v515_v0, %v523_v1  ;;  %v16202_v24 = vcombine.high %v755_v15, %v763_v17  ;;  %v15882_v0 = vcombine.high %v435_v52, %v443_v53 }
 0x187   :  { %5227 = vmatprep.subr.bf16.mxu1 %v15786_v20  ;;  %v16217_v20 = vcombine.low %v771_v3, %v779_v4  ;;  %v683_v3 = vld [vmem:[#allocation3 + $0xfd8] sm:$0xff] }
 0x188   :  { %v931_v4 = vld [vmem:[#allocation3 + $0x1798] sm:$0xff] }
 0x189   :  { %5185 = vmatpush2.bf16.msra.mxu0 %v16295_v26  ;;  %v491_v26 = vld [vmem:[#allocation3 + $0x9d8] sm:$0xff] }
 0x18a   :  { %5228 = vmatpush2.bf16.msra.mxu1 %v15785_v27  ;;  %5186 = vmatprep.subr.bf16.mxu0 %v16280_v28  ;;  %v747_v27 = vld [vmem:[#allocation3 + $0x11d8] sm:$0xff]  ;;  %v15930_v30 = vcombine.high %v483_v25, %v491_v26 }
 0x18b   :  { %5229 = vmatprep.subr.bf16.mxu1 %v15770_v29 }
 0x18d   :  { %5187 = vmatpush2.bf16.msra.mxu0 %v16279_v35  ;;  %v475_v35 = vld [vmem:[#allocation3 + $0x958] sm:$0xff] }
 0x18e   :  { %5230 = vmatpush2.bf16.msra.mxu1 %v15769_v37  ;;  %5188 = vmatprep.subr.bf16.mxu0 %v16264_v38  ;;  %v731_v37 = vld [vmem:[#allocation3 + $0x1158] sm:$0xff]  ;;  %v15929_v38 = vcombine.low %v483_v25, %v491_v26  ;;  %v15914_v41 = vcombine.high %v467_v33, %v475_v35 }
 0x18f   :  { %5231 = vmatprep.subr.bf16.mxu1 %v15754_v39  ;;  %v16170_v42 = vcombine.high %v723_v36, %v731_v37 }
 0x191   :  { %5189 = vmatpush2.bf16.msra.mxu0 %v16263_v46  ;;  %v707_v46 = vld [vmem:[#allocation3 + $0x1098] sm:$0xff] }
 0x192   :  { %5232 = vmatpush2.bf16.msra.mxu1 %v15753_v48  ;;  %5244 = vmatprep.subr.bf16.mxu0 %v15994_v22  ;;  %v715_v48 = vld [vmem:[#allocation3 + $0x10d8] sm:$0xff]  ;;  %v15913_v22 = vcombine.low %v467_v33, %v475_v35 }
 0x193   :  { %5287 = vmatprep.subr.bf16.mxu1 %v16250_v49  ;;  %v16169_v49 = vcombine.low %v723_v36, %v731_v37  ;;  %v16154_v51 = vcombine.high %v707_v46, %v715_v48  ;;  %v611_v35 = vld [vmem:[#allocation3 + $0xd98] sm:$0xff] }
 0x194   :  { %v4934_v12 = vpop.f32.mrf.mxu0  ;;  %5191 = vmatmul.mubr.bf16.vlgmr.msra.gmra.mxu0 %v18385_v2  ;;  %v619_v36 = vld [vmem:[#allocation3 + $0xdd8] sm:$0xff] }
 0x195   :  { %v4935_v5 = vadd.f32 %v4934_v12, %v18358_v56  ;;  %5234 = vmatmul.mubr.bf16.vlgmr.msra.gmra.mxu1 %v18354_v40  ;;  %5245 = vmatpush1.bf16.msra.mxu0 %v15993_v57  ;;  %v691_v57 = vld [vmem:[#allocation3 + $0x1018] sm:$0xff] }
 0x196   :  { %5288 = vmatpush1.bf16.msra.mxu1 %v16249_v61  ;;  %v18392_v8 = vpop.f32.mrf.mxu0  ;;  %5246 = vmatprep.subr.bf16.mxu0 %v15978_v62  ;;  %v699_v61 = vld [vmem:[#allocation3 + $0x1058] sm:$0xff]  ;;  %v15897_v62 = vcombine.low %v451_v43, %v459_v44 }
 0x197   :  { %5289 = vmatprep.subr.bf16.mxu1 %v16234_v63  ;;  %5276 = vmatprep.mubr.bf16.mxu0 %v18348_v16  ;;  %v6029_v40 = vadd.f32 %v5952_v6, %v4935_v5  ;;  %v739_v16 = vld [vmem:[#allocation3 + $0x1198] sm:$0xff]  ;;  %v16153_v63 = vcombine.low %v707_v46, %v715_v48  ;;  %v16138_v1 = vcombine.high %v691_v57, %v699_v61 }
 0x198   :  { %v4938_v56 = vpop.f32.mrf.mxu0  ;;  %5319 = vmatprep.mubr.bf16.mxu1 %v18367_v34  ;;  %v15945_v34 = vcombine.low %v499_v13, %v507_v14  ;;  %v16186_v32 = vcombine.high %v739_v16, %v747_v27  ;;  %v16185_v39 = vcombine.low %v739_v16, %v747_v27  ;;  %v675_v12 = vld [vmem:[#allocation3 + $0xf98] sm:$0xff] }
 0x199   :  { %v4939_v18 = vadd.f32 %v4938_v56, %v18371_v55  ;;  %5247 = vmatpush1.bf16.msra.mxu0 %v15977_v7  ;;  %v6061_v28 = vmax.f32 %v6029_v40, 0.0  ;;  %v16201_v55 = vcombine.low %v755_v15, %v763_v17  ;;  %v939_v5 = vld [vmem:[#allocation3 + $0x17d8] sm:$0xff]  ;;  %v16137_v7 = vcombine.low %v691_v57, %v699_v61 }
 0x19a   :  { %5290 = vmatpush1.bf16.msra.mxu1 %v16233_v9  ;;  %5248 = vmatprep.subr.bf16.mxu0 %v15962_v10  ;;  %v16122_v9 = vcombine.high %v675_v12, %v683_v3  ;;  %v16378_v10 = vcombine.high %v931_v4, %v939_v5  ;;  %v667_v13 = vld [vmem:[#allocation3 + $0xf58] sm:$0xff]  ;;  %v16121_v15 = vcombine.low %v675_v12, %v683_v3 }
 0x19b   :  { %v6045_v23 = vadd.f32 %v5952_v6, %v4939_v18  ;;  %5291 = vmatprep.subr.bf16.mxu1 %v16218_v11  ;;  %v15881_v6 = vcombine.low %v435_v52, %v443_v53  ;;  %v659_v11 = vld [vmem:[#allocation3 + $0xf18] sm:$0xff]  ;;  %v16377_v17 = vcombine.low %v931_v4, %v939_v5 }
 0x19c   :  { %v915_v14 = vld [vmem:[#allocation3 + $0x1718] sm:$0xff]  ;;  %v16106_v40 = vcombine.high %v659_v11, %v667_v13 }
 0x19d   :  { %v6077_v29 = vmax.f32 %v6045_v23, 0.0  ;;  %5249 = vmatpush1.bf16.msra.mxu0 %v15961_v19  ;;  %v923_v56 = vld [vmem:[#allocation3 + $0x1758] sm:$0xff] }
 0x19e   :  { %5292 = vmatpush1.bf16.msra.mxu1 %v16217_v20  ;;  %5250 = vmatprep.subr.bf16.mxu0 %v15946_v21  ;;  %v16362_v18 = vcombine.high %v915_v14, %v923_v56  ;;  %v643_v19 = vld [vmem:[#allocation3 + $0xe98] sm:$0xff]  ;;  %v16361_v25 = vcombine.low %v915_v14, %v923_v56 }
 0x19f   :  { %v18397_v31 = vpack.c.bf16 %v6077_v29, %v6061_v28  ;;  %5293 = vmatprep.subr.bf16.mxu1 %v16202_v24  ;;  %v651_v20 = vld [vmem:[#allocation3 + $0xed8] sm:$0xff]  ;;  %v16105_v24 = vcombine.low %v659_v11, %v667_v13 }
 0x1a0   :  { %v899_v21 = vld [vmem:[#allocation3 + $0x1698] sm:$0xff]  ;;  %v16090_v26 = vcombine.high %v643_v19, %v651_v20 }
 0x1a1   :  { %5251 = vmatpush1.bf16.msra.mxu0 %v15945_v34  ;;  %v907_v23 = vld [vmem:[#allocation3 + $0x16d8] sm:$0xff] }
 0x1a2   :  { %5294 = vmatpush1.bf16.msra.mxu1 %v16201_v55  ;;  %5252 = vmatprep.subr.bf16.mxu0 %v15930_v30  ;;  %v16346_v16 = vcombine.high %v899_v21, %v907_v23  ;;  %v627_v27 = vld [vmem:[#allocation3 + $0xe18] sm:$0xff]  ;;  %v16089_v55 = vcombine.low %v643_v19, %v651_v20  ;;  %v16345_v30 = vcombine.low %v899_v21, %v907_v23 }
 0x1a3   :  { %5295 = vmatprep.subr.bf16.mxu1 %v16186_v32  ;;  %v635_v28 = vld [vmem:[#allocation3 + $0xe58] sm:$0xff] }
 0x1a4   :  { %v883_v29 = vld [vmem:[#allocation3 + $0x1618] sm:$0xff]  ;;  %v16074_v32 = vcombine.high %v627_v27, %v635_v28 }
 0x1a5   :  { %5253 = vmatpush1.bf16.msra.mxu0 %v15929_v38  ;;  %v891_v34 = vld [vmem:[#allocation3 + $0x1658] sm:$0xff] }
 0x1a6   :  { %5296 = vmatpush1.bf16.msra.mxu1 %v16185_v39  ;;  %5254 = vmatprep.subr.bf16.mxu0 %v15914_v41  ;;  %v16330_v33 = vcombine.high %v883_v29, %v891_v34  ;;  %v867_v37 = vld [vmem:[#allocation3 + $0x1598] sm:$0xff]  ;;  %v16073_v39 = vcombine.low %v627_v27, %v635_v28  ;;  %v16329_v41 = vcombine.low %v883_v29, %v891_v34  ;;  %v540_v27 = vld [vmem:[#allocation3 + $0xb60] sm:$0xff]  ;;  %v18403_v29 = vpop.f32.mrf.mxu0 }
 0x1a7   :  { %5297 = vmatprep.subr.bf16.mxu1 %v16170_v42  ;;  %v875_v38 = vld [vmem:[#allocation3 + $0x15d8] sm:$0xff]  ;;  %v16058_v42 = vcombine.high %v611_v35, %v619_v36 }
 0x1a8   :  { %v16314_v43 = vcombine.high %v867_v37, %v875_v38  ;;  %v595_v44 = vld [vmem:[#allocation3 + $0xd18] sm:$0xff] }
 0x1a9   :  { %5255 = vmatpush1.bf16.msra.mxu0 %v15913_v22  ;;  %v603_v46 = vld [vmem:[#allocation3 + $0xd58] sm:$0xff] }
 0x1aa   :  { %5298 = vmatpush1.bf16.msra.mxu1 %v16169_v49  ;;  %5256 = vmatprep.subr.bf16.mxu0 %v15898_v50  ;;  %v851_v48 = vld [vmem:[#allocation3 + $0x1518] sm:$0xff]  ;;  %v16057_v49 = vcombine.low %v611_v35, %v619_v36  ;;  %v16313_v50 = vcombine.low %v867_v37, %v875_v38  ;;  %v260_v35 = vld [vmem:[#allocation3 + $0x2a0] sm:$0xff] }
 0x1ab   :  { %5299 = vmatprep.subr.bf16.mxu1 %v16154_v51  ;;  %v859_v22 = vld [vmem:[#allocation3 + $0x1558] sm:$0xff]  ;;  %v16042_v51 = vcombine.high %v595_v44, %v603_v46  ;;  %v268_v36 = vld [vmem:[#allocation3 + $0x2e0] sm:$0xff] }
 0x1ac   :  { %v16298_v52 = vcombine.high %v851_v48, %v859_v22  ;;  %v579_v53 = vld [vmem:[#allocation3 + $0xc98] sm:$0xff]  ;;  %v18413_v38 = vld [vmem:[%s19058_s0 + $0x8] ss:$24 sps:$4 sm:$0xff]  }
 0x1ad   :  { %5257 = vmatpush1.bf16.msra.mxu0 %v15897_v62  ;;  %v587_v57 = vld [vmem:[#allocation3 + $0xcd8] sm:$0xff] }
 0x1ae   :  { %5300 = vmatpush1.bf16.msra.mxu1 %v16153_v63  ;;  %5258 = vmatprep.subr.bf16.mxu0 %v15882_v0  ;;  %v835_v61 = vld [vmem:[#allocation3 + $0x1498] sm:$0xff]  ;;  %v18399_v63 = vpop.f32.mrf.mxu1  ;;  %v16041_v0 = vcombine.low %v595_v44, %v603_v46  ;;  %v16026_v12 = vcombine.high %v579_v53, %v587_v57 }
 0x1af   :  { %5301 = vmatprep.subr.bf16.mxu1 %v16138_v1  ;;  %v843_v62 = vld [vmem:[#allocation3 + $0x14d8] sm:$0xff]  ;;  %v16297_v1 = vcombine.low %v851_v48, %v859_v22  ;;  %v15708_v22 = vcombine.high %v260_v35, %v268_v36 }
 0x1b0   :  { %v4977_v3 = vpop.f32.mrf.mxu1  ;;  %v16282_v4 = vcombine.high %v835_v61, %v843_v62  ;;  %v563_v5 = vld [vmem:[#allocation3 + $0xc18] sm:$0xff]  ;;  %v16281_v11 = vcombine.low %v835_v61, %v843_v62  ;;  %v500_v62 = vld [vmem:[#allocation3 + $0xa20] sm:$0xff] }
 0x1b1   :  { %5259 = vmatpush1.bf16.msra.mxu0 %v15881_v6  ;;  %v571_v6 = vld [vmem:[#allocation3 + $0xc58] sm:$0xff] }
 0x1b2   :  { %5302 = vmatpush1.bf16.msra.mxu1 %v16137_v7  ;;  %5260 = vmatprep.subr.bf16.mxu0 %v16122_v9  ;;  %v819_v7 = vld [vmem:[#allocation3 + $0x1418] sm:$0xff]  ;;  %v16010_v13 = vcombine.high %v563_v5, %v571_v6  ;;  %v18401_v14 = vpop.f32.mrf.mxu1  ;;  %v16009_v19 = vcombine.low %v563_v5, %v571_v6 }
 0x1b3   :  { %5303 = vmatprep.subr.bf16.mxu1 %v16378_v10  ;;  %v827_v9 = vld [vmem:[#allocation3 + $0x1458] sm:$0xff]  ;;  %v16025_v10 = vcombine.low %v579_v53, %v587_v57  ;;  %v244_v53 = vld [vmem:[#allocation3 + $0x220] sm:$0xff] }
 0x1b4   :  { %v16266_v56 = vcombine.high %v819_v7, %v827_v9  ;;  %v16265_v20 = vcombine.low %v819_v7, %v827_v9  ;;  %v4981_v23 = vpop.f32.mrf.mxu1  ;;  %v252_v57 = vld [vmem:[#allocation3 + $0x260] sm:$0xff] }
 0x1b5   :  { %5261 = vmatpush2.bf16.msra.mxu0 %v16121_v15  ;;  %v292_v15 = vld [vmem:[#allocation3 + $0x3a0] sm:$0xff]  ;;  %v15692_v5 = vcombine.high %v244_v53, %v252_v57 }
 0x1b6   :  { %5304 = vmatpush2.bf16.msra.mxu1 %v16377_v17  ;;  %5262 = vmatprep.subr.bf16.mxu0 %v16106_v40  ;;  %v300_v17 = vld [vmem:[#allocation3 + $0x3e0] sm:$0xff] }
 0x1b7   :  { %5305 = vmatprep.subr.bf16.mxu1 %v16362_v18  ;;  %v548_v40 = vld [vmem:[#allocation3 + $0xba0] sm:$0xff]  ;;  %v15740_v21 = vcombine.high %v292_v15, %v300_v17  ;;  %v15739_v28 = vcombine.low %v292_v15, %v300_v17  ;;  %v15691_v17 = vcombine.low %v244_v53, %v252_v57 }
 0x1b8   :  { %v556_v18 = vld [vmem:[#allocation3 + $0xbe0] sm:$0xff] }
 0x1b9   :  { %5263 = vmatpush2.bf16.msra.mxu0 %v16105_v24  ;;  %v15996_v24 = vcombine.high %v548_v40, %v556_v18  ;;  %v15995_v34 = vcombine.low %v548_v40, %v556_v18 }
 0x1ba   :  { %5306 = vmatpush2.bf16.msra.mxu1 %v16361_v25  ;;  %5264 = vmatprep.subr.bf16.mxu0 %v16090_v26  ;;  %v276_v25 = vld [vmem:[#allocation3 + $0x320] sm:$0xff] }
 0x1bb   :  { %5307 = vmatprep.subr.bf16.mxu1 %v16346_v16  ;;  %v284_v26 = vld [vmem:[#allocation3 + $0x360] sm:$0xff] }
 0x1bc   :  { %v532_v16 = vld [vmem:[#allocation3 + $0xb20] sm:$0xff]  ;;  %v15723_v44 = vcombine.low %v276_v25, %v284_v26 }
 0x1bd   :  { %5265 = vmatpush2.bf16.msra.mxu0 %v16089_v55  ;;  %v15724_v55 = vcombine.high %v276_v25, %v284_v26  ;;  %v15979_v48 = vcombine.low %v532_v16, %v540_v27  ;;  %v468_v25 = vld [vmem:[#allocation3 + $0x920] sm:$0xff] }
 0x1be   :  { %5308 = vmatpush2.bf16.msra.mxu1 %v16345_v30  ;;  %5266 = vmatprep.subr.bf16.mxu0 %v16074_v32  ;;  %v18405_v30 = vpop.f32.mrf.mxu1  ;;  %v18408_v32 = vsub.s32 2, %v18373_v47  ;;  %v476_v26 = vld [vmem:[#allocation3 + $0x960] sm:$0xff] }
 0x1bf   :  { %5309 = vmatprep.subr.bf16.mxu1 %v16330_v33  ;;  %v15980_v33 = vcombine.high %v532_v16, %v540_v27 }
 0x1c0   :  { %19080 = vst [vmem:[#allocation18_spill] sm:$0xff] %v18408_v32 }
 0x1c1   :  { %5267 = vmatpush2.bf16.msra.mxu0 %v16073_v39  ;;  %v516_v39 = vld [vmem:[#allocation3 + $0xaa0] sm:$0xff] }
 0x1c2   :  { %5310 = vmatpush2.bf16.msra.mxu1 %v16329_v41  ;;  %5268 = vmatprep.subr.bf16.mxu0 %v16058_v42  ;;  %v524_v41 = vld [vmem:[#allocation3 + $0xae0] sm:$0xff] }
 0x1c3   :  { %5311 = vmatprep.subr.bf16.mxu1 %v16314_v43 }
 0x1c5   :  { %5269 = vmatpush2.bf16.msra.mxu0 %v16057_v49 }
 0x1c6   :  { %5312 = vmatpush2.bf16.msra.mxu1 %v16313_v50  ;;  %5270 = vmatprep.subr.bf16.mxu0 %v16042_v51  ;;  %v5960_v50 = vrot.slane %v18380_v60, %v18408_v32  ;;  %v18432_v60 = vld [vmem:[%s19058_s0 + $0xc] ss:$24 sps:$4 sm:$0xff]  }
 0x1c7   :  { %5313 = vmatprep.subr.bf16.mxu1 %v16298_v52  ;;  %v15964_v52 = vcombine.high %v516_v39, %v524_v41 }
 0x1c9   :  { %5271 = vmatpush2.bf16.msra.mxu0 %v16041_v0  ;;  %v508_v0 = vld [vmem:[#allocation3 + $0xa60] sm:$0xff] }
 0x1ca   :  { %5314 = vmatpush2.bf16.msra.mxu1 %v16297_v1  ;;  %5272 = vmatprep.subr.bf16.mxu0 %v16026_v12  ;;  %v15707_v12 = vcombine.low %v260_v35, %v268_v36  ;;  %v15948_v9 = vcombine.high %v500_v62, %v508_v0  ;;  %v15947_v40 = vcombine.low %v500_v62, %v508_v0  ;;  %v204_v35 = vld [vmem:[#allocation3 + $0xe0] sm:$0xff] }
 0x1cb   :  { %5315 = vmatprep.subr.bf16.mxu1 %v16282_v4  ;;  %v15963_v4 = vcombine.low %v516_v39, %v524_v41  ;;  %v452_v36 = vld [vmem:[#allocation3 + $0x8a0] sm:$0xff]  ;;  %v15915_v41 = vcombine.low %v468_v25, %v476_v26 }
 0x1cc   :  { %v428_v62 = vld [vmem:[#allocation3 + $0x7e0] sm:$0xff] }
 0x1cd   :  { %5273 = vmatpush2.bf16.msra.mxu0 %v16025_v10  ;;  %v228_v10 = vld [vmem:[#allocation3 + $0x1a0] sm:$0xff] }
 0x1ce   :  { %5316 = vmatpush2.bf16.msra.mxu1 %v16281_v11  ;;  %5274 = vmatprep.subr.bf16.mxu0 %v16010_v13  ;;  %v236_v11 = vld [vmem:[#allocation3 + $0x1e0] sm:$0xff] }
 0x1cf   :  { %5317 = vmatprep.subr.bf16.mxu1 %v16266_v56  ;;  %v484_v13 = vld [vmem:[#allocation3 + $0x9a0] sm:$0xff]  ;;  %v15676_v18 = vcombine.high %v228_v10, %v236_v11  ;;  %v15675_v27 = vcombine.low %v228_v10, %v236_v11 }
 0x1d0   :  { %v492_v56 = vld [vmem:[#allocation3 + $0x9e0] sm:$0xff] }
 0x1d1   :  { %5275 = vmatpush2.bf16.msra.mxu0 %v16009_v19  ;;  %v676_v0 = vld [vmem:[#allocation3 + $0xfa0] sm:$0xff] }
 0x1d2   :  { %5318 = vmatpush2.bf16.msra.mxu1 %v16265_v20  ;;  %5330 = vmatprep.subr.bf16.mxu0 %v15740_v21  ;;  %v15932_v21 = vcombine.high %v484_v13, %v492_v56  ;;  %v668_v10 = vld [vmem:[#allocation3 + $0xf60] sm:$0xff] }
 0x1d3   :  { %5373 = vmatprep.subr.bf16.mxu1 %v15996_v24  ;;  %v220_v24 = vld [vmem:[#allocation3 + $0x160] sm:$0xff] }
 0x1d4   :  { %v5020_v37 = vpop.f32.mrf.mxu0  ;;  %5277 = vmatmul.mubr.bf16.vlgmr.msra.gmra.mxu0 %v18413_v38 }
 0x1d5   :  { %v5021_v42 = vadd.f32 %v5020_v37, %v4977_v3  ;;  %v5063_v43 = vpop.f32.mrf.mxu1  ;;  %5320 = vmatmul.mubr.bf16.vlgmr.msra.gmra.mxu1 %v18385_v2  ;;  %5331 = vmatpush1.bf16.msra.mxu0 %v15739_v28  ;;  %v18426_v2 = vld [vmem:[%s19058_s0 + $0x4] ss:$24 sps:$4 sm:$0xff]   ;;  %v15931_v28 = vcombine.low %v484_v13, %v492_v56 }
 0x1d6   :  { %5374 = vmatpush1.bf16.msra.mxu1 %v15995_v34  ;;  %v18417_v46 = vpop.f32.mrf.mxu0  ;;  %5332 = vmatprep.subr.bf16.mxu0 %v15724_v55  ;;  %v15916_v55 = vcombine.high %v468_v25, %v476_v26  ;;  %v460_v37 = vld [vmem:[#allocation3 + $0x8e0] sm:$0xff] }
 0x1d7   :  { %v5064_v49 = vadd.f32 %v5063_v43, %v5021_v42  ;;  %v18421_v51 = vpop.f32.mrf.mxu1  ;;  %5375 = vmatprep.subr.bf16.mxu1 %v15980_v33  ;;  %5362 = vmatprep.mubr.bf16.mxu0 %v18426_v2  ;;  %v196_v33 = vld [vmem:[#allocation3 + $0xa0] sm:$0xff]  ;;  %v15900_v43 = vcombine.high %v452_v36, %v460_v37 }
 0x1d8   :  { %v5024_v61 = vpop.f32.mrf.mxu0  ;;  %5405 = vmatprep.mubr.bf16.mxu1 %v18432_v60  ;;  %v15644_v42 = vcombine.high %v196_v33, %v204_v35  ;;  %v372_v25 = vld [vmem:[#allocation3 + $0x620] sm:$0xff] }
 0x1d9   :  { %v5025_v1 = vadd.f32 %v5024_v61, %v4981_v23  ;;  %5333 = vmatpush1.bf16.msra.mxu0 %v15723_v44  ;;  %v5067_v3 = vpop.f32.mrf.mxu1  ;;  %v6031_v6 = vadd.f32 %v5960_v50, %v5064_v49  ;;  %v212_v23 = vld [vmem:[#allocation3 + $0x120] sm:$0xff] }
 0x1da   :  { %5376 = vmatpush1.bf16.msra.mxu1 %v15979_v48  ;;  %5334 = vmatprep.subr.bf16.mxu0 %v15708_v22  ;;  %v15660_v34 = vcombine.high %v212_v23, %v220_v24  ;;  %v15659_v39 = vcombine.low %v212_v23, %v220_v24  ;;  %v180_v44 = vld [vmem:[#allocation3 + $0x20] sm:$0xff] }
 0x1db   :  { %v5068_v7 = vadd.f32 %v5067_v3, %v5025_v1  ;;  %5377 = vmatprep.subr.bf16.mxu1 %v15964_v52  ;;  %v6063_v19 = vmax.f32 %v6031_v6, 0.0  ;;  %v188_v48 = vld [vmem:[#allocation3 + $0x60] sm:$0xff]  ;;  %v15899_v52 = vcombine.low %v452_v36, %v460_v37 }
 0x1dc   :  { %v436_v22 = vld [vmem:[#allocation3 + $0x820] sm:$0xff]  ;;  %v15628_v53 = vcombine.high %v180_v44, %v188_v48 }
 0x1dd   :  { %v6047_v15 = vadd.f32 %v5960_v50, %v5068_v7  ;;  %5335 = vmatpush1.bf16.msra.mxu0 %v15707_v12  ;;  %v444_v49 = vld [vmem:[#allocation3 + $0x860] sm:$0xff]  ;;  %v15643_v50 = vcombine.low %v196_v33, %v204_v35  ;;  %v15627_v12 = vcombine.low %v180_v44, %v188_v48 }
 0x1de   :  { %5378 = vmatpush1.bf16.msra.mxu1 %v15963_v4  ;;  %5336 = vmatprep.subr.bf16.mxu0 %v15692_v5  ;;  %v15884_v57 = vcombine.high %v436_v22, %v444_v49  ;;  %v420_v61 = vld [vmem:[#allocation3 + $0x7a0] sm:$0xff]  ;;  %v15883_v3 = vcombine.low %v436_v22, %v444_v49 }
 0x1df   :  { %v6079_v20 = vmax.f32 %v6047_v15, 0.0  ;;  %5379 = vmatprep.subr.bf16.mxu1 %v15948_v9  ;;  %v684_v1 = vld [vmem:[#allocation3 + $0xfe0] sm:$0xff]  ;;  %v15868_v4 = vcombine.high %v420_v61, %v428_v62  ;;  %v15867_v11 = vcombine.low %v420_v61, %v428_v62 }
 0x1e0   :  { %v16124_v5 = vcombine.high %v676_v0, %v684_v1  ;;  %v404_v6 = vld [vmem:[#allocation3 + $0x720] sm:$0xff]  ;;  %v16123_v13 = vcombine.low %v676_v0, %v684_v1 }
 0x1e1   :  { %v18435_v16 = vpack.c.bf16 %v6079_v20, %v6063_v19  ;;  %5337 = vmatpush1.bf16.msra.mxu0 %v15691_v17  ;;  %v412_v7 = vld [vmem:[#allocation3 + $0x760] sm:$0xff] }
 0x1e2   :  { %5380 = vmatpush1.bf16.msra.mxu1 %v15947_v40  ;;  %5338 = vmatprep.subr.bf16.mxu0 %v15676_v18  ;;  %v660_v9 = vld [vmem:[#allocation3 + $0xf20] sm:$0xff]  ;;  %v15852_v56 = vcombine.high %v404_v6, %v412_v7  ;;  %v15851_v20 = vcombine.low %v404_v6, %v412_v7 }
 0x1e3   :  { %5381 = vmatprep.subr.bf16.mxu1 %v15932_v21  ;;  %v16108_v15 = vcombine.high %v660_v9, %v668_v10  ;;  %v388_v17 = vld [vmem:[#allocation3 + $0x6a0] sm:$0xff]  ;;  %v16107_v21 = vcombine.low %v660_v9, %v668_v10 }
 0x1e4   :  { %v396_v40 = vld [vmem:[#allocation3 + $0x6e0] sm:$0xff] }
 0x1e5   :  { %5339 = vmatpush1.bf16.msra.mxu0 %v15675_v27  ;;  %v644_v18 = vld [vmem:[#allocation3 + $0xea0] sm:$0xff]  ;;  %v15836_v23 = vcombine.high %v388_v17, %v396_v40 }
 0x1e6   :  { %5382 = vmatpush1.bf16.msra.mxu1 %v15931_v28  ;;  %5340 = vmatprep.subr.bf16.mxu0 %v15660_v34  ;;  %v652_v19 = vld [vmem:[#allocation3 + $0xee0] sm:$0xff]  ;;  %v15835_v34 = vcombine.low %v388_v17, %v396_v40 }
 0x1e7   :  { %5383 = vmatprep.subr.bf16.mxu1 %v15916_v55  ;;  %v16092_v24 = vcombine.high %v644_v18, %v652_v19  ;;  %v380_v26 = vld [vmem:[#allocation3 + $0x660] sm:$0xff]  ;;  %v16091_v55 = vcombine.low %v644_v18, %v652_v19 }
 0x1e8   :  { %v628_v27 = vld [vmem:[#allocation3 + $0xe20] sm:$0xff]  ;;  %v15820_v33 = vcombine.high %v372_v25, %v380_v26 }
 0x1e9   :  { %5341 = vmatpush1.bf16.msra.mxu0 %v15659_v39  ;;  %v636_v28 = vld [vmem:[#allocation3 + $0xe60] sm:$0xff] }
 0x1ea   :  { %5384 = vmatpush1.bf16.msra.mxu1 %v15915_v41  ;;  %5342 = vmatprep.subr.bf16.mxu0 %v15644_v42  ;;  %v16076_v35 = vcombine.high %v628_v27, %v636_v28  ;;  %v356_v36 = vld [vmem:[#allocation3 + $0x5a0] sm:$0xff]  ;;  %v15819_v42 = vcombine.low %v372_v25, %v380_v26 }
 0x1eb   :  { %5385 = vmatprep.subr.bf16.mxu1 %v15900_v43  ;;  %v364_v37 = vld [vmem:[#allocation3 + $0x5e0] sm:$0xff]  ;;  %v16075_v43 = vcombine.low %v628_v27, %v636_v28 }
 0x1ec   :  { %v612_v39 = vld [vmem:[#allocation3 + $0xda0] sm:$0xff]  ;;  %v15804_v44 = vcombine.high %v356_v36, %v364_v37 }
 0x1ed   :  { %5343 = vmatpush1.bf16.msra.mxu0 %v15643_v50  ;;  %v620_v41 = vld [vmem:[#allocation3 + $0xde0] sm:$0xff] }
 0x1ee   :  { %5386 = vmatpush1.bf16.msra.mxu1 %v15899_v52  ;;  %5344 = vmatprep.subr.bf16.mxu0 %v15628_v53  ;;  %v16060_v48 = vcombine.high %v612_v39, %v620_v41  ;;  %v340_v22 = vld [vmem:[#allocation3 + $0x520] sm:$0xff]  ;;  %v15803_v53 = vcombine.low %v356_v36, %v364_v37 }
 0x1ef   :  { %5387 = vmatprep.subr.bf16.mxu1 %v15884_v57  ;;  %v348_v49 = vld [vmem:[#allocation3 + $0x560] sm:$0xff]  ;;  %v16059_v57 = vcombine.low %v612_v39, %v620_v41  ;;  %v18439_v39 = vpop.f32.mrf.mxu1 }
 0x1f0   :  { %v596_v50 = vld [vmem:[#allocation3 + $0xd20] sm:$0xff]  ;;  %v15788_v61 = vcombine.high %v340_v22, %v348_v49 }
 0x1f1   :  { %5345 = vmatpush1.bf16.msra.mxu0 %v15627_v12  ;;  %v604_v52 = vld [vmem:[#allocation3 + $0xd60] sm:$0xff] }
 0x1f2   :  { %5388 = vmatpush1.bf16.msra.mxu1 %v15883_v3  ;;  %5346 = vmatprep.subr.bf16.mxu0 %v15868_v4  ;;  %v16044_v62 = vcombine.high %v596_v50, %v604_v52  ;;  %v324_v0 = vld [vmem:[#allocation3 + $0x4a0] sm:$0xff]  ;;  %v15787_v4 = vcombine.low %v340_v22, %v348_v49  ;;  %v261_v22 = vld [vmem:[#allocation3 + $0x2a8] sm:$0xff] }
 0x1f3   :  { %5389 = vmatprep.subr.bf16.mxu1 %v16124_v5  ;;  %v332_v1 = vld [vmem:[#allocation3 + $0x4e0] sm:$0xff]  ;;  %v16043_v5 = vcombine.low %v596_v50, %v604_v52  ;;  %v269_v49 = vld [vmem:[#allocation3 + $0x2e8] sm:$0xff] }
 0x1f4   :  { %v580_v12 = vld [vmem:[#allocation3 + $0xca0] sm:$0xff]  ;;  %v15772_v6 = vcombine.high %v324_v0, %v332_v1 }
 0x1f5   :  { %5347 = vmatpush2.bf16.msra.mxu0 %v15867_v11  ;;  %v588_v3 = vld [vmem:[#allocation3 + $0xce0] sm:$0xff] }
 0x1f6   :  { %5390 = vmatpush2.bf16.msra.mxu1 %v16123_v13  ;;  %5348 = vmatprep.subr.bf16.mxu0 %v15852_v56  ;;  %v16028_v7 = vcombine.high %v580_v12, %v588_v3  ;;  %v308_v9 = vld [vmem:[#allocation3 + $0x420] sm:$0xff]  ;;  %v15771_v56 = vcombine.low %v324_v0, %v332_v1  ;;  %v15710_v1 = vcombine.high %v261_v22, %v269_v49 }
 0x1f7   :  { %5391 = vmatprep.subr.bf16.mxu1 %v16108_v15  ;;  %v316_v10 = vld [vmem:[#allocation3 + $0x460] sm:$0xff]  ;;  %v16027_v15 = vcombine.low %v580_v12, %v588_v3 }
 0x1f8   :  { %v564_v11 = vld [vmem:[#allocation3 + $0xc20] sm:$0xff]  ;;  %v15756_v17 = vcombine.high %v308_v9, %v316_v10 }
 0x1f9   :  { %5349 = vmatpush2.bf16.msra.mxu0 %v15851_v20  ;;  %v572_v13 = vld [vmem:[#allocation3 + $0xc60] sm:$0xff]  ;;  %v293_v20 = vld [vmem:[#allocation3 + $0x3a8] sm:$0xff] }
 0x1fa   :  { %5392 = vmatpush2.bf16.msra.mxu1 %v16107_v21  ;;  %5350 = vmatprep.subr.bf16.mxu0 %v15836_v23  ;;  %v16012_v40 = vcombine.high %v564_v11, %v572_v13  ;;  %v804_v18 = vld [vmem:[#allocation3 + $0x13a0] sm:$0xff]  ;;  %v301_v21 = vld [vmem:[#allocation3 + $0x3e8] sm:$0xff]  ;;  %v15755_v23 = vcombine.low %v308_v9, %v316_v10 }
 0x1fb   :  { %5393 = vmatprep.subr.bf16.mxu1 %v16092_v24  ;;  %v812_v19 = vld [vmem:[#allocation3 + $0x13e0] sm:$0xff]  ;;  %v16011_v24 = vcombine.low %v564_v11, %v572_v13  ;;  %v15742_v26 = vcombine.high %v293_v20, %v301_v21  ;;  %v15741_v36 = vcombine.low %v293_v20, %v301_v21  ;;  %v15709_v11 = vcombine.low %v261_v22, %v269_v49 }
 0x1fc   :  { %v16252_v25 = vcombine.high %v804_v18, %v812_v19  ;;  %v788_v27 = vld [vmem:[#allocation3 + $0x1320] sm:$0xff] }
 0x1fd   :  { %5351 = vmatpush2.bf16.msra.mxu0 %v15835_v34  ;;  %v796_v28 = vld [vmem:[#allocation3 + $0x1360] sm:$0xff]  ;;  %v277_v34 = vld [vmem:[#allocation3 + $0x328] sm:$0xff] }
 0x1fe   :  { %5394 = vmatpush2.bf16.msra.mxu1 %v16091_v55  ;;  %5352 = vmatprep.subr.bf16.mxu0 %v15820_v33  ;;  %v285_v55 = vld [vmem:[#allocation3 + $0x368] sm:$0xff]  ;;  %v16251_v33 = vcombine.low %v804_v18, %v812_v19  ;;  %v16236_v37 = vcombine.high %v788_v27, %v796_v28  ;;  %v16235_v52 = vcombine.low %v788_v27, %v796_v28  ;;  %v756_v12 = vld [vmem:[#allocation3 + $0x1220] sm:$0xff] }
 0x1ff   :  { %5395 = vmatprep.subr.bf16.mxu1 %v16076_v35  ;;  %v18437_v35 = vpop.f32.mrf.mxu0  ;;  %v15726_v41 = vcombine.high %v277_v34, %v285_v55  ;;  %v764_v3 = vld [vmem:[#allocation3 + $0x1260] sm:$0xff]  ;;  %v237_v18 = vld [vmem:[#allocation3 + $0x1e8] sm:$0xff] }
 0x200   :  { %v16204_v13 = vcombine.high %v756_v12, %v764_v3  ;;  %v16203_v19 = vcombine.low %v756_v12, %v764_v3  ;;  %v692_v49 = vld [vmem:[#allocation3 + $0x1020] sm:$0xff] }
 0x201   :  { %5353 = vmatpush2.bf16.msra.mxu0 %v15819_v42  ;;  %v772_v42 = vld [vmem:[#allocation3 + $0x12a0] sm:$0xff] }
 0x202   :  { %5396 = vmatpush2.bf16.msra.mxu1 %v16075_v43  ;;  %5354 = vmatprep.subr.bf16.mxu0 %v15804_v44  ;;  %v780_v43 = vld [vmem:[#allocation3 + $0x12e0] sm:$0xff] }
 0x203   :  { %5397 = vmatprep.subr.bf16.mxu1 %v16060_v48  ;;  %v18444_v48 = vld [vmem:[%s19058_s0] ss:$24 sps:$4 sm:$0xff]   ;;  %v16219_v9 = vcombine.low %v772_v42, %v780_v43 }
 0x205   :  { %5355 = vmatpush2.bf16.msra.mxu0 %v15803_v53 }
 0x206   :  { %5398 = vmatpush2.bf16.msra.mxu1 %v16059_v57  ;;  %5356 = vmatprep.subr.bf16.mxu0 %v15788_v61  ;;  %v15725_v61 = vcombine.low %v277_v34, %v285_v55 }
 0x207   :  { %5399 = vmatprep.subr.bf16.mxu1 %v16044_v62  ;;  %v16220_v62 = vcombine.high %v772_v42, %v780_v43 }
 0x209   :  { %5357 = vmatpush2.bf16.msra.mxu0 %v15787_v4 }
 0x20a   :  { %5400 = vmatpush2.bf16.msra.mxu1 %v16043_v5  ;;  %5358 = vmatprep.subr.bf16.mxu0 %v15772_v6  ;;  %v245_v5 = vld [vmem:[#allocation3 + $0x228] sm:$0xff] }
 0x20b   :  { %5401 = vmatprep.subr.bf16.mxu1 %v16028_v7  ;;  %v253_v6 = vld [vmem:[#allocation3 + $0x268] sm:$0xff] }
 0x20d   :  { %5359 = vmatpush2.bf16.msra.mxu0 %v15771_v56  ;;  %v15694_v56 = vcombine.high %v245_v5, %v253_v6 }
 0x20e   :  { %5402 = vmatpush2.bf16.msra.mxu1 %v16027_v15  ;;  %5360 = vmatprep.subr.bf16.mxu0 %v15756_v17  ;;  %v740_v15 = vld [vmem:[#allocation3 + $0x11a0] sm:$0xff] }
 0x20f   :  { %5403 = vmatprep.subr.bf16.mxu1 %v16012_v40  ;;  %v748_v17 = vld [vmem:[#allocation3 + $0x11e0] sm:$0xff]  ;;  %v229_v40 = vld [vmem:[#allocation3 + $0x1a8] sm:$0xff] }
 0x210   :  { %v16188_v20 = vcombine.high %v740_v15, %v748_v17  ;;  %v15678_v21 = vcombine.high %v229_v40, %v237_v18  ;;  %v16187_v27 = vcombine.low %v740_v15, %v748_v17  ;;  %v15677_v28 = vcombine.low %v229_v40, %v237_v18  ;;  %v916_v15 = vld [vmem:[#allocation3 + $0x1720] sm:$0xff]  ;;  %v405_v40 = vld [vmem:[#allocation3 + $0x728] sm:$0xff] }
 0x211   :  { %5361 = vmatpush2.bf16.msra.mxu0 %v15755_v23  ;;  %v724_v23 = vld [vmem:[#allocation3 + $0x1120] sm:$0xff]  ;;  %v413_v18 = vld [vmem:[#allocation3 + $0x768] sm:$0xff] }
 0x212   :  { %5404 = vmatpush2.bf16.msra.mxu1 %v16011_v24  ;;  %5416 = vmatprep.subr.bf16.mxu0 %v16252_v25  ;;  %v732_v24 = vld [vmem:[#allocation3 + $0x1160] sm:$0xff]  ;;  %v213_v25 = vld [vmem:[#allocation3 + $0x128] sm:$0xff] }
 0x213   :  { %5459 = vmatprep.subr.bf16.mxu1 %v15742_v26  ;;  %v221_v26 = vld [vmem:[#allocation3 + $0x168] sm:$0xff]  ;;  %v16172_v34 = vcombine.high %v724_v23, %v732_v24  ;;  %v16171_v42 = vcombine.low %v724_v23, %v732_v24  ;;  %v924_v17 = vld [vmem:[#allocation3 + $0x1760] sm:$0xff] }
 0x214   :  { %v5106_v44 = vpop.f32.mrf.mxu0  ;;  %5363 = vmatmul.mubr.bf16.vlgmr.msra.gmra.mxu0 %v18444_v48  ;;  %v15662_v55 = vcombine.high %v213_v25, %v221_v26  ;;  %v15661_v43 = vcombine.low %v213_v25, %v221_v26  ;;  %v900_v23 = vld [vmem:[#allocation3 + $0x16a0] sm:$0xff]  ;;  %v389_v25 = vld [vmem:[#allocation3 + $0x6a8] sm:$0xff] }
 0x215   :  { %v5149_v50 = vpop.f32.mrf.mxu1  ;;  %5406 = vmatmul.mubr.bf16.vlgmr.msra.gmra.mxu1 %v18413_v38  ;;  %5417 = vmatpush1.bf16.msra.mxu0 %v16251_v33  ;;  %v18457_v38 = vld [vmem:[%s19058_s0 + $0x14] ss:$24 sps:$4 sm:$0xff]   ;;  %v708_v33 = vld [vmem:[#allocation3 + $0x10a0] sm:$0xff] }
 0x216   :  { %v18448_v53 = vadd.f32 %v5149_v50, %v5106_v44  ;;  %5460 = vmatpush1.bf16.msra.mxu1 %v15741_v36  ;;  %v18450_v57 = vpop.f32.mrf.mxu0  ;;  %5418 = vmatprep.subr.bf16.mxu0 %v16236_v37  ;;  %v716_v36 = vld [vmem:[#allocation3 + $0x10e0] sm:$0xff]  ;;  %v197_v37 = vld [vmem:[#allocation3 + $0xa8] sm:$0xff] }
 0x217   :  { %v18452_v0 = vpop.f32.mrf.mxu1  ;;  %5461 = vmatprep.subr.bf16.mxu1 %v15726_v41  ;;  %5448 = vmatprep.mubr.bf16.mxu0 %v18457_v38  ;;  %v205_v41 = vld [vmem:[#allocation3 + $0xe8] sm:$0xff]  ;;  %v16156_v44 = vcombine.high %v708_v33, %v716_v36  ;;  %v700_v50 = vld [vmem:[#allocation3 + $0x1060] sm:$0xff] }
 0x218   :  { %v5110_v4 = vpop.f32.mrf.mxu0  ;;  %5491 = vmatprep.mubr.bf16.mxu1 %v18426_v2  ;;  %v15693_v2 = vcombine.low %v245_v5, %v253_v6  ;;  %v15646_v22 = vcombine.high %v197_v37, %v205_v41  ;;  %v16140_v12 = vcombine.high %v692_v49, %v700_v50  ;;  %v940_v5 = vld [vmem:[#allocation3 + $0x17e0] sm:$0xff]  ;;  %v421_v6 = vld [vmem:[#allocation3 + $0x7a8] sm:$0xff] }
 0x219   :  { %v5153_v7 = vpop.f32.mrf.mxu1  ;;  %5419 = vmatpush1.bf16.msra.mxu0 %v16235_v52  ;;  %v181_v52 = vld [vmem:[#allocation3 + $0x28] sm:$0xff]  ;;  %v908_v24 = vld [vmem:[#allocation3 + $0x16e0] sm:$0xff] }
 0x21a   :  { %v18461_v10 = vadd.f32 %v5153_v7, %v5110_v4  ;;  %5462 = vmatpush1.bf16.msra.mxu1 %v15725_v61  ;;  %5420 = vmatprep.subr.bf16.mxu0 %v16220_v62  ;;  %v189_v61 = vld [vmem:[#allocation3 + $0x68] sm:$0xff]  ;;  %v16155_v62 = vcombine.low %v708_v33, %v716_v36  ;;  %v932_v4 = vld [vmem:[#allocation3 + $0x17a0] sm:$0xff] }
 0x21b   :  { %5463 = vmatprep.subr.bf16.mxu1 %v15710_v1  ;;  %v15645_v1 = vcombine.low %v197_v37, %v205_v41  ;;  %v15630_v3 = vcombine.high %v181_v52, %v189_v61  ;;  %v429_v7 = vld [vmem:[#allocation3 + $0x7e8] sm:$0xff]  ;;  %v884_v33 = vld [vmem:[#allocation3 + $0x1620] sm:$0xff] }
 0x21c   :  { %v397_v26 = vld [vmem:[#allocation3 + $0x6e8] sm:$0xff]  ;;  %v892_v36 = vld [vmem:[#allocation3 + $0x1660] sm:$0xff] }
 0x21d   :  { %5421 = vmatpush1.bf16.msra.mxu0 %v16219_v9  ;;  %v16139_v9 = vcombine.low %v692_v49, %v700_v50  ;;  %v373_v37 = vld [vmem:[#allocation3 + $0x628] sm:$0xff]  ;;  %v868_v49 = vld [vmem:[#allocation3 + $0x15a0] sm:$0xff] }
 0x21e   :  { %5464 = vmatpush1.bf16.msra.mxu1 %v15709_v11  ;;  %5422 = vmatprep.subr.bf16.mxu0 %v16204_v13  ;;  %v15629_v11 = vcombine.low %v181_v52, %v189_v61  ;;  %v16380_v13 = vcombine.high %v932_v4, %v940_v5  ;;  %v381_v41 = vld [vmem:[#allocation3 + $0x668] sm:$0xff]  ;;  %v876_v50 = vld [vmem:[#allocation3 + $0x15e0] sm:$0xff] }
 0x21f   :  { %5465 = vmatprep.subr.bf16.mxu1 %v15694_v56  ;;  %v15870_v56 = vcombine.high %v421_v6, %v429_v7  ;;  %v357_v52 = vld [vmem:[#allocation3 + $0x5a8] sm:$0xff] }
 0x220   :  { %v365_v61 = vld [vmem:[#allocation3 + $0x5e8] sm:$0xff] }
 0x221   :  { %5423 = vmatpush1.bf16.msra.mxu0 %v16203_v19  ;;  %v16379_v19 = vcombine.low %v932_v4, %v940_v5  ;;  %v852_v4 = vld [vmem:[#allocation3 + $0x1520] sm:$0xff] }
 0x222   :  { %5466 = vmatpush1.bf16.msra.mxu1 %v15693_v2  ;;  %5424 = vmatprep.subr.bf16.mxu0 %v16188_v20  ;;  %v15869_v2 = vcombine.low %v421_v6, %v429_v7  ;;  %v16364_v20 = vcombine.high %v916_v15, %v924_v17  ;;  %v860_v5 = vld [vmem:[#allocation3 + $0x1560] sm:$0xff]  ;;  %v341_v6 = vld [vmem:[#allocation3 + $0x528] sm:$0xff] }
 0x223   :  { %5467 = vmatprep.subr.bf16.mxu1 %v15678_v21  ;;  %v15854_v21 = vcombine.high %v405_v40, %v413_v18  ;;  %v349_v7 = vld [vmem:[#allocation3 + $0x568] sm:$0xff] }
 0x225   :  { %5425 = vmatpush1.bf16.msra.mxu0 %v16187_v27  ;;  %v16363_v27 = vcombine.low %v916_v15, %v924_v17  ;;  %v836_v15 = vld [vmem:[#allocation3 + $0x14a0] sm:$0xff] }
 0x226   :  { %5468 = vmatpush1.bf16.msra.mxu1 %v15677_v28  ;;  %5426 = vmatprep.subr.bf16.mxu0 %v16172_v34  ;;  %v15853_v28 = vcombine.low %v405_v40, %v413_v18  ;;  %v16348_v34 = vcombine.high %v900_v23, %v908_v24  ;;  %v844_v17 = vld [vmem:[#allocation3 + $0x14e0] sm:$0xff]  ;;  %v325_v40 = vld [vmem:[#allocation3 + $0x4a8] sm:$0xff] }
 0x227   :  { %5469 = vmatprep.subr.bf16.mxu1 %v15662_v55  ;;  %v15838_v55 = vcombine.high %v389_v25, %v397_v26  ;;  %v333_v18 = vld [vmem:[#allocation3 + $0x4e8] sm:$0xff] }
 0x229   :  { %5427 = vmatpush1.bf16.msra.mxu0 %v16171_v42  ;;  %v16347_v42 = vcombine.low %v900_v23, %v908_v24  ;;  %v820_v23 = vld [vmem:[#allocation3 + $0x1420] sm:$0xff] }
 0x22a   :  { %5470 = vmatpush1.bf16.msra.mxu1 %v15661_v43  ;;  %5428 = vmatprep.subr.bf16.mxu0 %v16156_v44  ;;  %v15837_v43 = vcombine.low %v389_v25, %v397_v26  ;;  %v16332_v44 = vcombine.high %v884_v33, %v892_v36  ;;  %v828_v24 = vld [vmem:[#allocation3 + $0x1460] sm:$0xff]  ;;  %v309_v25 = vld [vmem:[#allocation3 + $0x428] sm:$0xff] }
 0x22b   :  { %5471 = vmatprep.subr.bf16.mxu1 %v15646_v22  ;;  %v15822_v22 = vcombine.high %v373_v37, %v381_v41  ;;  %v317_v26 = vld [vmem:[#allocation3 + $0x468] sm:$0xff] }
 0x22d   :  { %5429 = vmatpush1.bf16.msra.mxu0 %v16155_v62  ;;  %v16331_v62 = vcombine.low %v884_v33, %v892_v36  ;;  %v549_v33 = vld [vmem:[#allocation3 + $0xba8] sm:$0xff] }
 0x22e   :  { %5472 = vmatpush1.bf16.msra.mxu1 %v15645_v1  ;;  %5430 = vmatprep.subr.bf16.mxu0 %v16140_v12  ;;  %v15821_v1 = vcombine.low %v373_v37, %v381_v41  ;;  %v16316_v12 = vcombine.high %v868_v49, %v876_v50  ;;  %v557_v36 = vld [vmem:[#allocation3 + $0xbe8] sm:$0xff] }
 0x22f   :  { %5473 = vmatprep.subr.bf16.mxu1 %v15630_v3  ;;  %v15806_v3 = vcombine.high %v357_v52, %v365_v61  ;;  %v805_v37 = vld [vmem:[#allocation3 + $0x13a8] sm:$0xff] }
 0x230   :  { %v813_v41 = vld [vmem:[#allocation3 + $0x13e8] sm:$0xff] }
 0x231   :  { %5431 = vmatpush1.bf16.msra.mxu0 %v16139_v9  ;;  %v16315_v9 = vcombine.low %v868_v49, %v876_v50  ;;  %v533_v49 = vld [vmem:[#allocation3 + $0xb28] sm:$0xff] }
 0x232   :  { %5474 = vmatpush1.bf16.msra.mxu1 %v15629_v11  ;;  %5432 = vmatprep.subr.bf16.mxu0 %v16380_v13  ;;  %v15805_v11 = vcombine.low %v357_v52, %v365_v61  ;;  %v16300_v13 = vcombine.high %v852_v4, %v860_v5  ;;  %v541_v50 = vld [vmem:[#allocation3 + $0xb68] sm:$0xff] }
 0x233   :  { %5475 = vmatprep.subr.bf16.mxu1 %v15870_v56  ;;  %v15790_v56 = vcombine.high %v341_v6, %v349_v7  ;;  %v789_v52 = vld [vmem:[#allocation3 + $0x1328] sm:$0xff] }
 0x234   :  { %v797_v61 = vld [vmem:[#allocation3 + $0x1368] sm:$0xff] }
 0x235   :  { %5433 = vmatpush2.bf16.msra.mxu0 %v16379_v19  ;;  %v16299_v19 = vcombine.low %v852_v4, %v860_v5  ;;  %v15982_v4 = vcombine.high %v533_v49, %v541_v50  ;;  %v16238_v5 = vcombine.high %v789_v52, %v797_v61 }
 0x236   :  { %5476 = vmatpush2.bf16.msra.mxu1 %v15869_v2  ;;  %5434 = vmatprep.subr.bf16.mxu0 %v16364_v20  ;;  %v15789_v2 = vcombine.low %v341_v6, %v349_v7  ;;  %v16284_v20 = vcombine.high %v836_v15, %v844_v17  ;;  %v517_v6 = vld [vmem:[#allocation3 + $0xaa8] sm:$0xff] }
 0x237   :  { %5477 = vmatprep.subr.bf16.mxu1 %v15854_v21  ;;  %v15774_v21 = vcombine.high %v325_v40, %v333_v18  ;;  %v525_v7 = vld [vmem:[#allocation3 + $0xae8] sm:$0xff] }
 0x239   :  { %5435 = vmatpush2.bf16.msra.mxu0 %v16363_v27  ;;  %v16283_v27 = vcombine.low %v836_v15, %v844_v17  ;;  %v18475_v17 = vld [vmem:[#allocation5] sm:$0xff] }
 0x23a   :  { %5478 = vmatpush2.bf16.msra.mxu1 %v15853_v28  ;;  %5436 = vmatprep.subr.bf16.mxu0 %v16348_v34  ;;  %v15773_v28 = vcombine.low %v325_v40, %v333_v18  ;;  %v16268_v34 = vcombine.high %v820_v23, %v828_v24  ;;  %v15981_v18 = vcombine.low %v533_v49, %v541_v50 }
 0x23b   :  { %5479 = vmatprep.subr.bf16.mxu1 %v15838_v55  ;;  %v15758_v55 = vcombine.high %v309_v25, %v317_v26 }
 0x23d   :  { %5437 = vmatpush2.bf16.msra.mxu0 %v16347_v42  ;;  %v16267_v42 = vcombine.low %v820_v23, %v828_v24  ;;  %v501_v23 = vld [vmem:[#allocation3 + $0xa28] sm:$0xff] }
 0x23e   :  { %5480 = vmatpush2.bf16.msra.mxu1 %v15837_v43  ;;  %5438 = vmatprep.subr.bf16.mxu0 %v16332_v44  ;;  %v15757_v43 = vcombine.low %v309_v25, %v317_v26  ;;  %v15998_v44 = vcombine.high %v549_v33, %v557_v36  ;;  %v509_v24 = vld [vmem:[#allocation3 + $0xa68] sm:$0xff] }
 0x23f   :  { %5481 = vmatprep.subr.bf16.mxu1 %v15822_v22  ;;  %v16254_v22 = vcombine.high %v805_v37, %v813_v41  ;;  %v757_v25 = vld [vmem:[#allocation3 + $0x1228] sm:$0xff] }
 0x240   :  { %v765_v26 = vld [vmem:[#allocation3 + $0x1268] sm:$0xff] }
 0x241   :  { %5439 = vmatpush2.bf16.msra.mxu0 %v16331_v62  ;;  %v18464_v62 = vsub.s32 4, %v18373_v47 }
 0x242   :  { %5482 = vmatpush2.bf16.msra.mxu1 %v15821_v1  ;;  %5440 = vmatprep.subr.bf16.mxu0 %v16316_v12  ;;  %v15997_v1 = vcombine.low %v549_v33, %v557_v36  ;;  %v18466_v12 = vpop.f32.mrf.mxu0  ;;  %v16206_v36 = vcombine.high %v757_v25, %v765_v26 }
 0x243   :  { %5483 = vmatprep.subr.bf16.mxu1 %v15806_v3  ;;  %19081 = vst [vmem:[#allocation19_spill] sm:$0xff] %v18464_v62  ;;  %v16253_v3 = vcombine.low %v805_v37, %v813_v41  ;;  %v5968_v40 = vrot.slane %v18475_v17, %v18464_v62  ;;  %v485_v37 = vld [vmem:[#allocation3 + $0x9a8] sm:$0xff] }
 0x244   :  { %v493_v41 = vld [vmem:[#allocation3 + $0x9e8] sm:$0xff] }
 0x245   :  { %5441 = vmatpush2.bf16.msra.mxu0 %v16315_v9 }
 0x246   :  { %5484 = vmatpush2.bf16.msra.mxu1 %v15805_v11  ;;  %5442 = vmatprep.subr.bf16.mxu0 %v16300_v13  ;;  %v18471_v11 = vld [vmem:[%s19058_s0 + $0x10] ss:$24 sps:$4 sm:$0xff]  }
 0x247   :  { %5485 = vmatprep.subr.bf16.mxu1 %v15790_v56  ;;  %v773_v13 = vld [vmem:[#allocation3 + $0x12a8] sm:$0xff] }
 0x248   :  { %v781_v56 = vld [vmem:[#allocation3 + $0x12e8] sm:$0xff] }
 0x249   :  { %5443 = vmatpush2.bf16.msra.mxu0 %v16299_v19 }
 0x24a   :  { %5486 = vmatpush2.bf16.msra.mxu1 %v15789_v2  ;;  %5444 = vmatprep.subr.bf16.mxu0 %v16284_v20  ;;  %v16237_v2 = vcombine.low %v789_v52, %v797_v61  ;;  %v15966_v20 = vcombine.high %v517_v6, %v525_v7  ;;  %v469_v52 = vld [vmem:[#allocation3 + $0x928] sm:$0xff] }
 0x24b   :  { %5487 = vmatprep.subr.bf16.mxu1 %v15774_v21  ;;  %v16222_v21 = vcombine.high %v773_v13, %v781_v56  ;;  %v477_v61 = vld [vmem:[#allocation3 + $0x968] sm:$0xff] }
 0x24d   :  { %5445 = vmatpush2.bf16.msra.mxu0 %v16283_v27 }
 0x24e   :  { %5488 = vmatpush2.bf16.msra.mxu1 %v15773_v28  ;;  %5446 = vmatprep.subr.bf16.mxu0 %v16268_v34  ;;  %v15965_v28 = vcombine.low %v517_v6, %v525_v7  ;;  %v16221_v34 = vcombine.low %v773_v13, %v781_v56  ;;  %v15918_v6 = vcombine.high %v469_v52, %v477_v61  ;;  %v461_v13 = vld [vmem:[#allocation3 + $0x8e8] sm:$0xff] }
 0x24f   :  { %5489 = vmatprep.subr.bf16.mxu1 %v15758_v55  ;;  %v15950_v55 = vcombine.high %v501_v23, %v509_v24  ;;  %v709_v56 = vld [vmem:[#allocation3 + $0x10a8] sm:$0xff] }
 0x251   :  { %5447 = vmatpush2.bf16.msra.mxu0 %v16267_v42  ;;  %v749_v42 = vld [vmem:[#allocation3 + $0x11e8] sm:$0xff] }
 0x252   :  { %5490 = vmatpush2.bf16.msra.mxu1 %v15757_v43  ;;  %5502 = vmatprep.subr.bf16.mxu0 %v15998_v44 }
 0x253   :  { %5545 = vmatprep.subr.bf16.mxu1 %v16254_v22  ;;  %v15934_v22 = vcombine.high %v485_v37, %v493_v41 }
 0x254   :  { %v5192_v9 = vpop.f32.mrf.mxu0  ;;  %5449 = vmatmul.mubr.bf16.vlgmr.msra.gmra.mxu0 %v18471_v11 }
 0x255   :  { %v5193_v15 = vadd.f32 %v5192_v9, %v18448_v53  ;;  %5492 = vmatmul.mubr.bf16.vlgmr.msra.gmra.mxu1 %v18444_v48  ;;  %5503 = vmatpush1.bf16.msra.mxu0 %v15997_v1  ;;  %v725_v1 = vld [vmem:[#allocation3 + $0x1128] sm:$0xff] }
 0x256   :  { %5546 = vmatpush1.bf16.msra.mxu1 %v16253_v3  ;;  %v18480_v19 = vpop.f32.mrf.mxu0  ;;  %5504 = vmatprep.subr.bf16.mxu0 %v15982_v4  ;;  %v733_v3 = vld [vmem:[#allocation3 + $0x1168] sm:$0xff]  ;;  %v15933_v4 = vcombine.low %v485_v37, %v493_v41 }
 0x257   :  { %5547 = vmatprep.subr.bf16.mxu1 %v16238_v5  ;;  %5534 = vmatprep.mubr.bf16.mxu0 %v18432_v60  ;;  %v6033_v48 = vadd.f32 %v5968_v40, %v5193_v15  ;;  %v741_v60 = vld [vmem:[#allocation3 + $0x11a8] sm:$0xff]  ;;  %v16174_v7 = vcombine.high %v725_v1, %v733_v3 }
 0x258   :  { %v5196_v53 = vpop.f32.mrf.mxu0  ;;  %5577 = vmatprep.mubr.bf16.mxu1 %v18457_v38  ;;  %v15949_v38 = vcombine.low %v501_v23, %v509_v24  ;;  %v16190_v50 = vcombine.high %v741_v60, %v749_v42  ;;  %v16189_v5 = vcombine.low %v741_v60, %v749_v42  ;;  %v453_v9 = vld [vmem:[#allocation3 + $0x8a8] sm:$0xff] }
 0x259   :  { %v5197_v27 = vadd.f32 %v5196_v53, %v18461_v10  ;;  %5505 = vmatpush1.bf16.msra.mxu0 %v15981_v18  ;;  %v6065_v43 = vmax.f32 %v6033_v48, 0.0  ;;  %v16205_v10 = vcombine.low %v757_v25, %v765_v26  ;;  %v717_v15 = vld [vmem:[#allocation3 + $0x10e8] sm:$0xff]  ;;  %v16173_v18 = vcombine.low %v725_v1, %v733_v3 }
 0x25a   :  { %5548 = vmatpush1.bf16.msra.mxu1 %v16237_v2  ;;  %5506 = vmatprep.subr.bf16.mxu0 %v15966_v20  ;;  %v15902_v2 = vcombine.high %v453_v9, %v461_v13  ;;  %v16158_v20 = vcombine.high %v709_v56, %v717_v15  ;;  %v445_v23 = vld [vmem:[#allocation3 + $0x868] sm:$0xff]  ;;  %v15901_v25 = vcombine.low %v453_v9, %v461_v13 }
 0x25b   :  { %v6049_v33 = vadd.f32 %v5968_v40, %v5197_v27  ;;  %5549 = vmatprep.subr.bf16.mxu1 %v16222_v21  ;;  %v15917_v40 = vcombine.low %v469_v52, %v477_v61  ;;  %v437_v21 = vld [vmem:[#allocation3 + $0x828] sm:$0xff]  ;;  %v16157_v26 = vcombine.low %v709_v56, %v717_v15 }
 0x25c   :  { %v693_v24 = vld [vmem:[#allocation3 + $0x1028] sm:$0xff]  ;;  %v15886_v48 = vcombine.high %v437_v21, %v445_v23 }
 0x25d   :  { %v6081_v44 = vmax.f32 %v6049_v33, 0.0  ;;  %5507 = vmatpush1.bf16.msra.mxu0 %v15965_v28  ;;  %v701_v53 = vld [vmem:[#allocation3 + $0x1068] sm:$0xff] }
 0x25e   :  { %5550 = vmatpush1.bf16.msra.mxu1 %v16221_v34  ;;  %5508 = vmatprep.subr.bf16.mxu0 %v15950_v55  ;;  %v16142_v27 = vcombine.high %v693_v24, %v701_v53  ;;  %v677_v28 = vld [vmem:[#allocation3 + $0xfa8] sm:$0xff]  ;;  %v16141_v37 = vcombine.low %v693_v24, %v701_v53 }
 0x25f   :  { %v18485_v49 = vpack.c.bf16 %v6081_v44, %v6065_v43  ;;  %5551 = vmatprep.subr.bf16.mxu1 %v16206_v36  ;;  %v685_v34 = vld [vmem:[#allocation3 + $0xfe8] sm:$0xff]  ;;  %v15885_v36 = vcombine.low %v437_v21, %v445_v23 }
 0x260   :  { %v933_v55 = vld [vmem:[#allocation3 + $0x17a8] sm:$0xff]  ;;  %v16126_v41 = vcombine.high %v677_v28, %v685_v34 }
 0x261   :  { %19082 = vst [vmem:[#allocation20_spill] sm:$0xff] %v18485_v49  ;;  %5509 = vmatpush1.bf16.msra.mxu0 %v15949_v38  ;;  %v941_v33 = vld [vmem:[#allocation3 + $0x17e8] sm:$0xff] }
 0x262   :  { %5552 = vmatpush1.bf16.msra.mxu1 %v16205_v10  ;;  %5510 = vmatprep.subr.bf16.mxu0 %v15934_v22  ;;  %v16382_v60 = vcombine.high %v933_v55, %v941_v33  ;;  %v661_v42 = vld [vmem:[#allocation3 + $0xf28] sm:$0xff]  ;;  %v16125_v10 = vcombine.low %v677_v28, %v685_v34  ;;  %v16381_v22 = vcombine.low %v933_v55, %v941_v33 }
 0x263   :  { %5553 = vmatprep.subr.bf16.mxu1 %v16190_v50  ;;  %v669_v43 = vld [vmem:[#allocation3 + $0xf68] sm:$0xff] }
 0x264   :  { %v917_v44 = vld [vmem:[#allocation3 + $0x1728] sm:$0xff]  ;;  %v16110_v50 = vcombine.high %v661_v42, %v669_v43 }
 0x265   :  { %5511 = vmatpush1.bf16.msra.mxu0 %v15933_v4  ;;  %v925_v38 = vld [vmem:[#allocation3 + $0x1768] sm:$0xff] }
 0x266   :  { %5554 = vmatpush1.bf16.msra.mxu1 %v16189_v5  ;;  %5512 = vmatprep.subr.bf16.mxu0 %v15918_v6  ;;  %v16366_v52 = vcombine.high %v917_v44, %v925_v38  ;;  %v645_v61 = vld [vmem:[#allocation3 + $0xea8] sm:$0xff]  ;;  %v16109_v5 = vcombine.low %v661_v42, %v669_v43  ;;  %v16365_v6 = vcombine.low %v917_v44, %v925_v38 }
 0x267   :  { %5555 = vmatprep.subr.bf16.mxu1 %v16174_v7  ;;  %v653_v1 = vld [vmem:[#allocation3 + $0xee8] sm:$0xff] }
 0x268   :  { %v901_v3 = vld [vmem:[#allocation3 + $0x16a8] sm:$0xff]  ;;  %v16094_v7 = vcombine.high %v645_v61, %v653_v1 }
 0x269   :  { %5513 = vmatpush1.bf16.msra.mxu0 %v15917_v40  ;;  %v909_v4 = vld [vmem:[#allocation3 + $0x16e8] sm:$0xff] }
 0x26a   :  { %5556 = vmatpush1.bf16.msra.mxu1 %v16173_v18  ;;  %5514 = vmatprep.subr.bf16.mxu0 %v15902_v2  ;;  %v16350_v9 = vcombine.high %v901_v3, %v909_v4  ;;  %v629_v13 = vld [vmem:[#allocation3 + $0xe28] sm:$0xff]  ;;  %v16093_v18 = vcombine.low %v645_v61, %v653_v1  ;;  %v16349_v2 = vcombine.low %v901_v3, %v909_v4 }
 0x26b   :  { %5557 = vmatprep.subr.bf16.mxu1 %v16158_v20  ;;  %v637_v56 = vld [vmem:[#allocation3 + $0xe68] sm:$0xff] }
 0x26c   :  { %v885_v15 = vld [vmem:[#allocation3 + $0x1628] sm:$0xff]  ;;  %v16078_v20 = vcombine.high %v629_v13, %v637_v56 }
 0x26d   :  { %5515 = vmatpush1.bf16.msra.mxu0 %v15901_v25  ;;  %v893_v40 = vld [vmem:[#allocation3 + $0x1668] sm:$0xff] }
 0x26e   :  { %5558 = vmatpush1.bf16.msra.mxu1 %v16157_v26  ;;  %5516 = vmatprep.subr.bf16.mxu0 %v15886_v48  ;;  %v16334_v21 = vcombine.high %v885_v15, %v893_v40  ;;  %v613_v23 = vld [vmem:[#allocation3 + $0xda8] sm:$0xff]  ;;  %v16077_v26 = vcombine.low %v629_v13, %v637_v56  ;;  %v16333_v48 = vcombine.low %v885_v15, %v893_v40 }
 0x26f   :  { %5559 = vmatprep.subr.bf16.mxu1 %v16142_v27  ;;  %v621_v24 = vld [vmem:[#allocation3 + $0xde8] sm:$0xff] }
 0x270   :  { %v869_v53 = vld [vmem:[#allocation3 + $0x15a8] sm:$0xff]  ;;  %v16062_v27 = vcombine.high %v613_v23, %v621_v24 }
 0x271   :  { %5517 = vmatpush1.bf16.msra.mxu0 %v15885_v36  ;;  %v877_v25 = vld [vmem:[#allocation3 + $0x15e8] sm:$0xff] }
 0x272   :  { %5560 = vmatpush1.bf16.msra.mxu1 %v16141_v37  ;;  %5518 = vmatprep.subr.bf16.mxu0 %v16126_v41  ;;  %v16318_v28 = vcombine.high %v869_v53, %v877_v25  ;;  %v597_v34 = vld [vmem:[#allocation3 + $0xd28] sm:$0xff]  ;;  %v16061_v37 = vcombine.low %v613_v23, %v621_v24  ;;  %v16317_v41 = vcombine.low %v869_v53, %v877_v25 }
 0x273   :  { %5561 = vmatprep.subr.bf16.mxu1 %v16382_v60  ;;  %v605_v55 = vld [vmem:[#allocation3 + $0xd68] sm:$0xff] }
 0x274   :  { %v853_v33 = vld [vmem:[#allocation3 + $0x1528] sm:$0xff]  ;;  %v16046_v60 = vcombine.high %v597_v34, %v605_v55 }
 0x275   :  { %5519 = vmatpush2.bf16.msra.mxu0 %v16125_v10  ;;  %v861_v36 = vld [vmem:[#allocation3 + $0x1568] sm:$0xff] }
 0x276   :  { %5562 = vmatpush2.bf16.msra.mxu1 %v16381_v22  ;;  %5520 = vmatprep.subr.bf16.mxu0 %v16110_v50  ;;  %v16302_v42 = vcombine.high %v853_v33, %v861_v36  ;;  %v581_v43 = vld [vmem:[#allocation3 + $0xca8] sm:$0xff]  ;;  %v18487_v22 = vpop.f32.mrf.mxu1  ;;  %v16045_v50 = vcombine.low %v597_v34, %v605_v55  ;;  %v542_v34 = vld [vmem:[#allocation3 + $0xb70] sm:$0xff] }
 0x277   :  { %5563 = vmatprep.subr.bf16.mxu1 %v16366_v52  ;;  %v589_v44 = vld [vmem:[#allocation3 + $0xce8] sm:$0xff]  ;;  %v16301_v52 = vcombine.low %v853_v33, %v861_v36  ;;  %v18491_v33 = vpop.f32.mrf.mxu0 }
 0x278   :  { %v837_v38 = vld [vmem:[#allocation3 + $0x14a8] sm:$0xff]  ;;  %v16030_v61 = vcombine.high %v581_v43, %v589_v44  ;;  %v5235_v1 = vpop.f32.mrf.mxu1 }
 0x279   :  { %5521 = vmatpush2.bf16.msra.mxu0 %v16109_v5  ;;  %v845_v10 = vld [vmem:[#allocation3 + $0x14e8] sm:$0xff] }
 0x27a   :  { %5564 = vmatpush2.bf16.msra.mxu1 %v16365_v6  ;;  %5522 = vmatprep.subr.bf16.mxu0 %v16094_v7  ;;  %v16286_v3 = vcombine.high %v837_v38, %v845_v10  ;;  %v565_v4 = vld [vmem:[#allocation3 + $0xc28] sm:$0xff]  ;;  %v16285_v13 = vcombine.low %v837_v38, %v845_v10  ;;  %v18489_v15 = vpop.f32.mrf.mxu1 }
 0x27b   :  { %5565 = vmatprep.subr.bf16.mxu1 %v16350_v9  ;;  %v573_v5 = vld [vmem:[#allocation3 + $0xc68] sm:$0xff]  ;;  %v16029_v9 = vcombine.low %v581_v43, %v589_v44  ;;  %v262_v43 = vld [vmem:[#allocation3 + $0x2b0] sm:$0xff] }
 0x27c   :  { %v821_v6 = vld [vmem:[#allocation3 + $0x1428] sm:$0xff]  ;;  %v16014_v56 = vcombine.high %v565_v4, %v573_v5  ;;  %v16013_v23 = vcombine.low %v565_v4, %v573_v5  ;;  %v5239_v25 = vpop.f32.mrf.mxu1  ;;  %v270_v44 = vld [vmem:[#allocation3 + $0x2f0] sm:$0xff] }
 0x27d   :  { %5523 = vmatpush2.bf16.msra.mxu0 %v16093_v18  ;;  %v829_v7 = vld [vmem:[#allocation3 + $0x1468] sm:$0xff]  ;;  %v294_v18 = vld [vmem:[#allocation3 + $0x3b0] sm:$0xff] }
 0x27e   :  { %5566 = vmatpush2.bf16.msra.mxu1 %v16349_v2  ;;  %5524 = vmatprep.subr.bf16.mxu0 %v16078_v20  ;;  %v16270_v40 = vcombine.high %v821_v6, %v829_v7  ;;  %v302_v2 = vld [vmem:[#allocation3 + $0x3f0] sm:$0xff]  ;;  %v16269_v24 = vcombine.low %v821_v6, %v829_v7  ;;  %v18501_v10 = vld [vmem:[%s19058_s0 + $0x8] ss:$24 sps:$4 sm:$0xff]   ;;  %v15712_v7 = vcombine.high %v262_v43, %v270_v44 }
 0x27f   :  { %5567 = vmatprep.subr.bf16.mxu1 %v16334_v21  ;;  %v550_v20 = vld [vmem:[#allocation3 + $0xbb0] sm:$0xff]  ;;  %v15744_v53 = vcombine.high %v294_v18, %v302_v2  ;;  %v15743_v55 = vcombine.low %v294_v18, %v302_v2 }
 0x280   :  { %v558_v21 = vld [vmem:[#allocation3 + $0xbf0] sm:$0xff] }
 0x281   :  { %5525 = vmatpush2.bf16.msra.mxu0 %v16077_v26  ;;  %v16000_v26 = vcombine.high %v550_v20, %v558_v21  ;;  %v15999_v36 = vcombine.low %v550_v20, %v558_v21  ;;  %v254_v18 = vld [vmem:[#allocation3 + $0x270] sm:$0xff] }
 0x282   :  { %5568 = vmatpush2.bf16.msra.mxu1 %v16333_v48  ;;  %5526 = vmatprep.subr.bf16.mxu0 %v16062_v27  ;;  %v278_v48 = vld [vmem:[#allocation3 + $0x330] sm:$0xff] }
 0x283   :  { %5569 = vmatprep.subr.bf16.mxu1 %v16318_v28  ;;  %v286_v27 = vld [vmem:[#allocation3 + $0x370] sm:$0xff] }
 0x284   :  { %v534_v28 = vld [vmem:[#allocation3 + $0xb30] sm:$0xff]  ;;  %v15727_v4 = vcombine.low %v278_v48, %v286_v27 }
 0x285   :  { %5527 = vmatpush2.bf16.msra.mxu0 %v16061_v37  ;;  %v15728_v37 = vcombine.high %v278_v48, %v286_v27  ;;  %v15983_v6 = vcombine.low %v534_v28, %v542_v34  ;;  %v502_v20 = vld [vmem:[#allocation3 + $0xa30] sm:$0xff] }
 0x286   :  { %5570 = vmatpush2.bf16.msra.mxu1 %v16317_v41  ;;  %5528 = vmatprep.subr.bf16.mxu0 %v16046_v60  ;;  %v18493_v41 = vpop.f32.mrf.mxu1  ;;  %v18496_v60 = vsub.s32 6, %v18373_v47  ;;  %v510_v21 = vld [vmem:[#allocation3 + $0xa70] sm:$0xff] }
 0x287   :  { %5571 = vmatprep.subr.bf16.mxu1 %v16302_v42  ;;  %v15984_v42 = vcombine.high %v534_v28, %v542_v34  ;;  %v15952_v34 = vcombine.high %v502_v20, %v510_v21 }
 0x288   :  { %19083 = vst [vmem:[#allocation21_spill] sm:$0xff] %v18496_v60 }
 0x289   :  { %5529 = vmatpush2.bf16.msra.mxu0 %v16045_v50  ;;  %v518_v50 = vld [vmem:[#allocation3 + $0xab0] sm:$0xff] }
 0x28a   :  { %5572 = vmatpush2.bf16.msra.mxu1 %v16301_v52  ;;  %5530 = vmatprep.subr.bf16.mxu0 %v16030_v61  ;;  %v526_v52 = vld [vmem:[#allocation3 + $0xaf0] sm:$0xff] }
 0x28b   :  { %5573 = vmatprep.subr.bf16.mxu1 %v16286_v3 }
 0x28d   :  { %5531 = vmatpush2.bf16.msra.mxu0 %v16029_v9 }
 0x28e   :  { %5574 = vmatpush2.bf16.msra.mxu1 %v16285_v13  ;;  %5532 = vmatprep.subr.bf16.mxu0 %v16014_v56  ;;  %v5976_v13 = vrot.slane %v18475_v17, %v18496_v60  ;;  %v18520_v17 = vld [vmem:[%s19058_s0 + $0xc] ss:$24 sps:$4 sm:$0xff]  }
 0x28f   :  { %5575 = vmatprep.subr.bf16.mxu1 %v16270_v40  ;;  %v15968_v40 = vcombine.high %v518_v50, %v526_v52 }
 0x291   :  { %5533 = vmatpush2.bf16.msra.mxu0 %v16013_v23 }
 0x292   :  { %5576 = vmatpush2.bf16.msra.mxu1 %v16269_v24  ;;  %5588 = vmatprep.subr.bf16.mxu0 %v15744_v53  ;;  %v15711_v24 = vcombine.low %v262_v43, %v270_v44 }
 0x293   :  { %5631 = vmatprep.subr.bf16.mxu1 %v16000_v26  ;;  %v15967_v26 = vcombine.low %v518_v50, %v526_v52  ;;  %v214_v52 = vld [vmem:[#allocation3 + $0x130] sm:$0xff] }
 0x294   :  { %v5278_v38 = vpop.f32.mrf.mxu0  ;;  %5535 = vmatmul.mubr.bf16.vlgmr.msra.gmra.mxu0 %v18501_v10 }
 0x295   :  { %v5279_v61 = vadd.f32 %v5278_v38, %v5235_v1  ;;  %v5321_v3 = vpop.f32.mrf.mxu1  ;;  %5578 = vmatmul.mubr.bf16.vlgmr.msra.gmra.mxu1 %v18471_v11  ;;  %5589 = vmatpush1.bf16.msra.mxu0 %v15743_v55  ;;  %v246_v1 = vld [vmem:[#allocation3 + $0x230] sm:$0xff]  ;;  %v18514_v11 = vld [vmem:[%s19058_s0 + $0x4] ss:$24 sps:$4 sm:$0xff]  }
 0x296   :  { %5632 = vmatpush1.bf16.msra.mxu1 %v15999_v36  ;;  %v18505_v5 = vpop.f32.mrf.mxu0  ;;  %5590 = vmatprep.subr.bf16.mxu0 %v15728_v37  ;;  %v15696_v48 = vcombine.high %v246_v1, %v254_v18  ;;  %v230_v55 = vld [vmem:[#allocation3 + $0x1b0] sm:$0xff] }
 0x297   :  { %v5322_v9 = vadd.f32 %v5321_v3, %v5279_v61  ;;  %v18509_v56 = vpop.f32.mrf.mxu1  ;;  %5633 = vmatprep.subr.bf16.mxu1 %v15984_v42  ;;  %5620 = vmatprep.mubr.bf16.mxu0 %v18514_v11  ;;  %v238_v36 = vld [vmem:[#allocation3 + $0x1f0] sm:$0xff]  ;;  %v15695_v61 = vcombine.low %v246_v1, %v254_v18 }
 0x298   :  { %v5282_v2 = vpop.f32.mrf.mxu0  ;;  %5663 = vmatprep.mubr.bf16.mxu1 %v18520_v17  ;;  %v486_v37 = vld [vmem:[#allocation3 + $0x9b0] sm:$0xff]  ;;  %v15680_v43 = vcombine.high %v230_v55, %v238_v36 }
 0x299   :  { %v5283_v23 = vadd.f32 %v5282_v2, %v5239_v25  ;;  %5591 = vmatpush1.bf16.msra.mxu0 %v15727_v4  ;;  %v5325_v53 = vpop.f32.mrf.mxu1  ;;  %v6035_v27 = vadd.f32 %v5976_v13, %v5322_v9  ;;  %v494_v42 = vld [vmem:[#allocation3 + $0x9f0] sm:$0xff]  ;;  %v15951_v25 = vcombine.low %v502_v20, %v510_v21 }
 0x29a   :  { %5634 = vmatpush1.bf16.msra.mxu1 %v15983_v6  ;;  %5592 = vmatprep.subr.bf16.mxu0 %v15712_v7  ;;  %v15936_v50 = vcombine.high %v486_v37, %v494_v42  ;;  %v222_v4 = vld [vmem:[#allocation3 + $0x170] sm:$0xff] }
 0x29b   :  { %v5326_v28 = vadd.f32 %v5325_v53, %v5283_v23  ;;  %5635 = vmatprep.subr.bf16.mxu1 %v15968_v40  ;;  %v6067_v44 = vmax.f32 %v6035_v27, 0.0  ;;  %v470_v6 = vld [vmem:[#allocation3 + $0x930] sm:$0xff]  ;;  %v15679_v40 = vcombine.low %v230_v55, %v238_v36  ;;  %v15664_v1 = vcombine.high %v214_v52, %v222_v4 }
 0x29c   :  { %v478_v7 = vld [vmem:[#allocation3 + $0x970] sm:$0xff] }
 0x29d   :  { %v6051_v38 = vadd.f32 %v5976_v13, %v5326_v28  ;;  %5593 = vmatpush1.bf16.msra.mxu0 %v15711_v24  ;;  %v15935_v13 = vcombine.low %v486_v37, %v494_v42  ;;  %v15920_v18 = vcombine.high %v470_v6, %v478_v7  ;;  %v198_v2 = vld [vmem:[#allocation3 + $0xb0] sm:$0xff]  ;;  %v15663_v24 = vcombine.low %v214_v52, %v222_v4 }
 0x29e   :  { %5636 = vmatpush1.bf16.msra.mxu1 %v15967_v26  ;;  %5594 = vmatprep.subr.bf16.mxu0 %v15696_v48  ;;  %v206_v20 = vld [vmem:[#allocation3 + $0xf0] sm:$0xff]  ;;  %v15919_v53 = vcombine.low %v470_v6, %v478_v7 }
 0x29f   :  { %v6083_v3 = vmax.f32 %v6051_v38, 0.0  ;;  %5637 = vmatprep.subr.bf16.mxu1 %v15952_v34  ;;  %v454_v21 = vld [vmem:[#allocation3 + $0x8b0] sm:$0xff]  ;;  %v15648_v26 = vcombine.high %v198_v2, %v206_v20  ;;  %v15647_v36 = vcombine.low %v198_v2, %v206_v20 }
 0x2a0   :  { %v462_v23 = vld [vmem:[#allocation3 + $0x8f0] sm:$0xff] }
 0x2a1   :  { %v18523_v9 = vpack.c.bf16 %v6083_v3, %v6067_v44  ;;  %5595 = vmatpush1.bf16.msra.mxu0 %v15695_v61  ;;  %v15904_v48 = vcombine.high %v454_v21, %v462_v23  ;;  %v182_v27 = vld [vmem:[#allocation3 + $0x30] sm:$0xff]  ;;  %v15903_v37 = vcombine.low %v454_v21, %v462_v23 }
 0x2a2   :  { %5638 = vmatpush1.bf16.msra.mxu1 %v15951_v25  ;;  %5596 = vmatprep.subr.bf16.mxu0 %v15680_v43  ;;  %v190_v28 = vld [vmem:[#allocation3 + $0x70] sm:$0xff] }
 0x2a3   :  { %19084 = vst [vmem:[#allocation22_spill] sm:$0xff] %v18523_v9  ;;  %5639 = vmatprep.subr.bf16.mxu1 %v15936_v50  ;;  %v438_v34 = vld [vmem:[#allocation3 + $0x830] sm:$0xff]  ;;  %v15632_v42 = vcombine.high %v182_v27, %v190_v28  ;;  %v15631_v3 = vcombine.low %v182_v27, %v190_v28  ;;  %v767_v9 = vld [vmem:[#allocation3 + $0x1278] sm:$0xff] }
 0x2a4   :  { %v446_v55 = vld [vmem:[#allocation3 + $0x870] sm:$0xff] }
 0x2a5   :  { %5597 = vmatpush1.bf16.msra.mxu0 %v15679_v40  ;;  %v15888_v38 = vcombine.high %v438_v34, %v446_v55  ;;  %v422_v61 = vld [vmem:[#allocation3 + $0x7b0] sm:$0xff]  ;;  %v15887_v50 = vcombine.low %v438_v34, %v446_v55 }
 0x2a6   :  { %5640 = vmatpush1.bf16.msra.mxu1 %v15935_v13  ;;  %5598 = vmatprep.subr.bf16.mxu0 %v15664_v1  ;;  %v430_v25 = vld [vmem:[#allocation3 + $0x7f0] sm:$0xff] }
 0x2a7   :  { %5641 = vmatprep.subr.bf16.mxu1 %v15920_v18  ;;  %v678_v43 = vld [vmem:[#allocation3 + $0xfb0] sm:$0xff]  ;;  %v15872_v52 = vcombine.high %v422_v61, %v430_v25  ;;  %v15871_v1 = vcombine.low %v422_v61, %v430_v25 }
 0x2a8   :  { %v686_v44 = vld [vmem:[#allocation3 + $0xff0] sm:$0xff] }
 0x2a9   :  { %5599 = vmatpush1.bf16.msra.mxu0 %v15663_v24  ;;  %v16128_v4 = vcombine.high %v678_v43, %v686_v44  ;;  %v406_v6 = vld [vmem:[#allocation3 + $0x730] sm:$0xff]  ;;  %v16127_v18 = vcombine.low %v678_v43, %v686_v44 }
 0x2aa   :  { %5642 = vmatpush1.bf16.msra.mxu1 %v15919_v53  ;;  %5600 = vmatprep.subr.bf16.mxu0 %v15648_v26  ;;  %v414_v7 = vld [vmem:[#allocation3 + $0x770] sm:$0xff] }
 0x2ab   :  { %5643 = vmatprep.subr.bf16.mxu1 %v15904_v48  ;;  %v662_v40 = vld [vmem:[#allocation3 + $0xf30] sm:$0xff]  ;;  %v15856_v2 = vcombine.high %v406_v6, %v414_v7  ;;  %v15855_v26 = vcombine.low %v406_v6, %v414_v7 }
 0x2ac   :  { %v670_v13 = vld [vmem:[#allocation3 + $0xf70] sm:$0xff] }
 0x2ad   :  { %5601 = vmatpush1.bf16.msra.mxu0 %v15647_v36  ;;  %v16112_v20 = vcombine.high %v662_v40, %v670_v13  ;;  %v390_v21 = vld [vmem:[#allocation3 + $0x6b0] sm:$0xff]  ;;  %v16111_v48 = vcombine.low %v662_v40, %v670_v13 }
 0x2ae   :  { %5644 = vmatpush1.bf16.msra.mxu1 %v15903_v37  ;;  %5602 = vmatprep.subr.bf16.mxu0 %v15632_v42  ;;  %v398_v23 = vld [vmem:[#allocation3 + $0x6f0] sm:$0xff] }
 0x2af   :  { %5645 = vmatprep.subr.bf16.mxu1 %v15888_v38  ;;  %v646_v24 = vld [vmem:[#allocation3 + $0xeb0] sm:$0xff]  ;;  %v15840_v27 = vcombine.high %v390_v21, %v398_v23  ;;  %v15839_v42 = vcombine.low %v390_v21, %v398_v23 }
 0x2b0   :  { %v654_v53 = vld [vmem:[#allocation3 + $0xef0] sm:$0xff] }
 0x2b1   :  { %5603 = vmatpush1.bf16.msra.mxu0 %v15631_v3  ;;  %v16096_v28 = vcombine.high %v646_v24, %v654_v53  ;;  %v374_v34 = vld [vmem:[#allocation3 + $0x630] sm:$0xff]  ;;  %v16095_v38 = vcombine.low %v646_v24, %v654_v53 }
 0x2b2   :  { %5646 = vmatpush1.bf16.msra.mxu1 %v15887_v50  ;;  %5604 = vmatprep.subr.bf16.mxu0 %v15872_v52  ;;  %v382_v55 = vld [vmem:[#allocation3 + $0x670] sm:$0xff] }
 0x2b3   :  { %5647 = vmatprep.subr.bf16.mxu1 %v16128_v4  ;;  %v630_v36 = vld [vmem:[#allocation3 + $0xe30] sm:$0xff]  ;;  %v15824_v61 = vcombine.high %v374_v34, %v382_v55  ;;  %v15823_v52 = vcombine.low %v374_v34, %v382_v55 }
 0x2b4   :  { %v638_v37 = vld [vmem:[#allocation3 + $0xe70] sm:$0xff] }
 0x2b5   :  { %5605 = vmatpush2.bf16.msra.mxu0 %v15871_v1  ;;  %v16080_v25 = vcombine.high %v630_v36, %v638_v37  ;;  %v358_v43 = vld [vmem:[#allocation3 + $0x5b0] sm:$0xff]  ;;  %v16079_v4 = vcombine.low %v630_v36, %v638_v37 }
 0x2b6   :  { %5648 = vmatpush2.bf16.msra.mxu1 %v16127_v18  ;;  %5606 = vmatprep.subr.bf16.mxu0 %v15856_v2  ;;  %v366_v44 = vld [vmem:[#allocation3 + $0x5f0] sm:$0xff] }
 0x2b7   :  { %5649 = vmatprep.subr.bf16.mxu1 %v16112_v20  ;;  %v614_v3 = vld [vmem:[#allocation3 + $0xdb0] sm:$0xff]  ;;  %v15808_v6 = vcombine.high %v358_v43, %v366_v44  ;;  %v15807_v2 = vcombine.low %v358_v43, %v366_v44 }
 0x2b8   :  { %v622_v50 = vld [vmem:[#allocation3 + $0xdf0] sm:$0xff] }
 0x2b9   :  { %5607 = vmatpush2.bf16.msra.mxu0 %v15855_v26  ;;  %v16064_v7 = vcombine.high %v614_v3, %v622_v50  ;;  %v342_v40 = vld [vmem:[#allocation3 + $0x530] sm:$0xff]  ;;  %v16063_v20 = vcombine.low %v614_v3, %v622_v50 }
 0x2ba   :  { %5650 = vmatpush2.bf16.msra.mxu1 %v16111_v48  ;;  %5608 = vmatprep.subr.bf16.mxu0 %v15840_v27  ;;  %v350_v13 = vld [vmem:[#allocation3 + $0x570] sm:$0xff] }
 0x2bb   :  { %5651 = vmatprep.subr.bf16.mxu1 %v16096_v28  ;;  %v598_v1 = vld [vmem:[#allocation3 + $0xd30] sm:$0xff]  ;;  %v15792_v21 = vcombine.high %v342_v40, %v350_v13  ;;  %v15791_v27 = vcombine.low %v342_v40, %v350_v13 }
 0x2bc   :  { %v606_v18 = vld [vmem:[#allocation3 + $0xd70] sm:$0xff] }
 0x2bd   :  { %5609 = vmatpush2.bf16.msra.mxu0 %v15839_v42  ;;  %v16048_v23 = vcombine.high %v598_v1, %v606_v18  ;;  %v326_v24 = vld [vmem:[#allocation3 + $0x4b0] sm:$0xff]  ;;  %v16047_v28 = vcombine.low %v598_v1, %v606_v18 }
 0x2be   :  { %5652 = vmatpush2.bf16.msra.mxu1 %v16095_v38  ;;  %5610 = vmatprep.subr.bf16.mxu0 %v15824_v61  ;;  %v334_v53 = vld [vmem:[#allocation3 + $0x4f0] sm:$0xff] }
 0x2bf   :  { %5653 = vmatprep.subr.bf16.mxu1 %v16080_v25  ;;  %v582_v26 = vld [vmem:[#allocation3 + $0xcb0] sm:$0xff]  ;;  %v15776_v34 = vcombine.high %v326_v24, %v334_v53  ;;  %v15775_v61 = vcombine.low %v326_v24, %v334_v53 }
 0x2c0   :  { %v590_v48 = vld [vmem:[#allocation3 + $0xcf0] sm:$0xff] }
 0x2c1   :  { %5611 = vmatpush2.bf16.msra.mxu0 %v15823_v52  ;;  %v16032_v55 = vcombine.high %v582_v26, %v590_v48  ;;  %v310_v36 = vld [vmem:[#allocation3 + $0x430] sm:$0xff]  ;;  %v16031_v25 = vcombine.low %v582_v26, %v590_v48  ;;  %v295_v52 = vld [vmem:[#allocation3 + $0x3b8] sm:$0xff]  ;;  %v18527_v26 = vpop.f32.mrf.mxu1 }
 0x2c2   :  { %5654 = vmatpush2.bf16.msra.mxu1 %v16079_v4  ;;  %5612 = vmatprep.subr.bf16.mxu0 %v15808_v6  ;;  %v318_v37 = vld [vmem:[#allocation3 + $0x470] sm:$0xff]  ;;  %v303_v4 = vld [vmem:[#allocation3 + $0x3f8] sm:$0xff] }
 0x2c3   :  { %5655 = vmatprep.subr.bf16.mxu1 %v16064_v7  ;;  %v566_v42 = vld [vmem:[#allocation3 + $0xc30] sm:$0xff]  ;;  %v15760_v43 = vcombine.high %v310_v36, %v318_v37  ;;  %v15759_v6 = vcombine.low %v310_v36, %v318_v37  ;;  %v15746_v13 = vcombine.high %v295_v52, %v303_v4  ;;  %v15745_v24 = vcombine.low %v295_v52, %v303_v4  ;;  %v263_v36 = vld [vmem:[#allocation3 + $0x2b8] sm:$0xff] }
 0x2c4   :  { %v574_v38 = vld [vmem:[#allocation3 + $0xc70] sm:$0xff]  ;;  %v271_v37 = vld [vmem:[#allocation3 + $0x2f8] sm:$0xff] }
 0x2c5   :  { %5613 = vmatpush2.bf16.msra.mxu0 %v15807_v2  ;;  %v16016_v44 = vcombine.high %v566_v42, %v574_v38  ;;  %v806_v3 = vld [vmem:[#allocation3 + $0x13b0] sm:$0xff]  ;;  %v16015_v7 = vcombine.low %v566_v42, %v574_v38  ;;  %v279_v2 = vld [vmem:[#allocation3 + $0x338] sm:$0xff] }
 0x2c6   :  { %5656 = vmatpush2.bf16.msra.mxu1 %v16063_v20  ;;  %5614 = vmatprep.subr.bf16.mxu0 %v15792_v21  ;;  %v814_v50 = vld [vmem:[#allocation3 + $0x13f0] sm:$0xff]  ;;  %v287_v20 = vld [vmem:[#allocation3 + $0x378] sm:$0xff] }
 0x2c7   :  { %5657 = vmatprep.subr.bf16.mxu1 %v16048_v23  ;;  %v16256_v40 = vcombine.high %v806_v3, %v814_v50  ;;  %v790_v1 = vld [vmem:[#allocation3 + $0x1330] sm:$0xff]  ;;  %v16255_v21 = vcombine.low %v806_v3, %v814_v50  ;;  %v18525_v23 = vpop.f32.mrf.mxu0  ;;  %v15730_v48 = vcombine.high %v279_v2, %v287_v20  ;;  %v15714_v50 = vcombine.high %v263_v36, %v271_v37 }
 0x2c8   :  { %v798_v18 = vld [vmem:[#allocation3 + $0x1370] sm:$0xff] }
 0x2c9   :  { %5615 = vmatpush2.bf16.msra.mxu0 %v15791_v27  ;;  %v16240_v53 = vcombine.high %v790_v1, %v798_v18  ;;  %v774_v27 = vld [vmem:[#allocation3 + $0x12b0] sm:$0xff]  ;;  %v16239_v38 = vcombine.low %v790_v1, %v798_v18 }
 0x2ca   :  { %5658 = vmatpush2.bf16.msra.mxu1 %v16047_v28  ;;  %5616 = vmatprep.subr.bf16.mxu0 %v15776_v34  ;;  %v782_v28 = vld [vmem:[#allocation3 + $0x12f0] sm:$0xff] }
 0x2cb   :  { %5659 = vmatprep.subr.bf16.mxu1 %v16032_v55  ;;  %v18532_v55 = vld [vmem:[%s19058_s0] ss:$24 sps:$4 sm:$0xff]   ;;  %v758_v52 = vld [vmem:[#allocation3 + $0x1230] sm:$0xff]  ;;  %v16223_v1 = vcombine.low %v774_v27, %v782_v28 }
 0x2cc   :  { %v766_v4 = vld [vmem:[#allocation3 + $0x1270] sm:$0xff] }
 0x2cd   :  { %5617 = vmatpush2.bf16.msra.mxu0 %v15775_v61 }
 0x2ce   :  { %5660 = vmatpush2.bf16.msra.mxu1 %v16031_v25  ;;  %5618 = vmatprep.subr.bf16.mxu0 %v15760_v43  ;;  %v15729_v43 = vcombine.low %v279_v2, %v287_v20  ;;  %v15713_v2 = vcombine.low %v263_v36, %v271_v37  ;;  %v16208_v20 = vcombine.high %v758_v52, %v766_v4 }
 0x2cf   :  { %5661 = vmatprep.subr.bf16.mxu1 %v16016_v44  ;;  %v16224_v44 = vcombine.high %v774_v27, %v782_v28  ;;  %v726_v28 = vld [vmem:[#allocation3 + $0x1130] sm:$0xff] }
 0x2d1   :  { %5619 = vmatpush2.bf16.msra.mxu0 %v15759_v6 }
 0x2d2   :  { %5662 = vmatpush2.bf16.msra.mxu1 %v16015_v7  ;;  %5674 = vmatprep.subr.bf16.mxu0 %v16256_v40  ;;  %v247_v7 = vld [vmem:[#allocation3 + $0x238] sm:$0xff] }
 0x2d3   :  { %5717 = vmatprep.subr.bf16.mxu1 %v15746_v13  ;;  %v255_v40 = vld [vmem:[#allocation3 + $0x278] sm:$0xff] }
 0x2d4   :  { %v5364_v34 = vpop.f32.mrf.mxu0  ;;  %5621 = vmatmul.mubr.bf16.vlgmr.msra.gmra.mxu0 %v18532_v55 }
 0x2d5   :  { %v5407_v42 = vpop.f32.mrf.mxu1  ;;  %5664 = vmatmul.mubr.bf16.vlgmr.msra.gmra.mxu1 %v18501_v10  ;;  %5675 = vmatpush1.bf16.msra.mxu0 %v16255_v21  ;;  %v18545_v10 = vld [vmem:[%s19058_s0 + $0x14] ss:$24 sps:$4 sm:$0xff]   ;;  %v15698_v21 = vcombine.high %v247_v7, %v255_v40 }
 0x2d6   :  { %v18536_v61 = vadd.f32 %v5407_v42, %v5364_v34  ;;  %5718 = vmatpush1.bf16.msra.mxu1 %v15745_v24  ;;  %v18538_v25 = vpop.f32.mrf.mxu0  ;;  %5676 = vmatprep.subr.bf16.mxu0 %v16240_v53  ;;  %v742_v24 = vld [vmem:[#allocation3 + $0x11b0] sm:$0xff]  ;;  %v239_v34 = vld [vmem:[#allocation3 + $0x1f8] sm:$0xff]  ;;  %v16207_v42 = vcombine.low %v758_v52, %v766_v4 }
 0x2d7   :  { %v18540_v3 = vpop.f32.mrf.mxu1  ;;  %5719 = vmatprep.subr.bf16.mxu1 %v15730_v48  ;;  %5706 = vmatprep.mubr.bf16.mxu0 %v18545_v10  ;;  %v750_v53 = vld [vmem:[#allocation3 + $0x11f0] sm:$0xff]  ;;  %v231_v48 = vld [vmem:[#allocation3 + $0x1b8] sm:$0xff] }
 0x2d8   :  { %v5368_v6 = vpop.f32.mrf.mxu0  ;;  %5749 = vmatprep.mubr.bf16.mxu1 %v18514_v11  ;;  %v15697_v11 = vcombine.low %v247_v7, %v255_v40  ;;  %v16192_v60 = vcombine.high %v742_v24, %v750_v53  ;;  %v15682_v27 = vcombine.high %v231_v48, %v239_v34  ;;  %v16191_v36 = vcombine.low %v742_v24, %v750_v53  ;;  %v718_v52 = vld [vmem:[#allocation3 + $0x10f0] sm:$0xff]  ;;  %v199_v4 = vld [vmem:[#allocation3 + $0xb8] sm:$0xff] }
 0x2d9   :  { %v5411_v13 = vpop.f32.mrf.mxu1  ;;  %5677 = vmatpush1.bf16.msra.mxu0 %v16239_v38  ;;  %v734_v38 = vld [vmem:[#allocation3 + $0x1170] sm:$0xff]  ;;  %v15681_v37 = vcombine.low %v231_v48, %v239_v34  ;;  %v183_v53 = vld [vmem:[#allocation3 + $0x38] sm:$0xff] }
 0x2da   :  { %v18549_v18 = vadd.f32 %v5411_v13, %v5368_v6  ;;  %5720 = vmatpush1.bf16.msra.mxu1 %v15729_v43  ;;  %5678 = vmatprep.subr.bf16.mxu0 %v16224_v44  ;;  %v215_v43 = vld [vmem:[#allocation3 + $0x138] sm:$0xff]  ;;  %v710_v13 = vld [vmem:[#allocation3 + $0x10b0] sm:$0xff]  ;;  %v16175_v7 = vcombine.low %v726_v28, %v734_v38 }
 0x2db   :  { %5721 = vmatprep.subr.bf16.mxu1 %v15714_v50  ;;  %v223_v44 = vld [vmem:[#allocation3 + $0x178] sm:$0xff]  ;;  %v16176_v50 = vcombine.high %v726_v28, %v734_v38  ;;  %v702_v24 = vld [vmem:[#allocation3 + $0x1070] sm:$0xff]  ;;  %v16159_v48 = vcombine.low %v710_v13, %v718_v52 }
 0x2dc   :  { %v15666_v6 = vcombine.high %v215_v43, %v223_v44  ;;  %v15665_v40 = vcombine.low %v215_v43, %v223_v44  ;;  %v942_v28 = vld [vmem:[#allocation3 + $0x17f0] sm:$0xff]  ;;  %v423_v38 = vld [vmem:[#allocation3 + $0x7b8] sm:$0xff] }
 0x2dd   :  { %5679 = vmatpush1.bf16.msra.mxu0 %v16223_v1  ;;  %v207_v1 = vld [vmem:[#allocation3 + $0xf8] sm:$0xff] }
 0x2de   :  { %5722 = vmatpush1.bf16.msra.mxu1 %v15713_v2  ;;  %5680 = vmatprep.subr.bf16.mxu0 %v16208_v20  ;;  %v16160_v2 = vcombine.high %v710_v13, %v718_v52  ;;  %v15650_v20 = vcombine.high %v199_v4, %v207_v1  ;;  %v15649_v34 = vcombine.low %v199_v4, %v207_v1  ;;  %v926_v13 = vld [vmem:[#allocation3 + $0x1770] sm:$0xff]  ;;  %v407_v52 = vld [vmem:[#allocation3 + $0x738] sm:$0xff] }
 0x2df   :  { %5723 = vmatprep.subr.bf16.mxu1 %v15698_v21  ;;  %v694_v21 = vld [vmem:[#allocation3 + $0x1030] sm:$0xff] }
 0x2e0   :  { %v16143_v43 = vcombine.low %v694_v21, %v702_v24 }
 0x2e1   :  { %5681 = vmatpush1.bf16.msra.mxu0 %v16207_v42  ;;  %v16144_v42 = vcombine.high %v694_v21, %v702_v24  ;;  %v910_v21 = vld [vmem:[#allocation3 + $0x16f0] sm:$0xff]  ;;  %v391_v24 = vld [vmem:[#allocation3 + $0x6b8] sm:$0xff] }
 0x2e2   :  { %5724 = vmatpush1.bf16.msra.mxu1 %v15697_v11  ;;  %5682 = vmatprep.subr.bf16.mxu0 %v16192_v60  ;;  %v191_v60 = vld [vmem:[#allocation3 + $0x78] sm:$0xff] }
 0x2e3   :  { %5725 = vmatprep.subr.bf16.mxu1 %v15682_v27  ;;  %v15634_v11 = vcombine.high %v183_v53, %v191_v60  ;;  %v934_v27 = vld [vmem:[#allocation3 + $0x17b0] sm:$0xff]  ;;  %v15633_v44 = vcombine.low %v183_v53, %v191_v60 }
 0x2e4   :  { %v16383_v4 = vcombine.low %v934_v27, %v942_v28 }
 0x2e5   :  { %5683 = vmatpush1.bf16.msra.mxu0 %v16191_v36  ;;  %v431_v36 = vld [vmem:[#allocation3 + $0x7f8] sm:$0xff] }
 0x2e6   :  { %5726 = vmatpush1.bf16.msra.mxu1 %v15681_v37  ;;  %5684 = vmatprep.subr.bf16.mxu0 %v16176_v50  ;;  %v16384_v37 = vcombine.high %v934_v27, %v942_v28  ;;  %v15874_v50 = vcombine.high %v423_v38, %v431_v36  ;;  %v15873_v1 = vcombine.low %v423_v38, %v431_v36  ;;  %v894_v27 = vld [vmem:[#allocation3 + $0x1670] sm:$0xff]  ;;  %v375_v28 = vld [vmem:[#allocation3 + $0x638] sm:$0xff] }
 0x2e7   :  { %5727 = vmatprep.subr.bf16.mxu1 %v15666_v6  ;;  %v918_v6 = vld [vmem:[#allocation3 + $0x1730] sm:$0xff] }
 0x2e8   :  { %v16367_v53 = vcombine.low %v918_v6, %v926_v13 }
 0x2e9   :  { %5685 = vmatpush1.bf16.msra.mxu0 %v16175_v7  ;;  %v415_v7 = vld [vmem:[#allocation3 + $0x778] sm:$0xff] }
 0x2ea   :  { %5728 = vmatpush1.bf16.msra.mxu1 %v15665_v40  ;;  %5686 = vmatprep.subr.bf16.mxu0 %v16160_v2  ;;  %v16368_v40 = vcombine.high %v918_v6, %v926_v13  ;;  %v15858_v2 = vcombine.high %v407_v52, %v415_v7  ;;  %v15857_v60 = vcombine.low %v407_v52, %v415_v7  ;;  %v878_v6 = vld [vmem:[#allocation3 + $0x15f0] sm:$0xff]  ;;  %v359_v13 = vld [vmem:[#allocation3 + $0x5b8] sm:$0xff] }
 0x2eb   :  { %5729 = vmatprep.subr.bf16.mxu1 %v15650_v20  ;;  %v902_v20 = vld [vmem:[#allocation3 + $0x16b0] sm:$0xff] }
 0x2ec   :  { %v16351_v38 = vcombine.low %v902_v20, %v910_v21 }
 0x2ed   :  { %5687 = vmatpush1.bf16.msra.mxu0 %v16159_v48  ;;  %v399_v48 = vld [vmem:[#allocation3 + $0x6f8] sm:$0xff] }
 0x2ee   :  { %5730 = vmatpush1.bf16.msra.mxu1 %v15649_v34  ;;  %5688 = vmatprep.subr.bf16.mxu0 %v16144_v42  ;;  %v16352_v34 = vcombine.high %v902_v20, %v910_v21  ;;  %v15842_v42 = vcombine.high %v391_v24, %v399_v48  ;;  %v15841_v36 = vcombine.low %v391_v24, %v399_v48  ;;  %v862_v20 = vld [vmem:[#allocation3 + $0x1570] sm:$0xff]  ;;  %v343_v21 = vld [vmem:[#allocation3 + $0x538] sm:$0xff] }
 0x2ef   :  { %5731 = vmatprep.subr.bf16.mxu1 %v15634_v11  ;;  %v886_v11 = vld [vmem:[#allocation3 + $0x1630] sm:$0xff] }
 0x2f0   :  { %v16335_v52 = vcombine.low %v886_v11, %v894_v27 }
 0x2f1   :  { %5689 = vmatpush1.bf16.msra.mxu0 %v16143_v43  ;;  %v383_v43 = vld [vmem:[#allocation3 + $0x678] sm:$0xff] }
 0x2f2   :  { %5732 = vmatpush1.bf16.msra.mxu1 %v15633_v44  ;;  %5690 = vmatprep.subr.bf16.mxu0 %v16384_v37  ;;  %v16336_v44 = vcombine.high %v886_v11, %v894_v27  ;;  %v15826_v37 = vcombine.high %v375_v28, %v383_v43  ;;  %v15825_v7 = vcombine.low %v375_v28, %v383_v43  ;;  %v846_v11 = vld [vmem:[#allocation3 + $0x14f0] sm:$0xff]  ;;  %v327_v27 = vld [vmem:[#allocation3 + $0x4b8] sm:$0xff] }
 0x2f3   :  { %5733 = vmatprep.subr.bf16.mxu1 %v15874_v50  ;;  %v870_v50 = vld [vmem:[#allocation3 + $0x15b0] sm:$0xff] }
 0x2f4   :  { %v16319_v24 = vcombine.low %v870_v50, %v878_v6 }
 0x2f5   :  { %5691 = vmatpush2.bf16.msra.mxu0 %v16383_v4  ;;  %v367_v4 = vld [vmem:[#allocation3 + $0x5f8] sm:$0xff] }
 0x2f6   :  { %5734 = vmatpush2.bf16.msra.mxu1 %v15873_v1  ;;  %5692 = vmatprep.subr.bf16.mxu0 %v16368_v40  ;;  %v16320_v1 = vcombine.high %v870_v50, %v878_v6  ;;  %v15810_v40 = vcombine.high %v359_v13, %v367_v4  ;;  %v15809_v48 = vcombine.low %v359_v13, %v367_v4  ;;  %v830_v50 = vld [vmem:[#allocation3 + $0x1470] sm:$0xff]  ;;  %v311_v6 = vld [vmem:[#allocation3 + $0x438] sm:$0xff] }
 0x2f7   :  { %5735 = vmatprep.subr.bf16.mxu1 %v15858_v2  ;;  %v854_v2 = vld [vmem:[#allocation3 + $0x1530] sm:$0xff] }
 0x2f8   :  { %v16303_v28 = vcombine.low %v854_v2, %v862_v20 }
 0x2f9   :  { %5693 = vmatpush2.bf16.msra.mxu0 %v16367_v53  ;;  %v351_v53 = vld [vmem:[#allocation3 + $0x578] sm:$0xff] }
 0x2fa   :  { %5736 = vmatpush2.bf16.msra.mxu1 %v15857_v60  ;;  %5694 = vmatprep.subr.bf16.mxu0 %v16352_v34  ;;  %v16304_v60 = vcombine.high %v854_v2, %v862_v20  ;;  %v15794_v34 = vcombine.high %v343_v21, %v351_v53  ;;  %v15793_v43 = vcombine.low %v343_v21, %v351_v53  ;;  %v559_v2 = vld [vmem:[#allocation3 + $0xbf8] sm:$0xff] }
 0x2fb   :  { %5737 = vmatprep.subr.bf16.mxu1 %v15842_v42  ;;  %v838_v42 = vld [vmem:[#allocation3 + $0x14b0] sm:$0xff]  ;;  %v807_v20 = vld [vmem:[#allocation3 + $0x13b8] sm:$0xff] }
 0x2fc   :  { %v16287_v13 = vcombine.low %v838_v42, %v846_v11 }
 0x2fd   :  { %5695 = vmatpush2.bf16.msra.mxu0 %v16351_v38  ;;  %v335_v38 = vld [vmem:[#allocation3 + $0x4f8] sm:$0xff] }
 0x2fe   :  { %5738 = vmatpush2.bf16.msra.mxu1 %v15841_v36  ;;  %5696 = vmatprep.subr.bf16.mxu0 %v16336_v44  ;;  %v16288_v36 = vcombine.high %v838_v42, %v846_v11  ;;  %v15778_v44 = vcombine.high %v327_v27, %v335_v38  ;;  %v15777_v4 = vcombine.low %v327_v27, %v335_v38  ;;  %v543_v42 = vld [vmem:[#allocation3 + $0xb78] sm:$0xff]  ;;  %v18551_v38 = vpop.f32.mrf.mxu0 }
 0x2ff   :  { %5739 = vmatprep.subr.bf16.mxu1 %v15826_v37  ;;  %v822_v37 = vld [vmem:[#allocation3 + $0x1430] sm:$0xff]  ;;  %v791_v11 = vld [vmem:[#allocation3 + $0x1338] sm:$0xff] }
 0x300   :  { %v16271_v21 = vcombine.low %v822_v37, %v830_v50 }
 0x301   :  { %5697 = vmatpush2.bf16.msra.mxu0 %v16335_v52  ;;  %v319_v52 = vld [vmem:[#allocation3 + $0x478] sm:$0xff] }
 0x302   :  { %5740 = vmatpush2.bf16.msra.mxu1 %v15825_v7  ;;  %5698 = vmatprep.subr.bf16.mxu0 %v16320_v1  ;;  %v16272_v7 = vcombine.high %v822_v37, %v830_v50  ;;  %v15762_v1 = vcombine.high %v311_v6, %v319_v52  ;;  %v15761_v53 = vcombine.low %v311_v6, %v319_v52  ;;  %v519_v50 = vld [vmem:[#allocation3 + $0xab8] sm:$0xff] }
 0x303   :  { %5741 = vmatprep.subr.bf16.mxu1 %v15810_v40  ;;  %v551_v40 = vld [vmem:[#allocation3 + $0xbb8] sm:$0xff] }
 0x304   :  { %v16001_v27 = vcombine.low %v551_v40, %v559_v2  ;;  %v527_v6 = vld [vmem:[#allocation3 + $0xaf8] sm:$0xff] }
 0x305   :  { %5699 = vmatpush2.bf16.msra.mxu0 %v16319_v24  ;;  %v815_v24 = vld [vmem:[#allocation3 + $0x13f8] sm:$0xff] }
 0x306   :  { %5742 = vmatpush2.bf16.msra.mxu1 %v15809_v48  ;;  %5700 = vmatprep.subr.bf16.mxu0 %v16304_v60  ;;  %v16002_v48 = vcombine.high %v551_v40, %v559_v2  ;;  %v16258_v60 = vcombine.high %v807_v20, %v815_v24 }
 0x307   :  { %5743 = vmatprep.subr.bf16.mxu1 %v15794_v34  ;;  %v535_v34 = vld [vmem:[#allocation3 + $0xb38] sm:$0xff] }
 0x308   :  { %v15985_v2 = vcombine.low %v535_v34, %v543_v42 }
 0x309   :  { %5701 = vmatpush2.bf16.msra.mxu0 %v16303_v28  ;;  %v799_v28 = vld [vmem:[#allocation3 + $0x1378] sm:$0xff] }
 0x30a   :  { %5744 = vmatpush2.bf16.msra.mxu1 %v15793_v43  ;;  %5702 = vmatprep.subr.bf16.mxu0 %v16288_v36  ;;  %v18553_v43 = vld [vmem:[#allocation5 + $0x8] sm:$0xff]  ;;  %v16257_v36 = vcombine.low %v807_v20, %v815_v24  ;;  %v16242_v37 = vcombine.high %v791_v11, %v799_v28  ;;  %v16241_v24 = vcombine.low %v791_v11, %v799_v28 }
 0x30b   :  { %5745 = vmatprep.subr.bf16.mxu1 %v15778_v44  ;;  %v15986_v44 = vcombine.high %v535_v34, %v543_v42  ;;  %v5984_v40 = vrot.slane %v18553_v43, %v18376_v54  ;;  %v15969_v42 = vcombine.low %v519_v50, %v527_v6  ;;  %v751_v54 = vld [vmem:[#allocation3 + $0x11f8] sm:$0xff] }
 0x30d   :  { %5703 = vmatpush2.bf16.msra.mxu0 %v16287_v13  ;;  %v18558_v13 = vld [vmem:[%s19058_s0 + $0x10] ss:$24 sps:$4 sm:$0xff]  }
 0x30e   :  { %5746 = vmatpush2.bf16.msra.mxu1 %v15777_v4  ;;  %5704 = vmatprep.subr.bf16.mxu0 %v16272_v7  ;;  %v775_v4 = vld [vmem:[#allocation3 + $0x12b8] sm:$0xff] }
 0x30f   :  { %5747 = vmatprep.subr.bf16.mxu1 %v15762_v1  ;;  %v783_v7 = vld [vmem:[#allocation3 + $0x12f8] sm:$0xff] }
 0x310   :  { %v16225_v11 = vcombine.low %v775_v4, %v783_v7 }
 0x311   :  { %5705 = vmatpush2.bf16.msra.mxu0 %v16271_v21  ;;  %v15970_v21 = vcombine.high %v519_v50, %v527_v6 }
 0x312   :  { %5748 = vmatpush2.bf16.msra.mxu1 %v15761_v53  ;;  %5760 = vmatprep.subr.bf16.mxu0 %v16002_v48  ;;  %v16226_v53 = vcombine.high %v775_v4, %v783_v7  ;;  %v503_v48 = vld [vmem:[#allocation3 + $0xa38] sm:$0xff] }
 0x313   :  { %5803 = vmatprep.subr.bf16.mxu1 %v16258_v60  ;;  %v511_v60 = vld [vmem:[#allocation3 + $0xa78] sm:$0xff] }
 0x314   :  { %v5450_v52 = vpop.f32.mrf.mxu0  ;;  %5707 = vmatmul.mubr.bf16.vlgmr.msra.gmra.mxu0 %v18558_v13  ;;  %v15954_v28 = vcombine.high %v503_v48, %v511_v60  ;;  %v471_v4 = vld [vmem:[#allocation3 + $0x938] sm:$0xff] }
 0x315   :  { %v5451_v1 = vadd.f32 %v5450_v52, %v18536_v61  ;;  %5750 = vmatmul.mubr.bf16.vlgmr.msra.gmra.mxu1 %v18532_v55  ;;  %5761 = vmatpush1.bf16.msra.mxu0 %v16001_v27  ;;  %v759_v52 = vld [vmem:[#allocation3 + $0x1238] sm:$0xff] }
 0x316   :  { %5804 = vmatpush1.bf16.msra.mxu1 %v16257_v36  ;;  %v18565_v20 = vpop.f32.mrf.mxu0  ;;  %5762 = vmatprep.subr.bf16.mxu0 %v15986_v44  ;;  %v16210_v36 = vcombine.high %v759_v52, %v767_v9  ;;  %v487_v44 = vld [vmem:[#allocation3 + $0x9b8] sm:$0xff] }
 0x317   :  { %5805 = vmatprep.subr.bf16.mxu1 %v16242_v37  ;;  %5792 = vmatprep.mubr.bf16.mxu0 %v18520_v17  ;;  %v6037_v55 = vadd.f32 %v5984_v40, %v5451_v1  ;;  %v495_v37 = vld [vmem:[#allocation3 + $0x9f8] sm:$0xff] }
 0x318   :  { %v5454_v61 = vpop.f32.mrf.mxu0  ;;  %5835 = vmatprep.mubr.bf16.mxu1 %v18545_v10  ;;  %v743_v17 = vld [vmem:[#allocation3 + $0x11b8] sm:$0xff]  ;;  %v15953_v10 = vcombine.low %v503_v48, %v511_v60  ;;  %v15938_v1 = vcombine.high %v487_v44, %v495_v37 }
 0x319   :  { %v5455_v34 = vadd.f32 %v5454_v61, %v18549_v18  ;;  %5763 = vmatpush1.bf16.msra.mxu0 %v15985_v2  ;;  %v6069_v49 = vmax.f32 %v6037_v55, 0.0  ;;  %v16209_v18 = vcombine.low %v759_v52, %v767_v9  ;;  %v16194_v6 = vcombine.high %v743_v17, %v751_v54  ;;  %v479_v7 = vld [vmem:[#allocation3 + $0x978] sm:$0xff] }
 0x31a   :  { %5806 = vmatpush1.bf16.msra.mxu1 %v16241_v24  ;;  %5764 = vmatprep.subr.bf16.mxu0 %v15970_v21  ;;  %v735_v2 = vld [vmem:[#allocation3 + $0x1178] sm:$0xff]  ;;  %v15937_v24 = vcombine.low %v487_v44, %v495_v37  ;;  %v16193_v21 = vcombine.low %v743_v17, %v751_v54 }
 0x31b   :  { %v6053_v27 = vadd.f32 %v5984_v40, %v5455_v34  ;;  %5807 = vmatprep.subr.bf16.mxu1 %v16226_v53  ;;  %v727_v40 = vld [vmem:[#allocation3 + $0x1138] sm:$0xff]  ;;  %v15922_v53 = vcombine.high %v471_v4, %v479_v7 }
 0x31c   :  { %v16178_v48 = vcombine.high %v727_v40, %v735_v2  ;;  %v455_v60 = vld [vmem:[#allocation3 + $0x8b8] sm:$0xff] }
 0x31d   :  { %v6085_v62 = vmax.f32 %v6053_v27, 0.0  ;;  %5765 = vmatpush1.bf16.msra.mxu0 %v15969_v42  ;;  %v463_v61 = vld [vmem:[#allocation3 + $0x8f8] sm:$0xff] }
 0x31e   :  { %5808 = vmatpush1.bf16.msra.mxu1 %v16225_v11  ;;  %5766 = vmatprep.subr.bf16.mxu0 %v15954_v28  ;;  %v711_v9 = vld [vmem:[#allocation3 + $0x10b8] sm:$0xff]  ;;  %v15906_v55 = vcombine.high %v455_v60, %v463_v61  ;;  %v15905_v54 = vcombine.low %v455_v60, %v463_v61 }
 0x31f   :  { %v18570_v50 = vpack.c.bf16 %v6085_v62, %v6069_v49  ;;  %5809 = vmatprep.subr.bf16.mxu1 %v16210_v36  ;;  %v719_v52 = vld [vmem:[#allocation3 + $0x10f8] sm:$0xff]  ;;  %v15921_v62 = vcombine.low %v471_v4, %v479_v7  ;;  %v16177_v49 = vcombine.low %v727_v40, %v735_v2 }
 0x320   :  { %v16162_v34 = vcombine.high %v711_v9, %v719_v52  ;;  %v439_v42 = vld [vmem:[#allocation3 + $0x838] sm:$0xff]  ;;  %v16161_v36 = vcombine.low %v711_v9, %v719_v52 }
 0x321   :  { %5767 = vmatpush1.bf16.msra.mxu0 %v15953_v10  ;;  %v447_v11 = vld [vmem:[#allocation3 + $0x878] sm:$0xff] }
 0x322   :  { %5810 = vmatpush1.bf16.msra.mxu1 %v16209_v18  ;;  %5768 = vmatprep.subr.bf16.mxu0 %v15938_v1  ;;  %v695_v28 = vld [vmem:[#allocation3 + $0x1038] sm:$0xff]  ;;  %v15890_v44 = vcombine.high %v439_v42, %v447_v11 }
 0x323   :  { %5811 = vmatprep.subr.bf16.mxu1 %v16194_v6  ;;  %v703_v27 = vld [vmem:[#allocation3 + $0x1078] sm:$0xff]  ;;  %v15889_v6 = vcombine.low %v439_v42, %v447_v11 }
 0x324   :  { %v16146_v37 = vcombine.high %v695_v28, %v703_v27  ;;  %v679_v17 = vld [vmem:[#allocation3 + $0xfb8] sm:$0xff]  ;;  %v16145_v4 = vcombine.low %v695_v28, %v703_v27 }
 0x325   :  { %5769 = vmatpush1.bf16.msra.mxu0 %v15937_v24  ;;  %v687_v10 = vld [vmem:[#allocation3 + $0xff8] sm:$0xff] }
 0x326   :  { %5812 = vmatpush1.bf16.msra.mxu1 %v16193_v21  ;;  %5770 = vmatprep.subr.bf16.mxu0 %v15922_v53  ;;  %v935_v18 = vld [vmem:[#allocation3 + $0x17b8] sm:$0xff]  ;;  %v16130_v7 = vcombine.high %v679_v17, %v687_v10 }
 0x327   :  { %5813 = vmatprep.subr.bf16.mxu1 %v16178_v48  ;;  %v943_v1 = vld [vmem:[#allocation3 + $0x17f8] sm:$0xff]  ;;  %v16129_v48 = vcombine.low %v679_v17, %v687_v10 }
 0x328   :  { %v16386_v40 = vcombine.high %v935_v18, %v943_v1  ;;  %v663_v2 = vld [vmem:[#allocation3 + $0xf38] sm:$0xff]  ;;  %v16385_v60 = vcombine.low %v935_v18, %v943_v1 }
 0x329   :  { %5771 = vmatpush1.bf16.msra.mxu0 %v15921_v62  ;;  %v671_v24 = vld [vmem:[#allocation3 + $0xf78] sm:$0xff] }
 0x32a   :  { %5814 = vmatpush1.bf16.msra.mxu1 %v16177_v49  ;;  %5772 = vmatprep.subr.bf16.mxu0 %v15906_v55  ;;  %v919_v21 = vld [vmem:[#allocation3 + $0x1738] sm:$0xff]  ;;  %v16114_v61 = vcombine.high %v663_v2, %v671_v24 }
 0x32b   :  { %5815 = vmatprep.subr.bf16.mxu1 %v16162_v34  ;;  %v927_v53 = vld [vmem:[#allocation3 + $0x1778] sm:$0xff]  ;;  %v16113_v34 = vcombine.low %v663_v2, %v671_v24 }
 0x32c   :  { %v16370_v9 = vcombine.high %v919_v21, %v927_v53  ;;  %v647_v52 = vld [vmem:[#allocation3 + $0xeb8] sm:$0xff]  ;;  %v16369_v42 = vcombine.low %v919_v21, %v927_v53 }
 0x32d   :  { %5773 = vmatpush1.bf16.msra.mxu0 %v15905_v54  ;;  %v655_v62 = vld [vmem:[#allocation3 + $0xef8] sm:$0xff] }
 0x32e   :  { %5816 = vmatpush1.bf16.msra.mxu1 %v16161_v36  ;;  %5774 = vmatprep.subr.bf16.mxu0 %v15890_v44  ;;  %v903_v49 = vld [vmem:[#allocation3 + $0x16b8] sm:$0xff]  ;;  %v16098_v11 = vcombine.high %v647_v52, %v655_v62 }
 0x32f   :  { %5817 = vmatprep.subr.bf16.mxu1 %v16146_v37  ;;  %v911_v55 = vld [vmem:[#allocation3 + $0x16f8] sm:$0xff]  ;;  %v16097_v37 = vcombine.low %v647_v52, %v655_v62 }
 0x330   :  { %v16354_v28 = vcombine.high %v903_v49, %v911_v55  ;;  %v631_v27 = vld [vmem:[#allocation3 + $0xe38] sm:$0xff]  ;;  %v16353_v17 = vcombine.low %v903_v49, %v911_v55 }
 0x331   :  { %5775 = vmatpush1.bf16.msra.mxu0 %v15889_v6  ;;  %v639_v54 = vld [vmem:[#allocation3 + $0xe78] sm:$0xff] }
 0x332   :  { %5818 = vmatpush1.bf16.msra.mxu1 %v16145_v4  ;;  %5776 = vmatprep.subr.bf16.mxu0 %v16130_v7  ;;  %v887_v36 = vld [vmem:[#allocation3 + $0x1638] sm:$0xff]  ;;  %v16082_v10 = vcombine.high %v631_v27, %v639_v54 }
 0x333   :  { %5819 = vmatprep.subr.bf16.mxu1 %v16386_v40  ;;  %v895_v44 = vld [vmem:[#allocation3 + $0x1678] sm:$0xff]  ;;  %v16081_v40 = vcombine.low %v631_v27, %v639_v54  ;;  %v5027_v27 = vadd.f32 %v18437_v35, %v18405_v30  ;;  %v18577_v54 = vpop.f32.mrf.mxu1 }
 0x334   :  { %v16338_v18 = vcombine.high %v887_v36, %v895_v44  ;;  %v615_v1 = vld [vmem:[#allocation3 + $0xdb8] sm:$0xff]  ;;  %v16337_v2 = vcombine.low %v887_v36, %v895_v44  ;;  %v4898_v44 = vadd.f32 %v18399_v63, %v18378_v58 }
 0x335   :  { %5777 = vmatpush2.bf16.msra.mxu0 %v16129_v48  ;;  %v623_v6 = vld [vmem:[#allocation3 + $0xdf8] sm:$0xff] }
 0x336   :  { %5820 = vmatpush2.bf16.msra.mxu1 %v16385_v60  ;;  %5778 = vmatprep.subr.bf16.mxu0 %v16114_v61  ;;  %v871_v4 = vld [vmem:[#allocation3 + $0x15b8] sm:$0xff]  ;;  %v16066_v24 = vcombine.high %v615_v1, %v623_v6  ;;  %v4941_v58 = vadd.f32 %v18403_v29, %v4898_v44  ;;  %v6161_v44 = vld [vmem:[#allocation7 + $0x1a0] sm:$0xff] }
 0x337   :  { %5821 = vmatprep.subr.bf16.mxu1 %v16370_v9  ;;  %v879_v7 = vld [vmem:[#allocation3 + $0x15f8] sm:$0xff]  ;;  %v16065_v9 = vcombine.low %v615_v1, %v623_v6  ;;  %v18586_v1 = vpop.f32.mrf.mxu1 }
 0x338   :  { %v16322_v21 = vcombine.high %v871_v4, %v879_v7  ;;  %v599_v53 = vld [vmem:[#allocation3 + $0xd38] sm:$0xff]  ;;  %v16321_v52 = vcombine.low %v871_v4, %v879_v7  ;;  %v4894_v4 = vadd.f32 %v18362_v59, %v18360_v45 }
 0x339   :  { %5779 = vmatpush2.bf16.msra.mxu0 %v16113_v34  ;;  %v607_v48 = vld [vmem:[#allocation3 + $0xd78] sm:$0xff]  ;;  %v18600_v29 = vpop.f32.mrf.mxu1 }
 0x33a   :  { %5822 = vmatpush2.bf16.msra.mxu1 %v16369_v42  ;;  %5780 = vmatprep.subr.bf16.mxu0 %v16098_v11  ;;  %v855_v60 = vld [vmem:[#allocation3 + $0x1538] sm:$0xff]  ;;  %v16050_v62 = vcombine.high %v599_v53, %v607_v48  ;;  %v16049_v36 = vcombine.low %v599_v53, %v607_v48 }
 0x33b   :  { %5823 = vmatprep.subr.bf16.mxu1 %v16354_v28  ;;  %v863_v61 = vld [vmem:[#allocation3 + $0x1578] sm:$0xff]  ;;  %v18573_v28 = vsub.s32 1, %v18373_v47 }
 0x33c   :  { %v16306_v49 = vcombine.high %v855_v60, %v863_v61  ;;  %v583_v55 = vld [vmem:[#allocation3 + $0xcb8] sm:$0xff] }
 0x33d   :  { %5781 = vmatpush2.bf16.msra.mxu0 %v16097_v37  ;;  %v591_v34 = vld [vmem:[#allocation3 + $0xcf8] sm:$0xff]  ;;  %v16305_v37 = vcombine.low %v855_v60, %v863_v61  ;;  %v6165_v60 = vld [vmem:[#allocation7 + $0x1c0] sm:$0xff] }
 0x33e   :  { %5824 = vmatpush2.bf16.msra.mxu1 %v16353_v17  ;;  %5782 = vmatprep.subr.bf16.mxu0 %v16082_v10  ;;  %v839_v42 = vld [vmem:[#allocation3 + $0x14b8] sm:$0xff]  ;;  %v16034_v17 = vcombine.high %v583_v55, %v591_v34  ;;  %v5023_v10 = vadd.f32 %v18417_v46, %v18401_v14  ;;  %v5070_v46 = vadd.f32 %v18439_v39, %v5027_v27  ;;  %v6169_v61 = vld [vmem:[#allocation7 + $0x1e0] sm:$0xff] }
 0x33f   :  { %5825 = vmatprep.subr.bf16.mxu1 %v16338_v18  ;;  %v847_v11 = vld [vmem:[#allocation3 + $0x14f8] sm:$0xff]  ;;  %v18584_v18 = vsub.s32 3, %v18373_v47 }
 0x340   :  { %v16290_v30 = vcombine.high %v839_v42, %v847_v11  ;;  %v567_v35 = vld [vmem:[#allocation3 + $0xc38] sm:$0xff]  ;;  %v5066_v45 = vadd.f32 %v18421_v51, %v5023_v10  ;;  %v16444_v51 = vcombine.high %v6165_v60, %v6169_v61  ;;  %v6285_v10 = vld [vmem:[#allocation7 + $0x580] sm:$0xff] }
 0x341   :  { %5783 = vmatpush2.bf16.msra.mxu0 %v16081_v40  ;;  %v575_v6 = vld [vmem:[#allocation3 + $0xc78] sm:$0xff]  ;;  %v18591_v40 = vld [vmem:[#allocation5] sm:$0xff] }
 0x342   :  { %5826 = vmatpush2.bf16.msra.mxu1 %v16337_v2  ;;  %5784 = vmatprep.subr.bf16.mxu0 %v16066_v24  ;;  %v823_v63 = vld [vmem:[#allocation3 + $0x1438] sm:$0xff]  ;;  %v5956_v14 = vrot.slane %v18591_v40, %v18573_v28  ;;  %v16033_v2 = vcombine.low %v583_v55, %v591_v34  ;;  %v4937_v24 = vadd.f32 %v18392_v8, %v4894_v4 }
 0x343   :  { %5827 = vmatprep.subr.bf16.mxu1 %v16322_v21  ;;  %v831_v7 = vld [vmem:[#allocation3 + $0x1478] sm:$0xff]  ;;  %v16289_v21 = vcombine.low %v839_v42, %v847_v11  ;;  %v16018_v53 = vcombine.high %v567_v35, %v575_v6  ;;  %v5964_v59 = vrot.slane %v18591_v40, %v18584_v18  ;;  %v16017_v8 = vcombine.low %v567_v35, %v575_v6  ;;  %v5497_v42 = vpop.f32.mrf.mxu1 }
 0x344   :  { %v16274_v48 = vcombine.high %v823_v63, %v831_v7  ;;  %v6046_v39 = vadd.f32 %v5956_v14, %v4941_v58  ;;  %v16273_v55 = vcombine.low %v823_v63, %v831_v7  ;;  %v18602_v58 = vpop.f32.mrf.mxu0 }
 0x345   :  { %5785 = vmatpush2.bf16.msra.mxu0 %v16065_v9  ;;  %v6293_v9 = vld [vmem:[#allocation7 + $0x5c0] sm:$0xff]  ;;  %v6032_v34 = vadd.f32 %v5964_v59, %v5066_v45  ;;  %v18604_v63 = vpop.f32.mrf.mxu1 }
 0x346   :  { %5828 = vmatpush2.bf16.msra.mxu1 %v16321_v52  ;;  %5786 = vmatprep.subr.bf16.mxu0 %v16050_v62  ;;  %v6297_v52 = vld [vmem:[#allocation7 + $0x5e0] sm:$0xff]  ;;  %v6048_v62 = vadd.f32 %v5964_v59, %v5070_v46  ;;  %v6078_v27 = vmax.f32 %v6046_v39, 0.0 }
 0x347   :  { %5829 = vmatprep.subr.bf16.mxu1 %v16306_v49  ;;  %v6030_v49 = vadd.f32 %v5956_v14, %v4937_v24  ;;  %v16572_v11 = vcombine.high %v6293_v9, %v6297_v52  ;;  %v16571_v35 = vcombine.low %v6293_v9, %v6297_v52  ;;  %v6064_v6 = vmax.f32 %v6032_v34, 0.0  ;;  %v6149_v14 = vld [vmem:[#allocation7 + $0x140] sm:$0xff] }
 0x348   :  { %v6153_v46 = vld [vmem:[#allocation7 + $0x160] sm:$0xff] }
 0x349   :  { %5787 = vmatpush2.bf16.msra.mxu0 %v16049_v36  ;;  %v6157_v36 = vld [vmem:[#allocation7 + $0x180] sm:$0xff]  ;;  %v6062_v4 = vmax.f32 %v6030_v49, 0.0  ;;  %v5992_v49 = vrot.slane %v18553_v43, %v18408_v32 }
 0x34a   :  { %5830 = vmatpush2.bf16.msra.mxu1 %v16305_v37  ;;  %5788 = vmatprep.subr.bf16.mxu0 %v16034_v17  ;;  %v6080_v37 = vmax.f32 %v6048_v62, 0.0  ;;  %v16443_v17 = vcombine.low %v6165_v60, %v6169_v61  ;;  %v16436_v7 = vcombine.high %v6157_v36, %v6161_v44  ;;  %v6277_v45 = vld [vmem:[#allocation7 + $0x540] sm:$0xff]  ;;  %v16435_v39 = vcombine.low %v6157_v36, %v6161_v44 }
 0x34b   :  { %5831 = vmatprep.subr.bf16.mxu1 %v16290_v30  ;;  %v6289_v30 = vld [vmem:[#allocation7 + $0x5a0] sm:$0xff]  ;;  %v16428_v62 = vcombine.high %v6149_v14, %v6153_v46  ;;  %v16427_v44 = vcombine.low %v6149_v14, %v6153_v46 }
 0x34c   :  { %v6281_v59 = vld [vmem:[#allocation7 + $0x560] sm:$0xff]  ;;  %v16563_v52 = vcombine.low %v6285_v10, %v6289_v30 }
 0x34d   :  { %5789 = vmatpush2.bf16.msra.mxu0 %v16033_v2  ;;  %v18606_v2 = vpack.c.bf16 %v6078_v27, %v6062_v4  ;;  %v6273_v27 = vld [vmem:[#allocation7 + $0x520] sm:$0xff] }
 0x34e   :  { %5832 = vmatpush2.bf16.msra.mxu1 %v16289_v21  ;;  %5790 = vmatprep.subr.bf16.mxu0 %v16018_v53  ;;  %v18092_v21 = vld [vmem:[%s19058_s0 + $0x8] ss:$24 sps:$4 sm:$0xff]   ;;  %v16564_v53 = vcombine.high %v6285_v10, %v6289_v30 }
 0x34f   :  { %5833 = vmatprep.subr.bf16.mxu1 %v16274_v48  ;;  %v18611_v48 = vpack.c.bf16 %v6080_v37, %v6064_v6  ;;  %v6137_v6 = vld [vmem:[#allocation7 + $0xe0] sm:$0xff] }
 0x351   :  { %5791 = vmatpush2.bf16.msra.mxu0 %v16017_v8 }
 0x352   :  { %5834 = vmatpush2.bf16.msra.mxu1 %v16273_v55  ;;  %12295 = vmatprep.subr.bf16.mxu0 %v16444_v51  ;;  %v6145_v51 = vld [vmem:[#allocation7 + $0x120] sm:$0xff] }
 0x353   :  { %12338 = vmatprep.subr.bf16.mxu1 %v16572_v11  ;;  %v6269_v11 = vld [vmem:[#allocation7 + $0x500] sm:$0xff] }
 0x354   :  { %v5536_v24 = vpop.f32.mrf.mxu0  ;;  %5793 = vmatmul.mubr.bf16.vlgmr.msra.gmra.mxu0 %v18092_v21  ;;  %v16548_v4 = vcombine.high %v6269_v11, %v6273_v27 }
 0x355   :  { %v5537_v60 = vadd.f32 %v5536_v24, %v18586_v1  ;;  %v5579_v61 = vpop.f32.mrf.mxu1  ;;  %5836 = vmatmul.mubr.bf16.vlgmr.msra.gmra.mxu1 %v18558_v13  ;;  %12296 = vmatpush1.bf16.msra.mxu0 %v16443_v17  ;;  %v16556_v1 = vcombine.high %v6277_v45, %v6281_v59  ;;  %v6141_v13 = vld [vmem:[#allocation7 + $0x100] sm:$0xff]  ;;  %v16555_v17 = vcombine.low %v6277_v45, %v6281_v59 }
 0x356   :  { %12327 = vmatprep.mubr.bf16.mxu0 %v18606_v2  ;;  %12339 = vmatpush1.bf16.msra.mxu1 %v16571_v35  ;;  %v18616_v9 = vpop.f32.mrf.mxu0  ;;  %v16420_v43 = vcombine.high %v6141_v13, %v6145_v51  ;;  %v6133_v35 = vld [vmem:[#allocation7 + $0xc0] sm:$0xff] }
 0x357   :  { %v5580_v8 = vadd.f32 %v5579_v61, %v5537_v60  ;;  %12370 = vmatprep.mubr.bf16.mxu1 %v18611_v48  ;;  %v18621_v55 = vpop.f32.mrf.mxu1  ;;  %12297 = vmatprep.subr.bf16.mxu0 %v16436_v7  ;;  %v6261_v7 = vld [vmem:[#allocation7 + $0x4c0] sm:$0xff]  ;;  %v16412_v14 = vcombine.high %v6133_v35, %v6137_v6 }
 0x358   :  { %v5540_v34 = vpop.f32.mrf.mxu0  ;;  %12340 = vmatprep.subr.bf16.mxu1 %v16564_v53  ;;  %v6265_v24 = vld [vmem:[#allocation7 + $0x4e0] sm:$0xff]  ;;  %v16419_v53 = vcombine.low %v6141_v13, %v6145_v51 }
 0x359   :  { %v5541_v36 = vadd.f32 %v5540_v34, %v5497_v42  ;;  %12298 = vmatpush1.bf16.msra.mxu0 %v16435_v39  ;;  %v5583_v37 = vpop.f32.mrf.mxu1  ;;  %v6039_v10 = vadd.f32 %v5992_v49, %v5580_v8  ;;  %v16547_v42 = vcombine.low %v6269_v11, %v6273_v27  ;;  %v16540_v45 = vcombine.high %v6261_v7, %v6265_v24  ;;  %v6125_v59 = vld [vmem:[#allocation7 + $0x80] sm:$0xff] }
 0x35a   :  { %12341 = vmatpush1.bf16.msra.mxu1 %v16563_v52  ;;  %12299 = vmatprep.subr.bf16.mxu0 %v16428_v62  ;;  %v6129_v61 = vld [vmem:[#allocation7 + $0xa0] sm:$0xff]  ;;  %v16411_v8 = vcombine.low %v6133_v35, %v6137_v6 }
 0x35b   :  { %v5584_v30 = vadd.f32 %v5583_v37, %v5541_v36  ;;  %12342 = vmatprep.subr.bf16.mxu1 %v16556_v1  ;;  %v6071_v46 = vmax.f32 %v6039_v10, 0.0  ;;  %v6253_v39 = vld [vmem:[#allocation7 + $0x480] sm:$0xff]  ;;  %v16404_v1 = vcombine.high %v6125_v59, %v6129_v61  ;;  %v16403_v36 = vcombine.low %v6125_v59, %v6129_v61 }
 0x35c   :  { %v6257_v52 = vld [vmem:[#allocation7 + $0x4a0] sm:$0xff] }
 0x35d   :  { %v6055_v21 = vadd.f32 %v5992_v49, %v5584_v30  ;;  %12300 = vmatpush1.bf16.msra.mxu0 %v16427_v44  ;;  %v16539_v49 = vcombine.low %v6261_v7, %v6265_v24  ;;  %v16532_v13 = vcombine.high %v6253_v39, %v6257_v52  ;;  %v6117_v51 = vld [vmem:[#allocation7 + $0x40] sm:$0xff]  ;;  %v16531_v44 = vcombine.low %v6253_v39, %v6257_v52 }
 0x35e   :  { %12343 = vmatpush1.bf16.msra.mxu1 %v16555_v17  ;;  %12301 = vmatprep.subr.bf16.mxu0 %v16420_v43  ;;  %v6121_v34 = vld [vmem:[#allocation7 + $0x60] sm:$0xff] }
 0x35f   :  { %v6087_v60 = vmax.f32 %v6055_v21, 0.0  ;;  %12344 = vmatprep.subr.bf16.mxu1 %v16548_v4  ;;  %v6245_v11 = vld [vmem:[#allocation7 + $0x440] sm:$0xff]  ;;  %v16396_v37 = vcombine.high %v6117_v51, %v6121_v34  ;;  %v16395_v35 = vcombine.low %v6117_v51, %v6121_v34 }
 0x360   :  { %v6249_v27 = vld [vmem:[#allocation7 + $0x460] sm:$0xff] }
 0x361   :  { %v18623_v62 = vpack.c.bf16 %v6087_v60, %v6071_v46  ;;  %12302 = vmatpush1.bf16.msra.mxu0 %v16419_v53  ;;  %v16524_v17 = vcombine.high %v6245_v11, %v6249_v27  ;;  %v6109_v43 = vld [vmem:[#allocation7] sm:$0xff]  ;;  %v16523_v6 = vcombine.low %v6245_v11, %v6249_v27 }
 0x362   :  { %12345 = vmatpush1.bf16.msra.mxu1 %v16547_v42  ;;  %12303 = vmatprep.subr.bf16.mxu0 %v16412_v14  ;;  %v6113_v10 = vld [vmem:[#allocation7 + $0x20] sm:$0xff] }
 0x363   :  { %12346 = vmatprep.subr.bf16.mxu1 %v16540_v45  ;;  %v6237_v30 = vld [vmem:[#allocation7 + $0x400] sm:$0xff]  ;;  %v16388_v7 = vcombine.high %v6109_v43, %v6113_v10  ;;  %v16387_v46 = vcombine.low %v6109_v43, %v6113_v10 }
 0x364   :  { %v6241_v4 = vld [vmem:[#allocation7 + $0x420] sm:$0xff] }
 0x365   :  { %12304 = vmatpush1.bf16.msra.mxu0 %v16411_v8  ;;  %v16516_v24 = vcombine.high %v6237_v30, %v6241_v4  ;;  %v6229_v21 = vld [vmem:[#allocation7 + $0x3c0] sm:$0xff]  ;;  %v16515_v60 = vcombine.low %v6237_v30, %v6241_v4 }
 0x366   :  { %12347 = vmatpush1.bf16.msra.mxu1 %v16539_v49  ;;  %12305 = vmatprep.subr.bf16.mxu0 %v16404_v1  ;;  %v6233_v53 = vld [vmem:[#allocation7 + $0x3e0] sm:$0xff] }
 0x367   :  { %12348 = vmatprep.subr.bf16.mxu1 %v16532_v13  ;;  %v6357_v42 = vld [vmem:[#allocation7 + $0x7c0] sm:$0xff]  ;;  %v16508_v45 = vcombine.high %v6229_v21, %v6233_v53  ;;  %v16507_v49 = vcombine.low %v6229_v21, %v6233_v53 }
 0x368   :  { %v6361_v14 = vld [vmem:[#allocation7 + $0x7e0] sm:$0xff] }
 0x369   :  { %12306 = vmatpush1.bf16.msra.mxu0 %v16403_v36  ;;  %v16636_v59 = vcombine.high %v6357_v42, %v6361_v14  ;;  %v6221_v61 = vld [vmem:[#allocation7 + $0x380] sm:$0xff]  ;;  %v16635_v1 = vcombine.low %v6357_v42, %v6361_v14 }
 0x36a   :  { %12349 = vmatpush1.bf16.msra.mxu1 %v16531_v44  ;;  %12307 = vmatprep.subr.bf16.mxu0 %v16396_v37  ;;  %v6225_v39 = vld [vmem:[#allocation7 + $0x3a0] sm:$0xff] }
 0x36b   :  { %12350 = vmatprep.subr.bf16.mxu1 %v16524_v17  ;;  %v6349_v52 = vld [vmem:[#allocation7 + $0x780] sm:$0xff]  ;;  %v16500_v13 = vcombine.high %v6221_v61, %v6225_v39  ;;  %v16499_v44 = vcombine.low %v6221_v61, %v6225_v39 }
 0x36c   :  { %v6353_v8 = vld [vmem:[#allocation7 + $0x7a0] sm:$0xff] }
 0x36d   :  { %12308 = vmatpush1.bf16.msra.mxu0 %v16395_v35  ;;  %v16628_v51 = vcombine.high %v6349_v52, %v6353_v8  ;;  %v6213_v34 = vld [vmem:[#allocation7 + $0x340] sm:$0xff]  ;;  %v16627_v37 = vcombine.low %v6349_v52, %v6353_v8 }
 0x36e   :  { %12351 = vmatpush1.bf16.msra.mxu1 %v16523_v6  ;;  %12309 = vmatprep.subr.bf16.mxu0 %v16388_v7  ;;  %v6217_v11 = vld [vmem:[#allocation7 + $0x360] sm:$0xff] }
 0x36f   :  { %12352 = vmatprep.subr.bf16.mxu1 %v16516_v24  ;;  %v6341_v27 = vld [vmem:[#allocation7 + $0x740] sm:$0xff]  ;;  %v16492_v17 = vcombine.high %v6213_v34, %v6217_v11  ;;  %v16491_v6 = vcombine.low %v6213_v34, %v6217_v11 }
 0x370   :  { %v6345_v36 = vld [vmem:[#allocation7 + $0x760] sm:$0xff] }
 0x371   :  { %12310 = vmatpush1.bf16.msra.mxu0 %v16387_v46  ;;  %v16620_v43 = vcombine.high %v6341_v27, %v6345_v36  ;;  %v6205_v10 = vld [vmem:[#allocation7 + $0x300] sm:$0xff]  ;;  %v16619_v7 = vcombine.low %v6341_v27, %v6345_v36 }
 0x372   :  { %12353 = vmatpush1.bf16.msra.mxu1 %v16515_v60  ;;  %12311 = vmatprep.subr.bf16.mxu0 %v16508_v45  ;;  %v6209_v30 = vld [vmem:[#allocation7 + $0x320] sm:$0xff] }
 0x373   :  { %12354 = vmatprep.subr.bf16.mxu1 %v16636_v59  ;;  %v6333_v4 = vld [vmem:[#allocation7 + $0x700] sm:$0xff]  ;;  %v16484_v24 = vcombine.high %v6205_v10, %v6209_v30  ;;  %v16483_v60 = vcombine.low %v6205_v10, %v6209_v30  ;;  %v5156_v10 = vadd.f32 %v18487_v22, %v18466_v12 }
 0x374   :  { %v6337_v35 = vld [vmem:[#allocation7 + $0x720] sm:$0xff] }
 0x375   :  { %12312 = vmatpush2.bf16.msra.mxu0 %v16507_v49  ;;  %v16612_v21 = vcombine.high %v6333_v4, %v6337_v35  ;;  %v6197_v53 = vld [vmem:[#allocation7 + $0x2c0] sm:$0xff]  ;;  %v16611_v45 = vcombine.low %v6333_v4, %v6337_v35  ;;  %v5281_v35 = vadd.f32 %v18505_v5, %v18489_v15 }
 0x376   :  { %12355 = vmatpush2.bf16.msra.mxu1 %v16635_v1  ;;  %12313 = vmatprep.subr.bf16.mxu0 %v16500_v13  ;;  %v6201_v42 = vld [vmem:[#allocation7 + $0x2e0] sm:$0xff] }
 0x377   :  { %12356 = vmatprep.subr.bf16.mxu1 %v16628_v51  ;;  %v6325_v14 = vld [vmem:[#allocation7 + $0x6c0] sm:$0xff]  ;;  %v16476_v59 = vcombine.high %v6197_v53, %v6201_v42  ;;  %v16475_v1 = vcombine.low %v6197_v53, %v6201_v42 }
 0x378   :  { %v6329_v46 = vld [vmem:[#allocation7 + $0x6e0] sm:$0xff] }
 0x379   :  { %12314 = vmatpush2.bf16.msra.mxu0 %v16499_v44  ;;  %v16604_v61 = vcombine.high %v6325_v14, %v6329_v46  ;;  %v6189_v39 = vld [vmem:[#allocation7 + $0x280] sm:$0xff]  ;;  %v16603_v13 = vcombine.low %v6325_v14, %v6329_v46  ;;  %v5324_v46 = vadd.f32 %v18509_v56, %v5281_v35 }
 0x37a   :  { %12357 = vmatpush2.bf16.msra.mxu1 %v16627_v37  ;;  %12315 = vmatprep.subr.bf16.mxu0 %v16492_v17  ;;  %v6193_v52 = vld [vmem:[#allocation7 + $0x2a0] sm:$0xff]  ;;  %v18626_v37 = vsub.s32 5, %v18373_v47  ;;  %v5285_v17 = vadd.f32 %v18525_v23, %v18493_v41  ;;  %v5152_v41 = vadd.f32 %v18452_v0, %v18450_v57  ;;  %v5199_v23 = vadd.f32 %v18491_v33, %v5156_v10  ;;  %v18649_v10 = vpop.f32.mrf.mxu1 }
 0x37b   :  { %12358 = vmatprep.subr.bf16.mxu1 %v16620_v43  ;;  %v6317_v8 = vld [vmem:[#allocation7 + $0x680] sm:$0xff]  ;;  %v16468_v51 = vcombine.high %v6189_v39, %v6193_v52  ;;  %v16467_v43 = vcombine.low %v6189_v39, %v6193_v52 }
 0x37c   :  { %v6321_v49 = vld [vmem:[#allocation7 + $0x6a0] sm:$0xff]  ;;  %19085 = vst [vmem:[#allocation23_spill] sm:$0xff] %v18626_v37  ;;  %v5972_v53 = vrot.slane %v18591_v40, %v18626_v37  ;;  %v5328_v42 = vadd.f32 %v18527_v26, %v5285_v17 }
 0x37d   :  { %12316 = vmatpush2.bf16.msra.mxu0 %v16491_v6  ;;  %v16596_v34 = vcombine.high %v6317_v8, %v6321_v49  ;;  %v6181_v11 = vld [vmem:[#allocation7 + $0x240] sm:$0xff]  ;;  %v16595_v30 = vcombine.low %v6317_v8, %v6321_v49  ;;  %v18635_v6 = vsub.s32 7, %v18373_v47  ;;  %v5195_v47 = vadd.f32 %v18480_v19, %v5152_v41 }
 0x37e   :  { %12359 = vmatpush2.bf16.msra.mxu1 %v16619_v7  ;;  %12317 = vmatprep.subr.bf16.mxu0 %v16484_v24  ;;  %v6185_v27 = vld [vmem:[#allocation7 + $0x260] sm:$0xff] }
 0x37f   :  { %12360 = vmatprep.subr.bf16.mxu1 %v16612_v21  ;;  %v6309_v36 = vld [vmem:[#allocation7 + $0x640] sm:$0xff]  ;;  %v16460_v4 = vcombine.high %v6181_v11, %v6185_v27  ;;  %19086 = vst [vmem:[#allocation24_spill] sm:$0xff] %v18635_v6  ;;  %v16459_v15 = vcombine.low %v6181_v11, %v6185_v27  ;;  %v5980_v57 = vrot.slane %v18591_v40, %v18635_v6 }
 0x380   :  { %v6313_v44 = vld [vmem:[#allocation7 + $0x660] sm:$0xff]  ;;  %v6034_v19 = vadd.f32 %v5972_v53, %v5195_v47 }
 0x381   :  { %12318 = vmatpush2.bf16.msra.mxu0 %v16483_v60  ;;  %v16588_v7 = vcombine.high %v6309_v36, %v6313_v44  ;;  %v6173_v24 = vld [vmem:[#allocation7 + $0x200] sm:$0xff]  ;;  %v16587_v5 = vcombine.low %v6309_v36, %v6313_v44  ;;  %v6036_v49 = vadd.f32 %v5980_v57, %v5324_v46  ;;  %v18647_v44 = vpop.f32.mrf.mxu0 }
 0x382   :  { %12361 = vmatpush2.bf16.msra.mxu1 %v16611_v45  ;;  %12319 = vmatprep.subr.bf16.mxu0 %v16476_v59  ;;  %v6177_v21 = vld [vmem:[#allocation7 + $0x220] sm:$0xff]  ;;  %v6050_v45 = vadd.f32 %v5972_v53, %v5199_v23  ;;  %v6066_v36 = vmax.f32 %v6034_v19, 0.0 }
 0x383   :  { %12362 = vmatprep.subr.bf16.mxu1 %v16604_v61  ;;  %v6301_v12 = vld [vmem:[#allocation7 + $0x600] sm:$0xff]  ;;  %v16452_v14 = vcombine.high %v6173_v24, %v6177_v21  ;;  %v6052_v61 = vadd.f32 %v5980_v57, %v5328_v42  ;;  %v16451_v39 = vcombine.low %v6173_v24, %v6177_v21 }
 0x384   :  { %v6305_v22 = vld [vmem:[#allocation7 + $0x620] sm:$0xff] }
 0x385   :  { %12320 = vmatpush2.bf16.msra.mxu0 %v16475_v1  ;;  %v16580_v0 = vcombine.high %v6301_v12, %v6305_v22  ;;  %v6421_v33 = vld [vmem:[#allocation7 + $0x9c0] sm:$0xff]  ;;  %v16579_v52 = vcombine.low %v6301_v12, %v6305_v22  ;;  %v6082_v1 = vmax.f32 %v6050_v45, 0.0 }
 0x386   :  { %12363 = vmatpush2.bf16.msra.mxu1 %v16603_v13  ;;  %12321 = vmatprep.subr.bf16.mxu0 %v16468_v51  ;;  %v6425_v60 = vld [vmem:[#allocation7 + $0x9e0] sm:$0xff]  ;;  %v6084_v51 = vmax.f32 %v6052_v61, 0.0 }
 0x387   :  { %12364 = vmatprep.subr.bf16.mxu1 %v16596_v34  ;;  %v6549_v59 = vld [vmem:[#allocation7 + $0xdc0] sm:$0xff]  ;;  %v16700_v8 = vcombine.high %v6421_v33, %v6425_v60  ;;  %v16699_v34 = vcombine.low %v6421_v33, %v6425_v60 }
 0x388   :  { %v6553_v26 = vld [vmem:[#allocation7 + $0xde0] sm:$0xff] }
 0x389   :  { %12322 = vmatpush2.bf16.msra.mxu0 %v16467_v43  ;;  %v16828_v56 = vcombine.high %v6549_v59, %v6553_v26  ;;  %v6413_v40 = vld [vmem:[#allocation7 + $0x980] sm:$0xff]  ;;  %v16827_v17 = vcombine.low %v6549_v59, %v6553_v26  ;;  %v6068_v43 = vmax.f32 %v6036_v49, 0.0 }
 0x38a   :  { %12365 = vmatpush2.bf16.msra.mxu1 %v16595_v30  ;;  %12323 = vmatprep.subr.bf16.mxu0 %v16460_v4  ;;  %v6417_v13 = vld [vmem:[#allocation7 + $0x9a0] sm:$0xff] }
 0x38b   :  { %12366 = vmatprep.subr.bf16.mxu1 %v16588_v7  ;;  %v6541_v11 = vld [vmem:[#allocation7 + $0xd80] sm:$0xff]  ;;  %v16692_v30 = vcombine.high %v6413_v40, %v6417_v13  ;;  %v18651_v7 = vpack.c.bf16 %v6082_v1, %v6066_v36  ;;  %v18654_v12 = vpack.c.bf16 %v6084_v51, %v6068_v43  ;;  %v16691_v53 = vcombine.low %v6413_v40, %v6417_v13 }
 0x38c   :  { %v6545_v27 = vld [vmem:[#allocation7 + $0xda0] sm:$0xff] }
 0x38d   :  { %12324 = vmatpush2.bf16.msra.mxu0 %v16459_v15  ;;  %v6405_v4 = vld [vmem:[#allocation7 + $0x940] sm:$0xff]  ;;  %v16820_v21 = vcombine.high %v6541_v11, %v6545_v27  ;;  %v16819_v47 = vcombine.low %v6541_v11, %v6545_v27 }
 0x38e   :  { %12367 = vmatpush2.bf16.msra.mxu1 %v16587_v5  ;;  %12325 = vmatprep.subr.bf16.mxu0 %v16452_v14  ;;  %v6409_v35 = vld [vmem:[#allocation7 + $0x960] sm:$0xff] }
 0x38f   :  { %12368 = vmatprep.subr.bf16.mxu1 %v16580_v0  ;;  %v6533_v41 = vld [vmem:[#allocation7 + $0xd40] sm:$0xff]  ;;  %v16684_v5 = vcombine.high %v6405_v4, %v6409_v35  ;;  %v16683_v26 = vcombine.low %v6405_v4, %v6409_v35 }
 0x390   :  { %v6537_v23 = vld [vmem:[#allocation7 + $0xd60] sm:$0xff] }
 0x391   :  { %12326 = vmatpush2.bf16.msra.mxu0 %v16451_v39  ;;  %v16812_v46 = vcombine.high %v6533_v41, %v6537_v23  ;;  %v6397_v57 = vld [vmem:[#allocation7 + $0x900] sm:$0xff]  ;;  %v16811_v39 = vcombine.low %v6533_v41, %v6537_v23 }
 0x392   :  { %12369 = vmatpush2.bf16.msra.mxu1 %v16579_v52  ;;  %12381 = vmatprep.subr.bf16.mxu0 %v16700_v8  ;;  %v6401_v0 = vld [vmem:[#allocation7 + $0x920] sm:$0xff] }
 0x393   :  { %12424 = vmatprep.subr.bf16.mxu1 %v16828_v56  ;;  %v6525_v60 = vld [vmem:[#allocation7 + $0xd00] sm:$0xff]  ;;  %v16676_v19 = vcombine.high %v6397_v57, %v6401_v0  ;;  %v16675_v40 = vcombine.low %v6397_v57, %v6401_v0 }
 0x394   :  { %v5622_v24 = vpop.f32.mrf.mxu0  ;;  %12328 = vmatmul.mubr.bf16.vlgmr.msra.gmra.mxu0 %v18397_v31  ;;  %v6529_v45 = vld [vmem:[#allocation7 + $0xd20] sm:$0xff] }
 0x395   :  { %v5665_v22 = vpop.f32.mrf.mxu1  ;;  %12371 = vmatmul.mubr.bf16.vlgmr.msra.gmra.mxu1 %v18435_v16  ;;  %12382 = vmatpush1.bf16.msra.mxu0 %v16699_v34  ;;  %v16804_v52 = vcombine.high %v6525_v60, %v6529_v45  ;;  %v6389_v8 = vld [vmem:[#allocation7 + $0x8c0] sm:$0xff]  ;;  %v16803_v13 = vcombine.low %v6525_v60, %v6529_v45 }
 0x396   :  { %v18657_v42 = vadd.f32 %v5665_v22, %v5622_v24  ;;  %12413 = vmatprep.mubr.bf16.mxu0 %v18651_v7  ;;  %12425 = vmatpush1.bf16.msra.mxu1 %v16827_v17  ;;  %v18660_v15 = vpop.f32.mrf.mxu0  ;;  %v6393_v49 = vld [vmem:[#allocation7 + $0x8e0] sm:$0xff] }
 0x397   :  { %12456 = vmatprep.mubr.bf16.mxu1 %v18654_v12  ;;  %v18663_v14 = vpop.f32.mrf.mxu1  ;;  %12383 = vmatprep.subr.bf16.mxu0 %v16692_v30  ;;  %v6517_v56 = vld [vmem:[#allocation7 + $0xcc0] sm:$0xff]  ;;  %v16668_v51 = vcombine.high %v6389_v8, %v6393_v49  ;;  %v16667_v43 = vcombine.low %v6389_v8, %v6393_v49 }
 0x398   :  { %v5626_v33 = vpop.f32.mrf.mxu0  ;;  %12426 = vmatprep.subr.bf16.mxu1 %v16820_v21  ;;  %v6521_v1 = vld [vmem:[#allocation7 + $0xce0] sm:$0xff] }
 0x399   :  { %v5669_v59 = vpop.f32.mrf.mxu1  ;;  %12384 = vmatpush1.bf16.msra.mxu0 %v16691_v53  ;;  %v16796_v34 = vcombine.high %v6517_v56, %v6521_v1  ;;  %v6381_v11 = vld [vmem:[#allocation7 + $0x880] sm:$0xff]  ;;  %v16795_v30 = vcombine.low %v6517_v56, %v6521_v1 }
 0x39a   :  { %v18665_v61 = vadd.f32 %v5669_v59, %v5626_v33  ;;  %12427 = vmatpush1.bf16.msra.mxu1 %v16819_v47  ;;  %12385 = vmatprep.subr.bf16.mxu0 %v16684_v5  ;;  %v6385_v27 = vld [vmem:[#allocation7 + $0x8a0] sm:$0xff] }
 0x39b   :  { %12428 = vmatprep.subr.bf16.mxu1 %v16812_v46  ;;  %v6509_v36 = vld [vmem:[#allocation7 + $0xc80] sm:$0xff]  ;;  %v16660_v4 = vcombine.high %v6381_v11, %v6385_v27  ;;  %v16659_v22 = vcombine.low %v6381_v11, %v6385_v27 }
 0x39c   :  { %v6513_v17 = vld [vmem:[#allocation7 + $0xca0] sm:$0xff] }
 0x39d   :  { %12386 = vmatpush1.bf16.msra.mxu0 %v16683_v26  ;;  %v16788_v35 = vcombine.high %v6509_v36, %v6513_v17  ;;  %v6373_v24 = vld [vmem:[#allocation7 + $0x840] sm:$0xff]  ;;  %v16787_v53 = vcombine.low %v6509_v36, %v6513_v17 }
 0x39e   :  { %12429 = vmatpush1.bf16.msra.mxu1 %v16811_v39  ;;  %12387 = vmatprep.subr.bf16.mxu0 %v16676_v19  ;;  %v6377_v21 = vld [vmem:[#allocation7 + $0x860] sm:$0xff] }
 0x39f   :  { %12430 = vmatprep.subr.bf16.mxu1 %v16804_v52  ;;  %v6501_v41 = vld [vmem:[#allocation7 + $0xc40] sm:$0xff]  ;;  %v16652_v47 = vcombine.high %v6373_v24, %v6377_v21  ;;  %v16651_v60 = vcombine.low %v6373_v24, %v6377_v21 }
 0x3a0   :  { %v6505_v23 = vld [vmem:[#allocation7 + $0xc60] sm:$0xff] }
 0x3a1   :  { %12388 = vmatpush1.bf16.msra.mxu0 %v16675_v40  ;;  %v16780_v5 = vcombine.high %v6501_v41, %v6505_v23  ;;  %v6365_v46 = vld [vmem:[#allocation7 + $0x800] sm:$0xff]  ;;  %v16779_v45 = vcombine.low %v6501_v41, %v6505_v23 }
 0x3a2   :  { %12431 = vmatpush1.bf16.msra.mxu1 %v16803_v13  ;;  %12389 = vmatprep.subr.bf16.mxu0 %v16668_v51  ;;  %v6369_v57 = vld [vmem:[#allocation7 + $0x820] sm:$0xff] }
 0x3a3   :  { %12432 = vmatprep.subr.bf16.mxu1 %v16796_v34  ;;  %v6493_v0 = vld [vmem:[#allocation7 + $0xc00] sm:$0xff]  ;;  %v16644_v59 = vcombine.high %v6365_v46, %v6369_v57  ;;  %v16643_v49 = vcombine.low %v6365_v46, %v6369_v57 }
 0x3a4   :  { %v6497_v33 = vld [vmem:[#allocation7 + $0xc20] sm:$0xff] }
 0x3a5   :  { %12390 = vmatpush1.bf16.msra.mxu0 %v16667_v43  ;;  %v16772_v26 = vcombine.high %v6493_v0, %v6497_v33  ;;  %v6485_v39 = vld [vmem:[#allocation7 + $0xbc0] sm:$0xff]  ;;  %v16771_v56 = vcombine.low %v6493_v0, %v6497_v33 }
 0x3a6   :  { %12433 = vmatpush1.bf16.msra.mxu1 %v16795_v30  ;;  %12391 = vmatprep.subr.bf16.mxu0 %v16660_v4  ;;  %v6489_v19 = vld [vmem:[#allocation7 + $0xbe0] sm:$0xff] }
 0x3a7   :  { %12434 = vmatprep.subr.bf16.mxu1 %v16788_v35  ;;  %v6613_v52 = vld [vmem:[#allocation7 + $0xfc0] sm:$0xff]  ;;  %v16764_v1 = vcombine.high %v6485_v39, %v6489_v19  ;;  %v16763_v27 = vcombine.low %v6485_v39, %v6489_v19 }
 0x3a8   :  { %v6617_v8 = vld [vmem:[#allocation7 + $0xfe0] sm:$0xff] }
 0x3a9   :  { %12392 = vmatpush1.bf16.msra.mxu0 %v16659_v22  ;;  %v16892_v40 = vcombine.high %v6613_v52, %v6617_v8  ;;  %v6477_v13 = vld [vmem:[#allocation7 + $0xb80] sm:$0xff]  ;;  %v16891_v36 = vcombine.low %v6613_v52, %v6617_v8 }
 0x3aa   :  { %12435 = vmatpush1.bf16.msra.mxu1 %v16787_v53  ;;  %12393 = vmatprep.subr.bf16.mxu0 %v16652_v47  ;;  %v6481_v51 = vld [vmem:[#allocation7 + $0xba0] sm:$0xff] }
 0x3ab   :  { %12436 = vmatprep.subr.bf16.mxu1 %v16780_v5  ;;  %v6605_v34 = vld [vmem:[#allocation7 + $0xf80] sm:$0xff]  ;;  %v16756_v17 = vcombine.high %v6477_v13, %v6481_v51  ;;  %v16755_v21 = vcombine.low %v6477_v13, %v6481_v51 }
 0x3ac   :  { %v6609_v11 = vld [vmem:[#allocation7 + $0xfa0] sm:$0xff] }
 0x3ad   :  { %12394 = vmatpush1.bf16.msra.mxu0 %v16651_v60  ;;  %v16884_v43 = vcombine.high %v6605_v34, %v6609_v11  ;;  %v6469_v30 = vld [vmem:[#allocation7 + $0xb40] sm:$0xff]  ;;  %v16883_v41 = vcombine.low %v6605_v34, %v6609_v11 }
 0x3ae   :  { %12437 = vmatpush1.bf16.msra.mxu1 %v16779_v45  ;;  %12395 = vmatprep.subr.bf16.mxu0 %v16644_v59  ;;  %v6473_v4 = vld [vmem:[#allocation7 + $0xb60] sm:$0xff] }
 0x3af   :  { %12438 = vmatprep.subr.bf16.mxu1 %v16772_v26  ;;  %v6597_v35 = vld [vmem:[#allocation7 + $0xf40] sm:$0xff]  ;;  %v16748_v23 = vcombine.high %v6469_v30, %v6473_v4  ;;  %v16747_v57 = vcombine.low %v6469_v30, %v6473_v4  ;;  %v5543_v4 = vadd.f32 %v18647_v44, %v18604_v63 }
 0x3b0   :  { %v6601_v24 = vld [vmem:[#allocation7 + $0xf60] sm:$0xff] }
 0x3b1   :  { %12396 = vmatpush1.bf16.msra.mxu0 %v16643_v49  ;;  %v16876_v22 = vcombine.high %v6597_v35, %v6601_v24  ;;  %v6461_v53 = vld [vmem:[#allocation7 + $0xb00] sm:$0xff]  ;;  %v16875_v0 = vcombine.low %v6597_v35, %v6601_v24  ;;  %v5414_v24 = vadd.f32 %v18577_v54, %v18551_v38  ;;  %v5586_v54 = vadd.f32 %v18649_v10, %v5543_v4 }
 0x3b2   :  { %12439 = vmatpush1.bf16.msra.mxu1 %v16771_v56  ;;  %12397 = vmatprep.subr.bf16.mxu0 %v16764_v1  ;;  %v6465_v47 = vld [vmem:[#allocation7 + $0xb20] sm:$0xff] }
 0x3b3   :  { %12440 = vmatprep.subr.bf16.mxu1 %v16892_v40  ;;  %v6589_v5 = vld [vmem:[#allocation7 + $0xf00] sm:$0xff]  ;;  %v16740_v33 = vcombine.high %v6461_v53, %v6465_v47  ;;  %v16739_v19 = vcombine.low %v6461_v53, %v6465_v47  ;;  %v5457_v63 = vadd.f32 %v18602_v58, %v5414_v24 }
 0x3b4   :  { %v6593_v46 = vld [vmem:[#allocation7 + $0xf20] sm:$0xff] }
 0x3b5   :  { %12398 = vmatpush2.bf16.msra.mxu0 %v16763_v27  ;;  %v16868_v60 = vcombine.high %v6589_v5, %v6593_v46  ;;  %v6453_v45 = vld [vmem:[#allocation7 + $0xac0] sm:$0xff]  ;;  %v16867_v52 = vcombine.low %v6589_v5, %v6593_v46  ;;  %v5410_v5 = vadd.f32 %v18540_v3, %v18538_v25 }
 0x3b6   :  { %12441 = vmatpush2.bf16.msra.mxu1 %v16891_v36  ;;  %12399 = vmatprep.subr.bf16.mxu0 %v16756_v17  ;;  %v6457_v59 = vld [vmem:[#allocation7 + $0xae0] sm:$0xff] }
 0x3b7   :  { %12442 = vmatprep.subr.bf16.mxu1 %v16884_v43  ;;  %v6581_v26 = vld [vmem:[#allocation7 + $0xec0] sm:$0xff]  ;;  %v16732_v8 = vcombine.high %v6453_v45, %v6457_v59  ;;  %v16731_v51 = vcombine.low %v6453_v45, %v6457_v59 }
 0x3b8   :  { %v6585_v39 = vld [vmem:[#allocation7 + $0xee0] sm:$0xff] }
 0x3b9   :  { %12400 = vmatpush2.bf16.msra.mxu0 %v16755_v21  ;;  %v16860_v49 = vcombine.high %v6581_v26, %v6585_v39  ;;  %v6445_v56 = vld [vmem:[#allocation7 + $0xa80] sm:$0xff]  ;;  %v16859_v34 = vcombine.low %v6581_v26, %v6585_v39 }
 0x3ba   :  { %12443 = vmatpush2.bf16.msra.mxu1 %v16883_v41  ;;  %12401 = vmatprep.subr.bf16.mxu0 %v16748_v23  ;;  %v6449_v1 = vld [vmem:[#allocation7 + $0xaa0] sm:$0xff]  ;;  %v5539_v23 = vadd.f32 %v18616_v9, %v18600_v29  ;;  %v5453_v9 = vadd.f32 %v18565_v20, %v5410_v5 }
 0x3bb   :  { %12444 = vmatprep.subr.bf16.mxu1 %v16876_v22  ;;  %v6573_v40 = vld [vmem:[#allocation7 + $0xe80] sm:$0xff]  ;;  %v16724_v11 = vcombine.high %v6445_v56, %v6449_v1  ;;  %v16723_v35 = vcombine.low %v6445_v56, %v6449_v1 }
 0x3bc   :  { %v6577_v13 = vld [vmem:[#allocation7 + $0xea0] sm:$0xff]  ;;  %v5582_v25 = vadd.f32 %v18621_v55, %v5539_v23 }
 0x3bd   :  { %12402 = vmatpush2.bf16.msra.mxu0 %v16747_v57  ;;  %v16852_v27 = vcombine.high %v6573_v40, %v6577_v13  ;;  %v6437_v36 = vld [vmem:[#allocation7 + $0xa40] sm:$0xff]  ;;  %v16851_v21 = vcombine.low %v6573_v40, %v6577_v13  ;;  %v18676_v57 = vld [vmem:[#allocation5 + $0x8] sm:$0xff] }
 0x3be   :  { %12445 = vmatpush2.bf16.msra.mxu1 %v16875_v0  ;;  %12403 = vmatprep.subr.bf16.mxu0 %v16740_v33  ;;  %v6441_v17 = vld [vmem:[#allocation7 + $0xa60] sm:$0xff]  ;;  %v5988_v38 = vrot.slane %v18676_v57, %v18573_v28  ;;  %v5996_v3 = vrot.slane %v18676_v57, %v18584_v18 }
 0x3bf   :  { %12446 = vmatprep.subr.bf16.mxu1 %v16868_v60  ;;  %v6565_v43 = vld [vmem:[#allocation7 + $0xe40] sm:$0xff]  ;;  %v16716_v41 = vcombine.high %v6437_v36, %v6441_v17  ;;  %v16715_v29 = vcombine.low %v6437_v36, %v6441_v17  ;;  %v18685_v36 = vpop.f32.mrf.mxu0 }
 0x3c0   :  { %v6569_v30 = vld [vmem:[#allocation7 + $0xe60] sm:$0xff]  ;;  %v6054_v59 = vadd.f32 %v5988_v38, %v5457_v63  ;;  %v6056_v39 = vadd.f32 %v5996_v3, %v5586_v54  ;;  %v6038_v20 = vadd.f32 %v5988_v38, %v5453_v9 }
 0x3c1   :  { %12404 = vmatpush2.bf16.msra.mxu0 %v16739_v19  ;;  %v16844_v22 = vcombine.high %v6565_v43, %v6569_v30  ;;  %v6429_v53 = vld [vmem:[#allocation7 + $0xa00] sm:$0xff]  ;;  %v16843_v0 = vcombine.low %v6565_v43, %v6569_v30 }
 0x3c2   :  { %12447 = vmatpush2.bf16.msra.mxu1 %v16867_v52  ;;  %12405 = vmatprep.subr.bf16.mxu0 %v16732_v8  ;;  %v6433_v47 = vld [vmem:[#allocation7 + $0xa20] sm:$0xff]  ;;  %v6086_v56 = vmax.f32 %v6054_v59, 0.0  ;;  %v6088_v13 = vmax.f32 %v6056_v39, 0.0 }
 0x3c3   :  { %12448 = vmatprep.subr.bf16.mxu1 %v16860_v49  ;;  %v6557_v44 = vld [vmem:[#allocation7 + $0xe00] sm:$0xff]  ;;  %v16708_v33 = vcombine.high %v6429_v53, %v6433_v47  ;;  %v16707_v19 = vcombine.low %v6429_v53, %v6433_v47  ;;  %v6040_v49 = vadd.f32 %v5996_v3, %v5582_v25 }
 0x3c4   :  { %v6561_v46 = vld [vmem:[#allocation7 + $0xe20] sm:$0xff] }
 0x3c5   :  { %12406 = vmatpush2.bf16.msra.mxu0 %v16731_v51  ;;  %v16836_v58 = vcombine.high %v6557_v44, %v6561_v46  ;;  %v6677_v60 = vld [vmem:[#allocation7 + $0x11c0] sm:$0xff]  ;;  %v16835_v52 = vcombine.low %v6557_v44, %v6561_v46  ;;  %v6072_v43 = vmax.f32 %v6040_v49, 0.0  ;;  %v19089_v46 = vld [vmem:[#allocation22_spill] sm:$0xff] }
 0x3c6   :  { %12449 = vmatpush2.bf16.msra.mxu1 %v16859_v34  ;;  %12407 = vmatprep.subr.bf16.mxu0 %v16724_v11  ;;  %v6681_v45 = vld [vmem:[#allocation7 + $0x11e0] sm:$0xff] }
 0x3c7   :  { %12450 = vmatprep.subr.bf16.mxu1 %v16852_v27  ;;  %v6805_v26 = vld [vmem:[#allocation7 + $0x15c0] sm:$0xff]  ;;  %v16956_v8 = vcombine.high %v6677_v60, %v6681_v45  ;;  %v16955_v51 = vcombine.low %v6677_v60, %v6681_v45  ;;  %v6070_v27 = vmax.f32 %v6038_v20, 0.0  ;;  %v18692_v63 = vpack.c.bf16 %v6088_v13, %v6072_v43 }
 0x3c8   :  { %v6809_v10 = vld [vmem:[#allocation7 + $0x15e0] sm:$0xff] }
 0x3c9   :  { %12408 = vmatpush2.bf16.msra.mxu0 %v16723_v35  ;;  %v17084_v55 = vcombine.high %v6805_v26, %v6809_v10  ;;  %v6669_v1 = vld [vmem:[#allocation7 + $0x1180] sm:$0xff]  ;;  %v17083_v17 = vcombine.low %v6805_v26, %v6809_v10  ;;  %v18687_v24 = vpack.c.bf16 %v6086_v56, %v6070_v27 }
 0x3ca   :  { %12451 = vmatpush2.bf16.msra.mxu1 %v16851_v21  ;;  %12409 = vmatprep.subr.bf16.mxu0 %v16716_v41  ;;  %v6673_v40 = vld [vmem:[#allocation7 + $0x11a0] sm:$0xff] }
 0x3cb   :  { %12452 = vmatprep.subr.bf16.mxu1 %v16844_v22  ;;  %v6797_v34 = vld [vmem:[#allocation7 + $0x1580] sm:$0xff]  ;;  %v16948_v30 = vcombine.high %v6669_v1, %v6673_v40  ;;  %v16947_v38 = vcombine.low %v6669_v1, %v6673_v40 }
 0x3cc   :  { %v6801_v11 = vld [vmem:[#allocation7 + $0x15a0] sm:$0xff] }
 0x3cd   :  { %12410 = vmatpush2.bf16.msra.mxu0 %v16715_v29  ;;  %v6661_v4 = vld [vmem:[#allocation7 + $0x1140] sm:$0xff]  ;;  %v17076_v53 = vcombine.high %v6797_v34, %v6801_v11  ;;  %v17075_v29 = vcombine.low %v6797_v34, %v6801_v11 }
 0x3ce   :  { %12453 = vmatpush2.bf16.msra.mxu1 %v16843_v0  ;;  %12411 = vmatprep.subr.bf16.mxu0 %v16708_v33  ;;  %v6665_v35 = vld [vmem:[#allocation7 + $0x1160] sm:$0xff] }
 0x3cf   :  { %12454 = vmatprep.subr.bf16.mxu1 %v16836_v58  ;;  %v19087_v41 = vld [vmem:[#allocation19_spill] sm:$0xff]  ;;  %v19088_v22 = vld [vmem:[#allocation20_spill] sm:$0xff]  ;;  %v16940_v9 = vcombine.high %v6661_v4, %v6665_v35  ;;  %v16939_v59 = vcombine.low %v6661_v4, %v6665_v35 }
 0x3d0   :  { %v6000_v23 = vrot.slane %v18676_v57, %v19087_v41  ;;  %v6789_v47 = vld [vmem:[#allocation7 + $0x1540] sm:$0xff] }
 0x3d1   :  { %12412 = vmatpush2.bf16.msra.mxu0 %v16707_v19  ;;  %v6793_v5 = vld [vmem:[#allocation7 + $0x1560] sm:$0xff] }
 0x3d2   :  { %12455 = vmatpush2.bf16.msra.mxu1 %v16835_v52  ;;  %12467 = vmatprep.subr.bf16.mxu0 %v16956_v8  ;;  %v17068_v0 = vcombine.high %v6789_v47, %v6793_v5  ;;  %v6653_v33 = vld [vmem:[#allocation7 + $0x1100] sm:$0xff]  ;;  %v17067_v26 = vcombine.low %v6789_v47, %v6793_v5 }
 0x3d3   :  { %12510 = vmatprep.subr.bf16.mxu1 %v17084_v55  ;;  %v6657_v25 = vld [vmem:[#allocation7 + $0x1120] sm:$0xff] }
 0x3d4   :  { %v5708_v21 = vpop.f32.mrf.mxu0  ;;  %12414 = vmatmul.mubr.bf16.vlgmr.msra.gmra.mxu0 %v19088_v22  ;;  %v6785_v58 = vld [vmem:[#allocation7 + $0x1520] sm:$0xff]  ;;  %v16932_v10 = vcombine.high %v6653_v33, %v6657_v25  ;;  %v16931_v1 = vcombine.low %v6653_v33, %v6657_v25 }
 0x3d5   :  { %v5709_v44 = vadd.f32 %v5708_v21, %v18657_v42  ;;  %12457 = vmatmul.mubr.bf16.vlgmr.msra.gmra.mxu1 %v19089_v46  ;;  %12468 = vmatpush1.bf16.msra.mxu0 %v16955_v51  ;;  %v6781_v42 = vld [vmem:[#allocation7 + $0x1500] sm:$0xff] }
 0x3d6   :  { %12499 = vmatprep.mubr.bf16.mxu0 %v18687_v24  ;;  %12511 = vmatpush1.bf16.msra.mxu1 %v17083_v17  ;;  %v18697_v54 = vpop.f32.mrf.mxu0  ;;  %v17060_v19 = vcombine.high %v6781_v42, %v6785_v58  ;;  %v6645_v20 = vld [vmem:[#allocation7 + $0x10c0] sm:$0xff] }
 0x3d7   :  { %12542 = vmatprep.mubr.bf16.mxu1 %v18692_v63  ;;  %12469 = vmatprep.subr.bf16.mxu0 %v16948_v30  ;;  %v6041_v60 = vadd.f32 %v6000_v23, %v5709_v44  ;;  %v6649_v52 = vld [vmem:[#allocation7 + $0x10e0] sm:$0xff] }
 0x3d8   :  { %v5712_v3 = vpop.f32.mrf.mxu0  ;;  %12512 = vmatprep.subr.bf16.mxu1 %v17076_v53  ;;  %v6773_v8 = vld [vmem:[#allocation7 + $0x14c0] sm:$0xff]  ;;  %v16924_v40 = vcombine.high %v6645_v20, %v6649_v52  ;;  %v16923_v43 = vcombine.low %v6645_v20, %v6649_v52 }
 0x3d9   :  { %v5713_v45 = vadd.f32 %v5712_v3, %v18665_v61  ;;  %12470 = vmatpush1.bf16.msra.mxu0 %v16947_v38  ;;  %v6777_v49 = vld [vmem:[#allocation7 + $0x14e0] sm:$0xff]  ;;  %v6073_v55 = vmax.f32 %v6041_v60, 0.0  ;;  %v17059_v61 = vcombine.low %v6781_v42, %v6785_v58 }
 0x3da   :  { %12513 = vmatpush1.bf16.msra.mxu1 %v17075_v29  ;;  %12471 = vmatprep.subr.bf16.mxu0 %v16940_v9  ;;  %v17052_v51 = vcombine.high %v6773_v8, %v6777_v49  ;;  %v6637_v34 = vld [vmem:[#allocation7 + $0x1080] sm:$0xff]  ;;  %v17051_v30 = vcombine.low %v6773_v8, %v6777_v49 }
 0x3db   :  { %v6057_v39 = vadd.f32 %v6000_v23, %v5713_v45  ;;  %12514 = vmatprep.subr.bf16.mxu1 %v17068_v0  ;;  %v6641_v11 = vld [vmem:[#allocation7 + $0x10a0] sm:$0xff] }
 0x3dc   :  { %v6765_v27 = vld [vmem:[#allocation7 + $0x1480] sm:$0xff]  ;;  %v16916_v4 = vcombine.high %v6637_v34, %v6641_v11  ;;  %v16915_v5 = vcombine.low %v6637_v34, %v6641_v11 }
 0x3dd   :  { %v6089_v56 = vmax.f32 %v6057_v39, 0.0  ;;  %12472 = vmatpush1.bf16.msra.mxu0 %v16939_v59  ;;  %v6769_v17 = vld [vmem:[#allocation7 + $0x14a0] sm:$0xff] }
 0x3de   :  { %12515 = vmatpush1.bf16.msra.mxu1 %v17067_v26  ;;  %12473 = vmatprep.subr.bf16.mxu0 %v16932_v10  ;;  %v17044_v35 = vcombine.high %v6765_v27, %v6769_v17  ;;  %v6629_v21 = vld [vmem:[#allocation7 + $0x1040] sm:$0xff]  ;;  %v17043_v44 = vcombine.low %v6765_v27, %v6769_v17 }
 0x3df   :  { %v18701_v13 = vpack.c.bf16 %v6089_v56, %v6073_v55  ;;  %12516 = vmatprep.subr.bf16.mxu1 %v17060_v19  ;;  %v6633_v23 = vld [vmem:[#allocation7 + $0x1060] sm:$0xff] }
 0x3e0   :  { %v6757_v53 = vld [vmem:[#allocation7 + $0x1440] sm:$0xff]  ;;  %v16908_v38 = vcombine.high %v6629_v21, %v6633_v23  ;;  %v16907_v3 = vcombine.low %v6629_v21, %v6633_v23 }
 0x3e1   :  { %12474 = vmatpush1.bf16.msra.mxu0 %v16931_v1  ;;  %v6761_v47 = vld [vmem:[#allocation7 + $0x1460] sm:$0xff] }
 0x3e2   :  { %12517 = vmatpush1.bf16.msra.mxu1 %v17059_v61  ;;  %12475 = vmatprep.subr.bf16.mxu0 %v16924_v40  ;;  %v17036_v29 = vcombine.high %v6757_v53, %v6761_v47  ;;  %v6621_v9 = vld [vmem:[#allocation7 + $0x1000] sm:$0xff]  ;;  %v17035_v42 = vcombine.low %v6757_v53, %v6761_v47 }
 0x3e3   :  { %12518 = vmatprep.subr.bf16.mxu1 %v17052_v51  ;;  %v6625_v0 = vld [vmem:[#allocation7 + $0x1020] sm:$0xff] }
 0x3e4   :  { %v6749_v33 = vld [vmem:[#allocation7 + $0x1400] sm:$0xff]  ;;  %v16900_v58 = vcombine.high %v6621_v9, %v6625_v0  ;;  %v16899_v39 = vcombine.low %v6621_v9, %v6625_v0 }
 0x3e5   :  { %12476 = vmatpush1.bf16.msra.mxu0 %v16923_v43  ;;  %v6753_v25 = vld [vmem:[#allocation7 + $0x1420] sm:$0xff] }
 0x3e6   :  { %12519 = vmatpush1.bf16.msra.mxu1 %v17051_v30  ;;  %12477 = vmatprep.subr.bf16.mxu0 %v16916_v4  ;;  %v17028_v60 = vcombine.high %v6749_v33, %v6753_v25  ;;  %v6741_v45 = vld [vmem:[#allocation7 + $0x13c0] sm:$0xff]  ;;  %v17027_v19 = vcombine.low %v6749_v33, %v6753_v25 }
 0x3e7   :  { %12520 = vmatprep.subr.bf16.mxu1 %v17044_v35  ;;  %v6745_v59 = vld [vmem:[#allocation7 + $0x13e0] sm:$0xff] }
 0x3e8   :  { %v6869_v26 = vld [vmem:[#allocation7 + $0x17c0] sm:$0xff]  ;;  %v17020_v20 = vcombine.high %v6741_v45, %v6745_v59  ;;  %v17019_v1 = vcombine.low %v6741_v45, %v6745_v59 }
 0x3e9   :  { %12478 = vmatpush1.bf16.msra.mxu0 %v16915_v5  ;;  %v6873_v10 = vld [vmem:[#allocation7 + $0x17e0] sm:$0xff] }
 0x3ea   :  { %12521 = vmatpush1.bf16.msra.mxu1 %v17043_v44  ;;  %12479 = vmatprep.subr.bf16.mxu0 %v16908_v38  ;;  %v17148_v52 = vcombine.high %v6869_v26, %v6873_v10  ;;  %v6733_v8 = vld [vmem:[#allocation7 + $0x1380] sm:$0xff]  ;;  %v17147_v61 = vcombine.low %v6869_v26, %v6873_v10 }
 0x3eb   :  { %12522 = vmatprep.subr.bf16.mxu1 %v17036_v29  ;;  %v6737_v49 = vld [vmem:[#allocation7 + $0x13a0] sm:$0xff] }
 0x3ec   :  { %v6861_v55 = vld [vmem:[#allocation7 + $0x1780] sm:$0xff]  ;;  %v17012_v40 = vcombine.high %v6733_v8, %v6737_v49  ;;  %v17011_v43 = vcombine.low %v6733_v8, %v6737_v49 }
 0x3ed   :  { %12480 = vmatpush1.bf16.msra.mxu0 %v16907_v3  ;;  %v6865_v56 = vld [vmem:[#allocation7 + $0x17a0] sm:$0xff] }
 0x3ee   :  { %12523 = vmatpush1.bf16.msra.mxu1 %v17035_v42  ;;  %12481 = vmatprep.subr.bf16.mxu0 %v16900_v58  ;;  %v17140_v51 = vcombine.high %v6861_v55, %v6865_v56  ;;  %v6725_v34 = vld [vmem:[#allocation7 + $0x1340] sm:$0xff]  ;;  %v17139_v30 = vcombine.low %v6861_v55, %v6865_v56 }
 0x3ef   :  { %12524 = vmatprep.subr.bf16.mxu1 %v17028_v60  ;;  %v6729_v11 = vld [vmem:[#allocation7 + $0x1360] sm:$0xff] }
 0x3f0   :  { %v6853_v27 = vld [vmem:[#allocation7 + $0x1740] sm:$0xff]  ;;  %v17004_v4 = vcombine.high %v6725_v34, %v6729_v11  ;;  %v17003_v5 = vcombine.low %v6725_v34, %v6729_v11 }
 0x3f1   :  { %12482 = vmatpush1.bf16.msra.mxu0 %v16899_v39  ;;  %v6857_v17 = vld [vmem:[#allocation7 + $0x1760] sm:$0xff] }
 0x3f2   :  { %12525 = vmatpush1.bf16.msra.mxu1 %v17027_v19  ;;  %12483 = vmatprep.subr.bf16.mxu0 %v17020_v20  ;;  %v17132_v35 = vcombine.high %v6853_v27, %v6857_v17  ;;  %v6717_v21 = vld [vmem:[#allocation7 + $0x1300] sm:$0xff]  ;;  %v17131_v44 = vcombine.low %v6853_v27, %v6857_v17 }
 0x3f3   :  { %12526 = vmatprep.subr.bf16.mxu1 %v17148_v52  ;;  %v6721_v23 = vld [vmem:[#allocation7 + $0x1320] sm:$0xff]  ;;  %v5671_v52 = vpop.f32.mrf.mxu1 }
 0x3f4   :  { %v6845_v53 = vld [vmem:[#allocation7 + $0x1700] sm:$0xff]  ;;  %v16996_v38 = vcombine.high %v6717_v21, %v6721_v23  ;;  %v16995_v3 = vcombine.low %v6717_v21, %v6721_v23 }
 0x3f5   :  { %12484 = vmatpush2.bf16.msra.mxu0 %v17019_v1  ;;  %v6849_v47 = vld [vmem:[#allocation7 + $0x1720] sm:$0xff]  ;;  %v18704_v27 = vpop.f32.mrf.mxu1 }
 0x3f6   :  { %12527 = vmatpush2.bf16.msra.mxu1 %v17147_v61  ;;  %12485 = vmatprep.subr.bf16.mxu0 %v17012_v40  ;;  %v17124_v29 = vcombine.high %v6845_v53, %v6849_v47  ;;  %v6709_v9 = vld [vmem:[#allocation7 + $0x12c0] sm:$0xff]  ;;  %v17123_v42 = vcombine.low %v6845_v53, %v6849_v47  ;;  %v5714_v61 = vpop.f32.mrf.mxu0  ;;  %v6004_v53 = vrot.slane %v18676_v57, %v18626_v37  ;;  %v6267_v37 = vld [vmem:[#allocation7 + $0x4f0] sm:$0xff] }
 0x3f7   :  { %12528 = vmatprep.subr.bf16.mxu1 %v17140_v51  ;;  %v6713_v0 = vld [vmem:[#allocation7 + $0x12e0] sm:$0xff]  ;;  %v5672_v51 = vadd.f32 %v5671_v52, %v18685_v36 }
 0x3f8   :  { %v6837_v33 = vld [vmem:[#allocation7 + $0x16c0] sm:$0xff]  ;;  %v16988_v58 = vcombine.high %v6709_v9, %v6713_v0  ;;  %v16987_v39 = vcombine.low %v6709_v9, %v6713_v0 }
 0x3f9   :  { %12486 = vmatpush2.bf16.msra.mxu0 %v17011_v43  ;;  %v6841_v25 = vld [vmem:[#allocation7 + $0x16e0] sm:$0xff] }
 0x3fa   :  { %12529 = vmatpush2.bf16.msra.mxu1 %v17139_v30  ;;  %12487 = vmatprep.subr.bf16.mxu0 %v17004_v4  ;;  %v17116_v60 = vcombine.high %v6837_v33, %v6841_v25  ;;  %v6701_v45 = vld [vmem:[#allocation7 + $0x1280] sm:$0xff]  ;;  %v17115_v19 = vcombine.low %v6837_v33, %v6841_v25  ;;  %v5668_v4 = vadd.f32 %v18663_v14, %v18660_v15 }
 0x3fb   :  { %12530 = vmatprep.subr.bf16.mxu1 %v17132_v35  ;;  %v6705_v59 = vld [vmem:[#allocation7 + $0x12a0] sm:$0xff]  ;;  %v5715_v35 = vadd.f32 %v5714_v61, %v5672_v51 }
 0x3fc   :  { %v6829_v26 = vld [vmem:[#allocation7 + $0x1680] sm:$0xff]  ;;  %v16980_v20 = vcombine.high %v6701_v45, %v6705_v59  ;;  %v16979_v40 = vcombine.low %v6701_v45, %v6705_v59  ;;  %v5711_v47 = vadd.f32 %v18697_v54, %v5668_v4 }
 0x3fd   :  { %12488 = vmatpush2.bf16.msra.mxu0 %v17003_v5  ;;  %v6833_v10 = vld [vmem:[#allocation7 + $0x16a0] sm:$0xff]  ;;  %v6058_v15 = vadd.f32 %v6004_v53, %v5715_v35 }
 0x3fe   :  { %12531 = vmatpush2.bf16.msra.mxu1 %v17131_v44  ;;  %12489 = vmatprep.subr.bf16.mxu0 %v16996_v38  ;;  %v17108_v8 = vcombine.high %v6829_v26, %v6833_v10  ;;  %v6693_v49 = vld [vmem:[#allocation7 + $0x1240] sm:$0xff]  ;;  %v17107_v34 = vcombine.low %v6829_v26, %v6833_v10  ;;  %v5753_v38 = vpop.f32.mrf.mxu1 }
 0x3ff   :  { %12532 = vmatprep.subr.bf16.mxu1 %v17124_v29  ;;  %v6697_v55 = vld [vmem:[#allocation7 + $0x1260] sm:$0xff]  ;;  %v6090_v59 = vmax.f32 %v6058_v15, 0.0 }
 0x400   :  { %v6821_v56 = vld [vmem:[#allocation7 + $0x1640] sm:$0xff]  ;;  %v16972_v11 = vcombine.high %v6693_v49, %v6697_v55  ;;  %v16971_v36 = vcombine.low %v6693_v49, %v6697_v55  ;;  %v18711_v54 = vpop.f32.mrf.mxu1 }
 0x401   :  { %12490 = vmatpush2.bf16.msra.mxu0 %v16995_v3  ;;  %v6825_v1 = vld [vmem:[#allocation7 + $0x1660] sm:$0xff]  ;;  %v6042_v3 = vadd.f32 %v6004_v53, %v5711_v47 }
 0x402   :  { %12533 = vmatpush2.bf16.msra.mxu1 %v17123_v42  ;;  %12491 = vmatprep.subr.bf16.mxu0 %v16988_v58  ;;  %v17100_v17 = vcombine.high %v6821_v56, %v6825_v1  ;;  %v6685_v43 = vld [vmem:[#allocation7 + $0x1200] sm:$0xff]  ;;  %v17099_v5 = vcombine.low %v6821_v56, %v6825_v1 }
 0x403   :  { %12534 = vmatprep.subr.bf16.mxu1 %v17116_v60  ;;  %v6689_v30 = vld [vmem:[#allocation7 + $0x1220] sm:$0xff] }
 0x404   :  { %v6813_v21 = vld [vmem:[#allocation7 + $0x1600] sm:$0xff]  ;;  %v16964_v44 = vcombine.high %v6685_v43, %v6689_v30  ;;  %v16963_v25 = vcombine.low %v6685_v43, %v6689_v30 }
 0x405   :  { %12492 = vmatpush2.bf16.msra.mxu0 %v16987_v39  ;;  %v6817_v23 = vld [vmem:[#allocation7 + $0x1620] sm:$0xff] }
 0x406   :  { %12535 = vmatpush2.bf16.msra.mxu1 %v17115_v19  ;;  %12493 = vmatprep.subr.bf16.mxu0 %v16980_v20  ;;  %v17092_v29 = vcombine.high %v6813_v21, %v6817_v23  ;;  %v6933_v9 = vld [vmem:[#allocation7 + $0x19c0] sm:$0xff]  ;;  %v17091_v42 = vcombine.low %v6813_v21, %v6817_v23  ;;  %v6074_v20 = vmax.f32 %v6042_v3, 0.0 }
 0x407   :  { %12536 = vmatprep.subr.bf16.mxu1 %v17108_v8  ;;  %v6937_v0 = vld [vmem:[#allocation7 + $0x19e0] sm:$0xff]  ;;  %v5757_v8 = vpop.f32.mrf.mxu1 }
 0x408   :  { %v7061_v14 = vld [vmem:[#allocation7 + $0x1dc0] sm:$0xff]  ;;  %v17212_v58 = vcombine.high %v6933_v9, %v6937_v0  ;;  %v17211_v19 = vcombine.low %v6933_v9, %v6937_v0  ;;  %v18713_v61 = vpack.c.bf16 %v6090_v59, %v6074_v20  ;;  %v6012_v9 = vrot.slane %v18676_v57, %v18635_v6 }
 0x409   :  { %12494 = vmatpush2.bf16.msra.mxu0 %v16979_v40  ;;  %v7065_v33 = vld [vmem:[#allocation7 + $0x1de0] sm:$0xff] }
 0x40a   :  { %12537 = vmatpush2.bf16.msra.mxu1 %v17107_v34  ;;  %12495 = vmatprep.subr.bf16.mxu0 %v16972_v11  ;;  %v17340_v60 = vcombine.high %v7061_v14, %v7065_v33  ;;  %v6925_v45 = vld [vmem:[#allocation7 + $0x1980] sm:$0xff]  ;;  %v17339_v52 = vcombine.low %v7061_v14, %v7065_v33 }
 0x40b   :  { %12538 = vmatprep.subr.bf16.mxu1 %v17100_v17  ;;  %v6929_v26 = vld [vmem:[#allocation7 + $0x19a0] sm:$0xff] }
 0x40c   :  { %v7053_v10 = vld [vmem:[#allocation7 + $0x1d80] sm:$0xff]  ;;  %v17204_v49 = vcombine.high %v6925_v45, %v6929_v26  ;;  %v17203_v17 = vcombine.low %v6925_v45, %v6929_v26 }
 0x40d   :  { %12496 = vmatpush2.bf16.msra.mxu0 %v16971_v36  ;;  %v7057_v39 = vld [vmem:[#allocation7 + $0x1da0] sm:$0xff] }
 0x40e   :  { %12539 = vmatpush2.bf16.msra.mxu1 %v17099_v5  ;;  %12497 = vmatprep.subr.bf16.mxu0 %v16964_v44  ;;  %v17332_v55 = vcombine.high %v7053_v10, %v7057_v39  ;;  %v6917_v56 = vld [vmem:[#allocation7 + $0x1940] sm:$0xff]  ;;  %v17331_v30 = vcombine.low %v7053_v10, %v7057_v39 }
 0x40f   :  { %12540 = vmatprep.subr.bf16.mxu1 %v17092_v29  ;;  %v6921_v1 = vld [vmem:[#allocation7 + $0x1960] sm:$0xff] }
 0x410   :  { %v7045_v51 = vld [vmem:[#allocation7 + $0x1d40] sm:$0xff]  ;;  %v17196_v4 = vcombine.high %v6917_v56, %v6921_v1  ;;  %v17195_v15 = vcombine.low %v6917_v56, %v6921_v1 }
 0x411   :  { %12498 = vmatpush2.bf16.msra.mxu0 %v16963_v25  ;;  %v7049_v34 = vld [vmem:[#allocation7 + $0x1d60] sm:$0xff] }
 0x412   :  { %12541 = vmatpush2.bf16.msra.mxu1 %v17091_v42  ;;  %12553 = vmatprep.subr.bf16.mxu0 %v17212_v58  ;;  %v17324_v23 = vcombine.high %v7045_v51, %v7049_v34  ;;  %v6909_v53 = vld [vmem:[#allocation7 + $0x1900] sm:$0xff]  ;;  %v17323_v14 = vcombine.low %v7045_v51, %v7049_v34 }
 0x413   :  { %12596 = vmatprep.subr.bf16.mxu1 %v17340_v60  ;;  %v6913_v36 = vld [vmem:[#allocation7 + $0x1920] sm:$0xff] }
 0x414   :  { %v18715_v40 = vpop.f32.mrf.mxu0  ;;  %12500 = vmatmul.mubr.bf16.vlgmr.msra.gmra.mxu0 %v18570_v50  ;;  %v7037_v5 = vld [vmem:[#allocation7 + $0x1d00] sm:$0xff]  ;;  %v17188_v33 = vcombine.high %v6909_v53, %v6913_v36  ;;  %v17187_v39 = vcombine.low %v6909_v53, %v6913_v36 }
 0x415   :  { %v18718_v11 = vpop.f32.mrf.mxu1  ;;  %12543 = vmatmul.mubr.bf16.vlgmr.msra.gmra.mxu1 %v18623_v62  ;;  %12554 = vmatpush1.bf16.msra.mxu0 %v17211_v19  ;;  %v7041_v44 = vld [vmem:[#allocation7 + $0x1d20] sm:$0xff] }
 0x416   :  { %12585 = vmatprep.mubr.bf16.mxu0 %v18713_v61  ;;  %12597 = vmatpush1.bf16.msra.mxu1 %v17339_v52  ;;  %v5796_v43 = vpop.f32.mrf.mxu0  ;;  %v17316_v3 = vcombine.high %v7037_v5, %v7041_v44  ;;  %v6901_v42 = vld [vmem:[#allocation7 + $0x18c0] sm:$0xff]  ;;  %v17315_v19 = vcombine.low %v7037_v5, %v7041_v44 }
 0x417   :  { %v5797_v35 = vadd.f32 %v5796_v43, %v5753_v38  ;;  %v5839_v21 = vpop.f32.mrf.mxu1  ;;  %12555 = vmatprep.subr.bf16.mxu0 %v17204_v49  ;;  %12598 = vmatprep.subr.bf16.mxu1 %v17332_v55  ;;  %v6905_v58 = vld [vmem:[#allocation7 + $0x18e0] sm:$0xff] }
 0x418   :  { %v18722_v47 = vpop.f32.mrf.mxu0  ;;  %v7029_v45 = vld [vmem:[#allocation7 + $0x1cc0] sm:$0xff]  ;;  %v17180_v20 = vcombine.high %v6901_v42, %v6905_v58 }
 0x419   :  { %v5840_v29 = vadd.f32 %v5839_v21, %v5797_v35  ;;  %v18726_v0 = vpop.f32.mrf.mxu1  ;;  %12556 = vmatpush1.bf16.msra.mxu0 %v17203_v17  ;;  %v7033_v59 = vld [vmem:[#allocation7 + $0x1ce0] sm:$0xff]  ;;  %v17179_v17 = vcombine.low %v6901_v42, %v6905_v58 }
 0x41a   :  { %12599 = vmatpush1.bf16.msra.mxu1 %v17331_v30  ;;  %v5800_v38 = vpop.f32.mrf.mxu0  ;;  %12557 = vmatprep.subr.bf16.mxu0 %v17196_v4  ;;  %v17308_v49 = vcombine.high %v7029_v45, %v7033_v59  ;;  %v6893_v55 = vld [vmem:[#allocation7 + $0x1880] sm:$0xff]  ;;  %v17307_v43 = vcombine.low %v7029_v45, %v7033_v59 }
 0x41b   :  { %v5801_v25 = vadd.f32 %v5800_v38, %v5757_v8  ;;  %12600 = vmatprep.subr.bf16.mxu1 %v17324_v23  ;;  %v5843_v60 = vpop.f32.mrf.mxu1  ;;  %v6044_v26 = vadd.f32 %v6012_v9, %v5840_v29  ;;  %v6897_v8 = vld [vmem:[#allocation7 + $0x18a0] sm:$0xff] }
 0x41c   :  { %v7021_v56 = vld [vmem:[#allocation7 + $0x1c80] sm:$0xff]  ;;  %v17172_v30 = vcombine.high %v6893_v55, %v6897_v8  ;;  %v17171_v5 = vcombine.low %v6893_v55, %v6897_v8 }
 0x41d   :  { %v5844_v10 = vadd.f32 %v5843_v60, %v5801_v25  ;;  %12558 = vmatpush1.bf16.msra.mxu0 %v17195_v15  ;;  %v7025_v1 = vld [vmem:[#allocation7 + $0x1ca0] sm:$0xff]  ;;  %v6076_v51 = vmax.f32 %v6044_v26, 0.0 }
 0x41e   :  { %12601 = vmatpush1.bf16.msra.mxu1 %v17323_v14  ;;  %12559 = vmatprep.subr.bf16.mxu0 %v17188_v33  ;;  %v17300_v35 = vcombine.high %v7021_v56, %v7025_v1  ;;  %v6885_v21 = vld [vmem:[#allocation7 + $0x1840] sm:$0xff]  ;;  %v17299_v44 = vcombine.low %v7021_v56, %v7025_v1 }
 0x41f   :  { %v6060_v52 = vadd.f32 %v6012_v9, %v5844_v10  ;;  %12602 = vmatprep.subr.bf16.mxu1 %v17316_v3  ;;  %v6889_v23 = vld [vmem:[#allocation7 + $0x1860] sm:$0xff] }
 0x420   :  { %v7013_v53 = vld [vmem:[#allocation7 + $0x1c40] sm:$0xff]  ;;  %v17164_v29 = vcombine.high %v6885_v21, %v6889_v23  ;;  %v17163_v25 = vcombine.low %v6885_v21, %v6889_v23 }
 0x421   :  { %v6092_v34 = vmax.f32 %v6060_v52, 0.0  ;;  %12560 = vmatpush1.bf16.msra.mxu0 %v17187_v39  ;;  %v7017_v36 = vld [vmem:[#allocation7 + $0x1c60] sm:$0xff] }
 0x422   :  { %12603 = vmatpush1.bf16.msra.mxu1 %v17315_v19  ;;  %12561 = vmatprep.subr.bf16.mxu0 %v17180_v20  ;;  %v17292_v9 = vcombine.high %v7013_v53, %v7017_v36  ;;  %v6877_v15 = vld [vmem:[#allocation7 + $0x1800] sm:$0xff]  ;;  %v17291_v3 = vcombine.low %v7013_v53, %v7017_v36 }
 0x423   :  { %v18728_v4 = vpack.c.bf16 %v6092_v34, %v6076_v51  ;;  %12604 = vmatprep.subr.bf16.mxu1 %v17308_v49  ;;  %v6881_v38 = vld [vmem:[#allocation7 + $0x1820] sm:$0xff] }
 0x424   :  { %v7005_v14 = vld [vmem:[#allocation7 + $0x1c00] sm:$0xff]  ;;  %v17156_v42 = vcombine.high %v6877_v15, %v6881_v38  ;;  %v17155_v10 = vcombine.low %v6877_v15, %v6881_v38 }
 0x425   :  { %12562 = vmatpush1.bf16.msra.mxu0 %v17179_v17  ;;  %12628 = vmatprep.mubr.bf16.mxu1 %v18728_v4  ;;  %v7009_v33 = vld [vmem:[#allocation7 + $0x1c20] sm:$0xff] }
 0x426   :  { %12605 = vmatpush1.bf16.msra.mxu1 %v17307_v43  ;;  %12563 = vmatprep.subr.bf16.mxu0 %v17172_v30  ;;  %v17284_v58 = vcombine.high %v7005_v14, %v7009_v33  ;;  %v6997_v60 = vld [vmem:[#allocation7 + $0x1bc0] sm:$0xff]  ;;  %v17283_v39 = vcombine.low %v7005_v14, %v7009_v33 }
 0x427   :  { %12606 = vmatprep.subr.bf16.mxu1 %v17300_v35  ;;  %v7001_v45 = vld [vmem:[#allocation7 + $0x1be0] sm:$0xff] }
 0x428   :  { %v7125_v59 = vld [vmem:[#allocation7 + $0x1fc0] sm:$0xff]  ;;  %v17276_v19 = vcombine.high %v6997_v60, %v7001_v45  ;;  %v17275_v56 = vcombine.low %v6997_v60, %v7001_v45 }
 0x429   :  { %12564 = vmatpush1.bf16.msra.mxu0 %v17171_v5  ;;  %v7129_v26 = vld [vmem:[#allocation7 + $0x1fe0] sm:$0xff] }
 0x42a   :  { %12607 = vmatpush1.bf16.msra.mxu1 %v17299_v44  ;;  %12565 = vmatprep.subr.bf16.mxu0 %v17164_v29  ;;  %v17404_v20 = vcombine.high %v7125_v59, %v7129_v26  ;;  %v6989_v52 = vld [vmem:[#allocation7 + $0x1b80] sm:$0xff]  ;;  %v17403_v1 = vcombine.low %v7125_v59, %v7129_v26 }
 0x42b   :  { %12608 = vmatprep.subr.bf16.mxu1 %v17292_v9  ;;  %v6993_v49 = vld [vmem:[#allocation7 + $0x1ba0] sm:$0xff] }
 0x42c   :  { %v7117_v55 = vld [vmem:[#allocation7 + $0x1f80] sm:$0xff]  ;;  %v17268_v51 = vcombine.high %v6989_v52, %v6993_v49  ;;  %v17267_v21 = vcombine.low %v6989_v52, %v6993_v49 }
 0x42d   :  { %12566 = vmatpush1.bf16.msra.mxu0 %v17163_v25  ;;  %v7121_v8 = vld [vmem:[#allocation7 + $0x1fa0] sm:$0xff] }
 0x42e   :  { %12609 = vmatpush1.bf16.msra.mxu1 %v17291_v3  ;;  %12567 = vmatprep.subr.bf16.mxu0 %v17156_v42  ;;  %v17396_v34 = vcombine.high %v7117_v55, %v7121_v8  ;;  %v6981_v17 = vld [vmem:[#allocation7 + $0x1b40] sm:$0xff]  ;;  %v17395_v23 = vcombine.low %v7117_v55, %v7121_v8  ;;  %v5799_v8 = vadd.f32 %v18722_v47, %v18711_v54 }
 0x42f   :  { %12610 = vmatprep.subr.bf16.mxu1 %v17284_v58  ;;  %v6985_v43 = vld [vmem:[#allocation7 + $0x1b60] sm:$0xff] }
 0x430   :  { %v7109_v30 = vld [vmem:[#allocation7 + $0x1f40] sm:$0xff]  ;;  %v17260_v53 = vcombine.high %v6981_v17, %v6985_v43  ;;  %v17259_v15 = vcombine.low %v6981_v17, %v6985_v43  ;;  %v5795_v43 = vadd.f32 %v18715_v40, %v18704_v27 }
 0x431   :  { %12568 = vmatpush1.bf16.msra.mxu0 %v17155_v10  ;;  %v7113_v35 = vld [vmem:[#allocation7 + $0x1f60] sm:$0xff] }
 0x432   :  { %12611 = vmatpush1.bf16.msra.mxu1 %v17283_v39  ;;  %12569 = vmatprep.subr.bf16.mxu0 %v17276_v19  ;;  %v17388_v36 = vcombine.high %v7109_v30, %v7113_v35  ;;  %v6973_v5 = vld [vmem:[#allocation7 + $0x1b00] sm:$0xff]  ;;  %v17387_v38 = vcombine.low %v7109_v30, %v7113_v35 }
 0x433   :  { %12612 = vmatprep.subr.bf16.mxu1 %v17404_v20  ;;  %v6977_v44 = vld [vmem:[#allocation7 + $0x1b20] sm:$0xff] }
 0x434   :  { %v7101_v29 = vld [vmem:[#allocation7 + $0x1f00] sm:$0xff]  ;;  %v17252_v14 = vcombine.high %v6973_v5, %v6977_v44  ;;  %v17251_v60 = vcombine.low %v6973_v5, %v6977_v44  ;;  %v5838_v44 = vadd.f32 %v18718_v11, %v5795_v43 }
 0x435   :  { %12570 = vmatpush2.bf16.msra.mxu0 %v17275_v56  ;;  %v7105_v9 = vld [vmem:[#allocation7 + $0x1f20] sm:$0xff] }
 0x436   :  { %12613 = vmatpush2.bf16.msra.mxu1 %v17403_v1  ;;  %12571 = vmatprep.subr.bf16.mxu0 %v17268_v51  ;;  %v17380_v33 = vcombine.high %v7101_v29, %v7105_v9  ;;  %v6965_v25 = vld [vmem:[#allocation7 + $0x1ac0] sm:$0xff]  ;;  %v17379_v45 = vcombine.low %v7101_v29, %v7105_v9  ;;  %v19090_v29 = vld [vmem:[#allocation21_spill] sm:$0xff] }
 0x437   :  { %12614 = vmatprep.subr.bf16.mxu1 %v17396_v34  ;;  %v6969_v3 = vld [vmem:[#allocation7 + $0x1ae0] sm:$0xff]  ;;  %v6008_v9 = vrot.slane %v18676_v57, %v19090_v29 }
 0x438   :  { %v7093_v42 = vld [vmem:[#allocation7 + $0x1ec0] sm:$0xff]  ;;  %v17244_v59 = vcombine.high %v6965_v25, %v6969_v3  ;;  %v17243_v52 = vcombine.low %v6965_v25, %v6969_v3  ;;  %v6294_v25 = vld [vmem:[#allocation7 + $0x5c8] sm:$0xff] }
 0x439   :  { %12572 = vmatpush2.bf16.msra.mxu0 %v17267_v21  ;;  %v7097_v58 = vld [vmem:[#allocation7 + $0x1ee0] sm:$0xff]  ;;  %v6298_v3 = vld [vmem:[#allocation7 + $0x5e8] sm:$0xff] }
 0x43a   :  { %12615 = vmatpush2.bf16.msra.mxu1 %v17395_v23  ;;  %12573 = vmatprep.subr.bf16.mxu0 %v17260_v53  ;;  %v17372_v26 = vcombine.high %v7093_v42, %v7097_v58  ;;  %v6957_v10 = vld [vmem:[#allocation7 + $0x1a80] sm:$0xff]  ;;  %v17371_v49 = vcombine.low %v7093_v42, %v7097_v58  ;;  %v5842_v23 = vadd.f32 %v18726_v0, %v5799_v8 }
 0x43b   :  { %12616 = vmatprep.subr.bf16.mxu1 %v17388_v36  ;;  %v6961_v39 = vld [vmem:[#allocation7 + $0x1aa0] sm:$0xff]  ;;  %v6043_v42 = vadd.f32 %v6008_v9, %v5838_v44  ;;  %v16573_v8 = vcombine.low %v6294_v25, %v6298_v3 }
 0x43c   :  { %v7085_v19 = vld [vmem:[#allocation7 + $0x1e80] sm:$0xff]  ;;  %v17236_v55 = vcombine.high %v6957_v10, %v6961_v39  ;;  %v17235_v30 = vcombine.low %v6957_v10, %v6961_v39  ;;  %v6162_v10 = vld [vmem:[#allocation7 + $0x1a8] sm:$0xff] }
 0x43d   :  { %12574 = vmatpush2.bf16.msra.mxu0 %v17259_v15  ;;  %v7089_v20 = vld [vmem:[#allocation7 + $0x1ea0] sm:$0xff]  ;;  %v6075_v39 = vmax.f32 %v6043_v42, 0.0 }
 0x43e   :  { %12617 = vmatpush2.bf16.msra.mxu1 %v17387_v38  ;;  %12575 = vmatprep.subr.bf16.mxu0 %v17252_v14  ;;  %v17364_v56 = vcombine.high %v7085_v19, %v7089_v20  ;;  %v6949_v1 = vld [vmem:[#allocation7 + $0x1a40] sm:$0xff]  ;;  %v17363_v35 = vcombine.low %v7085_v19, %v7089_v20  ;;  %v6059_v38 = vadd.f32 %v6008_v9, %v5842_v23  ;;  %v6166_v14 = vld [vmem:[#allocation7 + $0x1c8] sm:$0xff] }
 0x43f   :  { %12618 = vmatprep.subr.bf16.mxu1 %v17380_v33  ;;  %v6953_v51 = vld [vmem:[#allocation7 + $0x1a60] sm:$0xff]  ;;  %v6170_v33 = vld [vmem:[#allocation7 + $0x1e8] sm:$0xff] }
 0x440   :  { %v7077_v34 = vld [vmem:[#allocation7 + $0x1e40] sm:$0xff]  ;;  %v17228_v21 = vcombine.high %v6949_v1, %v6953_v51  ;;  %v17227_v27 = vcombine.low %v6949_v1, %v6953_v51  ;;  %v19091_v19 = vld [vmem:[#allocation17_spill] sm:$0xff] }
 0x441   :  { %12576 = vmatpush2.bf16.msra.mxu0 %v17251_v60  ;;  %v7081_v17 = vld [vmem:[#allocation7 + $0x1e60] sm:$0xff]  ;;  %v16446_v60 = vcombine.high %v6166_v14, %v6170_v33  ;;  %v6150_v51 = vld [vmem:[#allocation7 + $0x148] sm:$0xff] }
 0x442   :  { %12619 = vmatpush2.bf16.msra.mxu1 %v17379_v45  ;;  %12577 = vmatprep.subr.bf16.mxu0 %v17244_v59  ;;  %v17356_v53 = vcombine.high %v7077_v34, %v7081_v17  ;;  %v6941_v54 = vld [vmem:[#allocation7 + $0x1a00] sm:$0xff]  ;;  %v17355_v40 = vcombine.low %v7077_v34, %v7081_v17  ;;  %v6091_v45 = vmax.f32 %v6059_v38, 0.0  ;;  %v16574_v59 = vcombine.high %v6294_v25, %v6298_v3  ;;  %v6154_v34 = vld [vmem:[#allocation7 + $0x168] sm:$0xff] }
 0x443   :  { %12620 = vmatprep.subr.bf16.mxu1 %v17372_v26  ;;  %v6945_v47 = vld [vmem:[#allocation7 + $0x1a20] sm:$0xff]  ;;  %v6158_v26 = vld [vmem:[#allocation7 + $0x188] sm:$0xff] }
 0x444   :  { %v7069_v36 = vld [vmem:[#allocation7 + $0x1e00] sm:$0xff]  ;;  %v17220_v15 = vcombine.high %v6941_v54, %v6945_v47  ;;  %v17219_v58 = vcombine.low %v6941_v54, %v6945_v47  ;;  %v16438_v1 = vcombine.high %v6158_v26, %v6162_v10  ;;  %v6270_v38 = vld [vmem:[#allocation7 + $0x508] sm:$0xff] }
 0x445   :  { %12578 = vmatpush2.bf16.msra.mxu0 %v17243_v52  ;;  %v7073_v5 = vld [vmem:[#allocation7 + $0x1e20] sm:$0xff]  ;;  %v16445_v52 = vcombine.low %v6166_v14, %v6170_v33  ;;  %v16429_v33 = vcombine.low %v6150_v51, %v6154_v34 }
 0x446   :  { %12621 = vmatpush2.bf16.msra.mxu1 %v17371_v49  ;;  %12579 = vmatprep.subr.bf16.mxu0 %v17236_v55  ;;  %v17348_v0 = vcombine.high %v7069_v36, %v7073_v5  ;;  %v17347_v11 = vcombine.low %v7069_v36, %v7073_v5  ;;  %v7133_v57 = vld [vmem:[#allocation8] sm:$0xff]  ;;  %v6286_v49 = vld [vmem:[#allocation7 + $0x588] sm:$0xff]  ;;  %v16430_v36 = vcombine.high %v6150_v51, %v6154_v34 }
 0x447   :  { %12622 = vmatprep.subr.bf16.mxu1 %v17364_v56  ;;  %v7138_v20 = vrot.slane %v7133_v57, %v19091_v19  ;;  %v6290_v55 = vld [vmem:[#allocation7 + $0x5a8] sm:$0xff]  ;;  %v18740_v56 = vpack.c.bf16 %v6091_v45, %v6075_v39 }
 0x448   :  { %v16566_v43 = vcombine.high %v6286_v49, %v6290_v55  ;;  %v16565_v47 = vcombine.low %v6286_v49, %v6290_v55  ;;  %v6134_v57 = vld [vmem:[#allocation7 + $0xc8] sm:$0xff] }
 0x449   :  { %12580 = vmatpush2.bf16.msra.mxu0 %v17235_v30  ;;  %v6278_v30 = vld [vmem:[#allocation7 + $0x548] sm:$0xff] }
 0x44a   :  { %12623 = vmatpush2.bf16.msra.mxu1 %v17363_v35  ;;  %12581 = vmatprep.subr.bf16.mxu0 %v17228_v21  ;;  %v6282_v35 = vld [vmem:[#allocation7 + $0x568] sm:$0xff] }
 0x44b   :  { %12624 = vmatprep.subr.bf16.mxu1 %v17356_v53  ;;  %v16437_v53 = vcombine.low %v6158_v26, %v6162_v10  ;;  %v16558_v9 = vcombine.high %v6278_v30, %v6282_v35  ;;  %v16557_v3 = vcombine.low %v6278_v30, %v6282_v35  ;;  %v6262_v45 = vld [vmem:[#allocation7 + $0x4c8] sm:$0xff] }
 0x44c   :  { %v6130_v49 = vld [vmem:[#allocation7 + $0xa8] sm:$0xff] }
 0x44d   :  { %12582 = vmatpush2.bf16.msra.mxu0 %v17227_v27  ;;  %v6142_v27 = vld [vmem:[#allocation7 + $0x108] sm:$0xff] }
 0x44e   :  { %12625 = vmatpush2.bf16.msra.mxu1 %v17355_v40  ;;  %12583 = vmatprep.subr.bf16.mxu0 %v17220_v15  ;;  %v6146_v40 = vld [vmem:[#allocation7 + $0x128] sm:$0xff] }
 0x44f   :  { %12626 = vmatprep.subr.bf16.mxu1 %v17348_v0  ;;  %v6274_v0 = vld [vmem:[#allocation7 + $0x528] sm:$0xff]  ;;  %v16422_v42 = vcombine.high %v6142_v27, %v6146_v40  ;;  %v16421_v26 = vcombine.low %v6142_v27, %v6146_v40 }
 0x450   :  { %v16549_v10 = vcombine.low %v6270_v38, %v6274_v0  ;;  %v6254_v55 = vld [vmem:[#allocation7 + $0x488] sm:$0xff] }
 0x451   :  { %12584 = vmatpush2.bf16.msra.mxu0 %v17219_v58  ;;  %v6122_v30 = vld [vmem:[#allocation7 + $0x68] sm:$0xff] }
 0x452   :  { %12627 = vmatpush2.bf16.msra.mxu1 %v17347_v11  ;;  %12639 = vmatprep.subr.bf16.mxu0 %v16446_v60  ;;  %v16550_v11 = vcombine.high %v6270_v38, %v6274_v0  ;;  %v6138_v60 = vld [vmem:[#allocation7 + $0xe8] sm:$0xff] }
 0x453   :  { %12682 = vmatprep.subr.bf16.mxu1 %v16574_v59  ;;  %v6266_v59 = vld [vmem:[#allocation7 + $0x4e8] sm:$0xff]  ;;  %v16414_v39 = vcombine.high %v6134_v57, %v6138_v60 }
 0x454   :  { %v12329_v17 = vpop.f32.mrf.mxu0  ;;  %12586 = vmatmul.mubr.bf16.vlgmr.msra.gmra.mxu0 %v18701_v13  ;;  %v16541_v51 = vcombine.low %v6262_v45, %v6266_v59  ;;  %v6246_v35 = vld [vmem:[#allocation7 + $0x448] sm:$0xff] }
 0x455   :  { %v12330_v21 = vadd.f32 %v12329_v17, %v7138_v20  ;;  %v12372_v23 = vpop.f32.mrf.mxu1  ;;  %12629 = vmatmul.mubr.bf16.vlgmr.msra.gmra.mxu1 %v18740_v56  ;;  %12640 = vmatpush1.bf16.msra.mxu0 %v16445_v52  ;;  %v6126_v52 = vld [vmem:[#allocation7 + $0x88] sm:$0xff] }
 0x456   :  { %12671 = vmatprep.mubr.bf16.mxu0 %v18606_v2  ;;  %12683 = vmatpush1.bf16.msra.mxu1 %v16573_v8  ;;  %v18745_v54 = vpop.f32.mrf.mxu0  ;;  %v6258_v8 = vld [vmem:[#allocation7 + $0x4a8] sm:$0xff]  ;;  %v16406_v34 = vcombine.high %v6126_v52, %v6130_v49 }
 0x457   :  { %v18747_v5 = vadd.f32 %v12372_v23, %v12330_v21  ;;  %12714 = vmatprep.mubr.bf16.mxu1 %v18611_v48  ;;  %v18750_v44 = vpop.f32.mrf.mxu1  ;;  %12641 = vmatprep.subr.bf16.mxu0 %v16438_v1  ;;  %v16413_v1 = vcombine.low %v6134_v57, %v6138_v60  ;;  %v16534_v17 = vcombine.high %v6254_v55, %v6258_v8  ;;  %v6250_v21 = vld [vmem:[#allocation7 + $0x468] sm:$0xff] }
 0x458   :  { %v12333_v15 = vpop.f32.mrf.mxu0  ;;  %12684 = vmatprep.subr.bf16.mxu1 %v16566_v43  ;;  %v6118_v43 = vld [vmem:[#allocation7 + $0x48] sm:$0xff]  ;;  %v16405_v23 = vcombine.low %v6126_v52, %v6130_v49  ;;  %v16525_v0 = vcombine.low %v6246_v35, %v6250_v21 }
 0x459   :  { %v12334_v14 = vadd.f32 %v12333_v15, %v7138_v20  ;;  %12642 = vmatpush1.bf16.msra.mxu0 %v16437_v53  ;;  %v12376_v25 = vpop.f32.mrf.mxu1  ;;  %v16542_v20 = vcombine.high %v6262_v45, %v6266_v59  ;;  %v16533_v53 = vcombine.low %v6254_v55, %v6258_v8  ;;  %v6114_v27 = vld [vmem:[#allocation7 + $0x28] sm:$0xff]  ;;  %v16397_v38 = vcombine.low %v6118_v43, %v6122_v30 }
 0x45a   :  { %12685 = vmatpush1.bf16.msra.mxu1 %v16565_v47  ;;  %12643 = vmatprep.subr.bf16.mxu0 %v16430_v36  ;;  %v16398_v47 = vcombine.high %v6118_v43, %v6122_v30  ;;  %v16526_v36 = vcombine.high %v6246_v35, %v6250_v21  ;;  %v6238_v40 = vld [vmem:[#allocation7 + $0x408] sm:$0xff] }
 0x45b   :  { %v18752_v58 = vadd.f32 %v12376_v25, %v12334_v14  ;;  %12686 = vmatprep.subr.bf16.mxu1 %v16558_v9  ;;  %v6110_v9 = vld [vmem:[#allocation7 + $0x8] sm:$0xff] }
 0x45c   :  { %v6242_v15 = vld [vmem:[#allocation7 + $0x428] sm:$0xff]  ;;  %v16390_v14 = vcombine.high %v6110_v9, %v6114_v27  ;;  %v16389_v57 = vcombine.low %v6110_v9, %v6114_v27 }
 0x45d   :  { %12644 = vmatpush1.bf16.msra.mxu0 %v16429_v33  ;;  %v16518_v33 = vcombine.high %v6238_v40, %v6242_v15  ;;  %v6230_v25 = vld [vmem:[#allocation7 + $0x3c8] sm:$0xff]  ;;  %v16517_v60 = vcombine.low %v6238_v40, %v6242_v15 }
 0x45e   :  { %12687 = vmatpush1.bf16.msra.mxu1 %v16557_v3  ;;  %12645 = vmatprep.subr.bf16.mxu0 %v16422_v42  ;;  %v6234_v3 = vld [vmem:[#allocation7 + $0x3e8] sm:$0xff] }
 0x45f   :  { %12688 = vmatprep.subr.bf16.mxu1 %v16550_v11  ;;  %v6358_v42 = vld [vmem:[#allocation7 + $0x7c8] sm:$0xff]  ;;  %v16510_v45 = vcombine.high %v6230_v25, %v6234_v3  ;;  %v16509_v52 = vcombine.low %v6230_v25, %v6234_v3 }
 0x460   :  { %v6362_v11 = vld [vmem:[#allocation7 + $0x7e8] sm:$0xff] }
 0x461   :  { %12646 = vmatpush1.bf16.msra.mxu0 %v16421_v26  ;;  %v16638_v59 = vcombine.high %v6358_v42, %v6362_v11  ;;  %v6222_v26 = vld [vmem:[#allocation7 + $0x388] sm:$0xff]  ;;  %v16637_v49 = vcombine.low %v6358_v42, %v6362_v11 }
 0x462   :  { %12689 = vmatpush1.bf16.msra.mxu1 %v16549_v10  ;;  %12647 = vmatprep.subr.bf16.mxu0 %v16414_v39  ;;  %v6226_v10 = vld [vmem:[#allocation7 + $0x3a8] sm:$0xff] }
 0x463   :  { %12690 = vmatprep.subr.bf16.mxu1 %v16542_v20  ;;  %v6350_v39 = vld [vmem:[#allocation7 + $0x788] sm:$0xff]  ;;  %v16502_v55 = vcombine.high %v6222_v26, %v6226_v10  ;;  %v16501_v43 = vcombine.low %v6222_v26, %v6226_v10 }
 0x464   :  { %v6354_v20 = vld [vmem:[#allocation7 + $0x7a8] sm:$0xff] }
 0x465   :  { %12648 = vmatpush1.bf16.msra.mxu0 %v16413_v1  ;;  %v16630_v8 = vcombine.high %v6350_v39, %v6354_v20  ;;  %v6214_v1 = vld [vmem:[#allocation7 + $0x348] sm:$0xff]  ;;  %v16629_v30 = vcombine.low %v6350_v39, %v6354_v20 }
 0x466   :  { %12691 = vmatpush1.bf16.msra.mxu1 %v16541_v51  ;;  %12649 = vmatprep.subr.bf16.mxu0 %v16406_v34  ;;  %v6218_v51 = vld [vmem:[#allocation7 + $0x368] sm:$0xff] }
 0x467   :  { %12692 = vmatprep.subr.bf16.mxu1 %v16534_v17  ;;  %v6342_v34 = vld [vmem:[#allocation7 + $0x748] sm:$0xff]  ;;  %v16494_v35 = vcombine.high %v6214_v1, %v6218_v51  ;;  %v16493_v9 = vcombine.low %v6214_v1, %v6218_v51 }
 0x468   :  { %v6346_v17 = vld [vmem:[#allocation7 + $0x768] sm:$0xff] }
 0x469   :  { %12650 = vmatpush1.bf16.msra.mxu0 %v16405_v23  ;;  %v16622_v21 = vcombine.high %v6342_v34, %v6346_v17  ;;  %v6206_v23 = vld [vmem:[#allocation7 + $0x308] sm:$0xff]  ;;  %v16621_v27 = vcombine.low %v6342_v34, %v6346_v17 }
 0x46a   :  { %12693 = vmatpush1.bf16.msra.mxu1 %v16533_v53  ;;  %12651 = vmatprep.subr.bf16.mxu0 %v16398_v47  ;;  %v6210_v53 = vld [vmem:[#allocation7 + $0x328] sm:$0xff] }
 0x46b   :  { %12694 = vmatprep.subr.bf16.mxu1 %v16526_v36  ;;  %v6334_v47 = vld [vmem:[#allocation7 + $0x708] sm:$0xff]  ;;  %v16486_v40 = vcombine.high %v6206_v23, %v6210_v53  ;;  %v16485_v25 = vcombine.low %v6206_v23, %v6210_v53 }
 0x46c   :  { %v6338_v36 = vld [vmem:[#allocation7 + $0x728] sm:$0xff] }
 0x46d   :  { %12652 = vmatpush1.bf16.msra.mxu0 %v16397_v38  ;;  %v16614_v15 = vcombine.high %v6334_v47, %v6338_v36  ;;  %v6198_v38 = vld [vmem:[#allocation7 + $0x2c8] sm:$0xff]  ;;  %v16613_v3 = vcombine.low %v6334_v47, %v6338_v36 }
 0x46e   :  { %12695 = vmatpush1.bf16.msra.mxu1 %v16525_v0  ;;  %12653 = vmatprep.subr.bf16.mxu0 %v16390_v14  ;;  %v6202_v0 = vld [vmem:[#allocation7 + $0x2e8] sm:$0xff] }
 0x46f   :  { %12696 = vmatprep.subr.bf16.mxu1 %v16518_v33  ;;  %v6326_v14 = vld [vmem:[#allocation7 + $0x6c8] sm:$0xff]  ;;  %v16478_v42 = vcombine.high %v6198_v38, %v6202_v0  ;;  %v16477_v26 = vcombine.low %v6198_v38, %v6202_v0 }
 0x470   :  { %v6330_v33 = vld [vmem:[#allocation7 + $0x6e8] sm:$0xff] }
 0x471   :  { %12654 = vmatpush1.bf16.msra.mxu0 %v16389_v57  ;;  %v16606_v11 = vcombine.high %v6326_v14, %v6330_v33  ;;  %v6190_v57 = vld [vmem:[#allocation7 + $0x288] sm:$0xff]  ;;  %v16605_v10 = vcombine.low %v6326_v14, %v6330_v33 }
 0x472   :  { %12697 = vmatpush1.bf16.msra.mxu1 %v16517_v60  ;;  %12655 = vmatprep.subr.bf16.mxu0 %v16510_v45  ;;  %v6194_v60 = vld [vmem:[#allocation7 + $0x2a8] sm:$0xff] }
 0x473   :  { %12698 = vmatprep.subr.bf16.mxu1 %v16638_v59  ;;  %v6318_v45 = vld [vmem:[#allocation7 + $0x688] sm:$0xff]  ;;  %v16470_v39 = vcombine.high %v6190_v57, %v6194_v60  ;;  %v16469_v1 = vcombine.low %v6190_v57, %v6194_v60  ;;  %v18754_v60 = vpop.f32.mrf.mxu0 }
 0x474   :  { %v6322_v59 = vld [vmem:[#allocation7 + $0x6a8] sm:$0xff] }
 0x475   :  { %12656 = vmatpush2.bf16.msra.mxu0 %v16509_v52  ;;  %v16598_v20 = vcombine.high %v6318_v45, %v6322_v59  ;;  %v6182_v52 = vld [vmem:[#allocation7 + $0x248] sm:$0xff]  ;;  %v16597_v51 = vcombine.low %v6318_v45, %v6322_v59  ;;  %v18756_v59 = vpop.f32.mrf.mxu1 }
 0x476   :  { %12699 = vmatpush2.bf16.msra.mxu1 %v16637_v49  ;;  %12657 = vmatprep.subr.bf16.mxu0 %v16502_v55  ;;  %v6186_v49 = vld [vmem:[#allocation7 + $0x268] sm:$0xff] }
 0x477   :  { %12700 = vmatprep.subr.bf16.mxu1 %v16630_v8  ;;  %v6310_v55 = vld [vmem:[#allocation7 + $0x648] sm:$0xff]  ;;  %v16462_v34 = vcombine.high %v6182_v52, %v6186_v49  ;;  %v16461_v23 = vcombine.low %v6182_v52, %v6186_v49 }
 0x478   :  { %v6314_v8 = vld [vmem:[#allocation7 + $0x668] sm:$0xff] }
 0x479   :  { %12658 = vmatpush2.bf16.msra.mxu0 %v16501_v43  ;;  %v16590_v17 = vcombine.high %v6310_v55, %v6314_v8  ;;  %v6174_v43 = vld [vmem:[#allocation7 + $0x208] sm:$0xff]  ;;  %v16589_v53 = vcombine.low %v6310_v55, %v6314_v8 }
 0x47a   :  { %12701 = vmatpush2.bf16.msra.mxu1 %v16629_v30  ;;  %12659 = vmatprep.subr.bf16.mxu0 %v16494_v35  ;;  %v6178_v30 = vld [vmem:[#allocation7 + $0x228] sm:$0xff] }
 0x47b   :  { %12702 = vmatprep.subr.bf16.mxu1 %v16622_v21  ;;  %v6302_v35 = vld [vmem:[#allocation7 + $0x608] sm:$0xff]  ;;  %v16454_v47 = vcombine.high %v6174_v43, %v6178_v30  ;;  %v16453_v38 = vcombine.low %v6174_v43, %v6178_v30 }
 0x47c   :  { %v6306_v21 = vld [vmem:[#allocation7 + $0x628] sm:$0xff] }
 0x47d   :  { %12660 = vmatpush2.bf16.msra.mxu0 %v16493_v9  ;;  %v16582_v36 = vcombine.high %v6302_v35, %v6306_v21  ;;  %v6422_v9 = vld [vmem:[#allocation7 + $0x9c8] sm:$0xff]  ;;  %v16581_v0 = vcombine.low %v6302_v35, %v6306_v21 }
 0x47e   :  { %12703 = vmatpush2.bf16.msra.mxu1 %v16621_v27  ;;  %12661 = vmatprep.subr.bf16.mxu0 %v16486_v40  ;;  %v6426_v27 = vld [vmem:[#allocation7 + $0x9e8] sm:$0xff] }
 0x47f   :  { %12704 = vmatprep.subr.bf16.mxu1 %v16614_v15  ;;  %v6550_v40 = vld [vmem:[#allocation7 + $0xdc8] sm:$0xff]  ;;  %v16702_v14 = vcombine.high %v6422_v9, %v6426_v27 }
 0x480   :  { %v6554_v15 = vld [vmem:[#allocation7 + $0xde8] sm:$0xff] }
 0x481   :  { %12662 = vmatpush2.bf16.msra.mxu0 %v16485_v25  ;;  %v16830_v33 = vcombine.high %v6550_v40, %v6554_v15  ;;  %v6414_v25 = vld [vmem:[#allocation7 + $0x988] sm:$0xff]  ;;  %v16829_v45 = vcombine.low %v6550_v40, %v6554_v15 }
 0x482   :  { %12705 = vmatpush2.bf16.msra.mxu1 %v16613_v3  ;;  %12663 = vmatprep.subr.bf16.mxu0 %v16478_v42  ;;  %v6418_v3 = vld [vmem:[#allocation7 + $0x9a8] sm:$0xff]  ;;  %v16701_v42 = vcombine.low %v6422_v9, %v6426_v27 }
 0x483   :  { %12706 = vmatprep.subr.bf16.mxu1 %v16606_v11  ;;  %v6542_v11 = vld [vmem:[#allocation7 + $0xd88] sm:$0xff] }
 0x484   :  { %v6546_v57 = vld [vmem:[#allocation7 + $0xda8] sm:$0xff] }
 0x485   :  { %12664 = vmatpush2.bf16.msra.mxu0 %v16477_v26  ;;  %v16694_v26 = vcombine.high %v6414_v25, %v6418_v3  ;;  %v16822_v52 = vcombine.high %v6542_v11, %v6546_v57  ;;  %v6534_v49 = vld [vmem:[#allocation7 + $0xd48] sm:$0xff] }
 0x486   :  { %12707 = vmatpush2.bf16.msra.mxu1 %v16605_v10  ;;  %12665 = vmatprep.subr.bf16.mxu0 %v16470_v39  ;;  %v6406_v10 = vld [vmem:[#allocation7 + $0x948] sm:$0xff] }
 0x487   :  { %12708 = vmatprep.subr.bf16.mxu1 %v16598_v20  ;;  %v6410_v39 = vld [vmem:[#allocation7 + $0x968] sm:$0xff] }
 0x488   :  { %v6538_v55 = vld [vmem:[#allocation7 + $0xd68] sm:$0xff]  ;;  %v16686_v43 = vcombine.high %v6406_v10, %v6410_v39  ;;  %v16685_v27 = vcombine.low %v6406_v10, %v6410_v39 }
 0x489   :  { %12666 = vmatpush2.bf16.msra.mxu0 %v16469_v1  ;;  %v6398_v21 = vld [vmem:[#allocation7 + $0x908] sm:$0xff]  ;;  %v16813_v15 = vcombine.low %v6534_v49, %v6538_v55 }
 0x48a   :  { %12709 = vmatpush2.bf16.msra.mxu1 %v16597_v51  ;;  %12667 = vmatprep.subr.bf16.mxu0 %v16462_v34  ;;  %v16693_v51 = vcombine.low %v6414_v25, %v6418_v3  ;;  %v6394_v25 = vld [vmem:[#allocation7 + $0x8e8] sm:$0xff] }
 0x48b   :  { %12710 = vmatprep.subr.bf16.mxu1 %v16590_v17  ;;  %v16821_v17 = vcombine.low %v6542_v11, %v6546_v57  ;;  %v6518_v3 = vld [vmem:[#allocation7 + $0xcc8] sm:$0xff] }
 0x48c   :  { %v6386_v10 = vld [vmem:[#allocation7 + $0x8a8] sm:$0xff] }
 0x48d   :  { %12668 = vmatpush2.bf16.msra.mxu0 %v16461_v23  ;;  %v6402_v23 = vld [vmem:[#allocation7 + $0x928] sm:$0xff] }
 0x48e   :  { %12711 = vmatpush2.bf16.msra.mxu1 %v16589_v53  ;;  %12669 = vmatprep.subr.bf16.mxu0 %v16454_v47  ;;  %v6526_v47 = vld [vmem:[#allocation7 + $0xd08] sm:$0xff]  ;;  %v16677_v11 = vcombine.low %v6398_v21, %v6402_v23 }
 0x48f   :  { %12712 = vmatprep.subr.bf16.mxu1 %v16582_v36  ;;  %v6530_v36 = vld [vmem:[#allocation7 + $0xd28] sm:$0xff] }
 0x490   :  { %v6510_v39 = vld [vmem:[#allocation7 + $0xc88] sm:$0xff] }
 0x491   :  { %12670 = vmatpush2.bf16.msra.mxu0 %v16453_v38  ;;  %v16678_v38 = vcombine.high %v6398_v21, %v6402_v23  ;;  %v7034_v19 = vld [vmem:[#allocation7 + $0x1ce8] sm:$0xff] }
 0x492   :  { %12713 = vmatpush2.bf16.msra.mxu1 %v16581_v0  ;;  %12725 = vmatprep.subr.bf16.mxu0 %v16702_v14  ;;  %v16806_v14 = vcombine.high %v6526_v47, %v6530_v36 }
 0x493   :  { %12768 = vmatprep.subr.bf16.mxu1 %v16830_v33  ;;  %v6390_v33 = vld [vmem:[#allocation7 + $0x8c8] sm:$0xff] }
 0x494   :  { %v12415_v20 = vpop.f32.mrf.mxu0  ;;  %12672 = vmatmul.mubr.bf16.vlgmr.msra.gmra.mxu0 %v18397_v31  ;;  %v16670_v57 = vcombine.high %v6390_v33, %v6394_v25 }
 0x495   :  { %v12416_v8 = vadd.f32 %v12415_v20, %v18747_v5  ;;  %v12458_v1 = vpop.f32.mrf.mxu1  ;;  %12715 = vmatmul.mubr.bf16.vlgmr.msra.gmra.mxu1 %v18435_v16  ;;  %12726 = vmatpush1.bf16.msra.mxu0 %v16701_v42  ;;  %v16814_v5 = vcombine.high %v6534_v49, %v6538_v55  ;;  %v6522_v42 = vld [vmem:[#allocation7 + $0xce8] sm:$0xff] }
 0x496   :  { %12757 = vmatprep.mubr.bf16.mxu0 %v18651_v7  ;;  %12769 = vmatpush1.bf16.msra.mxu1 %v16829_v45  ;;  %v18762_v34 = vpop.f32.mrf.mxu0  ;;  %v16798_v45 = vcombine.high %v6518_v3, %v6522_v42  ;;  %v6514_v20 = vld [vmem:[#allocation7 + $0xca8] sm:$0xff]  ;;  %v16797_v49 = vcombine.low %v6518_v3, %v6522_v42 }
 0x497   :  { %v18764_v30 = vadd.f32 %v12458_v1, %v12416_v8  ;;  %12800 = vmatprep.mubr.bf16.mxu1 %v18654_v12  ;;  %v18767_v35 = vpop.f32.mrf.mxu1  ;;  %12727 = vmatprep.subr.bf16.mxu0 %v16694_v26  ;;  %v6382_v26 = vld [vmem:[#allocation7 + $0x888] sm:$0xff]  ;;  %v16790_v8 = vcombine.high %v6510_v39, %v6514_v20  ;;  %v16789_v21 = vcombine.low %v6510_v39, %v6514_v20 }
 0x498   :  { %v12419_v53 = vpop.f32.mrf.mxu0  ;;  %12770 = vmatprep.subr.bf16.mxu1 %v16822_v52  ;;  %v16669_v52 = vcombine.low %v6390_v33, %v6394_v25  ;;  %v16662_v55 = vcombine.high %v6382_v26, %v6386_v10  ;;  %v6374_v1 = vld [vmem:[#allocation7 + $0x848] sm:$0xff] }
 0x499   :  { %v12420_v9 = vadd.f32 %v12419_v53, %v18752_v58  ;;  %12728 = vmatpush1.bf16.msra.mxu0 %v16693_v51  ;;  %v12462_v40 = vpop.f32.mrf.mxu1  ;;  %v16805_v58 = vcombine.low %v6526_v47, %v6530_v36  ;;  %v6378_v51 = vld [vmem:[#allocation7 + $0x868] sm:$0xff] }
 0x49a   :  { %12771 = vmatpush1.bf16.msra.mxu1 %v16821_v17  ;;  %12729 = vmatprep.subr.bf16.mxu0 %v16686_v43  ;;  %v6502_v17 = vld [vmem:[#allocation7 + $0xc48] sm:$0xff]  ;;  %v16654_v23 = vcombine.high %v6374_v1, %v6378_v51 }
 0x49b   :  { %v18770_v0 = vadd.f32 %v12462_v40, %v12420_v9  ;;  %12772 = vmatprep.subr.bf16.mxu1 %v16814_v5  ;;  %v6506_v43 = vld [vmem:[#allocation7 + $0xc68] sm:$0xff]  ;;  %v16661_v5 = vcombine.low %v6382_v26, %v6386_v10  ;;  %v16653_v40 = vcombine.low %v6374_v1, %v6378_v51 }
 0x49c   :  { %v16782_v53 = vcombine.high %v6502_v17, %v6506_v43  ;;  %v6366_v47 = vld [vmem:[#allocation7 + $0x808] sm:$0xff] }
 0x49d   :  { %12730 = vmatpush1.bf16.msra.mxu0 %v16685_v27  ;;  %v6370_v36 = vld [vmem:[#allocation7 + $0x828] sm:$0xff] }
 0x49e   :  { %12773 = vmatpush1.bf16.msra.mxu1 %v16813_v15  ;;  %12731 = vmatprep.subr.bf16.mxu0 %v16678_v38  ;;  %v6494_v9 = vld [vmem:[#allocation7 + $0xc08] sm:$0xff]  ;;  %v16781_v15 = vcombine.low %v6502_v17, %v6506_v43  ;;  %v16646_v38 = vcombine.high %v6366_v47, %v6370_v36 }
 0x49f   :  { %12774 = vmatprep.subr.bf16.mxu1 %v16806_v14  ;;  %v6498_v27 = vld [vmem:[#allocation7 + $0xc28] sm:$0xff] }
 0x4a0   :  { %v16774_v14 = vcombine.high %v6494_v9, %v6498_v27  ;;  %v6486_v33 = vld [vmem:[#allocation7 + $0xbc8] sm:$0xff] }
 0x4a1   :  { %12732 = vmatpush1.bf16.msra.mxu0 %v16677_v11  ;;  %v6490_v25 = vld [vmem:[#allocation7 + $0xbe8] sm:$0xff]  ;;  %v16645_v11 = vcombine.low %v6366_v47, %v6370_v36 }
 0x4a2   :  { %12775 = vmatpush1.bf16.msra.mxu1 %v16805_v58  ;;  %12733 = vmatprep.subr.bf16.mxu0 %v16670_v57  ;;  %v6614_v3 = vld [vmem:[#allocation7 + $0xfc8] sm:$0xff]  ;;  %v16773_v58 = vcombine.low %v6494_v9, %v6498_v27  ;;  %v16766_v57 = vcombine.high %v6486_v33, %v6490_v25 }
 0x4a3   :  { %12776 = vmatprep.subr.bf16.mxu1 %v16798_v45  ;;  %v6618_v42 = vld [vmem:[#allocation7 + $0xfe8] sm:$0xff] }
 0x4a4   :  { %v16894_v45 = vcombine.high %v6614_v3, %v6618_v42  ;;  %v6478_v26 = vld [vmem:[#allocation7 + $0xb88] sm:$0xff] }
 0x4a5   :  { %12734 = vmatpush1.bf16.msra.mxu0 %v16669_v52  ;;  %v6482_v10 = vld [vmem:[#allocation7 + $0xba8] sm:$0xff]  ;;  %v16765_v52 = vcombine.low %v6486_v33, %v6490_v25 }
 0x4a6   :  { %12777 = vmatpush1.bf16.msra.mxu1 %v16797_v49  ;;  %12735 = vmatprep.subr.bf16.mxu0 %v16662_v55  ;;  %v6606_v39 = vld [vmem:[#allocation7 + $0xf88] sm:$0xff]  ;;  %v16893_v49 = vcombine.low %v6614_v3, %v6618_v42  ;;  %v16758_v55 = vcombine.high %v6478_v26, %v6482_v10 }
 0x4a7   :  { %12778 = vmatprep.subr.bf16.mxu1 %v16790_v8  ;;  %v6610_v20 = vld [vmem:[#allocation7 + $0xfa8] sm:$0xff] }
 0x4a8   :  { %v16886_v8 = vcombine.high %v6606_v39, %v6610_v20  ;;  %v6470_v1 = vld [vmem:[#allocation7 + $0xb48] sm:$0xff] }
 0x4a9   :  { %12736 = vmatpush1.bf16.msra.mxu0 %v16661_v5  ;;  %v6474_v51 = vld [vmem:[#allocation7 + $0xb68] sm:$0xff]  ;;  %v16757_v5 = vcombine.low %v6478_v26, %v6482_v10 }
 0x4aa   :  { %12779 = vmatpush1.bf16.msra.mxu1 %v16789_v21  ;;  %12737 = vmatprep.subr.bf16.mxu0 %v16654_v23  ;;  %v6598_v17 = vld [vmem:[#allocation7 + $0xf48] sm:$0xff]  ;;  %v16885_v21 = vcombine.low %v6606_v39, %v6610_v20  ;;  %v16750_v23 = vcombine.high %v6470_v1, %v6474_v51 }
 0x4ab   :  { %12780 = vmatprep.subr.bf16.mxu1 %v16782_v53  ;;  %v6602_v43 = vld [vmem:[#allocation7 + $0xf68] sm:$0xff] }
 0x4ac   :  { %v16878_v53 = vcombine.high %v6598_v17, %v6602_v43  ;;  %v6462_v47 = vld [vmem:[#allocation7 + $0xb08] sm:$0xff] }
 0x4ad   :  { %12738 = vmatpush1.bf16.msra.mxu0 %v16653_v40  ;;  %v6466_v36 = vld [vmem:[#allocation7 + $0xb28] sm:$0xff]  ;;  %v16749_v40 = vcombine.low %v6470_v1, %v6474_v51 }
 0x4ae   :  { %12781 = vmatpush1.bf16.msra.mxu1 %v16781_v15  ;;  %12739 = vmatprep.subr.bf16.mxu0 %v16646_v38  ;;  %v6590_v9 = vld [vmem:[#allocation7 + $0xf08] sm:$0xff]  ;;  %v16877_v15 = vcombine.low %v6598_v17, %v6602_v43  ;;  %v16742_v38 = vcombine.high %v6462_v47, %v6466_v36 }
 0x4af   :  { %12782 = vmatprep.subr.bf16.mxu1 %v16774_v14  ;;  %v6594_v27 = vld [vmem:[#allocation7 + $0xf28] sm:$0xff] }
 0x4b0   :  { %v16870_v14 = vcombine.high %v6590_v9, %v6594_v27  ;;  %v6454_v33 = vld [vmem:[#allocation7 + $0xac8] sm:$0xff] }
 0x4b1   :  { %12740 = vmatpush1.bf16.msra.mxu0 %v16645_v11  ;;  %v6458_v25 = vld [vmem:[#allocation7 + $0xae8] sm:$0xff]  ;;  %v16741_v11 = vcombine.low %v6462_v47, %v6466_v36 }
 0x4b2   :  { %12783 = vmatpush1.bf16.msra.mxu1 %v16773_v58  ;;  %12741 = vmatprep.subr.bf16.mxu0 %v16766_v57  ;;  %v6582_v3 = vld [vmem:[#allocation7 + $0xec8] sm:$0xff]  ;;  %v16869_v58 = vcombine.low %v6590_v9, %v6594_v27  ;;  %v16734_v57 = vcombine.high %v6454_v33, %v6458_v25 }
 0x4b3   :  { %12784 = vmatprep.subr.bf16.mxu1 %v16894_v45  ;;  %v6586_v42 = vld [vmem:[#allocation7 + $0xee8] sm:$0xff] }
 0x4b4   :  { %v16862_v45 = vcombine.high %v6582_v3, %v6586_v42  ;;  %v6446_v26 = vld [vmem:[#allocation7 + $0xa88] sm:$0xff] }
 0x4b5   :  { %12742 = vmatpush2.bf16.msra.mxu0 %v16765_v52  ;;  %v6450_v10 = vld [vmem:[#allocation7 + $0xaa8] sm:$0xff]  ;;  %v16733_v52 = vcombine.low %v6454_v33, %v6458_v25 }
 0x4b6   :  { %12785 = vmatpush2.bf16.msra.mxu1 %v16893_v49  ;;  %12743 = vmatprep.subr.bf16.mxu0 %v16758_v55  ;;  %v6574_v39 = vld [vmem:[#allocation7 + $0xe88] sm:$0xff]  ;;  %v16861_v49 = vcombine.low %v6582_v3, %v6586_v42  ;;  %v16726_v55 = vcombine.high %v6446_v26, %v6450_v10 }
 0x4b7   :  { %12786 = vmatprep.subr.bf16.mxu1 %v16886_v8  ;;  %v6578_v20 = vld [vmem:[#allocation7 + $0xea8] sm:$0xff] }
 0x4b8   :  { %v16854_v8 = vcombine.high %v6574_v39, %v6578_v20  ;;  %v6438_v1 = vld [vmem:[#allocation7 + $0xa48] sm:$0xff] }
 0x4b9   :  { %12744 = vmatpush2.bf16.msra.mxu0 %v16757_v5  ;;  %v6442_v51 = vld [vmem:[#allocation7 + $0xa68] sm:$0xff]  ;;  %v16725_v5 = vcombine.low %v6446_v26, %v6450_v10 }
 0x4ba   :  { %12787 = vmatpush2.bf16.msra.mxu1 %v16885_v21  ;;  %12745 = vmatprep.subr.bf16.mxu0 %v16750_v23  ;;  %v6566_v17 = vld [vmem:[#allocation7 + $0xe48] sm:$0xff]  ;;  %v16853_v21 = vcombine.low %v6574_v39, %v6578_v20  ;;  %v16718_v23 = vcombine.high %v6438_v1, %v6442_v51 }
 0x4bb   :  { %12788 = vmatprep.subr.bf16.mxu1 %v16878_v53  ;;  %v6570_v43 = vld [vmem:[#allocation7 + $0xe68] sm:$0xff] }
 0x4bc   :  { %v16846_v53 = vcombine.high %v6566_v17, %v6570_v43  ;;  %v6430_v47 = vld [vmem:[#allocation7 + $0xa08] sm:$0xff] }
 0x4bd   :  { %12746 = vmatpush2.bf16.msra.mxu0 %v16749_v40  ;;  %v6434_v36 = vld [vmem:[#allocation7 + $0xa28] sm:$0xff]  ;;  %v16717_v40 = vcombine.low %v6438_v1, %v6442_v51 }
 0x4be   :  { %12789 = vmatpush2.bf16.msra.mxu1 %v16877_v15  ;;  %12747 = vmatprep.subr.bf16.mxu0 %v16742_v38  ;;  %v6558_v9 = vld [vmem:[#allocation7 + $0xe08] sm:$0xff]  ;;  %v16845_v15 = vcombine.low %v6566_v17, %v6570_v43  ;;  %v16710_v38 = vcombine.high %v6430_v47, %v6434_v36 }
 0x4bf   :  { %12790 = vmatprep.subr.bf16.mxu1 %v16870_v14  ;;  %v6562_v27 = vld [vmem:[#allocation7 + $0xe28] sm:$0xff] }
 0x4c0   :  { %v16838_v14 = vcombine.high %v6558_v9, %v6562_v27  ;;  %v6678_v33 = vld [vmem:[#allocation7 + $0x11c8] sm:$0xff] }
 0x4c1   :  { %12748 = vmatpush2.bf16.msra.mxu0 %v16741_v11  ;;  %v6682_v25 = vld [vmem:[#allocation7 + $0x11e8] sm:$0xff]  ;;  %v16709_v11 = vcombine.low %v6430_v47, %v6434_v36 }
 0x4c2   :  { %12791 = vmatpush2.bf16.msra.mxu1 %v16869_v58  ;;  %12749 = vmatprep.subr.bf16.mxu0 %v16734_v57  ;;  %v6806_v3 = vld [vmem:[#allocation7 + $0x15c8] sm:$0xff]  ;;  %v16837_v58 = vcombine.low %v6558_v9, %v6562_v27  ;;  %v16958_v57 = vcombine.high %v6678_v33, %v6682_v25  ;;  %v16957_v39 = vcombine.low %v6678_v33, %v6682_v25 }
 0x4c3   :  { %12792 = vmatprep.subr.bf16.mxu1 %v16862_v45  ;;  %v6810_v42 = vld [vmem:[#allocation7 + $0x15e8] sm:$0xff] }
 0x4c4   :  { %v17086_v45 = vcombine.high %v6806_v3, %v6810_v42  ;;  %v6670_v26 = vld [vmem:[#allocation7 + $0x1188] sm:$0xff] }
 0x4c5   :  { %12750 = vmatpush2.bf16.msra.mxu0 %v16733_v52  ;;  %v6674_v10 = vld [vmem:[#allocation7 + $0x11a8] sm:$0xff] }
 0x4c6   :  { %12793 = vmatpush2.bf16.msra.mxu1 %v16861_v49  ;;  %12751 = vmatprep.subr.bf16.mxu0 %v16726_v55  ;;  %v6798_v20 = vld [vmem:[#allocation7 + $0x1588] sm:$0xff]  ;;  %v18772_v49 = vpop.f32.mrf.mxu0  ;;  %v17085_v55 = vcombine.low %v6806_v3, %v6810_v42  ;;  %v16950_v1 = vcombine.high %v6670_v26, %v6674_v10  ;;  %v16949_v36 = vcombine.low %v6670_v26, %v6674_v10 }
 0x4c7   :  { %12794 = vmatprep.subr.bf16.mxu1 %v16854_v8  ;;  %v6802_v52 = vld [vmem:[#allocation7 + $0x15a8] sm:$0xff]  ;;  %v18774_v8 = vpop.f32.mrf.mxu1 }
 0x4c8   :  { %v6662_v51 = vld [vmem:[#allocation7 + $0x1148] sm:$0xff]  ;;  %v17077_v27 = vcombine.low %v6798_v20, %v6802_v52 }
 0x4c9   :  { %12752 = vmatpush2.bf16.msra.mxu0 %v16725_v5  ;;  %v6666_v17 = vld [vmem:[#allocation7 + $0x1168] sm:$0xff]  ;;  %v17078_v5 = vcombine.high %v6798_v20, %v6802_v52 }
 0x4ca   :  { %12795 = vmatpush2.bf16.msra.mxu1 %v16853_v21  ;;  %12753 = vmatprep.subr.bf16.mxu0 %v16718_v23  ;;  %v6790_v21 = vld [vmem:[#allocation7 + $0x1548] sm:$0xff] }
 0x4cb   :  { %12796 = vmatprep.subr.bf16.mxu1 %v16846_v53  ;;  %v6794_v23 = vld [vmem:[#allocation7 + $0x1568] sm:$0xff] }
 0x4cc   :  { %v6658_v33 = vld [vmem:[#allocation7 + $0x1128] sm:$0xff] }
 0x4cd   :  { %12754 = vmatpush2.bf16.msra.mxu0 %v16717_v40  ;;  %v16942_v40 = vcombine.high %v6662_v51, %v6666_v17  ;;  %v6782_v3 = vld [vmem:[#allocation7 + $0x1508] sm:$0xff] }
 0x4ce   :  { %12797 = vmatpush2.bf16.msra.mxu1 %v16845_v15  ;;  %12755 = vmatprep.subr.bf16.mxu0 %v16710_v38  ;;  %v6786_v42 = vld [vmem:[#allocation7 + $0x1528] sm:$0xff] }
 0x4cf   :  { %12798 = vmatprep.subr.bf16.mxu1 %v16838_v14  ;;  %v6654_v14 = vld [vmem:[#allocation7 + $0x1108] sm:$0xff] }
 0x4d0   :  { %v16934_v26 = vcombine.high %v6654_v14, %v6658_v33  ;;  %v6646_v20 = vld [vmem:[#allocation7 + $0x10c8] sm:$0xff] }
 0x4d1   :  { %12756 = vmatpush2.bf16.msra.mxu0 %v16709_v11  ;;  %v6650_v52 = vld [vmem:[#allocation7 + $0x10e8] sm:$0xff] }
 0x4d2   :  { %12799 = vmatpush2.bf16.msra.mxu1 %v16837_v58  ;;  %12811 = vmatprep.subr.bf16.mxu0 %v16958_v57  ;;  %v16941_v58 = vcombine.low %v6662_v51, %v6666_v17  ;;  %v6638_v17 = vld [vmem:[#allocation7 + $0x1088] sm:$0xff] }
 0x4d3   :  { %12854 = vmatprep.subr.bf16.mxu1 %v17086_v45  ;;  %v17069_v45 = vcombine.low %v6790_v21, %v6794_v23 }
 0x4d4   :  { %v12501_v43 = vpop.f32.mrf.mxu0  ;;  %12758 = vmatmul.mubr.bf16.vlgmr.msra.gmra.mxu0 %v19088_v22 }
 0x4d5   :  { %v12502_v53 = vadd.f32 %v12501_v43, %v18764_v30  ;;  %v12544_v47 = vpop.f32.mrf.mxu1  ;;  %12801 = vmatmul.mubr.bf16.vlgmr.msra.gmra.mxu1 %v19089_v46  ;;  %12812 = vmatpush1.bf16.msra.mxu0 %v16957_v39  ;;  %v17070_v30 = vcombine.high %v6790_v21, %v6794_v23  ;;  %v17062_v39 = vcombine.high %v6782_v3, %v6786_v42  ;;  %v6766_v21 = vld [vmem:[#allocation7 + $0x1488] sm:$0xff] }
 0x4d6   :  { %12843 = vmatprep.mubr.bf16.mxu0 %v18687_v24  ;;  %12855 = vmatpush1.bf16.msra.mxu1 %v17085_v55  ;;  %v18780_v9 = vpop.f32.mrf.mxu0  ;;  %v6774_v55 = vld [vmem:[#allocation7 + $0x14c8] sm:$0xff]  ;;  %v16933_v43 = vcombine.low %v6654_v14, %v6658_v33 }
 0x4d7   :  { %19092 = vst [vmem:[#allocation19_spill] sm:$0xff] %v18780_v9  ;;  %v18782_v15 = vadd.f32 %v12544_v47, %v12502_v53  ;;  %12886 = vmatprep.mubr.bf16.mxu1 %v18692_v63  ;;  %v18785_v38 = vpop.f32.mrf.mxu1  ;;  %12813 = vmatprep.subr.bf16.mxu0 %v16950_v1  ;;  %v6778_v1 = vld [vmem:[#allocation7 + $0x14e8] sm:$0xff]  ;;  %v16925_v47 = vcombine.low %v6646_v20, %v6650_v52  ;;  %v7035_v9 = vld [vmem:[#allocation7 + $0x1cf0] sm:$0xff] }
 0x4d8   :  { %19093 = vst [vmem:[#allocation20_spill] sm:$0xff] %v18785_v38  ;;  %v12505_v25 = vpop.f32.mrf.mxu0  ;;  %12856 = vmatprep.subr.bf16.mxu1 %v17078_v5  ;;  %v16926_v5 = vcombine.high %v6646_v20, %v6650_v52  ;;  %v17054_v51 = vcombine.high %v6774_v55, %v6778_v1  ;;  %v6642_v53 = vld [vmem:[#allocation7 + $0x10a8] sm:$0xff]  ;;  %v6651_v38 = vld [vmem:[#allocation7 + $0x10f0] sm:$0xff] }
 0x4d9   :  { %v12506_v11 = vadd.f32 %v12505_v25, %v18770_v0  ;;  %12814 = vmatpush1.bf16.msra.mxu0 %v16949_v36  ;;  %v12548_v57 = vpop.f32.mrf.mxu1  ;;  %v17061_v0 = vcombine.low %v6782_v3, %v6786_v42  ;;  %v6770_v23 = vld [vmem:[#allocation7 + $0x14a8] sm:$0xff]  ;;  %v17053_v36 = vcombine.low %v6774_v55, %v6778_v1  ;;  %v16917_v3 = vcombine.low %v6638_v17, %v6642_v53 }
 0x4da   :  { %12857 = vmatpush1.bf16.msra.mxu1 %v17077_v27  ;;  %12815 = vmatprep.subr.bf16.mxu0 %v16942_v40  ;;  %v16918_v27 = vcombine.high %v6638_v17, %v6642_v53  ;;  %v17046_v40 = vcombine.high %v6766_v21, %v6770_v23  ;;  %v6634_v14 = vld [vmem:[#allocation7 + $0x1068] sm:$0xff]  ;;  %v17045_v42 = vcombine.low %v6766_v21, %v6770_v23 }
 0x4db   :  { %v18788_v10 = vadd.f32 %v12548_v57, %v12506_v11  ;;  %12858 = vmatprep.subr.bf16.mxu1 %v17070_v30  ;;  %v6630_v30 = vld [vmem:[#allocation7 + $0x1048] sm:$0xff] }
 0x4dc   :  { %v6758_v33 = vld [vmem:[#allocation7 + $0x1448] sm:$0xff]  ;;  %v16910_v11 = vcombine.high %v6630_v30, %v6634_v14  ;;  %v16909_v20 = vcombine.low %v6630_v30, %v6634_v14 }
 0x4dd   :  { %12816 = vmatpush1.bf16.msra.mxu0 %v16941_v58  ;;  %v6762_v25 = vld [vmem:[#allocation7 + $0x1468] sm:$0xff] }
 0x4de   :  { %12859 = vmatpush1.bf16.msra.mxu1 %v17069_v45  ;;  %12817 = vmatprep.subr.bf16.mxu0 %v16934_v26  ;;  %v17038_v58 = vcombine.high %v6758_v33, %v6762_v25  ;;  %v6622_v57 = vld [vmem:[#allocation7 + $0x1008] sm:$0xff]  ;;  %v17037_v52 = vcombine.low %v6758_v33, %v6762_v25 }
 0x4df   :  { %12860 = vmatprep.subr.bf16.mxu1 %v17062_v39  ;;  %v6626_v45 = vld [vmem:[#allocation7 + $0x1028] sm:$0xff] }
 0x4e0   :  { %v6750_v26 = vld [vmem:[#allocation7 + $0x1408] sm:$0xff]  ;;  %v16902_v55 = vcombine.high %v6622_v57, %v6626_v45  ;;  %v16901_v17 = vcombine.low %v6622_v57, %v6626_v45 }
 0x4e1   :  { %12818 = vmatpush1.bf16.msra.mxu0 %v16933_v43  ;;  %v6754_v39 = vld [vmem:[#allocation7 + $0x1428] sm:$0xff] }
 0x4e2   :  { %12861 = vmatpush1.bf16.msra.mxu1 %v17061_v0  ;;  %12819 = vmatprep.subr.bf16.mxu0 %v16926_v5  ;;  %v17030_v1 = vcombine.high %v6750_v26, %v6754_v39  ;;  %v6742_v43 = vld [vmem:[#allocation7 + $0x13c8] sm:$0xff]  ;;  %v17029_v53 = vcombine.low %v6750_v26, %v6754_v39 }
 0x4e3   :  { %12862 = vmatprep.subr.bf16.mxu1 %v17054_v51  ;;  %v6746_v0 = vld [vmem:[#allocation7 + $0x13e8] sm:$0xff] }
 0x4e4   :  { %v6870_v5 = vld [vmem:[#allocation7 + $0x17c8] sm:$0xff]  ;;  %v17022_v21 = vcombine.high %v6742_v43, %v6746_v0  ;;  %v17021_v30 = vcombine.low %v6742_v43, %v6746_v0 }
 0x4e5   :  { %12820 = vmatpush1.bf16.msra.mxu0 %v16925_v47  ;;  %v6874_v51 = vld [vmem:[#allocation7 + $0x17e8] sm:$0xff] }
 0x4e6   :  { %12863 = vmatpush1.bf16.msra.mxu1 %v17053_v36  ;;  %12821 = vmatprep.subr.bf16.mxu0 %v16918_v27  ;;  %v17150_v23 = vcombine.high %v6870_v5, %v6874_v51  ;;  %v6734_v47 = vld [vmem:[#allocation7 + $0x1388] sm:$0xff]  ;;  %v17149_v14 = vcombine.low %v6870_v5, %v6874_v51 }
 0x4e7   :  { %12864 = vmatprep.subr.bf16.mxu1 %v17046_v40  ;;  %v6738_v36 = vld [vmem:[#allocation7 + $0x13a8] sm:$0xff] }
 0x4e8   :  { %v6862_v27 = vld [vmem:[#allocation7 + $0x1788] sm:$0xff]  ;;  %v17014_v33 = vcombine.high %v6734_v47, %v6738_v36  ;;  %v17013_v57 = vcombine.low %v6734_v47, %v6738_v36 }
 0x4e9   :  { %12822 = vmatpush1.bf16.msra.mxu0 %v16917_v3  ;;  %v6866_v40 = vld [vmem:[#allocation7 + $0x17a8] sm:$0xff] }
 0x4ea   :  { %12865 = vmatpush1.bf16.msra.mxu1 %v17045_v42  ;;  %12823 = vmatprep.subr.bf16.mxu0 %v16910_v11  ;;  %v17142_v25 = vcombine.high %v6862_v27, %v6866_v40  ;;  %v6726_v3 = vld [vmem:[#allocation7 + $0x1348] sm:$0xff]  ;;  %v17141_v45 = vcombine.low %v6862_v27, %v6866_v40 }
 0x4eb   :  { %12866 = vmatprep.subr.bf16.mxu1 %v17038_v58  ;;  %v6730_v42 = vld [vmem:[#allocation7 + $0x1368] sm:$0xff] }
 0x4ec   :  { %v6854_v11 = vld [vmem:[#allocation7 + $0x1748] sm:$0xff]  ;;  %v17006_v26 = vcombine.high %v6726_v3, %v6730_v42  ;;  %v17005_v43 = vcombine.low %v6726_v3, %v6730_v42 }
 0x4ed   :  { %12824 = vmatpush1.bf16.msra.mxu0 %v16909_v20  ;;  %v6858_v58 = vld [vmem:[#allocation7 + $0x1768] sm:$0xff] }
 0x4ee   :  { %12867 = vmatpush1.bf16.msra.mxu1 %v17037_v52  ;;  %12825 = vmatprep.subr.bf16.mxu0 %v16902_v55  ;;  %v17134_v39 = vcombine.high %v6854_v11, %v6858_v58  ;;  %v6718_v20 = vld [vmem:[#allocation7 + $0x1308] sm:$0xff]  ;;  %v17133_v0 = vcombine.low %v6854_v11, %v6858_v58 }
 0x4ef   :  { %12868 = vmatprep.subr.bf16.mxu1 %v17030_v1  ;;  %v6722_v52 = vld [vmem:[#allocation7 + $0x1328] sm:$0xff] }
 0x4f0   :  { %v6846_v55 = vld [vmem:[#allocation7 + $0x1708] sm:$0xff]  ;;  %v16998_v5 = vcombine.high %v6718_v20, %v6722_v52  ;;  %v16997_v47 = vcombine.low %v6718_v20, %v6722_v52 }
 0x4f1   :  { %12826 = vmatpush1.bf16.msra.mxu0 %v16901_v17  ;;  %v6850_v1 = vld [vmem:[#allocation7 + $0x1728] sm:$0xff] }
 0x4f2   :  { %12869 = vmatpush1.bf16.msra.mxu1 %v17029_v53  ;;  %12827 = vmatprep.subr.bf16.mxu0 %v17022_v21  ;;  %v17126_v51 = vcombine.high %v6846_v55, %v6850_v1  ;;  %v6710_v17 = vld [vmem:[#allocation7 + $0x12c8] sm:$0xff]  ;;  %v17125_v36 = vcombine.low %v6846_v55, %v6850_v1 }
 0x4f3   :  { %12870 = vmatprep.subr.bf16.mxu1 %v17150_v23  ;;  %v6714_v53 = vld [vmem:[#allocation7 + $0x12e8] sm:$0xff] }
 0x4f4   :  { %v6838_v21 = vld [vmem:[#allocation7 + $0x16c8] sm:$0xff]  ;;  %v16990_v27 = vcombine.high %v6710_v17, %v6714_v53  ;;  %v16989_v3 = vcombine.low %v6710_v17, %v6714_v53 }
 0x4f5   :  { %12828 = vmatpush2.bf16.msra.mxu0 %v17021_v30  ;;  %v6842_v23 = vld [vmem:[#allocation7 + $0x16e8] sm:$0xff] }
 0x4f6   :  { %12871 = vmatpush2.bf16.msra.mxu1 %v17149_v14  ;;  %12829 = vmatprep.subr.bf16.mxu0 %v17014_v33  ;;  %v17118_v40 = vcombine.high %v6838_v21, %v6842_v23  ;;  %v6702_v30 = vld [vmem:[#allocation7 + $0x1288] sm:$0xff]  ;;  %v17117_v42 = vcombine.low %v6838_v21, %v6842_v23 }
 0x4f7   :  { %12872 = vmatprep.subr.bf16.mxu1 %v17142_v25  ;;  %v6706_v14 = vld [vmem:[#allocation7 + $0x12a8] sm:$0xff] }
 0x4f8   :  { %v6830_v33 = vld [vmem:[#allocation7 + $0x1688] sm:$0xff]  ;;  %v16982_v11 = vcombine.high %v6702_v30, %v6706_v14  ;;  %v16981_v20 = vcombine.low %v6702_v30, %v6706_v14 }
 0x4f9   :  { %12830 = vmatpush2.bf16.msra.mxu0 %v17013_v57  ;;  %v6834_v25 = vld [vmem:[#allocation7 + $0x16a8] sm:$0xff] }
 0x4fa   :  { %12873 = vmatpush2.bf16.msra.mxu1 %v17141_v45  ;;  %12831 = vmatprep.subr.bf16.mxu0 %v17006_v26  ;;  %v17110_v58 = vcombine.high %v6830_v33, %v6834_v25  ;;  %v6694_v57 = vld [vmem:[#allocation7 + $0x1248] sm:$0xff]  ;;  %v17109_v52 = vcombine.low %v6830_v33, %v6834_v25 }
 0x4fb   :  { %12874 = vmatprep.subr.bf16.mxu1 %v17134_v39  ;;  %v6698_v45 = vld [vmem:[#allocation7 + $0x1268] sm:$0xff] }
 0x4fc   :  { %v6822_v26 = vld [vmem:[#allocation7 + $0x1648] sm:$0xff]  ;;  %v16974_v55 = vcombine.high %v6694_v57, %v6698_v45  ;;  %v16973_v17 = vcombine.low %v6694_v57, %v6698_v45  ;;  %v18790_v45 = vpop.f32.mrf.mxu0 }
 0x4fd   :  { %12832 = vmatpush2.bf16.msra.mxu0 %v17005_v43  ;;  %v6826_v39 = vld [vmem:[#allocation7 + $0x1668] sm:$0xff] }
 0x4fe   :  { %12875 = vmatpush2.bf16.msra.mxu1 %v17133_v0  ;;  %12833 = vmatprep.subr.bf16.mxu0 %v16998_v5  ;;  %v17102_v1 = vcombine.high %v6822_v26, %v6826_v39  ;;  %v6686_v43 = vld [vmem:[#allocation7 + $0x1208] sm:$0xff]  ;;  %v17101_v53 = vcombine.low %v6822_v26, %v6826_v39  ;;  %v18792_v39 = vpop.f32.mrf.mxu1 }
 0x4ff   :  { %12876 = vmatprep.subr.bf16.mxu1 %v17126_v51  ;;  %v6690_v0 = vld [vmem:[#allocation7 + $0x1228] sm:$0xff]  ;;  %19094 = vst [vmem:[#allocation22_spill] sm:$0xff] %v18792_v39  ;;  %v6775_v39 = vld [vmem:[#allocation7 + $0x14d0] sm:$0xff] }
 0x500   :  { %v6814_v5 = vld [vmem:[#allocation7 + $0x1608] sm:$0xff]  ;;  %v16966_v21 = vcombine.high %v6686_v43, %v6690_v0  ;;  %v16965_v30 = vcombine.low %v6686_v43, %v6690_v0 }
 0x501   :  { %12834 = vmatpush2.bf16.msra.mxu0 %v16997_v47  ;;  %v6818_v51 = vld [vmem:[#allocation7 + $0x1628] sm:$0xff] }
 0x502   :  { %12877 = vmatpush2.bf16.msra.mxu1 %v17125_v36  ;;  %12835 = vmatprep.subr.bf16.mxu0 %v16990_v27  ;;  %v17094_v23 = vcombine.high %v6814_v5, %v6818_v51  ;;  %v6934_v47 = vld [vmem:[#allocation7 + $0x19c8] sm:$0xff]  ;;  %v17093_v14 = vcombine.low %v6814_v5, %v6818_v51 }
 0x503   :  { %12878 = vmatprep.subr.bf16.mxu1 %v17118_v40  ;;  %v6938_v36 = vld [vmem:[#allocation7 + $0x19e8] sm:$0xff] }
 0x504   :  { %v7062_v27 = vld [vmem:[#allocation7 + $0x1dc8] sm:$0xff]  ;;  %v17214_v33 = vcombine.high %v6934_v47, %v6938_v36 }
 0x505   :  { %12836 = vmatpush2.bf16.msra.mxu0 %v16989_v3  ;;  %v7066_v40 = vld [vmem:[#allocation7 + $0x1de8] sm:$0xff] }
 0x506   :  { %12879 = vmatpush2.bf16.msra.mxu1 %v17117_v42  ;;  %12837 = vmatprep.subr.bf16.mxu0 %v16982_v11  ;;  %v17342_v25 = vcombine.high %v7062_v27, %v7066_v40  ;;  %v6926_v3 = vld [vmem:[#allocation7 + $0x1988] sm:$0xff]  ;;  %v17213_v11 = vcombine.low %v6934_v47, %v6938_v36  ;;  %v17341_v26 = vcombine.low %v7062_v27, %v7066_v40 }
 0x507   :  { %12880 = vmatprep.subr.bf16.mxu1 %v17110_v58  ;;  %v6930_v42 = vld [vmem:[#allocation7 + $0x19a8] sm:$0xff] }
 0x508   :  { %v7054_v58 = vld [vmem:[#allocation7 + $0x1d88] sm:$0xff] }
 0x509   :  { %12838 = vmatpush2.bf16.msra.mxu0 %v16981_v20  ;;  %v7058_v57 = vld [vmem:[#allocation7 + $0x1da8] sm:$0xff]  ;;  %v17206_v20 = vcombine.high %v6926_v3, %v6930_v42 }
 0x50a   :  { %12881 = vmatpush2.bf16.msra.mxu1 %v17109_v52  ;;  %12839 = vmatprep.subr.bf16.mxu0 %v16974_v55  ;;  %v6918_v52 = vld [vmem:[#allocation7 + $0x1948] sm:$0xff]  ;;  %v17334_v43 = vcombine.high %v7054_v58, %v7058_v57 }
 0x50b   :  { %12882 = vmatprep.subr.bf16.mxu1 %v17102_v1  ;;  %v6922_v55 = vld [vmem:[#allocation7 + $0x1968] sm:$0xff] }
 0x50c   :  { %v7046_v0 = vld [vmem:[#allocation7 + $0x1d48] sm:$0xff]  ;;  %v17198_v47 = vcombine.high %v6918_v52, %v6922_v55 }
 0x50d   :  { %12840 = vmatpush2.bf16.msra.mxu0 %v16973_v17  ;;  %v7050_v5 = vld [vmem:[#allocation7 + $0x1d68] sm:$0xff] }
 0x50e   :  { %12883 = vmatpush2.bf16.msra.mxu1 %v17101_v53  ;;  %12841 = vmatprep.subr.bf16.mxu0 %v16966_v21  ;;  %v17205_v53 = vcombine.low %v6926_v3, %v6930_v42  ;;  %v17326_v40 = vcombine.high %v7046_v0, %v7050_v5  ;;  %v17197_v42 = vcombine.low %v6918_v52, %v6922_v55 }
 0x50f   :  { %12884 = vmatprep.subr.bf16.mxu1 %v17094_v23  ;;  %v17333_v23 = vcombine.low %v7054_v58, %v7058_v57  ;;  %v17325_v58 = vcombine.low %v7046_v0, %v7050_v5  ;;  %v6894_v5 = vld [vmem:[#allocation7 + $0x1888] sm:$0xff] }
 0x511   :  { %12842 = vmatpush2.bf16.msra.mxu0 %v16965_v30  ;;  %v6914_v30 = vld [vmem:[#allocation7 + $0x1928] sm:$0xff] }
 0x512   :  { %12885 = vmatpush2.bf16.msra.mxu1 %v17093_v14  ;;  %12897 = vmatprep.subr.bf16.mxu0 %v17214_v33  ;;  %v7038_v33 = vld [vmem:[#allocation7 + $0x1d08] sm:$0xff] }
 0x513   :  { %12940 = vmatprep.subr.bf16.mxu1 %v17342_v25  ;;  %v7042_v25 = vld [vmem:[#allocation7 + $0x1d28] sm:$0xff] }
 0x514   :  { %v12587_v1 = vpop.f32.mrf.mxu0  ;;  %12844 = vmatmul.mubr.bf16.vlgmr.msra.gmra.mxu0 %v18570_v50 }
 0x515   :  { %v12588_v51 = vadd.f32 %v12587_v1, %v18782_v15  ;;  %v12630_v17 = vpop.f32.mrf.mxu1  ;;  %12887 = vmatmul.mubr.bf16.vlgmr.msra.gmra.mxu1 %v18623_v62  ;;  %12898 = vmatpush1.bf16.msra.mxu0 %v17213_v11  ;;  %v6910_v15 = vld [vmem:[#allocation7 + $0x1908] sm:$0xff]  ;;  %v17318_v1 = vcombine.high %v7038_v33, %v7042_v25 }
 0x516   :  { %12929 = vmatprep.mubr.bf16.mxu0 %v18713_v61  ;;  %12941 = vmatpush1.bf16.msra.mxu1 %v17341_v26  ;;  %v18798_v21 = vpop.f32.mrf.mxu0  ;;  %v17190_v57 = vcombine.high %v6910_v15, %v6914_v30  ;;  %v17189_v6 = vcombine.low %v6910_v15, %v6914_v30  ;;  %v6886_v30 = vld [vmem:[#allocation7 + $0x1848] sm:$0xff] }
 0x517   :  { %19095 = vst [vmem:[#allocation25_spill] sm:$0xff] %v18798_v21  ;;  %v12631_v36 = vadd.f32 %v12630_v17, %v12588_v51  ;;  %12972 = vmatprep.mubr.bf16.mxu1 %v18728_v4  ;;  %v18801_v27 = vpop.f32.mrf.mxu1  ;;  %12899 = vmatprep.subr.bf16.mxu0 %v17206_v20  ;;  %v6902_v20 = vld [vmem:[#allocation7 + $0x18c8] sm:$0xff]  ;;  %v6519_v21 = vld [vmem:[#allocation7 + $0xcd0] sm:$0xff] }
 0x518   :  { %19096 = vst [vmem:[#allocation26_spill] sm:$0xff] %v18801_v27  ;;  %v12591_v14 = vpop.f32.mrf.mxu0  ;;  %12942 = vmatprep.subr.bf16.mxu1 %v17334_v43  ;;  %v6906_v51 = vld [vmem:[#allocation7 + $0x18e8] sm:$0xff]  ;;  %v6391_v27 = vld [vmem:[#allocation7 + $0x8d0] sm:$0xff] }
 0x519   :  { %v12592_v3 = vadd.f32 %v12591_v14, %v18788_v10  ;;  %12900 = vmatpush1.bf16.msra.mxu0 %v17205_v53  ;;  %v12634_v11 = vpop.f32.mrf.mxu1  ;;  %v7030_v17 = vld [vmem:[#allocation7 + $0x1cc8] sm:$0xff]  ;;  %v13671_v29 = vmax.f32 %v12631_v36, 0.0  ;;  %v17317_v10 = vcombine.low %v7038_v33, %v7042_v25  ;;  %v17182_v52 = vcombine.high %v6902_v20, %v6906_v51 }
 0x51a   :  { %12943 = vmatpush1.bf16.msra.mxu1 %v17333_v23  ;;  %12901 = vmatprep.subr.bf16.mxu0 %v17198_v47  ;;  %v17310_v0 = vcombine.high %v7030_v17, %v7034_v19  ;;  %v6898_v53 = vld [vmem:[#allocation7 + $0x18a8] sm:$0xff]  ;;  %v17309_v36 = vcombine.low %v7030_v17, %v7034_v19 }
 0x51b   :  { %v12635_v26 = vadd.f32 %v12634_v11, %v12592_v3  ;;  %12944 = vmatprep.subr.bf16.mxu1 %v17326_v40  ;;  %v7022_v23 = vld [vmem:[#allocation7 + $0x1c88] sm:$0xff]  ;;  %v17181_v40 = vcombine.low %v6902_v20, %v6906_v51  ;;  %v17174_v14 = vcombine.high %v6894_v5, %v6898_v53 }
 0x51c   :  { %v7026_v47 = vld [vmem:[#allocation7 + $0x1ca8] sm:$0xff] }
 0x51d   :  { %v13679_v43 = vmax.f32 %v12635_v26, 0.0  ;;  %12902 = vmatpush1.bf16.msra.mxu0 %v17197_v42  ;;  %v17302_v15 = vcombine.high %v7022_v23, %v7026_v47  ;;  %v6890_v3 = vld [vmem:[#allocation7 + $0x1868] sm:$0xff]  ;;  %v17301_v42 = vcombine.low %v7022_v23, %v7026_v47 }
 0x51e   :  { %12945 = vmatpush1.bf16.msra.mxu1 %v17325_v58  ;;  %12903 = vmatprep.subr.bf16.mxu0 %v17190_v57  ;;  %v7014_v33 = vld [vmem:[#allocation7 + $0x1c48] sm:$0xff]  ;;  %v17166_v11 = vcombine.high %v6886_v30, %v6890_v3  ;;  %v17165_v19 = vcombine.low %v6886_v30, %v6890_v3 }
 0x51f   :  { %v18804_v55 = vpack.c.bf16 %v13679_v43, %v13671_v29  ;;  %12946 = vmatprep.subr.bf16.mxu1 %v17318_v1  ;;  %v7018_v25 = vld [vmem:[#allocation7 + $0x1c68] sm:$0xff]  ;;  %v17173_v29 = vcombine.low %v6894_v5, %v6898_v53 }
 0x520   :  { %v17294_v58 = vcombine.high %v7014_v33, %v7018_v25  ;;  %v6882_v57 = vld [vmem:[#allocation7 + $0x1828] sm:$0xff]  ;;  %v17293_v20 = vcombine.low %v7014_v33, %v7018_v25 }
 0x521   :  { %19097 = vst [vmem:[#allocation27_spill] sm:$0xff] %v18804_v55  ;;  %12904 = vmatpush1.bf16.msra.mxu0 %v17189_v6  ;;  %v6878_v6 = vld [vmem:[#allocation7 + $0x1808] sm:$0xff]  ;;  %v6263_v55 = vld [vmem:[#allocation7 + $0x4d0] sm:$0xff] }
 0x522   :  { %12947 = vmatpush1.bf16.msra.mxu1 %v17317_v10  ;;  %12905 = vmatprep.subr.bf16.mxu0 %v17182_v52  ;;  %v7006_v26 = vld [vmem:[#allocation7 + $0x1c08] sm:$0xff]  ;;  %v17158_v51 = vcombine.high %v6878_v6, %v6882_v57  ;;  %v17157_v5 = vcombine.low %v6878_v6, %v6882_v57 }
 0x523   :  { %12948 = vmatprep.subr.bf16.mxu1 %v17310_v0  ;;  %v7010_v1 = vld [vmem:[#allocation7 + $0x1c28] sm:$0xff] }
 0x524   :  { %v17286_v17 = vcombine.high %v7006_v26, %v7010_v1  ;;  %v6998_v43 = vld [vmem:[#allocation7 + $0x1bc8] sm:$0xff]  ;;  %v17285_v53 = vcombine.low %v7006_v26, %v7010_v1 }
 0x525   :  { %12906 = vmatpush1.bf16.msra.mxu0 %v17181_v40  ;;  %v7002_v10 = vld [vmem:[#allocation7 + $0x1be8] sm:$0xff] }
 0x526   :  { %12949 = vmatpush1.bf16.msra.mxu1 %v17309_v36  ;;  %12907 = vmatprep.subr.bf16.mxu0 %v17174_v14  ;;  %v7126_v52 = vld [vmem:[#allocation7 + $0x1fc8] sm:$0xff]  ;;  %v17278_v23 = vcombine.high %v6998_v43, %v7002_v10  ;;  %v17277_v30 = vcombine.low %v6998_v43, %v7002_v10 }
 0x527   :  { %12950 = vmatprep.subr.bf16.mxu1 %v17302_v15  ;;  %v7130_v0 = vld [vmem:[#allocation7 + $0x1fe8] sm:$0xff] }
 0x528   :  { %v17406_v47 = vcombine.high %v7126_v52, %v7130_v0  ;;  %v6990_v40 = vld [vmem:[#allocation7 + $0x1b88] sm:$0xff]  ;;  %v17405_v3 = vcombine.low %v7126_v52, %v7130_v0 }
 0x529   :  { %12908 = vmatpush1.bf16.msra.mxu0 %v17173_v29  ;;  %v6994_v36 = vld [vmem:[#allocation7 + $0x1ba8] sm:$0xff] }
 0x52a   :  { %12951 = vmatpush1.bf16.msra.mxu1 %v17301_v42  ;;  %12909 = vmatprep.subr.bf16.mxu0 %v17166_v11  ;;  %v7118_v14 = vld [vmem:[#allocation7 + $0x1f88] sm:$0xff]  ;;  %v17270_v33 = vcombine.high %v6990_v40, %v6994_v36  ;;  %v17269_v6 = vcombine.low %v6990_v40, %v6994_v36 }
 0x52b   :  { %12952 = vmatprep.subr.bf16.mxu1 %v17294_v58  ;;  %v7122_v15 = vld [vmem:[#allocation7 + $0x1fa8] sm:$0xff] }
 0x52c   :  { %v17398_v25 = vcombine.high %v7118_v14, %v7122_v15  ;;  %v6982_v29 = vld [vmem:[#allocation7 + $0x1b48] sm:$0xff]  ;;  %v17397_v57 = vcombine.low %v7118_v14, %v7122_v15 }
 0x52d   :  { %12910 = vmatpush1.bf16.msra.mxu0 %v17165_v19  ;;  %v6986_v42 = vld [vmem:[#allocation7 + $0x1b68] sm:$0xff] }
 0x52e   :  { %12953 = vmatpush1.bf16.msra.mxu1 %v17293_v20  ;;  %12911 = vmatprep.subr.bf16.mxu0 %v17158_v51  ;;  %v7110_v11 = vld [vmem:[#allocation7 + $0x1f48] sm:$0xff]  ;;  %v17262_v26 = vcombine.high %v6982_v29, %v6986_v42  ;;  %v17261_v43 = vcombine.low %v6982_v29, %v6986_v42 }
 0x52f   :  { %12954 = vmatprep.subr.bf16.mxu1 %v17286_v17  ;;  %v7114_v58 = vld [vmem:[#allocation7 + $0x1f68] sm:$0xff] }
 0x530   :  { %v17390_v1 = vcombine.high %v7110_v11, %v7114_v58  ;;  %v6974_v19 = vld [vmem:[#allocation7 + $0x1b08] sm:$0xff]  ;;  %v17389_v10 = vcombine.low %v7110_v11, %v7114_v58 }
 0x531   :  { %12912 = vmatpush1.bf16.msra.mxu0 %v17157_v5  ;;  %v6978_v20 = vld [vmem:[#allocation7 + $0x1b28] sm:$0xff] }
 0x532   :  { %12955 = vmatpush1.bf16.msra.mxu1 %v17285_v53  ;;  %12913 = vmatprep.subr.bf16.mxu0 %v17278_v23  ;;  %v7102_v51 = vld [vmem:[#allocation7 + $0x1f08] sm:$0xff]  ;;  %v17254_v52 = vcombine.high %v6974_v19, %v6978_v20  ;;  %v17253_v40 = vcombine.low %v6974_v19, %v6978_v20 }
 0x533   :  { %12956 = vmatprep.subr.bf16.mxu1 %v17406_v47  ;;  %v7106_v17 = vld [vmem:[#allocation7 + $0x1f28] sm:$0xff] }
 0x534   :  { %v17382_v0 = vcombine.high %v7102_v51, %v7106_v17  ;;  %v6966_v5 = vld [vmem:[#allocation7 + $0x1ac8] sm:$0xff]  ;;  %v17381_v36 = vcombine.low %v7102_v51, %v7106_v17 }
 0x535   :  { %12914 = vmatpush2.bf16.msra.mxu0 %v17277_v30  ;;  %v6970_v53 = vld [vmem:[#allocation7 + $0x1ae8] sm:$0xff] }
 0x536   :  { %12957 = vmatpush2.bf16.msra.mxu1 %v17405_v3  ;;  %12915 = vmatprep.subr.bf16.mxu0 %v17270_v33  ;;  %v7094_v23 = vld [vmem:[#allocation7 + $0x1ec8] sm:$0xff]  ;;  %v17246_v14 = vcombine.high %v6966_v5, %v6970_v53  ;;  %v17245_v29 = vcombine.low %v6966_v5, %v6970_v53 }
 0x537   :  { %12958 = vmatprep.subr.bf16.mxu1 %v17398_v25  ;;  %v7098_v47 = vld [vmem:[#allocation7 + $0x1ee8] sm:$0xff] }
 0x538   :  { %v17374_v15 = vcombine.high %v7094_v23, %v7098_v47  ;;  %v6958_v30 = vld [vmem:[#allocation7 + $0x1a88] sm:$0xff]  ;;  %v17373_v42 = vcombine.low %v7094_v23, %v7098_v47 }
 0x539   :  { %12916 = vmatpush2.bf16.msra.mxu0 %v17269_v6  ;;  %v6962_v3 = vld [vmem:[#allocation7 + $0x1aa8] sm:$0xff] }
 0x53a   :  { %12959 = vmatpush2.bf16.msra.mxu1 %v17397_v57  ;;  %12917 = vmatprep.subr.bf16.mxu0 %v17262_v26  ;;  %v7086_v33 = vld [vmem:[#allocation7 + $0x1e88] sm:$0xff]  ;;  %v17238_v11 = vcombine.high %v6958_v30, %v6962_v3  ;;  %v17237_v19 = vcombine.low %v6958_v30, %v6962_v3 }
 0x53b   :  { %12960 = vmatprep.subr.bf16.mxu1 %v17390_v1  ;;  %v7090_v25 = vld [vmem:[#allocation7 + $0x1ea8] sm:$0xff] }
 0x53c   :  { %v17366_v58 = vcombine.high %v7086_v33, %v7090_v25  ;;  %v6950_v6 = vld [vmem:[#allocation7 + $0x1a48] sm:$0xff]  ;;  %v17365_v20 = vcombine.low %v7086_v33, %v7090_v25 }
 0x53d   :  { %12918 = vmatpush2.bf16.msra.mxu0 %v17261_v43  ;;  %v6954_v57 = vld [vmem:[#allocation7 + $0x1a68] sm:$0xff] }
 0x53e   :  { %12961 = vmatpush2.bf16.msra.mxu1 %v17389_v10  ;;  %12919 = vmatprep.subr.bf16.mxu0 %v17254_v52  ;;  %v7078_v26 = vld [vmem:[#allocation7 + $0x1e48] sm:$0xff]  ;;  %v17230_v51 = vcombine.high %v6950_v6, %v6954_v57  ;;  %v17229_v5 = vcombine.low %v6950_v6, %v6954_v57  ;;  %v6287_v57 = vld [vmem:[#allocation7 + $0x590] sm:$0xff] }
 0x53f   :  { %12962 = vmatprep.subr.bf16.mxu1 %v17382_v0  ;;  %v7082_v1 = vld [vmem:[#allocation7 + $0x1e68] sm:$0xff] }
 0x540   :  { %v17358_v17 = vcombine.high %v7078_v26, %v7082_v1  ;;  %v6942_v43 = vld [vmem:[#allocation7 + $0x1a08] sm:$0xff]  ;;  %v17357_v53 = vcombine.low %v7078_v26, %v7082_v1  ;;  %v6291_v26 = vld [vmem:[#allocation7 + $0x5b0] sm:$0xff]  ;;  %v18807_v1 = vpop.f32.mrf.mxu0 }
 0x541   :  { %12920 = vmatpush2.bf16.msra.mxu0 %v17253_v40  ;;  %v6946_v10 = vld [vmem:[#allocation7 + $0x1a28] sm:$0xff]  ;;  %v6167_v40 = vld [vmem:[#allocation7 + $0x1d0] sm:$0xff]  ;;  %19098 = vst [vmem:[#allocation28_spill] sm:$0xff] %v18807_v1 }
 0x542   :  { %12963 = vmatpush2.bf16.msra.mxu1 %v17381_v36  ;;  %12921 = vmatprep.subr.bf16.mxu0 %v17246_v14  ;;  %v7070_v52 = vld [vmem:[#allocation7 + $0x1e08] sm:$0xff]  ;;  %v17222_v23 = vcombine.high %v6942_v43, %v6946_v10  ;;  %v6171_v36 = vld [vmem:[#allocation7 + $0x1f0] sm:$0xff]  ;;  %v17221_v30 = vcombine.low %v6942_v43, %v6946_v10 }
 0x543   :  { %12964 = vmatprep.subr.bf16.mxu1 %v17374_v15  ;;  %v7074_v0 = vld [vmem:[#allocation7 + $0x1e28] sm:$0xff]  ;;  %v6295_v14 = vld [vmem:[#allocation7 + $0x5d0] sm:$0xff]  ;;  %v16448_v33 = vcombine.high %v6167_v40, %v6171_v36  ;;  %v16447_v6 = vcombine.low %v6167_v40, %v6171_v36  ;;  %v16567_v36 = vcombine.low %v6287_v57, %v6291_v26 }
 0x544   :  { %v17350_v47 = vcombine.high %v7070_v52, %v7074_v0  ;;  %v6299_v15 = vld [vmem:[#allocation7 + $0x5f0] sm:$0xff]  ;;  %v17349_v3 = vcombine.low %v7070_v52, %v7074_v0  ;;  %v16568_v52 = vcombine.high %v6287_v57, %v6291_v26 }
 0x545   :  { %12922 = vmatpush2.bf16.msra.mxu0 %v17245_v29  ;;  %v16576_v25 = vcombine.high %v6295_v14, %v6299_v15  ;;  %v6159_v29 = vld [vmem:[#allocation7 + $0x190] sm:$0xff] }
 0x546   :  { %12965 = vmatpush2.bf16.msra.mxu1 %v17373_v42  ;;  %12923 = vmatprep.subr.bf16.mxu0 %v17238_v11  ;;  %v6163_v42 = vld [vmem:[#allocation7 + $0x1b0] sm:$0xff]  ;;  %v18094_v11 = vld [vmem:[#allocation8] sm:$0xff] }
 0x547   :  { %12966 = vmatprep.subr.bf16.mxu1 %v17366_v58  ;;  %v7146_v58 = vrot.slane %v18094_v11, %v18408_v32  ;;  %v6155_v43 = vld [vmem:[#allocation7 + $0x170] sm:$0xff] }
 0x548   :  { %v6279_v0 = vld [vmem:[#allocation7 + $0x550] sm:$0xff] }
 0x549   :  { %12924 = vmatpush2.bf16.msra.mxu0 %v17237_v19  ;;  %v16575_v19 = vcombine.low %v6295_v14, %v6299_v15  ;;  %v6139_v32 = vld [vmem:[#allocation7 + $0xf0] sm:$0xff] }
 0x54a   :  { %12967 = vmatpush2.bf16.msra.mxu1 %v17365_v20  ;;  %12925 = vmatprep.subr.bf16.mxu0 %v17230_v51  ;;  %v18809_v20 = vpop.f32.mrf.mxu1  ;;  %v16440_v51 = vcombine.high %v6159_v29, %v6163_v42  ;;  %v6523_v1 = vld [vmem:[#allocation7 + $0xcf0] sm:$0xff] }
 0x54b   :  { %12968 = vmatprep.subr.bf16.mxu1 %v17358_v17  ;;  %19099 = vst [vmem:[#allocation29_spill] sm:$0xff] %v18809_v20  ;;  %v6151_v17 = vld [vmem:[#allocation7 + $0x150] sm:$0xff] }
 0x54c   :  { %v16432_v14 = vcombine.high %v6151_v17, %v6155_v43  ;;  %v6395_v20 = vld [vmem:[#allocation7 + $0x8f0] sm:$0xff] }
 0x54d   :  { %12926 = vmatpush2.bf16.msra.mxu0 %v17229_v5  ;;  %v6283_v5 = vld [vmem:[#allocation7 + $0x570] sm:$0xff] }
 0x54e   :  { %12969 = vmatpush2.bf16.msra.mxu1 %v17357_v53  ;;  %12927 = vmatprep.subr.bf16.mxu0 %v17222_v23  ;;  %v16559_v57 = vcombine.low %v6279_v0, %v6283_v5 }
 0x54f   :  { %12970 = vmatprep.subr.bf16.mxu1 %v17350_v47  ;;  %v16439_v47 = vcombine.low %v6159_v29, %v6163_v42  ;;  %v6271_v29 = vld [vmem:[#allocation7 + $0x510] sm:$0xff] }
 0x550   :  { %v6275_v42 = vld [vmem:[#allocation7 + $0x530] sm:$0xff] }
 0x551   :  { %12928 = vmatpush2.bf16.msra.mxu0 %v17221_v30 }
 0x552   :  { %12971 = vmatpush2.bf16.msra.mxu1 %v17349_v3  ;;  %12983 = vmatprep.subr.bf16.mxu0 %v16448_v33  ;;  %v16560_v3 = vcombine.high %v6279_v0, %v6283_v5  ;;  %v6143_v33 = vld [vmem:[#allocation7 + $0x110] sm:$0xff] }
 0x553   :  { %13026 = vmatprep.subr.bf16.mxu1 %v16576_v25  ;;  %v6147_v25 = vld [vmem:[#allocation7 + $0x130] sm:$0xff] }
 0x554   :  { %v12673_v10 = vpop.f32.mrf.mxu0  ;;  %12930 = vmatmul.mubr.bf16.vlgmr.msra.gmra.mxu0 %v18701_v13  ;;  %v16424_v26 = vcombine.high %v6143_v33, %v6147_v25  ;;  %v6255_v0 = vld [vmem:[#allocation7 + $0x490] sm:$0xff] }
 0x555   :  { %v12674_v53 = vadd.f32 %v12673_v10, %v7146_v58  ;;  %v12716_v23 = vpop.f32.mrf.mxu1  ;;  %12973 = vmatmul.mubr.bf16.vlgmr.msra.gmra.mxu1 %v18740_v56  ;;  %12984 = vmatpush1.bf16.msra.mxu0 %v16447_v6  ;;  %v6259_v5 = vld [vmem:[#allocation7 + $0x4b0] sm:$0xff] }
 0x556   :  { %13015 = vmatprep.mubr.bf16.mxu0 %v18606_v2  ;;  %13027 = vmatpush1.bf16.msra.mxu1 %v16575_v19  ;;  %v18814_v40 = vpop.f32.mrf.mxu0  ;;  %v16431_v19 = vcombine.low %v6151_v17, %v6155_v43  ;;  %v16544_v17 = vcombine.high %v6263_v55, %v6267_v37  ;;  %v6127_v43 = vld [vmem:[#allocation7 + $0x90] sm:$0xff] }
 0x557   :  { %v18816_v15 = vadd.f32 %v12716_v23, %v12674_v53  ;;  %13058 = vmatprep.mubr.bf16.mxu1 %v18611_v48  ;;  %v18819_v30 = vpop.f32.mrf.mxu1  ;;  %12985 = vmatprep.subr.bf16.mxu0 %v16440_v51  ;;  %v16552_v23 = vcombine.high %v6271_v29, %v6275_v42  ;;  %v6135_v51 = vld [vmem:[#allocation7 + $0xd0] sm:$0xff] }
 0x558   :  { %v12677_v11 = vpop.f32.mrf.mxu0  ;;  %13028 = vmatprep.subr.bf16.mxu1 %v16568_v52  ;;  %v16423_v52 = vcombine.low %v6143_v33, %v6147_v25  ;;  %v6123_v33 = vld [vmem:[#allocation7 + $0x70] sm:$0xff] }
 0x559   :  { %v12678_v6 = vadd.f32 %v12677_v11, %v7146_v58  ;;  %12986 = vmatpush1.bf16.msra.mxu0 %v16439_v47  ;;  %v12720_v10 = vpop.f32.mrf.mxu1  ;;  %v16551_v58 = vcombine.low %v6271_v29, %v6275_v42  ;;  %v16416_v47 = vcombine.high %v6135_v51, %v6139_v32  ;;  %v6247_v25 = vld [vmem:[#allocation7 + $0x450] sm:$0xff]  ;;  %v16535_v42 = vcombine.low %v6255_v0, %v6259_v5 }
 0x55a   :  { %13029 = vmatpush1.bf16.msra.mxu1 %v16567_v36  ;;  %12987 = vmatprep.subr.bf16.mxu0 %v16432_v14  ;;  %v6131_v36 = vld [vmem:[#allocation7 + $0xb0] sm:$0xff]  ;;  %v16415_v14 = vcombine.low %v6135_v51, %v6139_v32 }
 0x55b   :  { %v18821_v53 = vadd.f32 %v12720_v10, %v12678_v6  ;;  %13030 = vmatprep.subr.bf16.mxu1 %v16560_v3  ;;  %v16543_v3 = vcombine.low %v6263_v55, %v6267_v37  ;;  %v16408_v11 = vcombine.high %v6127_v43, %v6131_v36  ;;  %v16536_v6 = vcombine.high %v6255_v0, %v6259_v5  ;;  %v6251_v10 = vld [vmem:[#allocation7 + $0x470] sm:$0xff] }
 0x55c   :  { %v16407_v29 = vcombine.low %v6127_v43, %v6131_v36  ;;  %v6115_v32 = vld [vmem:[#allocation7 + $0x30] sm:$0xff]  ;;  %v16527_v55 = vcombine.low %v6247_v25, %v6251_v10 }
 0x55d   :  { %12988 = vmatpush1.bf16.msra.mxu0 %v16431_v19  ;;  %v6119_v19 = vld [vmem:[#allocation7 + $0x50] sm:$0xff] }
 0x55e   :  { %13031 = vmatpush1.bf16.msra.mxu1 %v16559_v57  ;;  %12989 = vmatprep.subr.bf16.mxu0 %v16424_v26  ;;  %v16400_v57 = vcombine.high %v6119_v19, %v6123_v33  ;;  %v16528_v26 = vcombine.high %v6247_v25, %v6251_v10  ;;  %v6239_v51 = vld [vmem:[#allocation7 + $0x410] sm:$0xff]  ;;  %v16399_v37 = vcombine.low %v6119_v19, %v6123_v33 }
 0x55f   :  { %13032 = vmatprep.subr.bf16.mxu1 %v16552_v23  ;;  %v6111_v23 = vld [vmem:[#allocation7 + $0x10] sm:$0xff] }
 0x560   :  { %v6235_v43 = vld [vmem:[#allocation7 + $0x3f0] sm:$0xff]  ;;  %v16391_v0 = vcombine.low %v6111_v23, %v6115_v32 }
 0x561   :  { %12990 = vmatpush1.bf16.msra.mxu0 %v16423_v52  ;;  %v6243_v52 = vld [vmem:[#allocation7 + $0x430] sm:$0xff] }
 0x562   :  { %13033 = vmatpush1.bf16.msra.mxu1 %v16551_v58  ;;  %12991 = vmatprep.subr.bf16.mxu0 %v16416_v47  ;;  %v16392_v58 = vcombine.high %v6111_v23, %v6115_v32  ;;  %v16520_v47 = vcombine.high %v6239_v51, %v6243_v52  ;;  %v6359_v36 = vld [vmem:[#allocation7 + $0x7d0] sm:$0xff]  ;;  %v16519_v5 = vcombine.low %v6239_v51, %v6243_v52 }
 0x563   :  { %13034 = vmatprep.subr.bf16.mxu1 %v16544_v17  ;;  %v6231_v17 = vld [vmem:[#allocation7 + $0x3d0] sm:$0xff] }
 0x564   :  { %v6227_v19 = vld [vmem:[#allocation7 + $0x3b0] sm:$0xff]  ;;  %v16511_v25 = vcombine.low %v6231_v17, %v6235_v43 }
 0x565   :  { %12992 = vmatpush1.bf16.msra.mxu0 %v16415_v14  ;;  %v6363_v14 = vld [vmem:[#allocation7 + $0x7f0] sm:$0xff] }
 0x566   :  { %13035 = vmatpush1.bf16.msra.mxu1 %v16543_v3  ;;  %12993 = vmatprep.subr.bf16.mxu0 %v16408_v11  ;;  %v16512_v3 = vcombine.high %v6231_v17, %v6235_v43  ;;  %v16640_v11 = vcombine.high %v6359_v36, %v6363_v14  ;;  %v6351_v33 = vld [vmem:[#allocation7 + $0x790] sm:$0xff]  ;;  %v16639_v10 = vcombine.low %v6359_v36, %v6363_v14 }
 0x567   :  { %13036 = vmatprep.subr.bf16.mxu1 %v16536_v6  ;;  %v6223_v6 = vld [vmem:[#allocation7 + $0x390] sm:$0xff] }
 0x568   :  { %v6219_v23 = vld [vmem:[#allocation7 + $0x370] sm:$0xff]  ;;  %v16503_v51 = vcombine.low %v6223_v6, %v6227_v19 }
 0x569   :  { %12994 = vmatpush1.bf16.msra.mxu0 %v16407_v29  ;;  %v6355_v29 = vld [vmem:[#allocation7 + $0x7b0] sm:$0xff] }
 0x56a   :  { %13037 = vmatpush1.bf16.msra.mxu1 %v16535_v42  ;;  %12995 = vmatprep.subr.bf16.mxu0 %v16400_v57  ;;  %v16504_v42 = vcombine.high %v6223_v6, %v6227_v19  ;;  %v16632_v57 = vcombine.high %v6351_v33, %v6355_v29  ;;  %v6343_v32 = vld [vmem:[#allocation7 + $0x750] sm:$0xff]  ;;  %v16631_v52 = vcombine.low %v6351_v33, %v6355_v29 }
 0x56b   :  { %13038 = vmatprep.subr.bf16.mxu1 %v16528_v26  ;;  %v6215_v26 = vld [vmem:[#allocation7 + $0x350] sm:$0xff] }
 0x56c   :  { %v6211_v17 = vld [vmem:[#allocation7 + $0x330] sm:$0xff]  ;;  %v16495_v36 = vcombine.low %v6215_v26, %v6219_v23 }
 0x56d   :  { %12996 = vmatpush1.bf16.msra.mxu0 %v16399_v37  ;;  %v6347_v37 = vld [vmem:[#allocation7 + $0x770] sm:$0xff] }
 0x56e   :  { %13039 = vmatpush1.bf16.msra.mxu1 %v16527_v55  ;;  %12997 = vmatprep.subr.bf16.mxu0 %v16392_v58  ;;  %v16496_v55 = vcombine.high %v6215_v26, %v6219_v23  ;;  %v16624_v58 = vcombine.high %v6343_v32, %v6347_v37  ;;  %v6335_v43 = vld [vmem:[#allocation7 + $0x710] sm:$0xff]  ;;  %v16623_v14 = vcombine.low %v6343_v32, %v6347_v37 }
 0x56f   :  { %13040 = vmatprep.subr.bf16.mxu1 %v16520_v47  ;;  %v6207_v47 = vld [vmem:[#allocation7 + $0x310] sm:$0xff] }
 0x570   :  { %v6203_v6 = vld [vmem:[#allocation7 + $0x2f0] sm:$0xff]  ;;  %v16487_v33 = vcombine.low %v6207_v47, %v6211_v17 }
 0x571   :  { %12998 = vmatpush1.bf16.msra.mxu0 %v16391_v0  ;;  %v6339_v0 = vld [vmem:[#allocation7 + $0x730] sm:$0xff] }
 0x572   :  { %13041 = vmatpush1.bf16.msra.mxu1 %v16519_v5  ;;  %12999 = vmatprep.subr.bf16.mxu0 %v16512_v3  ;;  %v16488_v5 = vcombine.high %v6207_v47, %v6211_v17  ;;  %v16616_v3 = vcombine.high %v6335_v43, %v6339_v0  ;;  %v6327_v19 = vld [vmem:[#allocation7 + $0x6d0] sm:$0xff]  ;;  %v16615_v29 = vcombine.low %v6335_v43, %v6339_v0 }
 0x573   :  { %13042 = vmatprep.subr.bf16.mxu1 %v16640_v11  ;;  %v6199_v11 = vld [vmem:[#allocation7 + $0x2d0] sm:$0xff] }
 0x574   :  { %v6195_v26 = vld [vmem:[#allocation7 + $0x2b0] sm:$0xff]  ;;  %v16479_v32 = vcombine.low %v6199_v11, %v6203_v6 }
 0x575   :  { %13000 = vmatpush2.bf16.msra.mxu0 %v16511_v25  ;;  %v6331_v25 = vld [vmem:[#allocation7 + $0x6f0] sm:$0xff] }
 0x576   :  { %13043 = vmatpush2.bf16.msra.mxu1 %v16639_v10  ;;  %13001 = vmatprep.subr.bf16.mxu0 %v16504_v42  ;;  %v16480_v10 = vcombine.high %v6199_v11, %v6203_v6  ;;  %v16608_v42 = vcombine.high %v6327_v19, %v6331_v25  ;;  %v6319_v23 = vld [vmem:[#allocation7 + $0x690] sm:$0xff]  ;;  %v16607_v37 = vcombine.low %v6327_v19, %v6331_v25 }
 0x577   :  { %13044 = vmatprep.subr.bf16.mxu1 %v16632_v57  ;;  %v6191_v57 = vld [vmem:[#allocation7 + $0x290] sm:$0xff] }
 0x578   :  { %v6187_v47 = vld [vmem:[#allocation7 + $0x270] sm:$0xff]  ;;  %v16471_v43 = vcombine.low %v6191_v57, %v6195_v26 }
 0x579   :  { %13002 = vmatpush2.bf16.msra.mxu0 %v16503_v51  ;;  %v6323_v51 = vld [vmem:[#allocation7 + $0x6b0] sm:$0xff] }
 0x57a   :  { %13045 = vmatpush2.bf16.msra.mxu1 %v16631_v52  ;;  %13003 = vmatprep.subr.bf16.mxu0 %v16496_v55  ;;  %v16472_v52 = vcombine.high %v6191_v57, %v6195_v26  ;;  %v16600_v55 = vcombine.high %v6319_v23, %v6323_v51  ;;  %v6311_v17 = vld [vmem:[#allocation7 + $0x650] sm:$0xff]  ;;  %v16599_v0 = vcombine.low %v6319_v23, %v6323_v51 }
 0x57b   :  { %13046 = vmatprep.subr.bf16.mxu1 %v16624_v58  ;;  %v6183_v58 = vld [vmem:[#allocation7 + $0x250] sm:$0xff] }
 0x57c   :  { %v6179_v11 = vld [vmem:[#allocation7 + $0x230] sm:$0xff]  ;;  %v16463_v19 = vcombine.low %v6183_v58, %v6187_v47 }
 0x57d   :  { %13004 = vmatpush2.bf16.msra.mxu0 %v16495_v36  ;;  %v6315_v36 = vld [vmem:[#allocation7 + $0x670] sm:$0xff] }
 0x57e   :  { %13047 = vmatpush2.bf16.msra.mxu1 %v16623_v14  ;;  %13005 = vmatprep.subr.bf16.mxu0 %v16488_v5  ;;  %v16464_v14 = vcombine.high %v6183_v58, %v6187_v47  ;;  %v16592_v5 = vcombine.high %v6311_v17, %v6315_v36  ;;  %v6303_v6 = vld [vmem:[#allocation7 + $0x610] sm:$0xff]  ;;  %v16591_v25 = vcombine.low %v6311_v17, %v6315_v36 }
 0x57f   :  { %13048 = vmatprep.subr.bf16.mxu1 %v16616_v3  ;;  %v6175_v3 = vld [vmem:[#allocation7 + $0x210] sm:$0xff] }
 0x580   :  { %v6427_v57 = vld [vmem:[#allocation7 + $0x9f0] sm:$0xff]  ;;  %v16455_v23 = vcombine.low %v6175_v3, %v6179_v11 }
 0x581   :  { %13006 = vmatpush2.bf16.msra.mxu0 %v16487_v33  ;;  %v6307_v33 = vld [vmem:[#allocation7 + $0x630] sm:$0xff] }
 0x582   :  { %13049 = vmatpush2.bf16.msra.mxu1 %v16615_v29  ;;  %13007 = vmatprep.subr.bf16.mxu0 %v16480_v10  ;;  %v16456_v29 = vcombine.high %v6175_v3, %v6179_v11  ;;  %v16584_v10 = vcombine.high %v6303_v6, %v6307_v33  ;;  %v6551_v26 = vld [vmem:[#allocation7 + $0xdd0] sm:$0xff]  ;;  %v16583_v51 = vcombine.low %v6303_v6, %v6307_v33 }
 0x583   :  { %13050 = vmatprep.subr.bf16.mxu1 %v16608_v42  ;;  %v6423_v42 = vld [vmem:[#allocation7 + $0x9d0] sm:$0xff] }
 0x584   :  { %v6419_v58 = vld [vmem:[#allocation7 + $0x9b0] sm:$0xff]  ;;  %v16703_v47 = vcombine.low %v6423_v42, %v6427_v57 }
 0x585   :  { %13008 = vmatpush2.bf16.msra.mxu0 %v16479_v32  ;;  %v6555_v32 = vld [vmem:[#allocation7 + $0xdf0] sm:$0xff] }
 0x586   :  { %13051 = vmatpush2.bf16.msra.mxu1 %v16607_v37  ;;  %13009 = vmatprep.subr.bf16.mxu0 %v16472_v52  ;;  %v16704_v37 = vcombine.high %v6423_v42, %v6427_v57  ;;  %v16832_v52 = vcombine.high %v6551_v26, %v6555_v32  ;;  %v6543_v17 = vld [vmem:[#allocation7 + $0xd90] sm:$0xff] }
 0x587   :  { %13052 = vmatprep.subr.bf16.mxu1 %v16600_v55  ;;  %v6415_v55 = vld [vmem:[#allocation7 + $0x990] sm:$0xff] }
 0x588   :  { %v6547_v36 = vld [vmem:[#allocation7 + $0xdb0] sm:$0xff]  ;;  %v16695_v42 = vcombine.low %v6415_v55, %v6419_v58 }
 0x589   :  { %13010 = vmatpush2.bf16.msra.mxu0 %v16471_v43  ;;  %v18823_v43 = vpop.f32.mrf.mxu0  ;;  %v6407_v3 = vld [vmem:[#allocation7 + $0x950] sm:$0xff]  ;;  %v16824_v33 = vcombine.high %v6543_v17, %v6547_v36 }
 0x58a   :  { %13053 = vmatpush2.bf16.msra.mxu1 %v16599_v0  ;;  %13011 = vmatprep.subr.bf16.mxu0 %v16464_v14  ;;  %v16831_v0 = vcombine.low %v6551_v26, %v6555_v32  ;;  %v18825_v14 = vpop.f32.mrf.mxu1  ;;  %v6411_v11 = vld [vmem:[#allocation7 + $0x970] sm:$0xff]  ;;  %v16823_v26 = vcombine.low %v6543_v17, %v6547_v36 }
 0x58b   :  { %13054 = vmatprep.subr.bf16.mxu1 %v16592_v5  ;;  %v16696_v5 = vcombine.high %v6415_v55, %v6419_v58  ;;  %v16688_v32 = vcombine.high %v6407_v3, %v6411_v11  ;;  %v6527_v55 = vld [vmem:[#allocation7 + $0xd10] sm:$0xff] }
 0x58c   :  { %v6531_v58 = vld [vmem:[#allocation7 + $0xd30] sm:$0xff] }
 0x58d   :  { %13012 = vmatpush2.bf16.msra.mxu0 %v16463_v19  ;;  %v6535_v19 = vld [vmem:[#allocation7 + $0xd50] sm:$0xff] }
 0x58e   :  { %13055 = vmatpush2.bf16.msra.mxu1 %v16591_v25  ;;  %13013 = vmatprep.subr.bf16.mxu0 %v16456_v29  ;;  %v6539_v25 = vld [vmem:[#allocation7 + $0xd70] sm:$0xff] }
 0x58f   :  { %13056 = vmatprep.subr.bf16.mxu1 %v16584_v10  ;;  %v16815_v36 = vcombine.low %v6535_v19, %v6539_v25 }
 0x591   :  { %13014 = vmatpush2.bf16.msra.mxu0 %v16455_v23 }
 0x592   :  { %13057 = vmatpush2.bf16.msra.mxu1 %v16583_v51  ;;  %13069 = vmatprep.subr.bf16.mxu0 %v16704_v37  ;;  %v6399_v37 = vld [vmem:[#allocation7 + $0x910] sm:$0xff] }
 0x593   :  { %13112 = vmatprep.subr.bf16.mxu1 %v16832_v52  ;;  %v6403_v52 = vld [vmem:[#allocation7 + $0x930] sm:$0xff] }
 0x594   :  { %v12759_v6 = vpop.f32.mrf.mxu0  ;;  %13016 = vmatmul.mubr.bf16.vlgmr.msra.gmra.mxu0 %v18397_v31 }
 0x595   :  { %v12760_v29 = vadd.f32 %v12759_v6, %v18816_v15  ;;  %v12802_v10 = vpop.f32.mrf.mxu1  ;;  %13059 = vmatmul.mubr.bf16.vlgmr.msra.gmra.mxu1 %v18435_v16  ;;  %13070 = vmatpush1.bf16.msra.mxu0 %v16703_v47  ;;  %v16816_v15 = vcombine.high %v6535_v19, %v6539_v25  ;;  %v6511_v19 = vld [vmem:[#allocation7 + $0xc90] sm:$0xff] }
 0x596   :  { %13101 = vmatprep.mubr.bf16.mxu0 %v18651_v7  ;;  %13113 = vmatpush1.bf16.msra.mxu1 %v16831_v0  ;;  %v18831_v57 = vpop.f32.mrf.mxu0  ;;  %v16687_v0 = vcombine.low %v6407_v3, %v6411_v11  ;;  %v16800_v3 = vcombine.high %v6519_v21, %v6523_v1  ;;  %v6383_v11 = vld [vmem:[#allocation7 + $0x890] sm:$0xff] }
 0x597   :  { %v18833_v23 = vadd.f32 %v12802_v10, %v12760_v29  ;;  %13144 = vmatprep.mubr.bf16.mxu1 %v18654_v12  ;;  %v18836_v51 = vpop.f32.mrf.mxu1  ;;  %13071 = vmatprep.subr.bf16.mxu0 %v16696_v5  ;;  %v16680_v29 = vcombine.high %v6399_v37, %v6403_v52  ;;  %v16808_v5 = vcombine.high %v6527_v55, %v6531_v58  ;;  %v6515_v25 = vld [vmem:[#allocation7 + $0xcb0] sm:$0xff] }
 0x598   :  { %19100 = vst [vmem:[#allocation30_spill] sm:$0xff] %v18836_v51  ;;  %v12763_v6 = vpop.f32.mrf.mxu0  ;;  %13114 = vmatprep.subr.bf16.mxu1 %v16824_v33  ;;  %v16679_v33 = vcombine.low %v6399_v37, %v6403_v52  ;;  %v6379_v37 = vld [vmem:[#allocation7 + $0x870] sm:$0xff] }
 0x599   :  { %v12764_v47 = vadd.f32 %v12763_v6, %v18821_v53  ;;  %13072 = vmatpush1.bf16.msra.mxu0 %v16695_v42  ;;  %v12806_v17 = vpop.f32.mrf.mxu1  ;;  %v16807_v53 = vcombine.low %v6527_v55, %v6531_v58  ;;  %v16672_v42 = vcombine.high %v6391_v27, %v6395_v20  ;;  %v6503_v52 = vld [vmem:[#allocation7 + $0xc50] sm:$0xff]  ;;  %v16791_v58 = vcombine.low %v6511_v19, %v6515_v25 }
 0x59a   :  { %13115 = vmatpush1.bf16.msra.mxu1 %v16823_v26  ;;  %13073 = vmatprep.subr.bf16.mxu0 %v16688_v32  ;;  %v6387_v26 = vld [vmem:[#allocation7 + $0x8b0] sm:$0xff]  ;;  %v16671_v32 = vcombine.low %v6391_v27, %v6395_v20 }
 0x59b   :  { %v18839_v10 = vadd.f32 %v12806_v17, %v12764_v47  ;;  %13116 = vmatprep.subr.bf16.mxu1 %v16816_v15  ;;  %v16799_v15 = vcombine.low %v6519_v21, %v6523_v1  ;;  %v16664_v6 = vcombine.high %v6383_v11, %v6387_v26  ;;  %v16792_v47 = vcombine.high %v6511_v19, %v6515_v25  ;;  %v6507_v17 = vld [vmem:[#allocation7 + $0xc70] sm:$0xff] }
 0x59c   :  { %v16663_v55 = vcombine.low %v6383_v11, %v6387_v26  ;;  %v6371_v27 = vld [vmem:[#allocation7 + $0x830] sm:$0xff]  ;;  %v16783_v1 = vcombine.low %v6503_v52, %v6507_v17 }
 0x59d   :  { %13074 = vmatpush1.bf16.msra.mxu0 %v16687_v0  ;;  %v6375_v0 = vld [vmem:[#allocation7 + $0x850] sm:$0xff] }
 0x59e   :  { %13117 = vmatpush1.bf16.msra.mxu1 %v16815_v36  ;;  %13075 = vmatprep.subr.bf16.mxu0 %v16680_v29  ;;  %v16656_v36 = vcombine.high %v6375_v0, %v6379_v37  ;;  %v16784_v29 = vcombine.high %v6503_v52, %v6507_v17  ;;  %v6495_v20 = vld [vmem:[#allocation7 + $0xc10] sm:$0xff]  ;;  %v16655_v21 = vcombine.low %v6375_v0, %v6379_v37 }
 0x59f   :  { %13118 = vmatprep.subr.bf16.mxu1 %v16808_v5  ;;  %v6367_v5 = vld [vmem:[#allocation7 + $0x810] sm:$0xff] }
 0x5a0   :  { %v6491_v11 = vld [vmem:[#allocation7 + $0xbf0] sm:$0xff]  ;;  %v16647_v19 = vcombine.low %v6367_v5, %v6371_v27 }
 0x5a1   :  { %13076 = vmatpush1.bf16.msra.mxu0 %v16679_v33  ;;  %v6499_v33 = vld [vmem:[#allocation7 + $0xc30] sm:$0xff] }
 0x5a2   :  { %13119 = vmatpush1.bf16.msra.mxu1 %v16807_v53  ;;  %13077 = vmatprep.subr.bf16.mxu0 %v16672_v42  ;;  %v16648_v53 = vcombine.high %v6367_v5, %v6371_v27  ;;  %v16776_v42 = vcombine.high %v6495_v20, %v6499_v33  ;;  %v6615_v26 = vld [vmem:[#allocation7 + $0xfd0] sm:$0xff]  ;;  %v16775_v25 = vcombine.low %v6495_v20, %v6499_v33 }
 0x5a3   :  { %13120 = vmatprep.subr.bf16.mxu1 %v16800_v3  ;;  %v6487_v3 = vld [vmem:[#allocation7 + $0xbd0] sm:$0xff] }
 0x5a4   :  { %v6483_v0 = vld [vmem:[#allocation7 + $0xbb0] sm:$0xff]  ;;  %v16767_v52 = vcombine.low %v6487_v3, %v6491_v11 }
 0x5a5   :  { %13078 = vmatpush1.bf16.msra.mxu0 %v16671_v32  ;;  %v6619_v32 = vld [vmem:[#allocation7 + $0xff0] sm:$0xff] }
 0x5a6   :  { %13121 = vmatpush1.bf16.msra.mxu1 %v16799_v15  ;;  %13079 = vmatprep.subr.bf16.mxu0 %v16664_v6  ;;  %v16768_v15 = vcombine.high %v6487_v3, %v6491_v11  ;;  %v16896_v6 = vcombine.high %v6615_v26, %v6619_v32  ;;  %v6607_v37 = vld [vmem:[#allocation7 + $0xf90] sm:$0xff]  ;;  %v16895_v17 = vcombine.low %v6615_v26, %v6619_v32 }
 0x5a7   :  { %13122 = vmatprep.subr.bf16.mxu1 %v16792_v47  ;;  %v6479_v47 = vld [vmem:[#allocation7 + $0xb90] sm:$0xff] }
 0x5a8   :  { %v6475_v5 = vld [vmem:[#allocation7 + $0xb70] sm:$0xff]  ;;  %v16759_v20 = vcombine.low %v6479_v47, %v6483_v0 }
 0x5a9   :  { %13080 = vmatpush1.bf16.msra.mxu0 %v16663_v55  ;;  %v6611_v55 = vld [vmem:[#allocation7 + $0xfb0] sm:$0xff] }
 0x5aa   :  { %13123 = vmatpush1.bf16.msra.mxu1 %v16791_v58  ;;  %13081 = vmatprep.subr.bf16.mxu0 %v16656_v36  ;;  %v16760_v58 = vcombine.high %v6479_v47, %v6483_v0  ;;  %v16888_v36 = vcombine.high %v6607_v37, %v6611_v55  ;;  %v6599_v27 = vld [vmem:[#allocation7 + $0xf50] sm:$0xff]  ;;  %v16887_v33 = vcombine.low %v6607_v37, %v6611_v55 }
 0x5ab   :  { %13124 = vmatprep.subr.bf16.mxu1 %v16784_v29  ;;  %v6471_v29 = vld [vmem:[#allocation7 + $0xb50] sm:$0xff] }
 0x5ac   :  { %v6467_v3 = vld [vmem:[#allocation7 + $0xb30] sm:$0xff]  ;;  %v16751_v26 = vcombine.low %v6471_v29, %v6475_v5 }
 0x5ad   :  { %13082 = vmatpush1.bf16.msra.mxu0 %v16655_v21  ;;  %v6603_v21 = vld [vmem:[#allocation7 + $0xf70] sm:$0xff] }
 0x5ae   :  { %13125 = vmatpush1.bf16.msra.mxu1 %v16783_v1  ;;  %13083 = vmatprep.subr.bf16.mxu0 %v16648_v53  ;;  %v16752_v1 = vcombine.high %v6471_v29, %v6475_v5  ;;  %v16880_v53 = vcombine.high %v6599_v27, %v6603_v21  ;;  %v6591_v11 = vld [vmem:[#allocation7 + $0xf10] sm:$0xff]  ;;  %v16879_v32 = vcombine.low %v6599_v27, %v6603_v21 }
 0x5af   :  { %13126 = vmatprep.subr.bf16.mxu1 %v16776_v42  ;;  %v6463_v42 = vld [vmem:[#allocation7 + $0xb10] sm:$0xff] }
 0x5b0   :  { %v6459_v47 = vld [vmem:[#allocation7 + $0xaf0] sm:$0xff]  ;;  %v16743_v37 = vcombine.low %v6463_v42, %v6467_v3 }
 0x5b1   :  { %13084 = vmatpush1.bf16.msra.mxu0 %v16647_v19  ;;  %v6595_v19 = vld [vmem:[#allocation7 + $0xf30] sm:$0xff] }
 0x5b2   :  { %13127 = vmatpush1.bf16.msra.mxu1 %v16775_v25  ;;  %13085 = vmatprep.subr.bf16.mxu0 %v16768_v15  ;;  %v16744_v25 = vcombine.high %v6463_v42, %v6467_v3  ;;  %v16872_v15 = vcombine.high %v6591_v11, %v6595_v19  ;;  %v6583_v0 = vld [vmem:[#allocation7 + $0xed0] sm:$0xff]  ;;  %v16871_v55 = vcombine.low %v6591_v11, %v6595_v19 }
 0x5b3   :  { %13128 = vmatprep.subr.bf16.mxu1 %v16896_v6  ;;  %v6455_v6 = vld [vmem:[#allocation7 + $0xad0] sm:$0xff] }
 0x5b4   :  { %v6451_v29 = vld [vmem:[#allocation7 + $0xab0] sm:$0xff]  ;;  %v16735_v27 = vcombine.low %v6455_v6, %v6459_v47 }
 0x5b5   :  { %13086 = vmatpush2.bf16.msra.mxu0 %v16767_v52  ;;  %v6587_v52 = vld [vmem:[#allocation7 + $0xef0] sm:$0xff] }
 0x5b6   :  { %13129 = vmatpush2.bf16.msra.mxu1 %v16895_v17  ;;  %13087 = vmatprep.subr.bf16.mxu0 %v16760_v58  ;;  %v16736_v17 = vcombine.high %v6455_v6, %v6459_v47  ;;  %v16864_v58 = vcombine.high %v6583_v0, %v6587_v52  ;;  %v6575_v5 = vld [vmem:[#allocation7 + $0xe90] sm:$0xff]  ;;  %v16863_v21 = vcombine.low %v6583_v0, %v6587_v52 }
 0x5b7   :  { %13130 = vmatprep.subr.bf16.mxu1 %v16888_v36  ;;  %v6447_v36 = vld [vmem:[#allocation7 + $0xa90] sm:$0xff] }
 0x5b8   :  { %v6443_v42 = vld [vmem:[#allocation7 + $0xa70] sm:$0xff]  ;;  %v16727_v11 = vcombine.low %v6447_v36, %v6451_v29 }
 0x5b9   :  { %13088 = vmatpush2.bf16.msra.mxu0 %v16759_v20  ;;  %v6579_v20 = vld [vmem:[#allocation7 + $0xeb0] sm:$0xff] }
 0x5ba   :  { %13131 = vmatpush2.bf16.msra.mxu1 %v16887_v33  ;;  %13089 = vmatprep.subr.bf16.mxu0 %v16752_v1  ;;  %v16728_v33 = vcombine.high %v6447_v36, %v6451_v29  ;;  %v16856_v1 = vcombine.high %v6575_v5, %v6579_v20  ;;  %v6567_v3 = vld [vmem:[#allocation7 + $0xe50] sm:$0xff]  ;;  %v16855_v19 = vcombine.low %v6575_v5, %v6579_v20 }
 0x5bb   :  { %13132 = vmatprep.subr.bf16.mxu1 %v16880_v53  ;;  %v6439_v53 = vld [vmem:[#allocation7 + $0xa50] sm:$0xff] }
 0x5bc   :  { %v6435_v6 = vld [vmem:[#allocation7 + $0xa30] sm:$0xff]  ;;  %v16719_v0 = vcombine.low %v6439_v53, %v6443_v42 }
 0x5bd   :  { %13090 = vmatpush2.bf16.msra.mxu0 %v16751_v26  ;;  %v6571_v26 = vld [vmem:[#allocation7 + $0xe70] sm:$0xff] }
 0x5be   :  { %13133 = vmatpush2.bf16.msra.mxu1 %v16879_v32  ;;  %13091 = vmatprep.subr.bf16.mxu0 %v16744_v25  ;;  %v16720_v32 = vcombine.high %v6439_v53, %v6443_v42  ;;  %v16848_v25 = vcombine.high %v6567_v3, %v6571_v26  ;;  %v6559_v47 = vld [vmem:[#allocation7 + $0xe10] sm:$0xff]  ;;  %v16847_v52 = vcombine.low %v6567_v3, %v6571_v26 }
 0x5bf   :  { %13134 = vmatprep.subr.bf16.mxu1 %v16872_v15  ;;  %v6431_v15 = vld [vmem:[#allocation7 + $0xa10] sm:$0xff] }
 0x5c0   :  { %v6683_v36 = vld [vmem:[#allocation7 + $0x11f0] sm:$0xff]  ;;  %v16711_v5 = vcombine.low %v6431_v15, %v6435_v6 }
 0x5c1   :  { %13092 = vmatpush2.bf16.msra.mxu0 %v16743_v37  ;;  %v6563_v37 = vld [vmem:[#allocation7 + $0xe30] sm:$0xff] }
 0x5c2   :  { %13135 = vmatpush2.bf16.msra.mxu1 %v16871_v55  ;;  %13093 = vmatprep.subr.bf16.mxu0 %v16736_v17  ;;  %v16712_v55 = vcombine.high %v6431_v15, %v6435_v6  ;;  %v16840_v17 = vcombine.high %v6559_v47, %v6563_v37  ;;  %v6807_v29 = vld [vmem:[#allocation7 + $0x15d0] sm:$0xff]  ;;  %v16839_v20 = vcombine.low %v6559_v47, %v6563_v37 }
 0x5c3   :  { %13136 = vmatprep.subr.bf16.mxu1 %v16864_v58  ;;  %v6679_v58 = vld [vmem:[#allocation7 + $0x11d0] sm:$0xff] }
 0x5c4   :  { %v6675_v53 = vld [vmem:[#allocation7 + $0x11b0] sm:$0xff]  ;;  %v16959_v42 = vcombine.low %v6679_v58, %v6683_v36 }
 0x5c5   :  { %13094 = vmatpush2.bf16.msra.mxu0 %v16735_v27  ;;  %v6811_v27 = vld [vmem:[#allocation7 + $0x15f0] sm:$0xff] }
 0x5c6   :  { %13137 = vmatpush2.bf16.msra.mxu1 %v16863_v21  ;;  %13095 = vmatprep.subr.bf16.mxu0 %v16728_v33  ;;  %v16960_v21 = vcombine.high %v6679_v58, %v6683_v36  ;;  %v17088_v33 = vcombine.high %v6807_v29, %v6811_v27  ;;  %v6799_v3 = vld [vmem:[#allocation7 + $0x1590] sm:$0xff] }
 0x5c7   :  { %13138 = vmatprep.subr.bf16.mxu1 %v16856_v1  ;;  %v6671_v1 = vld [vmem:[#allocation7 + $0x1190] sm:$0xff] }
 0x5c8   :  { %v6803_v26 = vld [vmem:[#allocation7 + $0x15b0] sm:$0xff]  ;;  %v16951_v58 = vcombine.low %v6671_v1, %v6675_v53 }
 0x5c9   :  { %13096 = vmatpush2.bf16.msra.mxu0 %v16727_v11  ;;  %v18841_v11 = vpop.f32.mrf.mxu0  ;;  %v6663_v15 = vld [vmem:[#allocation7 + $0x1150] sm:$0xff]  ;;  %v17080_v37 = vcombine.high %v6799_v3, %v6803_v26 }
 0x5ca   :  { %13139 = vmatpush2.bf16.msra.mxu1 %v16855_v19  ;;  %13097 = vmatprep.subr.bf16.mxu0 %v16720_v32  ;;  %v17087_v19 = vcombine.low %v6807_v29, %v6811_v27  ;;  %v18843_v32 = vpop.f32.mrf.mxu1  ;;  %v6667_v6 = vld [vmem:[#allocation7 + $0x1170] sm:$0xff]  ;;  %v17079_v29 = vcombine.low %v6799_v3, %v6803_v26 }
 0x5cb   :  { %13140 = vmatprep.subr.bf16.mxu1 %v16848_v25  ;;  %v16952_v25 = vcombine.high %v6671_v1, %v6675_v53  ;;  %v16944_v27 = vcombine.high %v6663_v15, %v6667_v6  ;;  %v6783_v1 = vld [vmem:[#allocation7 + $0x1510] sm:$0xff] }
 0x5cc   :  { %v6787_v53 = vld [vmem:[#allocation7 + $0x1530] sm:$0xff] }
 0x5cd   :  { %13098 = vmatpush2.bf16.msra.mxu0 %v16719_v0  ;;  %v6791_v0 = vld [vmem:[#allocation7 + $0x1550] sm:$0xff] }
 0x5ce   :  { %13141 = vmatpush2.bf16.msra.mxu1 %v16847_v52  ;;  %13099 = vmatprep.subr.bf16.mxu0 %v16712_v55  ;;  %v6795_v52 = vld [vmem:[#allocation7 + $0x1570] sm:$0xff] }
 0x5cf   :  { %13142 = vmatprep.subr.bf16.mxu1 %v16840_v17  ;;  %v17071_v26 = vcombine.low %v6791_v0, %v6795_v52 }
 0x5d1   :  { %13100 = vmatpush2.bf16.msra.mxu0 %v16711_v5 }
 0x5d2   :  { %13143 = vmatpush2.bf16.msra.mxu1 %v16839_v20  ;;  %13155 = vmatprep.subr.bf16.mxu0 %v16960_v21  ;;  %v6655_v21 = vld [vmem:[#allocation7 + $0x1110] sm:$0xff] }
 0x5d3   :  { %13198 = vmatprep.subr.bf16.mxu1 %v17088_v33  ;;  %v6659_v33 = vld [vmem:[#allocation7 + $0x1130] sm:$0xff] }
 0x5d4   :  { %v12845_v47 = vpop.f32.mrf.mxu0  ;;  %13102 = vmatmul.mubr.bf16.vlgmr.msra.gmra.mxu0 %v19088_v22 }
 0x5d5   :  { %v12846_v55 = vadd.f32 %v12845_v47, %v18833_v23  ;;  %v12888_v17 = vpop.f32.mrf.mxu1  ;;  %13145 = vmatmul.mubr.bf16.vlgmr.msra.gmra.mxu1 %v19089_v46  ;;  %13156 = vmatpush1.bf16.msra.mxu0 %v16959_v42  ;;  %v17072_v23 = vcombine.high %v6791_v0, %v6795_v52  ;;  %v6767_v0 = vld [vmem:[#allocation7 + $0x1490] sm:$0xff] }
 0x5d6   :  { %13187 = vmatprep.mubr.bf16.mxu0 %v18687_v24  ;;  %13199 = vmatpush1.bf16.msra.mxu1 %v17087_v19  ;;  %v18849_v36 = vpop.f32.mrf.mxu0  ;;  %v16943_v19 = vcombine.low %v6663_v15, %v6667_v6  ;;  %v6639_v6 = vld [vmem:[#allocation7 + $0x1090] sm:$0xff] }
 0x5d7   :  { %19101 = vst [vmem:[#allocation31_spill] sm:$0xff] %v18849_v36  ;;  %v18851_v5 = vadd.f32 %v12888_v17, %v12846_v55  ;;  %13230 = vmatprep.mubr.bf16.mxu1 %v18692_v63  ;;  %v18854_v20 = vpop.f32.mrf.mxu1  ;;  %13157 = vmatprep.subr.bf16.mxu0 %v16952_v25  ;;  %v16936_v55 = vcombine.high %v6655_v21, %v6659_v33  ;;  %v6779_v36 = vld [vmem:[#allocation7 + $0x14f0] sm:$0xff] }
 0x5d8   :  { %19102 = vst [vmem:[#allocation32_spill] sm:$0xff] %v18854_v20  ;;  %v12849_v47 = vpop.f32.mrf.mxu0  ;;  %13200 = vmatprep.subr.bf16.mxu1 %v17080_v37  ;;  %v17064_v25 = vcombine.high %v6783_v1, %v6787_v53  ;;  %v6647_v20 = vld [vmem:[#allocation7 + $0x10d0] sm:$0xff]  ;;  %v16935_v37 = vcombine.low %v6655_v21, %v6659_v33  ;;  %v17056_v15 = vcombine.high %v6775_v39, %v6779_v36 }
 0x5d9   :  { %v12850_v42 = vadd.f32 %v12849_v47, %v18839_v10  ;;  %13158 = vmatpush1.bf16.msra.mxu0 %v16951_v58  ;;  %v12892_v3 = vpop.f32.mrf.mxu1  ;;  %v17063_v10 = vcombine.low %v6783_v1, %v6787_v53  ;;  %v16928_v58 = vcombine.high %v6647_v20, %v6651_v38  ;;  %v6771_v52 = vld [vmem:[#allocation7 + $0x14b0] sm:$0xff] }
 0x5da   :  { %13201 = vmatpush1.bf16.msra.mxu1 %v17079_v29  ;;  %13159 = vmatprep.subr.bf16.mxu0 %v16944_v27  ;;  %v6643_v29 = vld [vmem:[#allocation7 + $0x10b0] sm:$0xff]  ;;  %v16927_v27 = vcombine.low %v6647_v20, %v6651_v38  ;;  %v17047_v53 = vcombine.low %v6767_v0, %v6771_v52 }
 0x5db   :  { %v18857_v17 = vadd.f32 %v12892_v3, %v12850_v42  ;;  %13202 = vmatprep.subr.bf16.mxu1 %v17072_v23  ;;  %v17055_v23 = vcombine.low %v6775_v39, %v6779_v36  ;;  %v16920_v47 = vcombine.high %v6639_v6, %v6643_v29  ;;  %v17048_v42 = vcombine.high %v6767_v0, %v6771_v52  ;;  %v6635_v21 = vld [vmem:[#allocation7 + $0x1070] sm:$0xff] }
 0x5dc   :  { %v6759_v33 = vld [vmem:[#allocation7 + $0x1450] sm:$0xff]  ;;  %v16919_v1 = vcombine.low %v6639_v6, %v6643_v29 }
 0x5dd   :  { %13160 = vmatpush1.bf16.msra.mxu0 %v16943_v19  ;;  %v6631_v19 = vld [vmem:[#allocation7 + $0x1050] sm:$0xff] }
 0x5de   :  { %13203 = vmatpush1.bf16.msra.mxu1 %v17071_v26  ;;  %13161 = vmatprep.subr.bf16.mxu0 %v16936_v55  ;;  %v6763_v3 = vld [vmem:[#allocation7 + $0x1470] sm:$0xff]  ;;  %v16912_v26 = vcombine.high %v6631_v19, %v6635_v21  ;;  %v16911_v39 = vcombine.low %v6631_v19, %v6635_v21 }
 0x5df   :  { %13204 = vmatprep.subr.bf16.mxu1 %v17064_v25  ;;  %v17040_v55 = vcombine.high %v6759_v33, %v6763_v3  ;;  %v6623_v25 = vld [vmem:[#allocation7 + $0x1010] sm:$0xff]  ;;  %v17039_v36 = vcombine.low %v6759_v33, %v6763_v3 }
 0x5e0   :  { %v6627_v38 = vld [vmem:[#allocation7 + $0x1030] sm:$0xff] }
 0x5e1   :  { %13162 = vmatpush1.bf16.msra.mxu0 %v16935_v37  ;;  %v6751_v20 = vld [vmem:[#allocation7 + $0x1410] sm:$0xff]  ;;  %v16903_v0 = vcombine.low %v6623_v25, %v6627_v38 }
 0x5e2   :  { %13205 = vmatpush1.bf16.msra.mxu1 %v17063_v10  ;;  %13163 = vmatprep.subr.bf16.mxu0 %v16928_v58  ;;  %v6755_v37 = vld [vmem:[#allocation7 + $0x1430] sm:$0xff]  ;;  %v16904_v10 = vcombine.high %v6623_v25, %v6627_v38 }
 0x5e3   :  { %13206 = vmatprep.subr.bf16.mxu1 %v17056_v15  ;;  %v17032_v58 = vcombine.high %v6751_v20, %v6755_v37  ;;  %v6743_v15 = vld [vmem:[#allocation7 + $0x13d0] sm:$0xff]  ;;  %v17031_v52 = vcombine.low %v6751_v20, %v6755_v37 }
 0x5e4   :  { %v6747_v6 = vld [vmem:[#allocation7 + $0x13f0] sm:$0xff] }
 0x5e5   :  { %13164 = vmatpush1.bf16.msra.mxu0 %v16927_v27  ;;  %v6871_v29 = vld [vmem:[#allocation7 + $0x17d0] sm:$0xff]  ;;  %v17023_v33 = vcombine.low %v6743_v15, %v6747_v6 }
 0x5e6   :  { %13207 = vmatpush1.bf16.msra.mxu1 %v17055_v23  ;;  %13165 = vmatprep.subr.bf16.mxu0 %v16920_v47  ;;  %v6875_v27 = vld [vmem:[#allocation7 + $0x17f0] sm:$0xff]  ;;  %v17024_v23 = vcombine.high %v6743_v15, %v6747_v6 }
 0x5e7   :  { %13208 = vmatprep.subr.bf16.mxu1 %v17048_v42  ;;  %v17152_v47 = vcombine.high %v6871_v29, %v6875_v27  ;;  %v6735_v42 = vld [vmem:[#allocation7 + $0x1390] sm:$0xff]  ;;  %v17151_v3 = vcombine.low %v6871_v29, %v6875_v27 }
 0x5e8   :  { %v6739_v19 = vld [vmem:[#allocation7 + $0x13b0] sm:$0xff] }
 0x5e9   :  { %13166 = vmatpush1.bf16.msra.mxu0 %v16919_v1  ;;  %v6863_v21 = vld [vmem:[#allocation7 + $0x1790] sm:$0xff]  ;;  %v17015_v20 = vcombine.low %v6735_v42, %v6739_v19 }
 0x5ea   :  { %13209 = vmatpush1.bf16.msra.mxu1 %v17047_v53  ;;  %13167 = vmatprep.subr.bf16.mxu0 %v16912_v26  ;;  %v6867_v1 = vld [vmem:[#allocation7 + $0x17b0] sm:$0xff]  ;;  %v17016_v53 = vcombine.high %v6735_v42, %v6739_v19 }
 0x5eb   :  { %13210 = vmatprep.subr.bf16.mxu1 %v17040_v55  ;;  %v17144_v26 = vcombine.high %v6863_v21, %v6867_v1  ;;  %v6727_v55 = vld [vmem:[#allocation7 + $0x1350] sm:$0xff]  ;;  %v17143_v37 = vcombine.low %v6863_v21, %v6867_v1 }
 0x5ec   :  { %v6731_v25 = vld [vmem:[#allocation7 + $0x1370] sm:$0xff] }
 0x5ed   :  { %13168 = vmatpush1.bf16.msra.mxu0 %v16911_v39  ;;  %v6855_v38 = vld [vmem:[#allocation7 + $0x1750] sm:$0xff]  ;;  %v17007_v29 = vcombine.low %v6727_v55, %v6731_v25 }
 0x5ee   :  { %13211 = vmatpush1.bf16.msra.mxu1 %v17039_v36  ;;  %13169 = vmatprep.subr.bf16.mxu0 %v16904_v10  ;;  %v6859_v39 = vld [vmem:[#allocation7 + $0x1770] sm:$0xff]  ;;  %v17008_v36 = vcombine.high %v6727_v55, %v6731_v25 }
 0x5ef   :  { %13212 = vmatprep.subr.bf16.mxu1 %v17032_v58  ;;  %v17136_v10 = vcombine.high %v6855_v38, %v6859_v39  ;;  %v6719_v58 = vld [vmem:[#allocation7 + $0x1310] sm:$0xff]  ;;  %v17135_v27 = vcombine.low %v6855_v38, %v6859_v39 }
 0x5f0   :  { %v6723_v15 = vld [vmem:[#allocation7 + $0x1330] sm:$0xff] }
 0x5f1   :  { %13170 = vmatpush1.bf16.msra.mxu0 %v16903_v0  ;;  %v6847_v6 = vld [vmem:[#allocation7 + $0x1710] sm:$0xff]  ;;  %v16999_v21 = vcombine.low %v6719_v58, %v6723_v15 }
 0x5f2   :  { %13213 = vmatpush1.bf16.msra.mxu1 %v17031_v52  ;;  %13171 = vmatprep.subr.bf16.mxu0 %v17024_v23  ;;  %v6851_v0 = vld [vmem:[#allocation7 + $0x1730] sm:$0xff]  ;;  %v17000_v52 = vcombine.high %v6719_v58, %v6723_v15 }
 0x5f3   :  { %13214 = vmatprep.subr.bf16.mxu1 %v17152_v47  ;;  %v17128_v23 = vcombine.high %v6847_v6, %v6851_v0  ;;  %v6711_v47 = vld [vmem:[#allocation7 + $0x12d0] sm:$0xff]  ;;  %v17127_v1 = vcombine.low %v6847_v6, %v6851_v0 }
 0x5f4   :  { %v6715_v42 = vld [vmem:[#allocation7 + $0x12f0] sm:$0xff] }
 0x5f5   :  { %13172 = vmatpush2.bf16.msra.mxu0 %v17023_v33  ;;  %v6839_v19 = vld [vmem:[#allocation7 + $0x16d0] sm:$0xff]  ;;  %v16991_v38 = vcombine.low %v6711_v47, %v6715_v42 }
 0x5f6   :  { %13215 = vmatpush2.bf16.msra.mxu1 %v17151_v3  ;;  %13173 = vmatprep.subr.bf16.mxu0 %v17016_v53  ;;  %v6843_v33 = vld [vmem:[#allocation7 + $0x16f0] sm:$0xff]  ;;  %v16992_v3 = vcombine.high %v6711_v47, %v6715_v42 }
 0x5f7   :  { %13216 = vmatprep.subr.bf16.mxu1 %v17144_v26  ;;  %v17120_v53 = vcombine.high %v6839_v19, %v6843_v33  ;;  %v6703_v26 = vld [vmem:[#allocation7 + $0x1290] sm:$0xff]  ;;  %v17119_v39 = vcombine.low %v6839_v19, %v6843_v33 }
 0x5f8   :  { %v6707_v55 = vld [vmem:[#allocation7 + $0x12b0] sm:$0xff] }
 0x5f9   :  { %13174 = vmatpush2.bf16.msra.mxu0 %v17015_v20  ;;  %v6831_v25 = vld [vmem:[#allocation7 + $0x1690] sm:$0xff]  ;;  %v16983_v6 = vcombine.low %v6703_v26, %v6707_v55 }
 0x5fa   :  { %13217 = vmatpush2.bf16.msra.mxu1 %v17143_v37  ;;  %13175 = vmatprep.subr.bf16.mxu0 %v17008_v36  ;;  %v6835_v20 = vld [vmem:[#allocation7 + $0x16b0] sm:$0xff]  ;;  %v16984_v37 = vcombine.high %v6703_v26, %v6707_v55 }
 0x5fb   :  { %13218 = vmatprep.subr.bf16.mxu1 %v17136_v10  ;;  %v17112_v36 = vcombine.high %v6831_v25, %v6835_v20  ;;  %v6695_v10 = vld [vmem:[#allocation7 + $0x1250] sm:$0xff]  ;;  %v17111_v0 = vcombine.low %v6831_v25, %v6835_v20 }
 0x5fc   :  { %v6699_v58 = vld [vmem:[#allocation7 + $0x1270] sm:$0xff] }
 0x5fd   :  { %13176 = vmatpush2.bf16.msra.mxu0 %v17007_v29  ;;  %v6823_v15 = vld [vmem:[#allocation7 + $0x1650] sm:$0xff]  ;;  %v16975_v19 = vcombine.low %v6695_v10, %v6699_v58 }
 0x5fe   :  { %13219 = vmatpush2.bf16.msra.mxu1 %v17135_v27  ;;  %13177 = vmatprep.subr.bf16.mxu0 %v17000_v52  ;;  %v6827_v29 = vld [vmem:[#allocation7 + $0x1670] sm:$0xff]  ;;  %v16976_v27 = vcombine.high %v6695_v10, %v6699_v58 }
 0x5ff   :  { %13220 = vmatprep.subr.bf16.mxu1 %v17128_v23  ;;  %v17104_v52 = vcombine.high %v6823_v15, %v6827_v29  ;;  %v6687_v23 = vld [vmem:[#allocation7 + $0x1210] sm:$0xff]  ;;  %v17103_v33 = vcombine.low %v6823_v15, %v6827_v29 }
 0x600   :  { %v6691_v47 = vld [vmem:[#allocation7 + $0x1230] sm:$0xff] }
 0x601   :  { %13178 = vmatpush2.bf16.msra.mxu0 %v16999_v21  ;;  %v6815_v42 = vld [vmem:[#allocation7 + $0x1610] sm:$0xff]  ;;  %v16967_v25 = vcombine.low %v6687_v23, %v6691_v47 }
 0x602   :  { %13221 = vmatpush2.bf16.msra.mxu1 %v17127_v1  ;;  %13179 = vmatprep.subr.bf16.mxu0 %v16992_v3  ;;  %v6819_v21 = vld [vmem:[#allocation7 + $0x1630] sm:$0xff]  ;;  %v16968_v1 = vcombine.high %v6687_v23, %v6691_v47 }
 0x603   :  { %13222 = vmatprep.subr.bf16.mxu1 %v17120_v53  ;;  %v17096_v3 = vcombine.high %v6815_v42, %v6819_v21  ;;  %v6935_v53 = vld [vmem:[#allocation7 + $0x19d0] sm:$0xff]  ;;  %v17095_v20 = vcombine.low %v6815_v42, %v6819_v21 }
 0x604   :  { %v6939_v26 = vld [vmem:[#allocation7 + $0x19f0] sm:$0xff] }
 0x605   :  { %13180 = vmatpush2.bf16.msra.mxu0 %v16991_v38  ;;  %v7063_v55 = vld [vmem:[#allocation7 + $0x1dd0] sm:$0xff]  ;;  %v17215_v58 = vcombine.low %v6935_v53, %v6939_v26 }
 0x606   :  { %13223 = vmatpush2.bf16.msra.mxu1 %v17119_v39  ;;  %13181 = vmatprep.subr.bf16.mxu0 %v16984_v37  ;;  %v7067_v38 = vld [vmem:[#allocation7 + $0x1df0] sm:$0xff]  ;;  %v17216_v39 = vcombine.high %v6935_v53, %v6939_v26 }
 0x607   :  { %13224 = vmatprep.subr.bf16.mxu1 %v17112_v36  ;;  %v17344_v37 = vcombine.high %v7063_v55, %v7067_v38  ;;  %v6927_v36 = vld [vmem:[#allocation7 + $0x1990] sm:$0xff] }
 0x608   :  { %v6931_v10 = vld [vmem:[#allocation7 + $0x19b0] sm:$0xff] }
 0x609   :  { %13182 = vmatpush2.bf16.msra.mxu0 %v16983_v6  ;;  %v7055_v15 = vld [vmem:[#allocation7 + $0x1d90] sm:$0xff]  ;;  %v18859_v6 = vpop.f32.mrf.mxu0  ;;  %v17207_v53 = vcombine.low %v6927_v36, %v6931_v10 }
 0x60a   :  { %13225 = vmatpush2.bf16.msra.mxu1 %v17111_v0  ;;  %13183 = vmatprep.subr.bf16.mxu0 %v16976_v27  ;;  %v7059_v29 = vld [vmem:[#allocation7 + $0x1db0] sm:$0xff]  ;;  %19103 = vst [vmem:[#allocation33_spill] sm:$0xff] %v18859_v6  ;;  %v17343_v0 = vcombine.low %v7063_v55, %v7067_v38  ;;  %v18861_v27 = vpop.f32.mrf.mxu1 }
 0x60b   :  { %13226 = vmatprep.subr.bf16.mxu1 %v17104_v52  ;;  %19104 = vst [vmem:[#allocation34_spill] sm:$0xff] %v18861_v27  ;;  %v17208_v52 = vcombine.high %v6927_v36, %v6931_v10  ;;  %v6919_v23 = vld [vmem:[#allocation7 + $0x1950] sm:$0xff]  ;;  %v17336_v21 = vcombine.high %v7055_v15, %v7059_v29  ;;  %v17335_v55 = vcombine.low %v7055_v15, %v7059_v29 }
 0x60c   :  { %v6923_v47 = vld [vmem:[#allocation7 + $0x1970] sm:$0xff] }
 0x60d   :  { %13184 = vmatpush2.bf16.msra.mxu0 %v16975_v19  ;;  %v7047_v19 = vld [vmem:[#allocation7 + $0x1d50] sm:$0xff]  ;;  %v17200_v38 = vcombine.high %v6919_v23, %v6923_v47 }
 0x60e   :  { %13227 = vmatpush2.bf16.msra.mxu1 %v17103_v33  ;;  %13185 = vmatprep.subr.bf16.mxu0 %v16968_v1  ;;  %v7051_v33 = vld [vmem:[#allocation7 + $0x1d70] sm:$0xff] }
 0x60f   :  { %13228 = vmatprep.subr.bf16.mxu1 %v17096_v3  ;;  %v7043_v36 = vld [vmem:[#allocation7 + $0x1d30] sm:$0xff]  ;;  %v17327_v15 = vcombine.low %v7047_v19, %v7051_v33 }
 0x610   :  { %v7031_v27 = vld [vmem:[#allocation7 + $0x1cd0] sm:$0xff] }
 0x611   :  { %13186 = vmatpush2.bf16.msra.mxu0 %v16967_v25 }
 0x612   :  { %13229 = vmatpush2.bf16.msra.mxu1 %v17095_v20  ;;  %13241 = vmatprep.subr.bf16.mxu0 %v17216_v39  ;;  %v17328_v39 = vcombine.high %v7047_v19, %v7051_v33  ;;  %v17312_v19 = vcombine.high %v7031_v27, %v7035_v9  ;;  %v6895_v33 = vld [vmem:[#allocation7 + $0x1890] sm:$0xff] }
 0x613   :  { %13284 = vmatprep.subr.bf16.mxu1 %v17344_v37  ;;  %v6915_v37 = vld [vmem:[#allocation7 + $0x1930] sm:$0xff] }
 0x614   :  { %v12931_v42 = vpop.f32.mrf.mxu0  ;;  %13188 = vmatmul.mubr.bf16.vlgmr.msra.gmra.mxu0 %v18570_v50 }
 0x615   :  { %v12932_v1 = vadd.f32 %v12931_v42, %v18851_v5  ;;  %v12974_v3 = vpop.f32.mrf.mxu1  ;;  %13231 = vmatmul.mubr.bf16.vlgmr.msra.gmra.mxu1 %v18623_v62  ;;  %13242 = vmatpush1.bf16.msra.mxu0 %v17215_v58  ;;  %v6911_v5 = vld [vmem:[#allocation7 + $0x1910] sm:$0xff] }
 0x616   :  { %13273 = vmatprep.mubr.bf16.mxu0 %v18713_v61  ;;  %13285 = vmatpush1.bf16.msra.mxu1 %v17343_v0  ;;  %v18867_v26 = vpop.f32.mrf.mxu0  ;;  %v7039_v58 = vld [vmem:[#allocation7 + $0x1d10] sm:$0xff]  ;;  %v17199_v0 = vcombine.low %v6919_v23, %v6923_v47  ;;  %v17192_v29 = vcombine.high %v6911_v5, %v6915_v37  ;;  %v17191_v51 = vcombine.low %v6911_v5, %v6915_v37 }
 0x617   :  { %19105 = vst [vmem:[#allocation35_spill] sm:$0xff] %v18867_v26  ;;  %v12975_v25 = vadd.f32 %v12974_v3, %v12932_v1  ;;  %13316 = vmatprep.mubr.bf16.mxu1 %v18728_v4  ;;  %v18870_v20 = vpop.f32.mrf.mxu1  ;;  %13243 = vmatprep.subr.bf16.mxu0 %v17208_v52  ;;  %v17320_v3 = vcombine.high %v7039_v58, %v7043_v36  ;;  %v6903_v52 = vld [vmem:[#allocation7 + $0x18d0] sm:$0xff] }
 0x618   :  { %19106 = vst [vmem:[#allocation36_spill] sm:$0xff] %v18870_v20  ;;  %v12935_v42 = vpop.f32.mrf.mxu0  ;;  %13286 = vmatprep.subr.bf16.mxu1 %v17336_v21  ;;  %v6907_v20 = vld [vmem:[#allocation7 + $0x18f0] sm:$0xff] }
 0x619   :  { %v12936_v10 = vadd.f32 %v12935_v42, %v18857_v17  ;;  %13244 = vmatpush1.bf16.msra.mxu0 %v17207_v53  ;;  %v12978_v26 = vpop.f32.mrf.mxu1  ;;  %v13673_v6 = vmax.f32 %v12975_v25, 0.0  ;;  %v17319_v17 = vcombine.low %v7039_v58, %v7043_v36  ;;  %v17184_v23 = vcombine.high %v6903_v52, %v6907_v20  ;;  %v6899_v53 = vld [vmem:[#allocation7 + $0x18b0] sm:$0xff] }
 0x61a   :  { %13287 = vmatpush1.bf16.msra.mxu1 %v17335_v55  ;;  %13245 = vmatprep.subr.bf16.mxu0 %v17200_v38  ;;  %v7027_v55 = vld [vmem:[#allocation7 + $0x1cb0] sm:$0xff]  ;;  %v17183_v38 = vcombine.low %v6903_v52, %v6907_v20  ;;  %v17311_v25 = vcombine.low %v7031_v27, %v7035_v9 }
 0x61b   :  { %v12979_v1 = vadd.f32 %v12978_v26, %v12936_v10  ;;  %13288 = vmatprep.subr.bf16.mxu1 %v17328_v39  ;;  %v7023_v26 = vld [vmem:[#allocation7 + $0x1c90] sm:$0xff]  ;;  %v17176_v39 = vcombine.high %v6895_v33, %v6899_v53 }
 0x61c   :  { %v17304_v5 = vcombine.high %v7023_v26, %v7027_v55  ;;  %v6887_v37 = vld [vmem:[#allocation7 + $0x1850] sm:$0xff]  ;;  %v17303_v10 = vcombine.low %v7023_v26, %v7027_v55 }
 0x61d   :  { %v13681_v21 = vmax.f32 %v12979_v1, 0.0  ;;  %13246 = vmatpush1.bf16.msra.mxu0 %v17199_v0  ;;  %v6891_v42 = vld [vmem:[#allocation7 + $0x1870] sm:$0xff] }
 0x61e   :  { %13289 = vmatpush1.bf16.msra.mxu1 %v17327_v15  ;;  %13247 = vmatprep.subr.bf16.mxu0 %v17192_v29  ;;  %v7015_v58 = vld [vmem:[#allocation7 + $0x1c50] sm:$0xff]  ;;  %v17168_v0 = vcombine.high %v6887_v37, %v6891_v42  ;;  %v17167_v9 = vcombine.low %v6887_v37, %v6891_v42 }
 0x61f   :  { %v18873_v47 = vpack.c.bf16 %v13681_v21, %v13673_v6  ;;  %13290 = vmatprep.subr.bf16.mxu1 %v17320_v3  ;;  %v7019_v36 = vld [vmem:[#allocation7 + $0x1c70] sm:$0xff]  ;;  %v17175_v6 = vcombine.low %v6895_v33, %v6899_v53 }
 0x620   :  { %v17296_v15 = vcombine.high %v7015_v58, %v7019_v36  ;;  %v6883_v20 = vld [vmem:[#allocation7 + $0x1830] sm:$0xff]  ;;  %v17295_v27 = vcombine.low %v7015_v58, %v7019_v36 }
 0x621   :  { %19107 = vst [vmem:[#allocation37_spill] sm:$0xff] %v18873_v47  ;;  %13248 = vmatpush1.bf16.msra.mxu0 %v17191_v51  ;;  %v6879_v51 = vld [vmem:[#allocation7 + $0x1810] sm:$0xff] }
 0x622   :  { %13291 = vmatpush1.bf16.msra.mxu1 %v17319_v17  ;;  %13249 = vmatprep.subr.bf16.mxu0 %v17184_v23  ;;  %v7007_v29 = vld [vmem:[#allocation7 + $0x1c10] sm:$0xff]  ;;  %v17160_v3 = vcombine.high %v6879_v51, %v6883_v20  ;;  %v17159_v33 = vcombine.low %v6879_v51, %v6883_v20 }
 0x623   :  { %13292 = vmatprep.subr.bf16.mxu1 %v17312_v19  ;;  %v7011_v1 = vld [vmem:[#allocation7 + $0x1c30] sm:$0xff] }
 0x624   :  { %v17288_v52 = vcombine.high %v7007_v29, %v7011_v1  ;;  %v6999_v21 = vld [vmem:[#allocation7 + $0x1bd0] sm:$0xff]  ;;  %v17287_v53 = vcombine.low %v7007_v29, %v7011_v1 }
 0x625   :  { %13250 = vmatpush1.bf16.msra.mxu0 %v17183_v38  ;;  %v7003_v17 = vld [vmem:[#allocation7 + $0x1bf0] sm:$0xff] }
 0x626   :  { %13293 = vmatpush1.bf16.msra.mxu1 %v17311_v25  ;;  %13251 = vmatprep.subr.bf16.mxu0 %v17176_v39  ;;  %v7127_v23 = vld [vmem:[#allocation7 + $0x1fd0] sm:$0xff]  ;;  %v17280_v26 = vcombine.high %v6999_v21, %v7003_v17  ;;  %v17279_v37 = vcombine.low %v6999_v21, %v7003_v17 }
 0x627   :  { %13294 = vmatprep.subr.bf16.mxu1 %v17304_v5  ;;  %v7131_v19 = vld [vmem:[#allocation7 + $0x1ff0] sm:$0xff] }
 0x628   :  { %v17408_v55 = vcombine.high %v7127_v23, %v7131_v19  ;;  %v6991_v38 = vld [vmem:[#allocation7 + $0x1b90] sm:$0xff]  ;;  %v17407_v42 = vcombine.low %v7127_v23, %v7131_v19 }
 0x629   :  { %13252 = vmatpush1.bf16.msra.mxu0 %v17175_v6  ;;  %v6995_v25 = vld [vmem:[#allocation7 + $0x1bb0] sm:$0xff] }
 0x62a   :  { %13295 = vmatpush1.bf16.msra.mxu1 %v17303_v10  ;;  %13253 = vmatprep.subr.bf16.mxu0 %v17168_v0  ;;  %v7119_v39 = vld [vmem:[#allocation7 + $0x1f90] sm:$0xff]  ;;  %v17272_v58 = vcombine.high %v6991_v38, %v6995_v25  ;;  %v17271_v51 = vcombine.low %v6991_v38, %v6995_v25 }
 0x62b   :  { %13296 = vmatprep.subr.bf16.mxu1 %v17296_v15  ;;  %v7123_v5 = vld [vmem:[#allocation7 + $0x1fb0] sm:$0xff] }
 0x62c   :  { %v17400_v36 = vcombine.high %v7119_v39, %v7123_v5  ;;  %v6983_v6 = vld [vmem:[#allocation7 + $0x1b50] sm:$0xff]  ;;  %v17399_v20 = vcombine.low %v7119_v39, %v7123_v5 }
 0x62d   :  { %13254 = vmatpush1.bf16.msra.mxu0 %v17167_v9  ;;  %v6987_v10 = vld [vmem:[#allocation7 + $0x1b70] sm:$0xff] }
 0x62e   :  { %13297 = vmatpush1.bf16.msra.mxu1 %v17295_v27  ;;  %13255 = vmatprep.subr.bf16.mxu0 %v17160_v3  ;;  %v7111_v0 = vld [vmem:[#allocation7 + $0x1f50] sm:$0xff]  ;;  %v17264_v29 = vcombine.high %v6983_v6, %v6987_v10  ;;  %v17263_v21 = vcombine.low %v6983_v6, %v6987_v10 }
 0x62f   :  { %13298 = vmatprep.subr.bf16.mxu1 %v17288_v52  ;;  %v7115_v15 = vld [vmem:[#allocation7 + $0x1f70] sm:$0xff] }
 0x630   :  { %v17392_v1 = vcombine.high %v7111_v0, %v7115_v15  ;;  %v6975_v9 = vld [vmem:[#allocation7 + $0x1b10] sm:$0xff]  ;;  %v17391_v17 = vcombine.low %v7111_v0, %v7115_v15 }
 0x631   :  { %13256 = vmatpush1.bf16.msra.mxu0 %v17159_v33  ;;  %v6979_v27 = vld [vmem:[#allocation7 + $0x1b30] sm:$0xff] }
 0x632   :  { %13299 = vmatpush1.bf16.msra.mxu1 %v17287_v53  ;;  %13257 = vmatprep.subr.bf16.mxu0 %v17280_v26  ;;  %v7103_v3 = vld [vmem:[#allocation7 + $0x1f10] sm:$0xff]  ;;  %v17256_v23 = vcombine.high %v6975_v9, %v6979_v27  ;;  %v17255_v38 = vcombine.low %v6975_v9, %v6979_v27 }
 0x633   :  { %13300 = vmatprep.subr.bf16.mxu1 %v17408_v55  ;;  %v7107_v52 = vld [vmem:[#allocation7 + $0x1f30] sm:$0xff] }
 0x634   :  { %v17384_v19 = vcombine.high %v7103_v3, %v7107_v52  ;;  %v6967_v33 = vld [vmem:[#allocation7 + $0x1ad0] sm:$0xff]  ;;  %v17383_v25 = vcombine.low %v7103_v3, %v7107_v52 }
 0x635   :  { %13258 = vmatpush2.bf16.msra.mxu0 %v17279_v37  ;;  %v6971_v53 = vld [vmem:[#allocation7 + $0x1af0] sm:$0xff] }
 0x636   :  { %13301 = vmatpush2.bf16.msra.mxu1 %v17407_v42  ;;  %13259 = vmatprep.subr.bf16.mxu0 %v17272_v58  ;;  %v7095_v26 = vld [vmem:[#allocation7 + $0x1ed0] sm:$0xff]  ;;  %v17248_v39 = vcombine.high %v6967_v33, %v6971_v53  ;;  %v17247_v6 = vcombine.low %v6967_v33, %v6971_v53 }
 0x637   :  { %13302 = vmatprep.subr.bf16.mxu1 %v17400_v36  ;;  %v7099_v55 = vld [vmem:[#allocation7 + $0x1ef0] sm:$0xff] }
 0x638   :  { %v17376_v5 = vcombine.high %v7095_v26, %v7099_v55  ;;  %v6959_v37 = vld [vmem:[#allocation7 + $0x1a90] sm:$0xff]  ;;  %v17375_v10 = vcombine.low %v7095_v26, %v7099_v55 }
 0x639   :  { %13260 = vmatpush2.bf16.msra.mxu0 %v17271_v51  ;;  %v6963_v42 = vld [vmem:[#allocation7 + $0x1ab0] sm:$0xff] }
 0x63a   :  { %13303 = vmatpush2.bf16.msra.mxu1 %v17399_v20  ;;  %13261 = vmatprep.subr.bf16.mxu0 %v17264_v29  ;;  %v7087_v58 = vld [vmem:[#allocation7 + $0x1e90] sm:$0xff]  ;;  %v17240_v0 = vcombine.high %v6959_v37, %v6963_v42  ;;  %v17239_v9 = vcombine.low %v6959_v37, %v6963_v42 }
 0x63b   :  { %13304 = vmatprep.subr.bf16.mxu1 %v17392_v1  ;;  %v7091_v36 = vld [vmem:[#allocation7 + $0x1eb0] sm:$0xff] }
 0x63c   :  { %v17368_v15 = vcombine.high %v7087_v58, %v7091_v36  ;;  %v6951_v51 = vld [vmem:[#allocation7 + $0x1a50] sm:$0xff]  ;;  %v17367_v27 = vcombine.low %v7087_v58, %v7091_v36 }
 0x63d   :  { %13262 = vmatpush2.bf16.msra.mxu0 %v17263_v21  ;;  %v6955_v20 = vld [vmem:[#allocation7 + $0x1a70] sm:$0xff] }
 0x63e   :  { %13305 = vmatpush2.bf16.msra.mxu1 %v17391_v17  ;;  %13263 = vmatprep.subr.bf16.mxu0 %v17256_v23  ;;  %v7079_v29 = vld [vmem:[#allocation7 + $0x1e50] sm:$0xff]  ;;  %v17232_v3 = vcombine.high %v6951_v51, %v6955_v20  ;;  %v17231_v33 = vcombine.low %v6951_v51, %v6955_v20  ;;  %v6288_v20 = vld [vmem:[#allocation7 + $0x598] sm:$0xff] }
 0x63f   :  { %13306 = vmatprep.subr.bf16.mxu1 %v17384_v19  ;;  %v7083_v1 = vld [vmem:[#allocation7 + $0x1e70] sm:$0xff] }
 0x640   :  { %v17360_v52 = vcombine.high %v7079_v29, %v7083_v1  ;;  %v6943_v21 = vld [vmem:[#allocation7 + $0x1a10] sm:$0xff]  ;;  %v17359_v53 = vcombine.low %v7079_v29, %v7083_v1  ;;  %v6292_v29 = vld [vmem:[#allocation7 + $0x5b8] sm:$0xff]  ;;  %v18876_v1 = vpop.f32.mrf.mxu0 }
 0x641   :  { %13264 = vmatpush2.bf16.msra.mxu0 %v17255_v38  ;;  %v6947_v17 = vld [vmem:[#allocation7 + $0x1a30] sm:$0xff]  ;;  %v6168_v38 = vld [vmem:[#allocation7 + $0x1d8] sm:$0xff] }
 0x642   :  { %13307 = vmatpush2.bf16.msra.mxu1 %v17383_v25  ;;  %13265 = vmatprep.subr.bf16.mxu0 %v17248_v39  ;;  %v7071_v23 = vld [vmem:[#allocation7 + $0x1e10] sm:$0xff]  ;;  %v17224_v26 = vcombine.high %v6943_v21, %v6947_v17  ;;  %v6172_v25 = vld [vmem:[#allocation7 + $0x1f8] sm:$0xff]  ;;  %v17223_v37 = vcombine.low %v6943_v21, %v6947_v17 }
 0x643   :  { %13308 = vmatprep.subr.bf16.mxu1 %v17376_v5  ;;  %v7075_v19 = vld [vmem:[#allocation7 + $0x1e30] sm:$0xff]  ;;  %v6296_v39 = vld [vmem:[#allocation7 + $0x5d8] sm:$0xff]  ;;  %v16450_v58 = vcombine.high %v6168_v38, %v6172_v25  ;;  %v16449_v51 = vcombine.low %v6168_v38, %v6172_v25  ;;  %v16569_v38 = vcombine.low %v6288_v20, %v6292_v29 }
 0x644   :  { %v17352_v55 = vcombine.high %v7071_v23, %v7075_v19  ;;  %v6300_v5 = vld [vmem:[#allocation7 + $0x5f8] sm:$0xff]  ;;  %v17351_v42 = vcombine.low %v7071_v23, %v7075_v19  ;;  %v16570_v23 = vcombine.high %v6288_v20, %v6292_v29 }
 0x645   :  { %13266 = vmatpush2.bf16.msra.mxu0 %v17247_v6  ;;  %v16578_v36 = vcombine.high %v6296_v39, %v6300_v5  ;;  %v6160_v6 = vld [vmem:[#allocation7 + $0x198] sm:$0xff] }
 0x646   :  { %13309 = vmatpush2.bf16.msra.mxu1 %v17375_v10  ;;  %13267 = vmatprep.subr.bf16.mxu0 %v17240_v0  ;;  %v6164_v10 = vld [vmem:[#allocation7 + $0x1b8] sm:$0xff]  ;;  %v18095_v0 = vld [vmem:[#allocation8] sm:$0xff] }
 0x647   :  { %13310 = vmatprep.subr.bf16.mxu1 %v17368_v15  ;;  %v7154_v15 = vrot.slane %v18095_v0, %v19087_v41  ;;  %v6156_v21 = vld [vmem:[#allocation7 + $0x178] sm:$0xff] }
 0x648   :  { %v6280_v19 = vld [vmem:[#allocation7 + $0x558] sm:$0xff] }
 0x649   :  { %13268 = vmatpush2.bf16.msra.mxu0 %v17239_v9  ;;  %v16577_v9 = vcombine.low %v6296_v39, %v6300_v5  ;;  %v6284_v41 = vld [vmem:[#allocation7 + $0x578] sm:$0xff] }
 0x64a   :  { %13311 = vmatpush2.bf16.msra.mxu1 %v17367_v27  ;;  %13269 = vmatprep.subr.bf16.mxu0 %v17232_v3  ;;  %v18878_v27 = vpop.f32.mrf.mxu1  ;;  %v16442_v3 = vcombine.high %v6160_v6, %v6164_v10  ;;  %v16561_v20 = vcombine.low %v6280_v19, %v6284_v41 }
 0x64b   :  { %13312 = vmatprep.subr.bf16.mxu1 %v17360_v52  ;;  %v6152_v52 = vld [vmem:[#allocation7 + $0x158] sm:$0xff] }
 0x64c   :  { %v16434_v25 = vcombine.high %v6152_v52, %v6156_v21  ;;  %v16433_v0 = vcombine.low %v6152_v52, %v6156_v21  ;;  %v6128_v21 = vld [vmem:[#allocation7 + $0x98] sm:$0xff] }
 0x64d   :  { %13270 = vmatpush2.bf16.msra.mxu0 %v17231_v33 }
 0x64e   :  { %13313 = vmatpush2.bf16.msra.mxu1 %v17359_v53  ;;  %13271 = vmatprep.subr.bf16.mxu0 %v17224_v26  ;;  %v16441_v26 = vcombine.low %v6160_v6, %v6164_v10  ;;  %v6272_v6 = vld [vmem:[#allocation7 + $0x518] sm:$0xff] }
 0x64f   :  { %13314 = vmatprep.subr.bf16.mxu1 %v17352_v55  ;;  %v6276_v10 = vld [vmem:[#allocation7 + $0x538] sm:$0xff] }
 0x651   :  { %13272 = vmatpush2.bf16.msra.mxu0 %v17223_v37  ;;  %v16562_v37 = vcombine.high %v6280_v19, %v6284_v41  ;;  %v6256_v19 = vld [vmem:[#allocation7 + $0x498] sm:$0xff] }
 0x652   :  { %13315 = vmatpush2.bf16.msra.mxu1 %v17351_v42  ;;  %13327 = vmatprep.subr.bf16.mxu0 %v16450_v58  ;;  %v6144_v42 = vld [vmem:[#allocation7 + $0x118] sm:$0xff] }
 0x653   :  { %13370 = vmatprep.subr.bf16.mxu1 %v16578_v36  ;;  %v6148_v58 = vld [vmem:[#allocation7 + $0x138] sm:$0xff] }
 0x654   :  { %v13017_v17 = vpop.f32.mrf.mxu0  ;;  %13274 = vmatmul.mubr.bf16.vlgmr.msra.gmra.mxu0 %v18701_v13  ;;  %v16426_v29 = vcombine.high %v6144_v42, %v6148_v58  ;;  %v6260_v41 = vld [vmem:[#allocation7 + $0x4b8] sm:$0xff] }
 0x655   :  { %v13018_v33 = vadd.f32 %v13017_v17, %v7154_v15  ;;  %v13060_v53 = vpop.f32.mrf.mxu1  ;;  %13317 = vmatmul.mubr.bf16.vlgmr.msra.gmra.mxu1 %v18740_v56  ;;  %13328 = vmatpush1.bf16.msra.mxu0 %v16449_v51  ;;  %v6140_v17 = vld [vmem:[#allocation7 + $0xf8] sm:$0xff] }
 0x656   :  { %13359 = vmatprep.mubr.bf16.mxu0 %v18606_v2  ;;  %13371 = vmatpush1.bf16.msra.mxu1 %v16577_v9  ;;  %v18883_v55 = vpop.f32.mrf.mxu0 }
 0x657   :  { %v18885_v39 = vadd.f32 %v13060_v53, %v13018_v33  ;;  %13402 = vmatprep.mubr.bf16.mxu1 %v18611_v48  ;;  %v18888_v5 = vpop.f32.mrf.mxu1  ;;  %13329 = vmatprep.subr.bf16.mxu0 %v16442_v3  ;;  %v16554_v48 = vcombine.high %v6272_v6, %v6276_v10  ;;  %v6136_v3 = vld [vmem:[#allocation7 + $0xd8] sm:$0xff] }
 0x658   :  { %v13021_v36 = vpop.f32.mrf.mxu0  ;;  %13372 = vmatprep.subr.bf16.mxu1 %v16570_v23  ;;  %v6264_v33 = vld [vmem:[#allocation7 + $0x4d8] sm:$0xff]  ;;  %v16425_v23 = vcombine.low %v6144_v42, %v6148_v58 }
 0x659   :  { %v13022_v2 = vadd.f32 %v13021_v36, %v7154_v15  ;;  %13330 = vmatpush1.bf16.msra.mxu0 %v16441_v26  ;;  %v13064_v51 = vpop.f32.mrf.mxu1  ;;  %v6268_v53 = vld [vmem:[#allocation7 + $0x4f8] sm:$0xff]  ;;  %v16553_v15 = vcombine.low %v6272_v6, %v6276_v10  ;;  %v16418_v26 = vcombine.high %v6136_v3, %v6140_v17  ;;  %v16537_v10 = vcombine.low %v6256_v19, %v6260_v41 }
 0x65a   :  { %13373 = vmatpush1.bf16.msra.mxu1 %v16569_v38  ;;  %13331 = vmatprep.subr.bf16.mxu0 %v16434_v25  ;;  %v16546_v52 = vcombine.high %v6264_v33, %v6268_v53  ;;  %v6132_v38 = vld [vmem:[#allocation7 + $0xb8] sm:$0xff]  ;;  %v16417_v25 = vcombine.low %v6136_v3, %v6140_v17 }
 0x65b   :  { %v18890_v9 = vadd.f32 %v13064_v51, %v13022_v2  ;;  %13374 = vmatprep.subr.bf16.mxu1 %v16562_v37  ;;  %v16545_v37 = vcombine.low %v6264_v33, %v6268_v53  ;;  %v16410_v36 = vcombine.high %v6128_v21, %v6132_v38  ;;  %v16538_v2 = vcombine.high %v6256_v19, %v6260_v41  ;;  %v6124_v42 = vld [vmem:[#allocation7 + $0x78] sm:$0xff] }
 0x65c   :  { %v6248_v58 = vld [vmem:[#allocation7 + $0x458] sm:$0xff]  ;;  %v16409_v6 = vcombine.low %v6128_v21, %v6132_v38 }
 0x65d   :  { %13332 = vmatpush1.bf16.msra.mxu0 %v16433_v0  ;;  %v6120_v0 = vld [vmem:[#allocation7 + $0x58] sm:$0xff] }
 0x65e   :  { %13375 = vmatpush1.bf16.msra.mxu1 %v16561_v20  ;;  %13333 = vmatprep.subr.bf16.mxu0 %v16426_v29  ;;  %v6252_v51 = vld [vmem:[#allocation7 + $0x478] sm:$0xff]  ;;  %v16402_v20 = vcombine.high %v6120_v0, %v6124_v42  ;;  %v16401_v33 = vcombine.low %v6120_v0, %v6124_v42 }
 0x65f   :  { %13376 = vmatprep.subr.bf16.mxu1 %v16554_v48  ;;  %v16530_v29 = vcombine.high %v6248_v58, %v6252_v51  ;;  %v6112_v48 = vld [vmem:[#allocation7 + $0x18] sm:$0xff]  ;;  %v16529_v53 = vcombine.low %v6248_v58, %v6252_v51 }
 0x660   :  { %v6116_v3 = vld [vmem:[#allocation7 + $0x38] sm:$0xff] }
 0x661   :  { %13334 = vmatpush1.bf16.msra.mxu0 %v16425_v23  ;;  %v6240_v17 = vld [vmem:[#allocation7 + $0x418] sm:$0xff]  ;;  %v16393_v19 = vcombine.low %v6112_v48, %v6116_v3 }
 0x662   :  { %13377 = vmatpush1.bf16.msra.mxu1 %v16553_v15  ;;  %13335 = vmatprep.subr.bf16.mxu0 %v16418_v26  ;;  %v6244_v23 = vld [vmem:[#allocation7 + $0x438] sm:$0xff]  ;;  %v16394_v15 = vcombine.high %v6112_v48, %v6116_v3 }
 0x663   :  { %13378 = vmatprep.subr.bf16.mxu1 %v16546_v52  ;;  %v16522_v26 = vcombine.high %v6240_v17, %v6244_v23  ;;  %v6232_v52 = vld [vmem:[#allocation7 + $0x3d8] sm:$0xff]  ;;  %v16521_v41 = vcombine.low %v6240_v17, %v6244_v23 }
 0x664   :  { %v6236_v21 = vld [vmem:[#allocation7 + $0x3f8] sm:$0xff] }
 0x665   :  { %13336 = vmatpush1.bf16.msra.mxu0 %v16417_v25  ;;  %v6360_v38 = vld [vmem:[#allocation7 + $0x7d8] sm:$0xff]  ;;  %v16513_v58 = vcombine.low %v6232_v52, %v6236_v21 }
 0x666   :  { %13379 = vmatpush1.bf16.msra.mxu1 %v16545_v37  ;;  %13337 = vmatprep.subr.bf16.mxu0 %v16410_v36  ;;  %v6364_v25 = vld [vmem:[#allocation7 + $0x7f8] sm:$0xff]  ;;  %v16514_v37 = vcombine.high %v6232_v52, %v6236_v21 }
 0x667   :  { %13380 = vmatprep.subr.bf16.mxu1 %v16538_v2  ;;  %v16642_v36 = vcombine.high %v6360_v38, %v6364_v25  ;;  %v6224_v2 = vld [vmem:[#allocation7 + $0x398] sm:$0xff]  ;;  %v16641_v51 = vcombine.low %v6360_v38, %v6364_v25 }
 0x668   :  { %v6228_v0 = vld [vmem:[#allocation7 + $0x3b8] sm:$0xff] }
 0x669   :  { %13338 = vmatpush1.bf16.msra.mxu0 %v16409_v6  ;;  %v6352_v42 = vld [vmem:[#allocation7 + $0x798] sm:$0xff]  ;;  %v16505_v17 = vcombine.low %v6224_v2, %v6228_v0 }
 0x66a   :  { %13381 = vmatpush1.bf16.msra.mxu1 %v16537_v10  ;;  %13339 = vmatprep.subr.bf16.mxu0 %v16402_v20  ;;  %v6356_v6 = vld [vmem:[#allocation7 + $0x7b8] sm:$0xff]  ;;  %v16506_v10 = vcombine.high %v6224_v2, %v6228_v0 }
 0x66b   :  { %13382 = vmatprep.subr.bf16.mxu1 %v16530_v29  ;;  %v16634_v20 = vcombine.high %v6352_v42, %v6356_v6  ;;  %v6216_v29 = vld [vmem:[#allocation7 + $0x358] sm:$0xff]  ;;  %v16633_v23 = vcombine.low %v6352_v42, %v6356_v6 }
 0x66c   :  { %v6220_v48 = vld [vmem:[#allocation7 + $0x378] sm:$0xff] }
 0x66d   :  { %13340 = vmatpush1.bf16.msra.mxu0 %v16401_v33  ;;  %v6344_v3 = vld [vmem:[#allocation7 + $0x758] sm:$0xff]  ;;  %v16497_v38 = vcombine.low %v6216_v29, %v6220_v48 }
 0x66e   :  { %13383 = vmatpush1.bf16.msra.mxu1 %v16529_v53  ;;  %13341 = vmatprep.subr.bf16.mxu0 %v16394_v15  ;;  %v6348_v33 = vld [vmem:[#allocation7 + $0x778] sm:$0xff]  ;;  %v16498_v53 = vcombine.high %v6216_v29, %v6220_v48 }
 0x66f   :  { %13384 = vmatprep.subr.bf16.mxu1 %v16522_v26  ;;  %v16626_v15 = vcombine.high %v6344_v3, %v6348_v33  ;;  %v6208_v26 = vld [vmem:[#allocation7 + $0x318] sm:$0xff]  ;;  %v16625_v25 = vcombine.low %v6344_v3, %v6348_v33 }
 0x670   :  { %v6212_v52 = vld [vmem:[#allocation7 + $0x338] sm:$0xff] }
 0x671   :  { %13342 = vmatpush1.bf16.msra.mxu0 %v16393_v19  ;;  %v6336_v21 = vld [vmem:[#allocation7 + $0x718] sm:$0xff]  ;;  %v16489_v42 = vcombine.low %v6208_v26, %v6212_v52 }
 0x672   :  { %13385 = vmatpush1.bf16.msra.mxu1 %v16521_v41  ;;  %13343 = vmatprep.subr.bf16.mxu0 %v16514_v37  ;;  %v6340_v19 = vld [vmem:[#allocation7 + $0x738] sm:$0xff]  ;;  %v16490_v41 = vcombine.high %v6208_v26, %v6212_v52 }
 0x673   :  { %13386 = vmatprep.subr.bf16.mxu1 %v16642_v36  ;;  %v16618_v37 = vcombine.high %v6336_v21, %v6340_v19  ;;  %v6200_v36 = vld [vmem:[#allocation7 + $0x2d8] sm:$0xff]  ;;  %v16617_v6 = vcombine.low %v6336_v21, %v6340_v19 }
 0x674   :  { %v6204_v2 = vld [vmem:[#allocation7 + $0x2f8] sm:$0xff] }
 0x675   :  { %13344 = vmatpush2.bf16.msra.mxu0 %v16513_v58  ;;  %v6328_v0 = vld [vmem:[#allocation7 + $0x6d8] sm:$0xff]  ;;  %v16481_v3 = vcombine.low %v6200_v36, %v6204_v2 }
 0x676   :  { %13387 = vmatpush2.bf16.msra.mxu1 %v16641_v51  ;;  %13345 = vmatprep.subr.bf16.mxu0 %v16506_v10  ;;  %v6332_v58 = vld [vmem:[#allocation7 + $0x6f8] sm:$0xff]  ;;  %v16482_v51 = vcombine.high %v6200_v36, %v6204_v2 }
 0x677   :  { %13388 = vmatprep.subr.bf16.mxu1 %v16634_v20  ;;  %v16610_v10 = vcombine.high %v6328_v0, %v6332_v58  ;;  %v6192_v20 = vld [vmem:[#allocation7 + $0x298] sm:$0xff]  ;;  %v16609_v33 = vcombine.low %v6328_v0, %v6332_v58 }
 0x678   :  { %v6196_v29 = vld [vmem:[#allocation7 + $0x2b8] sm:$0xff] }
 0x679   :  { %13346 = vmatpush2.bf16.msra.mxu0 %v16505_v17  ;;  %v6320_v48 = vld [vmem:[#allocation7 + $0x698] sm:$0xff]  ;;  %v16473_v21 = vcombine.low %v6192_v20, %v6196_v29 }
 0x67a   :  { %13389 = vmatpush2.bf16.msra.mxu1 %v16633_v23  ;;  %13347 = vmatprep.subr.bf16.mxu0 %v16498_v53  ;;  %v6324_v17 = vld [vmem:[#allocation7 + $0x6b8] sm:$0xff]  ;;  %v16474_v23 = vcombine.high %v6192_v20, %v6196_v29 }
 0x67b   :  { %13390 = vmatprep.subr.bf16.mxu1 %v16626_v15  ;;  %v16602_v53 = vcombine.high %v6320_v48, %v6324_v17  ;;  %v6184_v15 = vld [vmem:[#allocation7 + $0x258] sm:$0xff]  ;;  %v16601_v19 = vcombine.low %v6320_v48, %v6324_v17 }
 0x67c   :  { %v6188_v26 = vld [vmem:[#allocation7 + $0x278] sm:$0xff] }
 0x67d   :  { %13348 = vmatpush2.bf16.msra.mxu0 %v16497_v38  ;;  %v6312_v52 = vld [vmem:[#allocation7 + $0x658] sm:$0xff]  ;;  %v16465_v0 = vcombine.low %v6184_v15, %v6188_v26 }
 0x67e   :  { %13391 = vmatpush2.bf16.msra.mxu1 %v16625_v25  ;;  %13349 = vmatprep.subr.bf16.mxu0 %v16490_v41  ;;  %v6316_v38 = vld [vmem:[#allocation7 + $0x678] sm:$0xff]  ;;  %v16466_v25 = vcombine.high %v6184_v15, %v6188_v26 }
 0x67f   :  { %13392 = vmatprep.subr.bf16.mxu1 %v16618_v37  ;;  %v16594_v41 = vcombine.high %v6312_v52, %v6316_v38  ;;  %v6176_v37 = vld [vmem:[#allocation7 + $0x218] sm:$0xff]  ;;  %v16593_v58 = vcombine.low %v6312_v52, %v6316_v38 }
 0x680   :  { %v6180_v36 = vld [vmem:[#allocation7 + $0x238] sm:$0xff] }
 0x681   :  { %13350 = vmatpush2.bf16.msra.mxu0 %v16489_v42  ;;  %v6304_v2 = vld [vmem:[#allocation7 + $0x618] sm:$0xff]  ;;  %v16457_v48 = vcombine.low %v6176_v37, %v6180_v36 }
 0x682   :  { %13393 = vmatpush2.bf16.msra.mxu1 %v16617_v6  ;;  %13351 = vmatprep.subr.bf16.mxu0 %v16482_v51  ;;  %v6308_v42 = vld [vmem:[#allocation7 + $0x638] sm:$0xff]  ;;  %v16458_v6 = vcombine.high %v6176_v37, %v6180_v36 }
 0x683   :  { %13394 = vmatprep.subr.bf16.mxu1 %v16610_v10  ;;  %v16586_v51 = vcombine.high %v6304_v2, %v6308_v42  ;;  %v6424_v10 = vld [vmem:[#allocation7 + $0x9d8] sm:$0xff]  ;;  %v16585_v17 = vcombine.low %v6304_v2, %v6308_v42 }
 0x684   :  { %v6428_v20 = vld [vmem:[#allocation7 + $0x9f8] sm:$0xff] }
 0x685   :  { %13352 = vmatpush2.bf16.msra.mxu0 %v16481_v3  ;;  %v6552_v29 = vld [vmem:[#allocation7 + $0xdd8] sm:$0xff]  ;;  %v16705_v26 = vcombine.low %v6424_v10, %v6428_v20 }
 0x686   :  { %13395 = vmatpush2.bf16.msra.mxu1 %v16609_v33  ;;  %13353 = vmatprep.subr.bf16.mxu0 %v16474_v23  ;;  %v6556_v3 = vld [vmem:[#allocation7 + $0xdf8] sm:$0xff]  ;;  %v16706_v33 = vcombine.high %v6424_v10, %v6428_v20 }
 0x687   :  { %13396 = vmatprep.subr.bf16.mxu1 %v16602_v53  ;;  %v16834_v23 = vcombine.high %v6552_v29, %v6556_v3  ;;  %v6416_v53 = vld [vmem:[#allocation7 + $0x998] sm:$0xff] }
 0x688   :  { %v6420_v15 = vld [vmem:[#allocation7 + $0x9b8] sm:$0xff] }
 0x689   :  { %13354 = vmatpush2.bf16.msra.mxu0 %v16473_v21  ;;  %v6544_v52 = vld [vmem:[#allocation7 + $0xd98] sm:$0xff]  ;;  %v18892_v21 = vpop.f32.mrf.mxu0  ;;  %v16697_v10 = vcombine.low %v6416_v53, %v6420_v15 }
 0x68a   :  { %13397 = vmatpush2.bf16.msra.mxu1 %v16601_v19  ;;  %13355 = vmatprep.subr.bf16.mxu0 %v16466_v25  ;;  %v6548_v38 = vld [vmem:[#allocation7 + $0xdb8] sm:$0xff]  ;;  %v16833_v19 = vcombine.low %v6552_v29, %v6556_v3  ;;  %v18894_v25 = vpop.f32.mrf.mxu1 }
 0x68b   :  { %13398 = vmatprep.subr.bf16.mxu1 %v16594_v41  ;;  %v16698_v41 = vcombine.high %v6416_v53, %v6420_v15  ;;  %v6408_v37 = vld [vmem:[#allocation7 + $0x958] sm:$0xff]  ;;  %v16826_v42 = vcombine.high %v6544_v52, %v6548_v38  ;;  %v16825_v29 = vcombine.low %v6544_v52, %v6548_v38 }
 0x68c   :  { %v6412_v36 = vld [vmem:[#allocation7 + $0x978] sm:$0xff] }
 0x68d   :  { %13356 = vmatpush2.bf16.msra.mxu0 %v16465_v0  ;;  %v6536_v0 = vld [vmem:[#allocation7 + $0xd58] sm:$0xff]  ;;  %v16690_v3 = vcombine.high %v6408_v37, %v6412_v36  ;;  %v16689_v15 = vcombine.low %v6408_v37, %v6412_v36 }
 0x68e   :  { %13399 = vmatpush2.bf16.msra.mxu1 %v16593_v58  ;;  %13357 = vmatprep.subr.bf16.mxu0 %v16458_v6  ;;  %v6540_v58 = vld [vmem:[#allocation7 + $0xd78] sm:$0xff] }
 0x68f   :  { %13400 = vmatprep.subr.bf16.mxu1 %v16586_v51  ;;  %v6532_v53 = vld [vmem:[#allocation7 + $0xd38] sm:$0xff]  ;;  %v16817_v52 = vcombine.low %v6536_v0, %v6540_v58 }
 0x690   :  { %v6384_v36 = vld [vmem:[#allocation7 + $0x898] sm:$0xff] }
 0x691   :  { %13358 = vmatpush2.bf16.msra.mxu0 %v16457_v48 }
 0x692   :  { %13401 = vmatpush2.bf16.msra.mxu1 %v16585_v17  ;;  %13413 = vmatprep.subr.bf16.mxu0 %v16706_v33  ;;  %v6400_v17 = vld [vmem:[#allocation7 + $0x918] sm:$0xff] }
 0x693   :  { %13456 = vmatprep.subr.bf16.mxu1 %v16834_v23  ;;  %v6404_v33 = vld [vmem:[#allocation7 + $0x938] sm:$0xff] }
 0x694   :  { %v13103_v2 = vpop.f32.mrf.mxu0  ;;  %13360 = vmatmul.mubr.bf16.vlgmr.msra.gmra.mxu0 %v18397_v31  ;;  %v6528_v23 = vld [vmem:[#allocation7 + $0xd18] sm:$0xff]  ;;  %v16682_v38 = vcombine.high %v6400_v17, %v6404_v33 }
 0x695   :  { %v13104_v6 = vadd.f32 %v13103_v2, %v18885_v39  ;;  %v13146_v51 = vpop.f32.mrf.mxu1  ;;  %13403 = vmatmul.mubr.bf16.vlgmr.msra.gmra.mxu1 %v18435_v16  ;;  %13414 = vmatpush1.bf16.msra.mxu0 %v16705_v26  ;;  %v16818_v39 = vcombine.high %v6536_v0, %v6540_v58  ;;  %v6396_v2 = vld [vmem:[#allocation7 + $0x8f8] sm:$0xff] }
 0x696   :  { %13445 = vmatprep.mubr.bf16.mxu0 %v18651_v7  ;;  %13457 = vmatpush1.bf16.msra.mxu1 %v16833_v19  ;;  %v18900_v20 = vpop.f32.mrf.mxu0  ;;  %v16810_v19 = vcombine.high %v6528_v23, %v6532_v53  ;;  %v6512_v0 = vld [vmem:[#allocation7 + $0xc98] sm:$0xff] }
 0x697   :  { %v18902_v48 = vadd.f32 %v13146_v51, %v13104_v6  ;;  %13488 = vmatprep.mubr.bf16.mxu1 %v18654_v12  ;;  %v18905_v31 = vpop.f32.mrf.mxu1  ;;  %13415 = vmatprep.subr.bf16.mxu0 %v16698_v41  ;;  %v6392_v41 = vld [vmem:[#allocation7 + $0x8d8] sm:$0xff] }
 0x698   :  { %v13107_v16 = vpop.f32.mrf.mxu0  ;;  %13458 = vmatprep.subr.bf16.mxu1 %v16826_v42  ;;  %v6520_v6 = vld [vmem:[#allocation7 + $0xcd8] sm:$0xff]  ;;  %v16681_v42 = vcombine.low %v6400_v17, %v6404_v33 }
 0x699   :  { %v13108_v7 = vadd.f32 %v13107_v16, %v18890_v9  ;;  %13416 = vmatpush1.bf16.msra.mxu0 %v16697_v10  ;;  %v13150_v26 = vpop.f32.mrf.mxu1  ;;  %v6524_v51 = vld [vmem:[#allocation7 + $0xcf8] sm:$0xff]  ;;  %v16809_v9 = vcombine.low %v6528_v23, %v6532_v53  ;;  %v16674_v10 = vcombine.high %v6392_v41, %v6396_v2 }
 0x69a   :  { %13459 = vmatpush1.bf16.msra.mxu1 %v16825_v29  ;;  %13417 = vmatprep.subr.bf16.mxu0 %v16690_v3  ;;  %v16802_v37 = vcombine.high %v6520_v6, %v6524_v51  ;;  %v6388_v29 = vld [vmem:[#allocation7 + $0x8b8] sm:$0xff]  ;;  %v16673_v3 = vcombine.low %v6392_v41, %v6396_v2 }
 0x69b   :  { %v18908_v12 = vadd.f32 %v13150_v26, %v13108_v7  ;;  %13460 = vmatprep.subr.bf16.mxu1 %v16818_v39  ;;  %v6516_v58 = vld [vmem:[#allocation7 + $0xcb8] sm:$0xff]  ;;  %v16801_v39 = vcombine.low %v6520_v6, %v6524_v51  ;;  %v16666_v16 = vcombine.high %v6384_v36, %v6388_v29  ;;  %v16665_v23 = vcombine.low %v6384_v36, %v6388_v29 }
 0x69c   :  { %v16794_v7 = vcombine.high %v6512_v0, %v6516_v58  ;;  %v6380_v17 = vld [vmem:[#allocation7 + $0x878] sm:$0xff]  ;;  %v16793_v53 = vcombine.low %v6512_v0, %v6516_v58 }
 0x69d   :  { %13418 = vmatpush1.bf16.msra.mxu0 %v16689_v15  ;;  %v6376_v15 = vld [vmem:[#allocation7 + $0x858] sm:$0xff] }
 0x69e   :  { %13461 = vmatpush1.bf16.msra.mxu1 %v16817_v52  ;;  %13419 = vmatprep.subr.bf16.mxu0 %v16682_v38  ;;  %v6504_v33 = vld [vmem:[#allocation7 + $0xc58] sm:$0xff]  ;;  %v16658_v52 = vcombine.high %v6376_v15, %v6380_v17  ;;  %v16657_v6 = vcombine.low %v6376_v15, %v6380_v17 }
 0x69f   :  { %13462 = vmatprep.subr.bf16.mxu1 %v16810_v19  ;;  %v6508_v26 = vld [vmem:[#allocation7 + $0xc78] sm:$0xff] }
 0x6a0   :  { %v16786_v38 = vcombine.high %v6504_v33, %v6508_v26  ;;  %v6368_v19 = vld [vmem:[#allocation7 + $0x818] sm:$0xff]  ;;  %v16785_v51 = vcombine.low %v6504_v33, %v6508_v26 }
 0x6a1   :  { %13420 = vmatpush1.bf16.msra.mxu0 %v16681_v42  ;;  %v6372_v41 = vld [vmem:[#allocation7 + $0x838] sm:$0xff] }
 0x6a2   :  { %13463 = vmatpush1.bf16.msra.mxu1 %v16809_v9  ;;  %13421 = vmatprep.subr.bf16.mxu0 %v16674_v10  ;;  %v6496_v2 = vld [vmem:[#allocation7 + $0xc18] sm:$0xff]  ;;  %v16650_v9 = vcombine.high %v6368_v19, %v6372_v41  ;;  %v16649_v0 = vcombine.low %v6368_v19, %v6372_v41 }
 0x6a3   :  { %13464 = vmatprep.subr.bf16.mxu1 %v16802_v37  ;;  %v6500_v42 = vld [vmem:[#allocation7 + $0xc38] sm:$0xff] }
 0x6a4   :  { %v16778_v10 = vcombine.high %v6496_v2, %v6500_v42  ;;  %v6488_v37 = vld [vmem:[#allocation7 + $0xbd8] sm:$0xff]  ;;  %v16777_v58 = vcombine.low %v6496_v2, %v6500_v42 }
 0x6a5   :  { %13422 = vmatpush1.bf16.msra.mxu0 %v16673_v3  ;;  %v6492_v36 = vld [vmem:[#allocation7 + $0xbf8] sm:$0xff] }
 0x6a6   :  { %13465 = vmatpush1.bf16.msra.mxu1 %v16801_v39  ;;  %13423 = vmatprep.subr.bf16.mxu0 %v16666_v16  ;;  %v6616_v29 = vld [vmem:[#allocation7 + $0xfd8] sm:$0xff]  ;;  %v16770_v39 = vcombine.high %v6488_v37, %v6492_v36  ;;  %v16769_v33 = vcombine.low %v6488_v37, %v6492_v36 }
 0x6a7   :  { %13466 = vmatprep.subr.bf16.mxu1 %v16794_v7  ;;  %v6620_v3 = vld [vmem:[#allocation7 + $0xff8] sm:$0xff] }
 0x6a8   :  { %v16898_v16 = vcombine.high %v6616_v29, %v6620_v3  ;;  %v6480_v7 = vld [vmem:[#allocation7 + $0xb98] sm:$0xff]  ;;  %v16897_v26 = vcombine.low %v6616_v29, %v6620_v3 }
 0x6a9   :  { %13424 = vmatpush1.bf16.msra.mxu0 %v16665_v23  ;;  %v6484_v15 = vld [vmem:[#allocation7 + $0xbb8] sm:$0xff] }
 0x6aa   :  { %13467 = vmatpush1.bf16.msra.mxu1 %v16793_v53  ;;  %13425 = vmatprep.subr.bf16.mxu0 %v16658_v52  ;;  %v6608_v17 = vld [vmem:[#allocation7 + $0xf98] sm:$0xff]  ;;  %v16762_v53 = vcombine.high %v6480_v7, %v6484_v15  ;;  %v16761_v2 = vcombine.low %v6480_v7, %v6484_v15 }
 0x6ab   :  { %13468 = vmatprep.subr.bf16.mxu1 %v16786_v38  ;;  %v6612_v23 = vld [vmem:[#allocation7 + $0xfb8] sm:$0xff] }
 0x6ac   :  { %v16890_v52 = vcombine.high %v6608_v17, %v6612_v23  ;;  %v6472_v38 = vld [vmem:[#allocation7 + $0xb58] sm:$0xff]  ;;  %v16889_v42 = vcombine.low %v6608_v17, %v6612_v23 }
 0x6ad   :  { %13426 = vmatpush1.bf16.msra.mxu0 %v16657_v6  ;;  %v6476_v19 = vld [vmem:[#allocation7 + $0xb78] sm:$0xff] }
 0x6ae   :  { %13469 = vmatpush1.bf16.msra.mxu1 %v16785_v51  ;;  %13427 = vmatprep.subr.bf16.mxu0 %v16650_v9  ;;  %v6600_v41 = vld [vmem:[#allocation7 + $0xf58] sm:$0xff]  ;;  %v16754_v51 = vcombine.high %v6472_v38, %v6476_v19  ;;  %v16753_v29 = vcombine.low %v6472_v38, %v6476_v19 }
 0x6af   :  { %13470 = vmatprep.subr.bf16.mxu1 %v16778_v10  ;;  %v6604_v6 = vld [vmem:[#allocation7 + $0xf78] sm:$0xff] }
 0x6b0   :  { %v16882_v9 = vcombine.high %v6600_v41, %v6604_v6  ;;  %v6464_v10 = vld [vmem:[#allocation7 + $0xb18] sm:$0xff]  ;;  %v16881_v3 = vcombine.low %v6600_v41, %v6604_v6 }
 0x6b1   :  { %13428 = vmatpush1.bf16.msra.mxu0 %v16649_v0  ;;  %v6468_v37 = vld [vmem:[#allocation7 + $0xb38] sm:$0xff] }
 0x6b2   :  { %13471 = vmatpush1.bf16.msra.mxu1 %v16777_v58  ;;  %13429 = vmatprep.subr.bf16.mxu0 %v16770_v39  ;;  %v6592_v36 = vld [vmem:[#allocation7 + $0xf18] sm:$0xff]  ;;  %v16746_v58 = vcombine.high %v6464_v10, %v6468_v37  ;;  %v16745_v17 = vcombine.low %v6464_v10, %v6468_v37 }
 0x6b3   :  { %13472 = vmatprep.subr.bf16.mxu1 %v16898_v16  ;;  %v6596_v0 = vld [vmem:[#allocation7 + $0xf38] sm:$0xff] }
 0x6b4   :  { %v16874_v39 = vcombine.high %v6592_v36, %v6596_v0  ;;  %v6456_v16 = vld [vmem:[#allocation7 + $0xad8] sm:$0xff]  ;;  %v16873_v23 = vcombine.low %v6592_v36, %v6596_v0 }
 0x6b5   :  { %13430 = vmatpush2.bf16.msra.mxu0 %v16769_v33  ;;  %v6460_v7 = vld [vmem:[#allocation7 + $0xaf8] sm:$0xff] }
 0x6b6   :  { %13473 = vmatpush2.bf16.msra.mxu1 %v16897_v26  ;;  %13431 = vmatprep.subr.bf16.mxu0 %v16762_v53  ;;  %v6584_v15 = vld [vmem:[#allocation7 + $0xed8] sm:$0xff]  ;;  %v16738_v26 = vcombine.high %v6456_v16, %v6460_v7  ;;  %v16737_v41 = vcombine.low %v6456_v16, %v6460_v7 }
 0x6b7   :  { %13474 = vmatprep.subr.bf16.mxu1 %v16890_v52  ;;  %v6588_v33 = vld [vmem:[#allocation7 + $0xef8] sm:$0xff] }
 0x6b8   :  { %v16866_v53 = vcombine.high %v6584_v15, %v6588_v33  ;;  %v6448_v52 = vld [vmem:[#allocation7 + $0xa98] sm:$0xff]  ;;  %v16865_v6 = vcombine.low %v6584_v15, %v6588_v33 }
 0x6b9   :  { %13432 = vmatpush2.bf16.msra.mxu0 %v16761_v2  ;;  %v6452_v38 = vld [vmem:[#allocation7 + $0xab8] sm:$0xff] }
 0x6ba   :  { %13475 = vmatpush2.bf16.msra.mxu1 %v16889_v42  ;;  %13433 = vmatprep.subr.bf16.mxu0 %v16754_v51  ;;  %v6576_v19 = vld [vmem:[#allocation7 + $0xe98] sm:$0xff]  ;;  %v16730_v42 = vcombine.high %v6448_v52, %v6452_v38  ;;  %v16729_v36 = vcombine.low %v6448_v52, %v6452_v38 }
 0x6bb   :  { %13476 = vmatprep.subr.bf16.mxu1 %v16882_v9  ;;  %v6580_v2 = vld [vmem:[#allocation7 + $0xeb8] sm:$0xff] }
 0x6bc   :  { %v16858_v51 = vcombine.high %v6576_v19, %v6580_v2  ;;  %v6440_v9 = vld [vmem:[#allocation7 + $0xa58] sm:$0xff]  ;;  %v16857_v0 = vcombine.low %v6576_v19, %v6580_v2 }
 0x6bd   :  { %13434 = vmatpush2.bf16.msra.mxu0 %v16753_v29  ;;  %v6444_v10 = vld [vmem:[#allocation7 + $0xa78] sm:$0xff] }
 0x6be   :  { %13477 = vmatpush2.bf16.msra.mxu1 %v16881_v3  ;;  %13435 = vmatprep.subr.bf16.mxu0 %v16746_v58  ;;  %v6568_v37 = vld [vmem:[#allocation7 + $0xe58] sm:$0xff]  ;;  %v16722_v3 = vcombine.high %v6440_v9, %v6444_v10  ;;  %v16721_v15 = vcombine.low %v6440_v9, %v6444_v10 }
 0x6bf   :  { %13478 = vmatprep.subr.bf16.mxu1 %v16874_v39  ;;  %v6572_v29 = vld [vmem:[#allocation7 + $0xe78] sm:$0xff] }
 0x6c0   :  { %v16850_v58 = vcombine.high %v6568_v37, %v6572_v29  ;;  %v6432_v39 = vld [vmem:[#allocation7 + $0xa18] sm:$0xff]  ;;  %v16849_v33 = vcombine.low %v6568_v37, %v6572_v29 }
 0x6c1   :  { %13436 = vmatpush2.bf16.msra.mxu0 %v16745_v17  ;;  %v6436_v16 = vld [vmem:[#allocation7 + $0xa38] sm:$0xff] }
 0x6c2   :  { %13479 = vmatpush2.bf16.msra.mxu1 %v16873_v23  ;;  %13437 = vmatprep.subr.bf16.mxu0 %v16738_v26  ;;  %v6560_v7 = vld [vmem:[#allocation7 + $0xe18] sm:$0xff]  ;;  %v16714_v23 = vcombine.high %v6432_v39, %v6436_v16  ;;  %v16713_v19 = vcombine.low %v6432_v39, %v6436_v16 }
 0x6c3   :  { %13480 = vmatprep.subr.bf16.mxu1 %v16866_v53  ;;  %v6564_v17 = vld [vmem:[#allocation7 + $0xe38] sm:$0xff] }
 0x6c4   :  { %v16842_v26 = vcombine.high %v6560_v7, %v6564_v17  ;;  %v6680_v53 = vld [vmem:[#allocation7 + $0x11d8] sm:$0xff]  ;;  %v16841_v2 = vcombine.low %v6560_v7, %v6564_v17 }
 0x6c5   :  { %13438 = vmatpush2.bf16.msra.mxu0 %v16737_v41  ;;  %v6684_v52 = vld [vmem:[#allocation7 + $0x11f8] sm:$0xff] }
 0x6c6   :  { %13481 = vmatpush2.bf16.msra.mxu1 %v16865_v6  ;;  %13439 = vmatprep.subr.bf16.mxu0 %v16730_v42  ;;  %v6808_v38 = vld [vmem:[#allocation7 + $0x15d8] sm:$0xff]  ;;  %v16962_v6 = vcombine.high %v6680_v53, %v6684_v52  ;;  %v16961_v10 = vcombine.low %v6680_v53, %v6684_v52 }
 0x6c7   :  { %13482 = vmatprep.subr.bf16.mxu1 %v16858_v51  ;;  %v6812_v41 = vld [vmem:[#allocation7 + $0x15f8] sm:$0xff] }
 0x6c8   :  { %v17090_v42 = vcombine.high %v6808_v38, %v6812_v41  ;;  %v6672_v51 = vld [vmem:[#allocation7 + $0x1198] sm:$0xff] }
 0x6c9   :  { %13440 = vmatpush2.bf16.msra.mxu0 %v16729_v36  ;;  %v6676_v9 = vld [vmem:[#allocation7 + $0x11b8] sm:$0xff]  ;;  %v18910_v36 = vpop.f32.mrf.mxu0 }
 0x6ca   :  { %13483 = vmatpush2.bf16.msra.mxu1 %v16857_v0  ;;  %13441 = vmatprep.subr.bf16.mxu0 %v16722_v3  ;;  %v6800_v37 = vld [vmem:[#allocation7 + $0x1598] sm:$0xff]  ;;  %v17089_v0 = vcombine.low %v6808_v38, %v6812_v41  ;;  %v18912_v3 = vpop.f32.mrf.mxu1  ;;  %v16953_v53 = vcombine.low %v6672_v51, %v6676_v9 }
 0x6cb   :  { %13484 = vmatprep.subr.bf16.mxu1 %v16850_v58  ;;  %v6804_v29 = vld [vmem:[#allocation7 + $0x15b8] sm:$0xff]  ;;  %v16954_v58 = vcombine.high %v6672_v51, %v6676_v9 }
 0x6cc   :  { %v6664_v39 = vld [vmem:[#allocation7 + $0x1158] sm:$0xff]  ;;  %v17082_v17 = vcombine.high %v6800_v37, %v6804_v29  ;;  %v17081_v38 = vcombine.low %v6800_v37, %v6804_v29 }
 0x6cd   :  { %13442 = vmatpush2.bf16.msra.mxu0 %v16721_v15  ;;  %v6668_v16 = vld [vmem:[#allocation7 + $0x1178] sm:$0xff] }
 0x6ce   :  { %13485 = vmatpush2.bf16.msra.mxu1 %v16849_v33  ;;  %13443 = vmatprep.subr.bf16.mxu0 %v16714_v23  ;;  %v6792_v15 = vld [vmem:[#allocation7 + $0x1558] sm:$0xff]  ;;  %v16946_v41 = vcombine.high %v6664_v39, %v6668_v16  ;;  %v16945_v9 = vcombine.low %v6664_v39, %v6668_v16 }
 0x6cf   :  { %13486 = vmatprep.subr.bf16.mxu1 %v16842_v26  ;;  %v6796_v33 = vld [vmem:[#allocation7 + $0x1578] sm:$0xff] }
 0x6d0   :  { %v6788_v51 = vld [vmem:[#allocation7 + $0x1538] sm:$0xff]  ;;  %v17073_v37 = vcombine.low %v6792_v15, %v6796_v33 }
 0x6d1   :  { %13444 = vmatpush2.bf16.msra.mxu0 %v16713_v19  ;;  %v6640_v16 = vld [vmem:[#allocation7 + $0x1098] sm:$0xff] }
 0x6d2   :  { %13487 = vmatpush2.bf16.msra.mxu1 %v16841_v2  ;;  %13499 = vmatprep.subr.bf16.mxu0 %v16962_v6  ;;  %v6656_v2 = vld [vmem:[#allocation7 + $0x1118] sm:$0xff] }
 0x6d3   :  { %13542 = vmatprep.subr.bf16.mxu1 %v17090_v42  ;;  %v6660_v6 = vld [vmem:[#allocation7 + $0x1138] sm:$0xff] }
 0x6d4   :  { %v13189_v7 = vpop.f32.mrf.mxu0  ;;  %13446 = vmatmul.mubr.bf16.vlgmr.msra.gmra.mxu0 %v19088_v22  ;;  %v6784_v42 = vld [vmem:[#allocation7 + $0x1518] sm:$0xff]  ;;  %v16938_v29 = vcombine.high %v6656_v2, %v6660_v6 }
 0x6d5   :  { %v13190_v23 = vadd.f32 %v13189_v7, %v18902_v48  ;;  %v13232_v26 = vpop.f32.mrf.mxu1  ;;  %13489 = vmatmul.mubr.bf16.vlgmr.msra.gmra.mxu1 %v19089_v46  ;;  %13500 = vmatpush1.bf16.msra.mxu0 %v16961_v10  ;;  %v17074_v48 = vcombine.high %v6792_v15, %v6796_v33  ;;  %v6652_v7 = vld [vmem:[#allocation7 + $0x10f8] sm:$0xff] }
 0x6d6   :  { %13531 = vmatprep.mubr.bf16.mxu0 %v18687_v24  ;;  %13543 = vmatpush1.bf16.msra.mxu1 %v17089_v0  ;;  %v18918_v52 = vpop.f32.mrf.mxu0  ;;  %v17066_v0 = vcombine.high %v6784_v42, %v6788_v51  ;;  %v6768_v15 = vld [vmem:[#allocation7 + $0x1498] sm:$0xff] }
 0x6d7   :  { %v18920_v19 = vadd.f32 %v13232_v26, %v13190_v23  ;;  %13574 = vmatprep.mubr.bf16.mxu1 %v18692_v63  ;;  %v18923_v22 = vpop.f32.mrf.mxu1  ;;  %13501 = vmatprep.subr.bf16.mxu0 %v16954_v58  ;;  %v6648_v58 = vld [vmem:[#allocation7 + $0x10d8] sm:$0xff] }
 0x6d8   :  { %v13193_v46 = vpop.f32.mrf.mxu0  ;;  %13544 = vmatprep.subr.bf16.mxu1 %v17082_v17  ;;  %v6776_v23 = vld [vmem:[#allocation7 + $0x14d8] sm:$0xff]  ;;  %v16937_v17 = vcombine.low %v6656_v2, %v6660_v6 }
 0x6d9   :  { %v13194_v24 = vadd.f32 %v13193_v46, %v18908_v12  ;;  %13502 = vmatpush1.bf16.msra.mxu0 %v16953_v53  ;;  %v13236_v10 = vpop.f32.mrf.mxu1  ;;  %v6780_v26 = vld [vmem:[#allocation7 + $0x14f8] sm:$0xff]  ;;  %v17065_v12 = vcombine.low %v6784_v42, %v6788_v51  ;;  %v16930_v53 = vcombine.high %v6648_v58, %v6652_v7 }
 0x6da   :  { %13545 = vmatpush1.bf16.msra.mxu1 %v17081_v38  ;;  %13503 = vmatprep.subr.bf16.mxu0 %v16946_v41  ;;  %v17058_v39 = vcombine.high %v6776_v23, %v6780_v26  ;;  %v6644_v38 = vld [vmem:[#allocation7 + $0x10b8] sm:$0xff]  ;;  %v16929_v41 = vcombine.low %v6648_v58, %v6652_v7 }
 0x6db   :  { %v18926_v63 = vadd.f32 %v13236_v10, %v13194_v24  ;;  %13546 = vmatprep.subr.bf16.mxu1 %v17074_v48  ;;  %v6772_v33 = vld [vmem:[#allocation7 + $0x14b8] sm:$0xff]  ;;  %v17057_v48 = vcombine.low %v6776_v23, %v6780_v26  ;;  %v16922_v46 = vcombine.high %v6640_v16, %v6644_v38  ;;  %v16921_v42 = vcombine.low %v6640_v16, %v6644_v38 }
 0x6dc   :  { %v17050_v24 = vcombine.high %v6768_v15, %v6772_v33  ;;  %v6636_v2 = vld [vmem:[#allocation7 + $0x1078] sm:$0xff]  ;;  %v17049_v51 = vcombine.low %v6768_v15, %v6772_v33 }
 0x6dd   :  { %13504 = vmatpush1.bf16.msra.mxu0 %v16945_v9  ;;  %v6632_v9 = vld [vmem:[#allocation7 + $0x1058] sm:$0xff] }
 0x6de   :  { %13547 = vmatpush1.bf16.msra.mxu1 %v17073_v37  ;;  %13505 = vmatprep.subr.bf16.mxu0 %v16938_v29  ;;  %v6760_v6 = vld [vmem:[#allocation7 + $0x1458] sm:$0xff]  ;;  %v16914_v37 = vcombine.high %v6632_v9, %v6636_v2  ;;  %v16913_v23 = vcombine.low %v6632_v9, %v6636_v2 }
 0x6df   :  { %13548 = vmatprep.subr.bf16.mxu1 %v17066_v0  ;;  %v6764_v10 = vld [vmem:[#allocation7 + $0x1478] sm:$0xff] }
 0x6e0   :  { %v17042_v29 = vcombine.high %v6760_v6, %v6764_v10  ;;  %v6624_v0 = vld [vmem:[#allocation7 + $0x1018] sm:$0xff]  ;;  %v17041_v26 = vcombine.low %v6760_v6, %v6764_v10 }
 0x6e1   :  { %13506 = vmatpush1.bf16.msra.mxu0 %v16937_v17  ;;  %v6628_v58 = vld [vmem:[#allocation7 + $0x1038] sm:$0xff] }
 0x6e2   :  { %13549 = vmatpush1.bf16.msra.mxu1 %v17065_v12  ;;  %13507 = vmatprep.subr.bf16.mxu0 %v16930_v53  ;;  %v6752_v7 = vld [vmem:[#allocation7 + $0x1418] sm:$0xff]  ;;  %v16906_v12 = vcombine.high %v6624_v0, %v6628_v58  ;;  %v16905_v15 = vcombine.low %v6624_v0, %v6628_v58 }
 0x6e3   :  { %13550 = vmatprep.subr.bf16.mxu1 %v17058_v39  ;;  %v6756_v17 = vld [vmem:[#allocation7 + $0x1438] sm:$0xff] }
 0x6e4   :  { %v17034_v53 = vcombine.high %v6752_v7, %v6756_v17  ;;  %v6744_v39 = vld [vmem:[#allocation7 + $0x13d8] sm:$0xff]  ;;  %v17033_v33 = vcombine.low %v6752_v7, %v6756_v17 }
 0x6e5   :  { %13508 = vmatpush1.bf16.msra.mxu0 %v16929_v41  ;;  %v6748_v16 = vld [vmem:[#allocation7 + $0x13f8] sm:$0xff] }
 0x6e6   :  { %13551 = vmatpush1.bf16.msra.mxu1 %v17057_v48  ;;  %13509 = vmatprep.subr.bf16.mxu0 %v16922_v46  ;;  %v6872_v38 = vld [vmem:[#allocation7 + $0x17d8] sm:$0xff]  ;;  %v17026_v48 = vcombine.high %v6744_v39, %v6748_v16  ;;  %v17025_v6 = vcombine.low %v6744_v39, %v6748_v16 }
 0x6e7   :  { %13552 = vmatprep.subr.bf16.mxu1 %v17050_v24  ;;  %v6876_v41 = vld [vmem:[#allocation7 + $0x17f8] sm:$0xff] }
 0x6e8   :  { %v17154_v46 = vcombine.high %v6872_v38, %v6876_v41  ;;  %v6736_v24 = vld [vmem:[#allocation7 + $0x1398] sm:$0xff]  ;;  %v17153_v10 = vcombine.low %v6872_v38, %v6876_v41 }
 0x6e9   :  { %13510 = vmatpush1.bf16.msra.mxu0 %v16921_v42  ;;  %v6740_v9 = vld [vmem:[#allocation7 + $0x13b8] sm:$0xff] }
 0x6ea   :  { %13553 = vmatpush1.bf16.msra.mxu1 %v17049_v51  ;;  %13511 = vmatprep.subr.bf16.mxu0 %v16914_v37  ;;  %v6864_v2 = vld [vmem:[#allocation7 + $0x1798] sm:$0xff]  ;;  %v17018_v51 = vcombine.high %v6736_v24, %v6740_v9  ;;  %v17017_v7 = vcombine.low %v6736_v24, %v6740_v9 }
 0x6eb   :  { %13554 = vmatprep.subr.bf16.mxu1 %v17042_v29  ;;  %v6868_v42 = vld [vmem:[#allocation7 + $0x17b8] sm:$0xff] }
 0x6ec   :  { %v17146_v37 = vcombine.high %v6864_v2, %v6868_v42  ;;  %v6728_v29 = vld [vmem:[#allocation7 + $0x1358] sm:$0xff]  ;;  %v17145_v17 = vcombine.low %v6864_v2, %v6868_v42 }
 0x6ed   :  { %13512 = vmatpush1.bf16.msra.mxu0 %v16913_v23  ;;  %v6732_v0 = vld [vmem:[#allocation7 + $0x1378] sm:$0xff] }
 0x6ee   :  { %13555 = vmatpush1.bf16.msra.mxu1 %v17041_v26  ;;  %13513 = vmatprep.subr.bf16.mxu0 %v16906_v12  ;;  %v6856_v58 = vld [vmem:[#allocation7 + $0x1758] sm:$0xff]  ;;  %v17010_v26 = vcombine.high %v6728_v29, %v6732_v0  ;;  %v17009_v38 = vcombine.low %v6728_v29, %v6732_v0 }
 0x6ef   :  { %13556 = vmatprep.subr.bf16.mxu1 %v17034_v53  ;;  %v6860_v23 = vld [vmem:[#allocation7 + $0x1778] sm:$0xff] }
 0x6f0   :  { %v17138_v12 = vcombine.high %v6856_v58, %v6860_v23  ;;  %v6720_v53 = vld [vmem:[#allocation7 + $0x1318] sm:$0xff]  ;;  %v17137_v41 = vcombine.low %v6856_v58, %v6860_v23 }
 0x6f1   :  { %13514 = vmatpush1.bf16.msra.mxu0 %v16905_v15  ;;  %v6724_v39 = vld [vmem:[#allocation7 + $0x1338] sm:$0xff] }
 0x6f2   :  { %13557 = vmatpush1.bf16.msra.mxu1 %v17033_v33  ;;  %13515 = vmatprep.subr.bf16.mxu0 %v17026_v48  ;;  %v6848_v16 = vld [vmem:[#allocation7 + $0x1718] sm:$0xff]  ;;  %v17002_v33 = vcombine.high %v6720_v53, %v6724_v39  ;;  %v17001_v2 = vcombine.low %v6720_v53, %v6724_v39 }
 0x6f3   :  { %13558 = vmatprep.subr.bf16.mxu1 %v17154_v46  ;;  %v6852_v15 = vld [vmem:[#allocation7 + $0x1738] sm:$0xff] }
 0x6f4   :  { %v17130_v48 = vcombine.high %v6848_v16, %v6852_v15  ;;  %v6712_v46 = vld [vmem:[#allocation7 + $0x12d8] sm:$0xff]  ;;  %v17129_v42 = vcombine.low %v6848_v16, %v6852_v15 }
 0x6f5   :  { %13516 = vmatpush2.bf16.msra.mxu0 %v17025_v6  ;;  %v6716_v24 = vld [vmem:[#allocation7 + $0x12f8] sm:$0xff] }
 0x6f6   :  { %13559 = vmatpush2.bf16.msra.mxu1 %v17153_v10  ;;  %13517 = vmatprep.subr.bf16.mxu0 %v17018_v51  ;;  %v6840_v9 = vld [vmem:[#allocation7 + $0x16d8] sm:$0xff]  ;;  %v16994_v10 = vcombine.high %v6712_v46, %v6716_v24  ;;  %v16993_v58 = vcombine.low %v6712_v46, %v6716_v24 }
 0x6f7   :  { %13560 = vmatprep.subr.bf16.mxu1 %v17146_v37  ;;  %v6844_v6 = vld [vmem:[#allocation7 + $0x16f8] sm:$0xff] }
 0x6f8   :  { %v17122_v51 = vcombine.high %v6840_v9, %v6844_v6  ;;  %v6704_v37 = vld [vmem:[#allocation7 + $0x1298] sm:$0xff]  ;;  %v17121_v23 = vcombine.low %v6840_v9, %v6844_v6 }
 0x6f9   :  { %13518 = vmatpush2.bf16.msra.mxu0 %v17017_v7  ;;  %v6708_v29 = vld [vmem:[#allocation7 + $0x12b8] sm:$0xff] }
 0x6fa   :  { %13561 = vmatpush2.bf16.msra.mxu1 %v17145_v17  ;;  %13519 = vmatprep.subr.bf16.mxu0 %v17010_v26  ;;  %v6832_v0 = vld [vmem:[#allocation7 + $0x1698] sm:$0xff]  ;;  %v16986_v17 = vcombine.high %v6704_v37, %v6708_v29  ;;  %v16985_v16 = vcombine.low %v6704_v37, %v6708_v29 }
 0x6fb   :  { %13562 = vmatprep.subr.bf16.mxu1 %v17138_v12  ;;  %v6836_v7 = vld [vmem:[#allocation7 + $0x16b8] sm:$0xff] }
 0x6fc   :  { %v17114_v26 = vcombine.high %v6832_v0, %v6836_v7  ;;  %v6696_v12 = vld [vmem:[#allocation7 + $0x1258] sm:$0xff]  ;;  %v17113_v15 = vcombine.low %v6832_v0, %v6836_v7 }
 0x6fd   :  { %13520 = vmatpush2.bf16.msra.mxu0 %v17009_v38  ;;  %v6700_v53 = vld [vmem:[#allocation7 + $0x1278] sm:$0xff] }
 0x6fe   :  { %13563 = vmatpush2.bf16.msra.mxu1 %v17137_v41  ;;  %13521 = vmatprep.subr.bf16.mxu0 %v17002_v33  ;;  %v6824_v39 = vld [vmem:[#allocation7 + $0x1658] sm:$0xff]  ;;  %v16978_v41 = vcombine.high %v6696_v12, %v6700_v53  ;;  %v16977_v9 = vcombine.low %v6696_v12, %v6700_v53 }
 0x6ff   :  { %13564 = vmatprep.subr.bf16.mxu1 %v17130_v48  ;;  %v6828_v38 = vld [vmem:[#allocation7 + $0x1678] sm:$0xff] }
 0x700   :  { %v17106_v33 = vcombine.high %v6824_v39, %v6828_v38  ;;  %v6688_v48 = vld [vmem:[#allocation7 + $0x1218] sm:$0xff]  ;;  %v17105_v6 = vcombine.low %v6824_v39, %v6828_v38 }
 0x701   :  { %13522 = vmatpush2.bf16.msra.mxu0 %v17001_v2  ;;  %v6692_v46 = vld [vmem:[#allocation7 + $0x1238] sm:$0xff] }
 0x702   :  { %13565 = vmatpush2.bf16.msra.mxu1 %v17129_v42  ;;  %13523 = vmatprep.subr.bf16.mxu0 %v16994_v10  ;;  %v6816_v24 = vld [vmem:[#allocation7 + $0x1618] sm:$0xff]  ;;  %v16970_v42 = vcombine.high %v6688_v48, %v6692_v46  ;;  %v16969_v0 = vcombine.low %v6688_v48, %v6692_v46 }
 0x703   :  { %13566 = vmatprep.subr.bf16.mxu1 %v17122_v51  ;;  %v6820_v2 = vld [vmem:[#allocation7 + $0x1638] sm:$0xff] }
 0x704   :  { %v17098_v10 = vcombine.high %v6816_v24, %v6820_v2  ;;  %v6936_v51 = vld [vmem:[#allocation7 + $0x19d8] sm:$0xff]  ;;  %v17097_v7 = vcombine.low %v6816_v24, %v6820_v2 }
 0x705   :  { %13524 = vmatpush2.bf16.msra.mxu0 %v16993_v58  ;;  %v6940_v37 = vld [vmem:[#allocation7 + $0x19f8] sm:$0xff] }
 0x706   :  { %13567 = vmatpush2.bf16.msra.mxu1 %v17121_v23  ;;  %13525 = vmatprep.subr.bf16.mxu0 %v16986_v17  ;;  %v7064_v29 = vld [vmem:[#allocation7 + $0x1dd8] sm:$0xff]  ;;  %v17218_v23 = vcombine.high %v6936_v51, %v6940_v37  ;;  %v17217_v53 = vcombine.low %v6936_v51, %v6940_v37 }
 0x707   :  { %13568 = vmatprep.subr.bf16.mxu1 %v17114_v26  ;;  %v7068_v58 = vld [vmem:[#allocation7 + $0x1df8] sm:$0xff] }
 0x708   :  { %v17346_v17 = vcombine.high %v7064_v29, %v7068_v58  ;;  %v6928_v26 = vld [vmem:[#allocation7 + $0x1998] sm:$0xff] }
 0x709   :  { %13526 = vmatpush2.bf16.msra.mxu0 %v16985_v16  ;;  %v6932_v12 = vld [vmem:[#allocation7 + $0x19b8] sm:$0xff]  ;;  %v18928_v16 = vpop.f32.mrf.mxu0 }
 0x70a   :  { %13569 = vmatpush2.bf16.msra.mxu1 %v17113_v15  ;;  %13527 = vmatprep.subr.bf16.mxu0 %v16978_v41  ;;  %v7056_v39 = vld [vmem:[#allocation7 + $0x1d98] sm:$0xff]  ;;  %v17345_v15 = vcombine.low %v7064_v29, %v7068_v58  ;;  %v18930_v41 = vpop.f32.mrf.mxu1  ;;  %v17209_v51 = vcombine.low %v6928_v26, %v6932_v12 }
 0x70b   :  { %13570 = vmatprep.subr.bf16.mxu1 %v17106_v33  ;;  %v7060_v38 = vld [vmem:[#allocation7 + $0x1db8] sm:$0xff]  ;;  %v17210_v33 = vcombine.high %v6928_v26, %v6932_v12 }
 0x70c   :  { %v6920_v48 = vld [vmem:[#allocation7 + $0x1958] sm:$0xff]  ;;  %v17338_v2 = vcombine.high %v7056_v39, %v7060_v38  ;;  %v17337_v29 = vcombine.low %v7056_v39, %v7060_v38 }
 0x70d   :  { %13528 = vmatpush2.bf16.msra.mxu0 %v16977_v9  ;;  %v6924_v46 = vld [vmem:[#allocation7 + $0x1978] sm:$0xff] }
 0x70e   :  { %13571 = vmatpush2.bf16.msra.mxu1 %v17105_v6  ;;  %13529 = vmatprep.subr.bf16.mxu0 %v16970_v42  ;;  %v7048_v9 = vld [vmem:[#allocation7 + $0x1d58] sm:$0xff]  ;;  %v17202_v58 = vcombine.high %v6920_v48, %v6924_v46  ;;  %v17201_v12 = vcombine.low %v6920_v48, %v6924_v46 }
 0x70f   :  { %13572 = vmatprep.subr.bf16.mxu1 %v17098_v10  ;;  %v7052_v6 = vld [vmem:[#allocation7 + $0x1d78] sm:$0xff] }
 0x710   :  { %v7044_v26 = vld [vmem:[#allocation7 + $0x1d38] sm:$0xff]  ;;  %v17329_v39 = vcombine.low %v7048_v9, %v7052_v6 }
 0x711   :  { %13530 = vmatpush2.bf16.msra.mxu0 %v16969_v0 }
 0x712   :  { %13573 = vmatpush2.bf16.msra.mxu1 %v17097_v7  ;;  %13585 = vmatprep.subr.bf16.mxu0 %v17218_v23  ;;  %v17330_v7 = vcombine.high %v7048_v9, %v7052_v6  ;;  %v6916_v23 = vld [vmem:[#allocation7 + $0x1938] sm:$0xff] }
 0x713   :  { %13628 = vmatprep.subr.bf16.mxu1 %v17346_v17  ;;  %v6896_v6 = vld [vmem:[#allocation7 + $0x1898] sm:$0xff] }
 0x714   :  { %v13275_v24 = vpop.f32.mrf.mxu0  ;;  %13532 = vmatmul.mubr.bf16.vlgmr.msra.gmra.mxu0 %v18570_v50 }
 0x715   :  { %v13276_v42 = vadd.f32 %v13275_v24, %v18920_v19  ;;  %v13318_v10 = vpop.f32.mrf.mxu1  ;;  %13575 = vmatmul.mubr.bf16.vlgmr.msra.gmra.mxu1 %v18623_v62  ;;  %13586 = vmatpush1.bf16.msra.mxu0 %v17217_v53  ;;  %v6912_v19 = vld [vmem:[#allocation7 + $0x1918] sm:$0xff] }
 0x716   :  { %13617 = vmatprep.mubr.bf16.mxu0 %v18713_v61  ;;  %13629 = vmatpush1.bf16.msra.mxu1 %v17345_v15  ;;  %v18936_v37 = vpop.f32.mrf.mxu0  ;;  %v7040_v62 = vld [vmem:[#allocation7 + $0x1d18] sm:$0xff]  ;;  %v17194_v38 = vcombine.high %v6912_v19, %v6916_v23 }
 0x717   :  { %v13319_v0 = vadd.f32 %v13318_v10, %v13276_v42  ;;  %13660 = vmatprep.mubr.bf16.mxu1 %v18728_v4  ;;  %v18939_v50 = vpop.f32.mrf.mxu1  ;;  %13587 = vmatprep.subr.bf16.mxu0 %v17210_v33  ;;  %v17322_v15 = vcombine.high %v7040_v62, %v7044_v26  ;;  %v6904_v33 = vld [vmem:[#allocation7 + $0x18d8] sm:$0xff] }
 0x718   :  { %19108 = vst [vmem:[#allocation38_spill] sm:$0xff] %v18939_v50  ;;  %v13279_v17 = vpop.f32.mrf.mxu0  ;;  %13630 = vmatprep.subr.bf16.mxu1 %v17338_v2  ;;  %v6908_v24 = vld [vmem:[#allocation7 + $0x18f8] sm:$0xff]  ;;  %v17193_v50 = vcombine.low %v6912_v19, %v6916_v23 }
 0x719   :  { %v13280_v61 = vadd.f32 %v13279_v17, %v18926_v63  ;;  %13588 = vmatpush1.bf16.msra.mxu0 %v17209_v51  ;;  %v13322_v53 = vpop.f32.mrf.mxu1  ;;  %v7032_v42 = vld [vmem:[#allocation7 + $0x1cd8] sm:$0xff]  ;;  %v13675_v47 = vmax.f32 %v13319_v0, 0.0  ;;  %v17321_v63 = vcombine.low %v7040_v62, %v7044_v26  ;;  %v17186_v48 = vcombine.high %v6904_v33, %v6908_v24 }
 0x71a   :  { %13631 = vmatpush1.bf16.msra.mxu1 %v17337_v29  ;;  %13589 = vmatprep.subr.bf16.mxu0 %v17202_v58  ;;  %v7036_v10 = vld [vmem:[#allocation7 + $0x1cf8] sm:$0xff] }
 0x71b   :  { %v13323_v4 = vadd.f32 %v13322_v53, %v13280_v61  ;;  %13632 = vmatprep.subr.bf16.mxu1 %v17330_v7  ;;  %v17314_v9 = vcombine.high %v7032_v42, %v7036_v10  ;;  %v6900_v51 = vld [vmem:[#allocation7 + $0x18b8] sm:$0xff]  ;;  %v17185_v7 = vcombine.low %v6904_v33, %v6908_v24  ;;  %v17313_v0 = vcombine.low %v7032_v42, %v7036_v10 }
 0x71c   :  { %v7024_v29 = vld [vmem:[#allocation7 + $0x1c98] sm:$0xff]  ;;  %v17178_v17 = vcombine.high %v6896_v6, %v6900_v51 }
 0x71d   :  { %v13683_v2 = vmax.f32 %v13323_v4, 0.0  ;;  %13590 = vmatpush1.bf16.msra.mxu0 %v17201_v12  ;;  %v7028_v58 = vld [vmem:[#allocation7 + $0x1cb8] sm:$0xff] }
 0x71e   :  { %13633 = vmatpush1.bf16.msra.mxu1 %v17329_v39  ;;  %13591 = vmatprep.subr.bf16.mxu0 %v17194_v38  ;;  %v17306_v19 = vcombine.high %v7024_v29, %v7028_v58  ;;  %v6888_v23 = vld [vmem:[#allocation7 + $0x1858] sm:$0xff]  ;;  %v17305_v12 = vcombine.low %v7024_v29, %v7028_v58 }
 0x71f   :  { %v18942_v46 = vpack.c.bf16 %v13683_v2, %v13675_v47  ;;  %13634 = vmatprep.subr.bf16.mxu1 %v17322_v15  ;;  %v6892_v61 = vld [vmem:[#allocation7 + $0x1878] sm:$0xff]  ;;  %v17177_v47 = vcombine.low %v6896_v6, %v6900_v51 }
 0x720   :  { %v7016_v62 = vld [vmem:[#allocation7 + $0x1c58] sm:$0xff]  ;;  %v17170_v53 = vcombine.high %v6888_v23, %v6892_v61  ;;  %v17169_v33 = vcombine.low %v6888_v23, %v6892_v61 }
 0x721   :  { %13592 = vmatpush1.bf16.msra.mxu0 %v17193_v50  ;;  %v7020_v26 = vld [vmem:[#allocation7 + $0x1c78] sm:$0xff] }
 0x722   :  { %13635 = vmatpush1.bf16.msra.mxu1 %v17321_v63  ;;  %13593 = vmatprep.subr.bf16.mxu0 %v17186_v48  ;;  %v17298_v39 = vcombine.high %v7016_v62, %v7020_v26  ;;  %v6880_v50 = vld [vmem:[#allocation7 + $0x1818] sm:$0xff]  ;;  %v17297_v24 = vcombine.low %v7016_v62, %v7020_v26  ;;  %v18944_v26 = vld [vmem:[#allocation8] sm:$0xff] }
 0x723   :  { %13636 = vmatprep.subr.bf16.mxu1 %v17314_v9  ;;  %v6884_v38 = vld [vmem:[#allocation7 + $0x1838] sm:$0xff] }
 0x724   :  { %v7008_v4 = vld [vmem:[#allocation7 + $0x1c18] sm:$0xff]  ;;  %v17162_v42 = vcombine.high %v6880_v50, %v6884_v38  ;;  %v17161_v6 = vcombine.low %v6880_v50, %v6884_v38 }
 0x725   :  { %13594 = vmatpush1.bf16.msra.mxu0 %v17185_v7  ;;  %v7012_v15 = vld [vmem:[#allocation7 + $0x1c38] sm:$0xff] }
 0x726   :  { %13637 = vmatpush1.bf16.msra.mxu1 %v17313_v0  ;;  %13595 = vmatprep.subr.bf16.mxu0 %v17178_v17  ;;  %v17290_v10 = vcombine.high %v7008_v4, %v7012_v15  ;;  %v7000_v2 = vld [vmem:[#allocation7 + $0x1bd8] sm:$0xff]  ;;  %v17289_v51 = vcombine.low %v7008_v4, %v7012_v15  ;;  %v7150_v4 = vrot.slane %v18944_v26, %v18584_v18 }
 0x727   :  { %13638 = vmatprep.subr.bf16.mxu1 %v17306_v19  ;;  %v7004_v63 = vld [vmem:[#allocation7 + $0x1bf8] sm:$0xff] }
 0x728   :  { %v7128_v48 = vld [vmem:[#allocation7 + $0x1fd8] sm:$0xff]  ;;  %v17282_v29 = vcombine.high %v7000_v2, %v7004_v63  ;;  %v17281_v23 = vcombine.low %v7000_v2, %v7004_v63  ;;  %v12680_v2 = vadd.f32 %v18823_v43, %v7150_v4 }
 0x729   :  { %13596 = vmatpush1.bf16.msra.mxu0 %v17177_v47  ;;  %v7132_v9 = vld [vmem:[#allocation7 + $0x1ff8] sm:$0xff]  ;;  %v7142_v47 = vrot.slane %v18944_v26, %v18573_v28 }
 0x72a   :  { %13639 = vmatpush1.bf16.msra.mxu1 %v17305_v12  ;;  %13597 = vmatprep.subr.bf16.mxu0 %v17170_v53  ;;  %v17410_v58 = vcombine.high %v7128_v48, %v7132_v9  ;;  %v6992_v7 = vld [vmem:[#allocation7 + $0x1b98] sm:$0xff]  ;;  %v17409_v61 = vcombine.low %v7128_v48, %v7132_v9  ;;  %v12723_v43 = vadd.f32 %v18825_v14, %v12680_v2 }
 0x72b   :  { %13640 = vmatprep.subr.bf16.mxu1 %v17298_v39  ;;  %v6996_v0 = vld [vmem:[#allocation7 + $0x1bb8] sm:$0xff] }
 0x72c   :  { %v7120_v17 = vld [vmem:[#allocation7 + $0x1f98] sm:$0xff]  ;;  %v17274_v62 = vcombine.high %v6992_v7, %v6996_v0  ;;  %v17273_v15 = vcombine.low %v6992_v7, %v6996_v0 }
 0x72d   :  { %13598 = vmatpush1.bf16.msra.mxu0 %v17169_v33  ;;  %v7124_v19 = vld [vmem:[#allocation7 + $0x1fb8] sm:$0xff]  ;;  %v12336_v33 = vadd.f32 %v18754_v60, %v7142_v47 }
 0x72e   :  { %13641 = vmatpush1.bf16.msra.mxu1 %v17297_v24  ;;  %13599 = vmatprep.subr.bf16.mxu0 %v17162_v42  ;;  %v17402_v12 = vcombine.high %v7120_v17, %v7124_v19  ;;  %v6984_v53 = vld [vmem:[#allocation7 + $0x1b58] sm:$0xff]  ;;  %v17401_v24 = vcombine.low %v7120_v17, %v7124_v19 }
 0x72f   :  { %13642 = vmatprep.subr.bf16.mxu1 %v17290_v10  ;;  %v6988_v39 = vld [vmem:[#allocation7 + $0x1b78] sm:$0xff]  ;;  %v12332_v10 = vadd.f32 %v18745_v54, %v7142_v47  ;;  %v12379_v60 = vadd.f32 %v18756_v59, %v12336_v33 }
 0x730   :  { %v7112_v50 = vld [vmem:[#allocation7 + $0x1f58] sm:$0xff]  ;;  %v17266_v42 = vcombine.high %v6984_v53, %v6988_v39 }
 0x731   :  { %13600 = vmatpush1.bf16.msra.mxu0 %v17161_v6  ;;  %v7116_v38 = vld [vmem:[#allocation7 + $0x1f78] sm:$0xff]  ;;  %v12375_v54 = vadd.f32 %v18750_v44, %v12332_v10 }
 0x732   :  { %13643 = vmatpush1.bf16.msra.mxu1 %v17289_v51  ;;  %13601 = vmatprep.subr.bf16.mxu0 %v17282_v29  ;;  %v17394_v63 = vcombine.high %v7112_v50, %v7116_v38  ;;  %v6976_v48 = vld [vmem:[#allocation7 + $0x1b18] sm:$0xff]  ;;  %v12676_v29 = vadd.f32 %v18814_v40, %v7150_v4  ;;  %v17393_v7 = vcombine.low %v7112_v50, %v7116_v38 }
 0x733   :  { %13644 = vmatprep.subr.bf16.mxu1 %v17410_v58  ;;  %v6980_v9 = vld [vmem:[#allocation7 + $0x1b38] sm:$0xff]  ;;  %v17265_v58 = vcombine.low %v6984_v53, %v6988_v39  ;;  %v12418_v47 = vadd.f32 %v18762_v34, %v12375_v54 }
 0x734   :  { %v7104_v6 = vld [vmem:[#allocation7 + $0x1f18] sm:$0xff]  ;;  %v17258_v0 = vcombine.high %v6976_v48, %v6980_v9  ;;  %v12719_v59 = vadd.f32 %v18819_v30, %v12676_v29  ;;  %v17257_v53 = vcombine.low %v6976_v48, %v6980_v9 }
 0x735   :  { %13602 = vmatpush2.bf16.msra.mxu0 %v17281_v23  ;;  %v7108_v51 = vld [vmem:[#allocation7 + $0x1f38] sm:$0xff]  ;;  %v12461_v30 = vadd.f32 %v18767_v35, %v12418_v47 }
 0x736   :  { %13645 = vmatpush2.bf16.msra.mxu1 %v17409_v61  ;;  %13603 = vmatprep.subr.bf16.mxu0 %v17274_v62  ;;  %v17386_v17 = vcombine.high %v7104_v6, %v7108_v51  ;;  %v6968_v19 = vld [vmem:[#allocation7 + $0x1ad8] sm:$0xff]  ;;  %v12422_v61 = vadd.f32 %v18772_v49, %v12379_v60  ;;  %v17385_v44 = vcombine.low %v7104_v6, %v7108_v51 }
 0x737   :  { %13646 = vmatprep.subr.bf16.mxu1 %v17402_v12  ;;  %v6972_v23 = vld [vmem:[#allocation7 + $0x1af8] sm:$0xff]  ;;  %v12766_v12 = vadd.f32 %v18841_v11, %v12723_v43  ;;  %v12762_v39 = vadd.f32 %v18831_v57, %v12719_v59  ;;  %v19116_v59 = vld [vmem:[#allocation28_spill] sm:$0xff] }
 0x738   :  { %v7096_v62 = vld [vmem:[#allocation7 + $0x1ed8] sm:$0xff]  ;;  %v17250_v14 = vcombine.high %v6968_v19, %v6972_v23  ;;  %v12465_v4 = vadd.f32 %v18774_v8, %v12422_v61  ;;  %v17249_v33 = vcombine.low %v6968_v19, %v6972_v23 }
 0x739   :  { %13604 = vmatpush2.bf16.msra.mxu0 %v17273_v15  ;;  %v7100_v40 = vld [vmem:[#allocation7 + $0x1ef8] sm:$0xff]  ;;  %v12809_v11 = vadd.f32 %v18843_v32, %v12766_v12 }
 0x73a   :  { %13647 = vmatpush2.bf16.msra.mxu1 %v17401_v24  ;;  %13605 = vmatprep.subr.bf16.mxu0 %v17266_v42  ;;  %v17378_v50 = vcombine.high %v7096_v62, %v7100_v40  ;;  %v6960_v38 = vld [vmem:[#allocation7 + $0x1a98] sm:$0xff]  ;;  %v12508_v24 = vadd.f32 %v18790_v45, %v12465_v4  ;;  %v17377_v42 = vcombine.low %v7096_v62, %v7100_v40  ;;  %v19115_v40 = vld [vmem:[#allocation20_spill] sm:$0xff] }
 0x73b   :  { %13648 = vmatprep.subr.bf16.mxu1 %v17394_v63  ;;  %v6964_v49 = vld [vmem:[#allocation7 + $0x1ab8] sm:$0xff]  ;;  %v19110_v63 = vld [vmem:[#allocation33_spill] sm:$0xff] }
 0x73c   :  { %v7088_v15 = vld [vmem:[#allocation7 + $0x1e98] sm:$0xff]  ;;  %v17242_v57 = vcombine.high %v6960_v38, %v6964_v49  ;;  %v12852_v48 = vadd.f32 %v19110_v63, %v12809_v11  ;;  %v17241_v45 = vcombine.low %v6960_v38, %v6964_v49  ;;  %v19118_v49 = vld [vmem:[#allocation25_spill] sm:$0xff] }
 0x73d   :  { %13606 = vmatpush2.bf16.msra.mxu0 %v17265_v58  ;;  %v7092_v34 = vld [vmem:[#allocation7 + $0x1eb8] sm:$0xff] }
 0x73e   :  { %13649 = vmatpush2.bf16.msra.mxu1 %v17393_v7  ;;  %13607 = vmatprep.subr.bf16.mxu0 %v17258_v0  ;;  %v19109_v10 = vld [vmem:[#allocation30_spill] sm:$0xff]  ;;  %v17370_v8 = vcombine.high %v7088_v15, %v7092_v34  ;;  %v19111_v51 = vld [vmem:[#allocation19_spill] sm:$0xff]  ;;  %v17369_v54 = vcombine.low %v7088_v15, %v7092_v34 }
 0x73f   :  { %13650 = vmatprep.subr.bf16.mxu1 %v17386_v17  ;;  %v12805_v2 = vadd.f32 %v19109_v10, %v12762_v39  ;;  %v6952_v9 = vld [vmem:[#allocation7 + $0x1a58] sm:$0xff]  ;;  %v12504_v35 = vadd.f32 %v19111_v51, %v12461_v30 }
 0x740   :  { %v6956_v6 = vld [vmem:[#allocation7 + $0x1a78] sm:$0xff] }
 0x741   :  { %13608 = vmatpush2.bf16.msra.mxu0 %v17257_v53  ;;  %v7080_v29 = vld [vmem:[#allocation7 + $0x1e58] sm:$0xff]  ;;  %v17234_v43 = vcombine.high %v6952_v9, %v6956_v6  ;;  %v12547_v47 = vadd.f32 %v19115_v40, %v12504_v35  ;;  %v17233_v38 = vcombine.low %v6952_v9, %v6956_v6 }
 0x742   :  { %13651 = vmatpush2.bf16.msra.mxu1 %v17385_v44  ;;  %13609 = vmatprep.subr.bf16.mxu0 %v17250_v14  ;;  %v7084_v32 = vld [vmem:[#allocation7 + $0x1e78] sm:$0xff]  ;;  %v19117_v14 = vld [vmem:[#allocation32_spill] sm:$0xff] }
 0x743   :  { %13652 = vmatprep.subr.bf16.mxu1 %v17378_v50  ;;  %v19112_v58 = vld [vmem:[#allocation31_spill] sm:$0xff]  ;;  %v19113_v7 = vld [vmem:[#allocation22_spill] sm:$0xff]  ;;  %v17362_v23 = vcombine.high %v7080_v29, %v7084_v32  ;;  %v12590_v4 = vadd.f32 %v19118_v49, %v12547_v47  ;;  %v17361_v15 = vcombine.low %v7080_v29, %v7084_v32 }
 0x744   :  { %v12848_v60 = vadd.f32 %v19112_v58, %v12805_v2  ;;  %v12551_v0 = vadd.f32 %v19113_v7, %v12508_v24  ;;  %v19114_v17 = vld [vmem:[#allocation34_spill] sm:$0xff]  ;;  %v19119_v30 = vld [vmem:[#allocation35_spill] sm:$0xff]  ;;  %v19120_v24 = vld [vmem:[#allocation29_spill] sm:$0xff] }
 0x745   :  { %13610 = vmatpush2.bf16.msra.mxu0 %v17249_v33  ;;  %v12895_v19 = vadd.f32 %v19114_v17, %v12852_v48  ;;  %v6944_v61 = vld [vmem:[#allocation7 + $0x1a18] sm:$0xff] }
 0x746   :  { %13653 = vmatpush2.bf16.msra.mxu1 %v17377_v42  ;;  %13611 = vmatprep.subr.bf16.mxu0 %v17242_v57  ;;  %v6948_v62 = vld [vmem:[#allocation7 + $0x1a38] sm:$0xff]  ;;  %v12594_v12 = vadd.f32 %v19116_v59, %v12551_v0  ;;  %v12891_v39 = vadd.f32 %v19117_v14, %v12848_v60 }
 0x747   :  { %13654 = vmatprep.subr.bf16.mxu1 %v17370_v8  ;;  %v7072_v53 = vld [vmem:[#allocation7 + $0x1e18] sm:$0xff]  ;;  %v12938_v50 = vadd.f32 %v18876_v1, %v12895_v19  ;;  %v17226_v34 = vcombine.high %v6944_v61, %v6948_v62  ;;  %v17225_v10 = vcombine.low %v6944_v61, %v6948_v62  ;;  %v19122_v8 = vld [vmem:[#allocation36_spill] sm:$0xff] }
 0x748   :  { %v7076_v44 = vld [vmem:[#allocation7 + $0x1e38] sm:$0xff]  ;;  %v12934_v11 = vadd.f32 %v19119_v30, %v12891_v39  ;;  %v12637_v42 = vadd.f32 %v19120_v24, %v12594_v12 }
 0x749   :  { %13612 = vmatpush2.bf16.msra.mxu0 %v17241_v45  ;;  %v17354_v33 = vcombine.high %v7072_v53, %v7076_v44  ;;  %v12981_v57 = vadd.f32 %v18878_v27, %v12938_v50  ;;  %v19121_v2 = vld [vmem:[#allocation26_spill] sm:$0xff]  ;;  %v17353_v63 = vcombine.low %v7072_v53, %v7076_v44  ;;  %v17690_v48 = vld [vmem:[#allocation10 + $0xe4] ss:$16 sps:$4 sm:$0xff]  }
 0x74a   :  { %13655 = vmatpush2.bf16.msra.mxu1 %v17369_v54  ;;  %13613 = vmatprep.subr.bf16.mxu0 %v17234_v43  ;;  %v12633_v1 = vadd.f32 %v19121_v2, %v12590_v4  ;;  %v12977_v9 = vadd.f32 %v19122_v8, %v12934_v11  ;;  %v17693_v6 = vld [vmem:[#allocation10 + $0x2e4] ss:$16 sps:$4 sm:$0xff]   ;;  %v13680_v51 = vmax.f32 %v12637_v42, 0.0  ;;  %v17688_v29 = vld [vmem:[#allocation10 + $0xe0] ss:$16 sps:$4 sm:$0xff]  }
 0x74b   :  { %13656 = vmatprep.subr.bf16.mxu1 %v17362_v23  ;;  %v13682_v35 = vmax.f32 %v12981_v57, 0.0  ;;  %v17691_v27 = vld [vmem:[#allocation10 + $0x2e0] ss:$16 sps:$4 sm:$0xff]   ;;  %v17696_v60 = vld [vmem:[#allocation10 + $0xc4] ss:$16 sps:$4 sm:$0xff]  }
 0x74c   :  { %v13672_v32 = vmax.f32 %v12633_v1, 0.0  ;;  %v13674_v58 = vmax.f32 %v12977_v9, 0.0  ;;  %v17699_v7 = vld [vmem:[#allocation10 + $0x2c4] ss:$16 sps:$4 sm:$0xff]   ;;  %v17694_v54 = vld [vmem:[#allocation10 + $0xc0] ss:$16 sps:$4 sm:$0xff]  }
 0x74d   :  { %13614 = vmatpush2.bf16.msra.mxu0 %v17233_v38  ;;  %v17697_v43 = vld [vmem:[#allocation10 + $0x2c0] ss:$16 sps:$4 sm:$0xff]   ;;  %v17702_v17 = vld [vmem:[#allocation10 + $0xa4] ss:$16 sps:$4 sm:$0xff]  }
 0x74e   :  { %13657 = vmatpush2.bf16.msra.mxu1 %v17361_v15  ;;  %13615 = vmatprep.subr.bf16.mxu0 %v17226_v34  ;;  %v18982_v45 = vpack.c.bf16 %v13680_v51, %v13672_v32  ;;  %v18985_v0 = vpack.c.bf16 %v13682_v35, %v13674_v58  ;;  %v17705_v19 = vld [vmem:[#allocation10 + $0x2a4] ss:$16 sps:$4 sm:$0xff]   ;;  %v17700_v23 = vld [vmem:[#allocation10 + $0xa0] ss:$16 sps:$4 sm:$0xff]  }
 0x74f   :  { %13658 = vmatprep.subr.bf16.mxu1 %v17354_v33  ;;  %v17708_v61 = vld [vmem:[#allocation10 + $0x84] ss:$16 sps:$4 sm:$0xff]   ;;  %v17706_v62 = vld [vmem:[#allocation10 + $0x80] ss:$16 sps:$4 sm:$0xff]  }
 0x750   :  { %v17709_v40 = vld [vmem:[#allocation10 + $0x280] ss:$16 sps:$4 sm:$0xff]   ;;  %v17714_v47 = vld [vmem:[#allocation10 + $0x64] ss:$16 sps:$4 sm:$0xff]  }
 0x751   :  { %13616 = vmatpush2.bf16.msra.mxu0 %v17225_v10  ;;  %v17717_v59 = vld [vmem:[#allocation10 + $0x264] ss:$16 sps:$4 sm:$0xff]   ;;  %v17712_v12 = vld [vmem:[#allocation10 + $0x60] ss:$16 sps:$4 sm:$0xff]  }
 0x752   :  { %13659 = vmatpush2.bf16.msra.mxu1 %v17353_v63  ;;  %15253 = vmatprep.subr.bf16.mxu0 %v17690_v48  ;;  %v17715_v53 = vld [vmem:[#allocation10 + $0x260] ss:$16 sps:$4 sm:$0xff]   ;;  %v17720_v44 = vld [vmem:[#allocation10 + $0x44] ss:$16 sps:$4 sm:$0xff]  }
 0x753   :  { %15296 = vmatprep.subr.bf16.mxu1 %v17693_v6  ;;  %v17723_v14 = vld [vmem:[#allocation10 + $0x244] ss:$16 sps:$4 sm:$0xff]   ;;  %v17718_v39 = vld [vmem:[#allocation10 + $0x40] ss:$16 sps:$4 sm:$0xff]  }
 0x754   :  { %13618 = vmatmul.mubr.bf16.vlgmr.msra.gmra.mxu0 %v18701_v13  ;;  %v17703_v13 = vld [vmem:[#allocation10 + $0x2a0] ss:$16 sps:$4 sm:$0xff]   ;;  %v17726_v38 = vld [vmem:[#allocation10 + $0x24] ss:$16 sps:$4 sm:$0xff]  }
 0x755   :  { %13661 = vmatmul.mubr.bf16.vlgmr.msra.gmra.mxu1 %v18740_v56  ;;  %15254 = vmatpush1.bf16.msra.mxu0 %v17688_v29  ;;  %v17711_v56 = vld [vmem:[#allocation10 + $0x284] ss:$16 sps:$4 sm:$0xff]   ;;  %v17721_v50 = vld [vmem:[#allocation10 + $0x240] ss:$16 sps:$4 sm:$0xff]  }
 0x756   :  { %15285 = vmatprep.mubr.bf16.mxu0 %v18982_v45  ;;  %15297 = vmatpush1.bf16.msra.mxu1 %v17691_v27  ;;  %v17729_v49 = vld [vmem:[#allocation10 + $0x224] ss:$16 sps:$4 sm:$0xff]   ;;  %v17724_v4 = vld [vmem:[#allocation10 + $0x20] ss:$16 sps:$4 sm:$0xff]  }
 0x757   :  { %15328 = vmatprep.mubr.bf16.mxu1 %v18985_v0  ;;  %15255 = vmatprep.subr.bf16.mxu0 %v17696_v60  ;;  %v17727_v15 = vld [vmem:[#allocation10 + $0x220] ss:$16 sps:$4 sm:$0xff]   ;;  %v17732_v34 = vld [vmem:[#allocation10 + $0x4] ss:$16 sps:$4 sm:$0xff]  }
 0x758   :  { %15298 = vmatprep.subr.bf16.mxu1 %v17699_v7  ;;  %v17735_v30 = vld [vmem:[#allocation10 + $0x204] ss:$16 sps:$4 sm:$0xff]   ;;  %v17730_v11 = vld [vmem:[#allocation10] ss:$16 sps:$4 sm:$0xff]  }
 0x759   :  { %15256 = vmatpush1.bf16.msra.mxu0 %v17694_v54  ;;  %v17733_v33 = vld [vmem:[#allocation10 + $0x200] ss:$16 sps:$4 sm:$0xff]   ;;  %v17738_v24 = vld [vmem:[#allocation10 + $0x1e4] ss:$16 sps:$4 sm:$0xff]  }
 0x75a   :  { %15299 = vmatpush1.bf16.msra.mxu1 %v17697_v43  ;;  %15257 = vmatprep.subr.bf16.mxu0 %v17702_v17  ;;  %v17741_v42 = vld [vmem:[#allocation10 + $0x3e4] ss:$16 sps:$4 sm:$0xff]   ;;  %v17736_v57 = vld [vmem:[#allocation10 + $0x1e0] ss:$16 sps:$4 sm:$0xff]  }
 0x75b   :  { %15300 = vmatprep.subr.bf16.mxu1 %v17705_v19  ;;  %v17739_v10 = vld [vmem:[#allocation10 + $0x3e0] ss:$16 sps:$4 sm:$0xff]   ;;  %v17744_v2 = vld [vmem:[#allocation10 + $0x1c4] ss:$16 sps:$4 sm:$0xff]  }
 0x75c   :  { %v17747_v1 = vld [vmem:[#allocation10 + $0x3c4] ss:$16 sps:$4 sm:$0xff]   ;;  %v17742_v8 = vld [vmem:[#allocation10 + $0x1c0] ss:$16 sps:$4 sm:$0xff]  }
 0x75d   :  { %15258 = vmatpush1.bf16.msra.mxu0 %v17700_v23  ;;  %v19123_v63 = vld [vmem:[#allocation23_spill] sm:$0xff]  ;;  %v17745_v6 = vld [vmem:[#allocation10 + $0x3c0] ss:$16 sps:$4 sm:$0xff]  }
 0x75e   :  { %15301 = vmatpush1.bf16.msra.mxu1 %v17703_v13  ;;  %15259 = vmatprep.subr.bf16.mxu0 %v17708_v61  ;;  %v7158_v48 = vrot.slane %v18944_v26, %v19123_v63  ;;  %v17750_v51 = vld [vmem:[#allocation10 + $0x1a4] ss:$16 sps:$4 sm:$0xff]   ;;  %v17748_v32 = vld [vmem:[#allocation10 + $0x1a0] ss:$16 sps:$4 sm:$0xff]  }
 0x75f   :  { %15302 = vmatprep.subr.bf16.mxu1 %v17711_v56  ;;  %v17753_v35 = vld [vmem:[#allocation10 + $0x3a4] ss:$16 sps:$4 sm:$0xff]   ;;  %v17751_v58 = vld [vmem:[#allocation10 + $0x3a0] ss:$16 sps:$4 sm:$0xff]  }
 0x760   :  { %v13024_v9 = vadd.f32 %v18892_v21, %v7158_v48  ;;  %v13020_v29 = vadd.f32 %v18883_v55, %v7158_v48  ;;  %v17756_v60 = vld [vmem:[#allocation10 + $0x184] ss:$16 sps:$4 sm:$0xff]   ;;  %v17754_v43 = vld [vmem:[#allocation10 + $0x180] ss:$16 sps:$4 sm:$0xff]  }
 0x761   :  { %15260 = vmatpush1.bf16.msra.mxu0 %v17706_v62  ;;  %v17759_v7 = vld [vmem:[#allocation10 + $0x384] ss:$16 sps:$4 sm:$0xff]   ;;  %v17757_v55 = vld [vmem:[#allocation10 + $0x380] ss:$16 sps:$4 sm:$0xff]  }
 0x762   :  { %15303 = vmatpush1.bf16.msra.mxu1 %v17709_v40  ;;  %15261 = vmatprep.subr.bf16.mxu0 %v17714_v47  ;;  %v13067_v27 = vadd.f32 %v18894_v25, %v13024_v9  ;;  %v13063_v21 = vadd.f32 %v18888_v5, %v13020_v29  ;;  %v17762_v19 = vld [vmem:[#allocation10 + $0x164] ss:$16 sps:$4 sm:$0xff]   ;;  %v17760_v13 = vld [vmem:[#allocation10 + $0x160] ss:$16 sps:$4 sm:$0xff]   ;;  %v13281_v40 = vpop.f32.mrf.mxu0 }
 0x763   :  { %15304 = vmatprep.subr.bf16.mxu1 %v17717_v59  ;;  %v17765_v25 = vld [vmem:[#allocation10 + $0x364] ss:$16 sps:$4 sm:$0xff]   ;;  %v17766_v47 = vld [vmem:[#allocation10 + $0x140] ss:$16 sps:$4 sm:$0xff]  }
 0x764   :  { %v13110_v54 = vadd.f32 %v18910_v36, %v13067_v27  ;;  %v13106_v17 = vadd.f32 %v18900_v20, %v13063_v21  ;;  %v17763_v36 = vld [vmem:[#allocation10 + $0x360] ss:$16 sps:$4 sm:$0xff]   ;;  %v17768_v56 = vld [vmem:[#allocation10 + $0x144] ss:$16 sps:$4 sm:$0xff]  }
 0x765   :  { %15262 = vmatpush1.bf16.msra.mxu0 %v17712_v12  ;;  %v17771_v20 = vld [vmem:[#allocation10 + $0x344] ss:$16 sps:$4 sm:$0xff]   ;;  %v17787_v63 = vld [vmem:[#allocation10 + $0x4c0] ss:$16 sps:$4 sm:$0xff]  }
 0x766   :  { %15305 = vmatpush1.bf16.msra.mxu1 %v17715_v53  ;;  %15263 = vmatprep.subr.bf16.mxu0 %v17720_v44  ;;  %v13153_v23 = vadd.f32 %v18912_v3, %v13110_v54  ;;  %v13149_v61 = vadd.f32 %v18905_v31, %v13106_v17  ;;  %v17769_v3 = vld [vmem:[#allocation10 + $0x340] ss:$16 sps:$4 sm:$0xff]   ;;  %v17774_v12 = vld [vmem:[#allocation10 + $0x124] ss:$16 sps:$4 sm:$0xff]  }
 0x767   :  { %15306 = vmatprep.subr.bf16.mxu1 %v17723_v14  ;;  %v17777_v31 = vld [vmem:[#allocation10 + $0x324] ss:$16 sps:$4 sm:$0xff]   ;;  %v17772_v44 = vld [vmem:[#allocation10 + $0x120] ss:$16 sps:$4 sm:$0xff]  }
 0x768   :  { %v13196_v5 = vadd.f32 %v18928_v16, %v13153_v23  ;;  %v13192_v62 = vadd.f32 %v18918_v52, %v13149_v61  ;;  %v17775_v52 = vld [vmem:[#allocation10 + $0x320] ss:$16 sps:$4 sm:$0xff]   ;;  %v17792_v48 = vld [vmem:[#allocation10 + $0x4a4] ss:$16 sps:$4 sm:$0xff]  }
 0x769   :  { %15264 = vmatpush1.bf16.msra.mxu0 %v17718_v39  ;;  %v17780_v39 = vld [vmem:[#allocation10 + $0x104] ss:$16 sps:$4 sm:$0xff]   ;;  %v17868_v54 = vld [vmem:[#allocation10 + $0x660] ss:$16 sps:$4 sm:$0xff]  }
 0x76a   :  { %15307 = vmatpush1.bf16.msra.mxu1 %v17721_v50  ;;  %15265 = vmatprep.subr.bf16.mxu0 %v17726_v38  ;;  %v13239_v59 = vadd.f32 %v18930_v41, %v13196_v5  ;;  %v13235_v16 = vadd.f32 %v18923_v22, %v13192_v62  ;;  %v13324_v50 = vpop.f32.mrf.mxu1  ;;  %v17783_v41 = vld [vmem:[#allocation10 + $0x304] ss:$16 sps:$4 sm:$0xff]   ;;  %v17781_v22 = vld [vmem:[#allocation10 + $0x300] ss:$16 sps:$4 sm:$0xff]  }
 0x76b   :  { %15308 = vmatprep.subr.bf16.mxu1 %v17729_v49  ;;  %v17778_v49 = vld [vmem:[#allocation10 + $0x100] ss:$16 sps:$4 sm:$0xff]   ;;  %v17858_v9 = vld [vmem:[#allocation10 + $0x6a4] ss:$16 sps:$4 sm:$0xff]  }
 0x76c   :  { %v13282_v53 = vadd.f32 %v13281_v40, %v13239_v59  ;;  %v13278_v14 = vadd.f32 %v18936_v37, %v13235_v16  ;;  %v17784_v37 = vld [vmem:[#allocation10 + $0x4e0] ss:$16 sps:$4 sm:$0xff]   ;;  %v17864_v29 = vld [vmem:[#allocation10 + $0x684] ss:$16 sps:$4 sm:$0xff]  }
 0x76d   :  { %15266 = vmatpush1.bf16.msra.mxu0 %v17724_v4  ;;  %v19124_v4 = vld [vmem:[#allocation38_spill] sm:$0xff]  ;;  %v17798_v27 = vld [vmem:[#allocation10 + $0x464] ss:$16 sps:$4 sm:$0xff]  }
 0x76e   :  { %15309 = vmatpush1.bf16.msra.mxu1 %v17727_v15  ;;  %15267 = vmatprep.subr.bf16.mxu0 %v17732_v34  ;;  %v13325_v38 = vadd.f32 %v13324_v50, %v13282_v53  ;;  %v13321_v15 = vadd.f32 %v19124_v4, %v13278_v14  ;;  %v17786_v34 = vld [vmem:[#allocation10 + $0x4e4] ss:$16 sps:$4 sm:$0xff]   ;;  %v17799_v17 = vld [vmem:[#allocation10 + $0x440] ss:$16 sps:$4 sm:$0xff]  }
 0x76f   :  { %15310 = vmatprep.subr.bf16.mxu1 %v17735_v30  ;;  %v17846_v30 = vld [vmem:[#allocation10 + $0x6e4] ss:$16 sps:$4 sm:$0xff]   ;;  %v17802_v23 = vld [vmem:[#allocation10 + $0x420] ss:$16 sps:$4 sm:$0xff]  }
 0x770   :  { %v17801_v21 = vld [vmem:[#allocation10 + $0x444] ss:$16 sps:$4 sm:$0xff]   ;;  %v17880_v61 = vld [vmem:[#allocation10 + $0x620] ss:$16 sps:$4 sm:$0xff]  }
 0x771   :  { %15268 = vmatpush1.bf16.msra.mxu0 %v17730_v11  ;;  %v13684_v11 = vmax.f32 %v13325_v38, 0.0  ;;  %v17888_v5 = vld [vmem:[#allocation10 + $0x604] ss:$16 sps:$4 sm:$0xff]   ;;  %v17808_v40 = vld [vmem:[#allocation10 + $0x5e0] ss:$16 sps:$4 sm:$0xff]  }
 0x772   :  { %15311 = vmatpush1.bf16.msra.mxu1 %v17733_v33  ;;  %15269 = vmatprep.subr.bf16.mxu0 %v17738_v24  ;;  %v13676_v33 = vmax.f32 %v13321_v15, 0.0  ;;  %v17789_v24 = vld [vmem:[#allocation10 + $0x4c4] ss:$16 sps:$4 sm:$0xff]   ;;  %v17892_v59 = vld [vmem:[#allocation10 + $0x7e0] ss:$16 sps:$4 sm:$0xff]  }
 0x773   :  { %15312 = vmatprep.subr.bf16.mxu1 %v17741_v42  ;;  %v17844_v42 = vld [vmem:[#allocation10 + $0x6e0] ss:$16 sps:$4 sm:$0xff]   ;;  %v17894_v62 = vld [vmem:[#allocation10 + $0x7e4] ss:$16 sps:$4 sm:$0xff]  }
 0x774   :  { %v17898_v16 = vld [vmem:[#allocation10 + $0x7c0] ss:$16 sps:$4 sm:$0xff]   ;;  %v17906_v53 = vld [vmem:[#allocation10 + $0x7a4] ss:$16 sps:$4 sm:$0xff]  }
 0x775   :  { %15270 = vmatpush2.bf16.msra.mxu0 %v17736_v57  ;;  %v19006_v57 = vpack.c.bf16 %v13684_v11, %v13676_v33  ;;  %v17819_v14 = vld [vmem:[#allocation10 + $0x584] ss:$16 sps:$4 sm:$0xff]   ;;  %v17817_v50 = vld [vmem:[#allocation10 + $0x580] ss:$16 sps:$4 sm:$0xff]  }
 0x776   :  { %15313 = vmatpush2.bf16.msra.mxu1 %v17739_v10  ;;  %15271 = vmatprep.subr.bf16.mxu0 %v17744_v2  ;;  %v19125_v10 = vld [vmem:[#allocation27_spill] sm:$0xff]  ;;  %v17910_v38 = vld [vmem:[#allocation10 + $0x780] ss:$16 sps:$4 sm:$0xff]  }
 0x777   :  { %15314 = vmatprep.subr.bf16.mxu1 %v17747_v1  ;;  %v17852_v2 = vld [vmem:[#allocation10 + $0x6c4] ss:$16 sps:$4 sm:$0xff]   ;;  %v17820_v4 = vld [vmem:[#allocation10 + $0x560] ss:$16 sps:$4 sm:$0xff]  }
 0x778   :  { %v19126_v1 = vld [vmem:[#allocation37_spill] sm:$0xff] }
 0x779   :  { %15272 = vmatpush2.bf16.msra.mxu0 %v17742_v8  ;;  %v17850_v8 = vld [vmem:[#allocation10 + $0x6c0] ss:$16 sps:$4 sm:$0xff]   ;;  %v17825_v15 = vld [vmem:[#allocation10 + $0x544] ss:$16 sps:$4 sm:$0xff]  }
 0x77a   :  { %15315 = vmatpush2.bf16.msra.mxu1 %v17745_v6  ;;  %15273 = vmatprep.subr.bf16.mxu0 %v17750_v51  ;;  %v17790_v6 = vld [vmem:[#allocation10 + $0x4a0] ss:$16 sps:$4 sm:$0xff]   ;;  %v17795_v51 = vld [vmem:[#allocation10 + $0x484] ss:$16 sps:$4 sm:$0xff]  }
 0x77b   :  { %15316 = vmatprep.subr.bf16.mxu1 %v17753_v35  ;;  %v17856_v35 = vld [vmem:[#allocation10 + $0x6a0] ss:$16 sps:$4 sm:$0xff]   ;;  %v17828_v11 = vld [vmem:[#allocation10 + $0x524] ss:$16 sps:$4 sm:$0xff]  }
 0x77c   :  { %v17930_v33 = vld [vmem:[#allocation10 + $0x724] ss:$16 sps:$4 sm:$0xff]  }
 0x77d   :  { %15274 = vmatpush2.bf16.msra.mxu0 %v17748_v32  ;;  %v17793_v32 = vld [vmem:[#allocation10 + $0x480] ss:$16 sps:$4 sm:$0xff]  }
 0x77e   :  { %15317 = vmatpush2.bf16.msra.mxu1 %v17751_v58  ;;  %15275 = vmatprep.subr.bf16.mxu0 %v17756_v60  ;;  %v17862_v58 = vld [vmem:[#allocation10 + $0x680] ss:$16 sps:$4 sm:$0xff]   ;;  %v17870_v60 = vld [vmem:[#allocation10 + $0x664] ss:$16 sps:$4 sm:$0xff]  }
 0x77f   :  { %15318 = vmatprep.subr.bf16.mxu1 %v17759_v7  ;;  %v17796_v7 = vld [vmem:[#allocation10 + $0x460] ss:$16 sps:$4 sm:$0xff]  }
 0x781   :  { %15276 = vmatpush2.bf16.msra.mxu0 %v17754_v43  ;;  %v17876_v43 = vld [vmem:[#allocation10 + $0x644] ss:$16 sps:$4 sm:$0xff]  }
 0x782   :  { %15319 = vmatpush2.bf16.msra.mxu1 %v17757_v55  ;;  %15277 = vmatprep.subr.bf16.mxu0 %v17762_v19  ;;  %v17804_v55 = vld [vmem:[#allocation10 + $0x424] ss:$16 sps:$4 sm:$0xff]   ;;  %v17874_v19 = vld [vmem:[#allocation10 + $0x640] ss:$16 sps:$4 sm:$0xff]  }
 0x783   :  { %15320 = vmatprep.subr.bf16.mxu1 %v17765_v25  ;;  %v17882_v25 = vld [vmem:[#allocation10 + $0x624] ss:$16 sps:$4 sm:$0xff]  }
 0x785   :  { %15278 = vmatpush2.bf16.msra.mxu0 %v17760_v13  ;;  %v17807_v13 = vld [vmem:[#allocation10 + $0x404] ss:$16 sps:$4 sm:$0xff]  }
 0x786   :  { %15321 = vmatpush2.bf16.msra.mxu1 %v17763_v36  ;;  %15279 = vmatprep.subr.bf16.mxu0 %v17768_v56  ;;  %v17805_v36 = vld [vmem:[#allocation10 + $0x400] ss:$16 sps:$4 sm:$0xff]   ;;  %v17810_v56 = vld [vmem:[#allocation10 + $0x5e4] ss:$16 sps:$4 sm:$0xff]  }
 0x787   :  { %15322 = vmatprep.subr.bf16.mxu1 %v17771_v20  ;;  %v17886_v20 = vld [vmem:[#allocation10 + $0x600] ss:$16 sps:$4 sm:$0xff]  }
 0x789   :  { %15280 = vmatpush2.bf16.msra.mxu0 %v17766_v47  ;;  %v17813_v47 = vld [vmem:[#allocation10 + $0x5c4] ss:$16 sps:$4 sm:$0xff]  }
 0x78a   :  { %15323 = vmatpush2.bf16.msra.mxu1 %v17769_v3  ;;  %15281 = vmatprep.subr.bf16.mxu0 %v17774_v12  ;;  %v17900_v3 = vld [vmem:[#allocation10 + $0x7c4] ss:$16 sps:$4 sm:$0xff]   ;;  %v17811_v12 = vld [vmem:[#allocation10 + $0x5c0] ss:$16 sps:$4 sm:$0xff]  }
 0x78b   :  { %15324 = vmatprep.subr.bf16.mxu1 %v17777_v31  ;;  %v17816_v31 = vld [vmem:[#allocation10 + $0x5a4] ss:$16 sps:$4 sm:$0xff]  }
 0x78d   :  { %15282 = vmatpush2.bf16.msra.mxu0 %v17772_v44  ;;  %v17814_v44 = vld [vmem:[#allocation10 + $0x5a0] ss:$16 sps:$4 sm:$0xff]  }
 0x78e   :  { %15325 = vmatpush2.bf16.msra.mxu1 %v17775_v52  ;;  %15283 = vmatprep.subr.bf16.mxu0 %v17780_v39  ;;  %v17904_v52 = vld [vmem:[#allocation10 + $0x7a0] ss:$16 sps:$4 sm:$0xff]   ;;  %v17912_v39 = vld [vmem:[#allocation10 + $0x784] ss:$16 sps:$4 sm:$0xff]  }
 0x78f   :  { %15326 = vmatprep.subr.bf16.mxu1 %v17783_v41  ;;  %v17822_v41 = vld [vmem:[#allocation10 + $0x564] ss:$16 sps:$4 sm:$0xff]  }
 0x791   :  { %15284 = vmatpush2.bf16.msra.mxu0 %v17778_v49  ;;  %v17918_v49 = vld [vmem:[#allocation10 + $0x764] ss:$16 sps:$4 sm:$0xff]  }
 0x792   :  { %15327 = vmatpush2.bf16.msra.mxu1 %v17781_v22  ;;  %15339 = vmatprep.subr.bf16.mxu0 %v17786_v34  ;;  %v17916_v22 = vld [vmem:[#allocation10 + $0x760] ss:$16 sps:$4 sm:$0xff]   ;;  %v17924_v34 = vld [vmem:[#allocation10 + $0x744] ss:$16 sps:$4 sm:$0xff]  }
 0x793   :  { %15382 = vmatprep.subr.bf16.mxu1 %v17846_v30  ;;  %v17823_v30 = vld [vmem:[#allocation10 + $0x540] ss:$16 sps:$4 sm:$0xff]  }
 0x794   :  { %15286 = vmatmul.mubr.bf16.vlgmr.msra.gmra.mxu0 %v19125_v10 }
 0x795   :  { %15329 = vmatmul.mubr.bf16.vlgmr.msra.gmra.mxu1 %v19126_v1  ;;  %15340 = vmatpush1.bf16.msra.mxu0 %v17784_v37  ;;  %v17922_v37 = vld [vmem:[#allocation10 + $0x740] ss:$16 sps:$4 sm:$0xff]  }
 0x796   :  { %15371 = vmatprep.mubr.bf16.mxu0 %v19006_v57  ;;  %15341 = vmatprep.subr.bf16.mxu0 %v17789_v24  ;;  %v17826_v24 = vld [vmem:[#allocation10 + $0x520] ss:$16 sps:$4 sm:$0xff]  }
 0x797   :  { %15383 = vmatpush1.bf16.msra.mxu1 %v17844_v42  ;;  %v17831_v42 = vld [vmem:[#allocation10 + $0x504] ss:$16 sps:$4 sm:$0xff]  }
 0x798   :  { %15384 = vmatprep.subr.bf16.mxu1 %v17852_v2  ;;  %v17928_v2 = vld [vmem:[#allocation10 + $0x720] ss:$16 sps:$4 sm:$0xff]  }
 0x799   :  { %15342 = vmatpush1.bf16.msra.mxu0 %v17787_v63  ;;  %v17936_v63 = vld [vmem:[#allocation10 + $0x704] ss:$16 sps:$4 sm:$0xff]  }
 0x79a   :  { %15343 = vmatprep.subr.bf16.mxu0 %v17792_v48  ;;  %v17829_v48 = vld [vmem:[#allocation10 + $0x500] ss:$16 sps:$4 sm:$0xff]  }
 0x79b   :  { %15385 = vmatpush1.bf16.msra.mxu1 %v17850_v8  ;;  %v17834_v8 = vld [vmem:[#allocation10 + $0xec] ss:$16 sps:$4 sm:$0xff]  }
 0x79c   :  { %15386 = vmatprep.subr.bf16.mxu1 %v17858_v9  ;;  %v17934_v9 = vld [vmem:[#allocation10 + $0x700] ss:$16 sps:$4 sm:$0xff]  }
 0x79d   :  { %15344 = vmatpush1.bf16.msra.mxu0 %v17790_v6  ;;  %v17942_v6 = vld [vmem:[#allocation10 + $0x2ec] ss:$16 sps:$4 sm:$0xff]  }
 0x79e   :  { %15345 = vmatprep.subr.bf16.mxu0 %v17795_v51  ;;  %v17832_v51 = vld [vmem:[#allocation10 + $0xe8] ss:$16 sps:$4 sm:$0xff]  }
 0x79f   :  { %15387 = vmatpush1.bf16.msra.mxu1 %v17856_v35  ;;  %v17837_v35 = vld [vmem:[#allocation10 + $0xcc] ss:$16 sps:$4 sm:$0xff]  }
 0x7a0   :  { %15388 = vmatprep.subr.bf16.mxu1 %v17864_v29  ;;  %v17835_v29 = vld [vmem:[#allocation10 + $0xc8] ss:$16 sps:$4 sm:$0xff]  }
 0x7a1   :  { %15346 = vmatpush1.bf16.msra.mxu0 %v17793_v32  ;;  %v17840_v32 = vld [vmem:[#allocation10 + $0xac] ss:$16 sps:$4 sm:$0xff]  }
 0x7a2   :  { %15347 = vmatprep.subr.bf16.mxu0 %v17798_v27  ;;  %v17838_v27 = vld [vmem:[#allocation10 + $0xa8] ss:$16 sps:$4 sm:$0xff]  }
 0x7a3   :  { %15389 = vmatpush1.bf16.msra.mxu1 %v17862_v58  ;;  %v17843_v58 = vld [vmem:[#allocation10 + $0x8c] ss:$16 sps:$4 sm:$0xff]  }
 0x7a4   :  { %15390 = vmatprep.subr.bf16.mxu1 %v17870_v60  ;;  %v17841_v60 = vld [vmem:[#allocation10 + $0x88] ss:$16 sps:$4 sm:$0xff]  }
 0x7a5   :  { %15348 = vmatpush1.bf16.msra.mxu0 %v17796_v7  ;;  %v17849_v7 = vld [vmem:[#allocation10 + $0x6c] ss:$16 sps:$4 sm:$0xff]  }
 0x7a6   :  { %15349 = vmatprep.subr.bf16.mxu0 %v17801_v21  ;;  %v17847_v21 = vld [vmem:[#allocation10 + $0x68] ss:$16 sps:$4 sm:$0xff]  }
 0x7a7   :  { %15391 = vmatpush1.bf16.msra.mxu1 %v17868_v54  ;;  %v17855_v54 = vld [vmem:[#allocation10 + $0x4c] ss:$16 sps:$4 sm:$0xff]  }
 0x7a8   :  { %15392 = vmatprep.subr.bf16.mxu1 %v17876_v43  ;;  %v17853_v43 = vld [vmem:[#allocation10 + $0x48] ss:$16 sps:$4 sm:$0xff]  }
 0x7a9   :  { %15350 = vmatpush1.bf16.msra.mxu0 %v17799_v17  ;;  %v17861_v17 = vld [vmem:[#allocation10 + $0x2c] ss:$16 sps:$4 sm:$0xff]  }
 0x7aa   :  { %15351 = vmatprep.subr.bf16.mxu0 %v17804_v55  ;;  %v13361_v55 = vpop.f32.mrf.mxu0 }
 0x7ab   :  { %15393 = vmatpush1.bf16.msra.mxu1 %v17874_v19  ;;  %v17867_v19 = vld [vmem:[#allocation10 + $0xc] ss:$16 sps:$4 sm:$0xff]  }
 0x7ac   :  { %15394 = vmatprep.subr.bf16.mxu1 %v17882_v25  ;;  %v13404_v25 = vpop.f32.mrf.mxu1 }
 0x7ad   :  { %15352 = vmatpush1.bf16.msra.mxu0 %v17802_v23  ;;  %v17865_v23 = vld [vmem:[#allocation10 + $0x8] ss:$16 sps:$4 sm:$0xff]  }
 0x7ae   :  { %15353 = vmatprep.subr.bf16.mxu0 %v17807_v13  ;;  %v13363_v13 = vpop.f32.mrf.mxu0 }
 0x7af   :  { %15395 = vmatpush1.bf16.msra.mxu1 %v17880_v61  ;;  %v17873_v61 = vld [vmem:[#allocation10 + $0x1ec] ss:$16 sps:$4 sm:$0xff]  }
 0x7b0   :  { %15396 = vmatprep.subr.bf16.mxu1 %v17888_v5  ;;  %v13406_v5 = vpop.f32.mrf.mxu1 }
 0x7b1   :  { %15354 = vmatpush1.bf16.msra.mxu0 %v17805_v36  ;;  %v17871_v36 = vld [vmem:[#allocation10 + $0x1e8] ss:$16 sps:$4 sm:$0xff]  }
 0x7b2   :  { %15355 = vmatprep.subr.bf16.mxu0 %v17810_v56  ;;  %v13365_v56 = vpop.f32.mrf.mxu0 }
 0x7b3   :  { %15397 = vmatpush1.bf16.msra.mxu1 %v17886_v20  ;;  %v17879_v20 = vld [vmem:[#allocation10 + $0x1cc] ss:$16 sps:$4 sm:$0xff]  }
 0x7b4   :  { %15398 = vmatprep.subr.bf16.mxu1 %v17894_v62  ;;  %v13408_v62 = vpop.f32.mrf.mxu1 }
 0x7b5   :  { %15356 = vmatpush2.bf16.msra.mxu0 %v17808_v40  ;;  %v17877_v40 = vld [vmem:[#allocation10 + $0x1c8] ss:$16 sps:$4 sm:$0xff]  }
 0x7b6   :  { %15357 = vmatprep.subr.bf16.mxu0 %v17813_v47  ;;  %v13367_v47 = vpop.f32.mrf.mxu0 }
 0x7b7   :  { %15399 = vmatpush2.bf16.msra.mxu1 %v17892_v59  ;;  %v17885_v59 = vld [vmem:[#allocation10 + $0x1ac] ss:$16 sps:$4 sm:$0xff]  }
 0x7b8   :  { %15400 = vmatprep.subr.bf16.mxu1 %v17900_v3  ;;  %v13410_v3 = vpop.f32.mrf.mxu1 }
 0x7b9   :  { %15358 = vmatpush2.bf16.msra.mxu0 %v17811_v12  ;;  %v13447_v12 = vpop.f32.mrf.mxu0 }
 0x7ba   :  { %15359 = vmatprep.subr.bf16.mxu0 %v17816_v31  ;;  %v13490_v31 = vpop.f32.mrf.mxu1 }
 0x7bb   :  { %15401 = vmatpush2.bf16.msra.mxu1 %v17898_v16  ;;  %v17883_v16 = vld [vmem:[#allocation10 + $0x1a8] ss:$16 sps:$4 sm:$0xff]  }
 0x7bc   :  { %15402 = vmatprep.subr.bf16.mxu1 %v17906_v53  ;;  %v17891_v53 = vld [vmem:[#allocation10 + $0x18c] ss:$16 sps:$4 sm:$0xff]  }
 0x7bd   :  { %15360 = vmatpush2.bf16.msra.mxu0 %v17814_v44  ;;  %v13449_v44 = vpop.f32.mrf.mxu0 }
 0x7be   :  { %15361 = vmatprep.subr.bf16.mxu0 %v17819_v14  ;;  %v13492_v14 = vpop.f32.mrf.mxu1 }
 0x7bf   :  { %15403 = vmatpush2.bf16.msra.mxu1 %v17904_v52  ;;  %v17889_v52 = vld [vmem:[#allocation10 + $0x188] ss:$16 sps:$4 sm:$0xff]  }
 0x7c0   :  { %15404 = vmatprep.subr.bf16.mxu1 %v17912_v39  ;;  %v17897_v39 = vld [vmem:[#allocation10 + $0x16c] ss:$16 sps:$4 sm:$0xff]  }
 0x7c1   :  { %15362 = vmatpush2.bf16.msra.mxu0 %v17817_v50  ;;  %v13451_v50 = vpop.f32.mrf.mxu0 }
 0x7c2   :  { %15363 = vmatprep.subr.bf16.mxu0 %v17822_v41  ;;  %v19127_v41 = vld [vmem:[#allocation24_spill] sm:$0xff] }
 0x7c3   :  { %15405 = vmatpush2.bf16.msra.mxu1 %v17910_v38  ;;  %v7166_v38 = vrot.slane %v18944_v26, %v19127_v41 }
 0x7c4   :  { %15406 = vmatprep.subr.bf16.mxu1 %v17918_v49  ;;  %v13494_v49 = vpop.f32.mrf.mxu1 }
 0x7c5   :  { %15364 = vmatpush2.bf16.msra.mxu0 %v17820_v4  ;;  %v17895_v4 = vld [vmem:[#allocation10 + $0x168] ss:$16 sps:$4 sm:$0xff]  }
 0x7c6   :  { %15365 = vmatprep.subr.bf16.mxu0 %v17825_v15  ;;  %v19128_v15 = vld [vmem:[#allocation21_spill] sm:$0xff] }
 0x7c7   :  { %15407 = vmatpush2.bf16.msra.mxu1 %v17916_v22  ;;  %v7162_v22 = vrot.slane %v18944_v26, %v19128_v15  ;;  %v17915_v26 = vld [vmem:[#allocation10 + $0x10c] ss:$16 sps:$4 sm:$0xff]  }
 0x7c8   :  { %15408 = vmatprep.subr.bf16.mxu1 %v17924_v34  ;;  %v17903_v34 = vld [vmem:[#allocation10 + $0x14c] ss:$16 sps:$4 sm:$0xff]  }
 0x7c9   :  { %15366 = vmatpush2.bf16.msra.mxu0 %v17823_v30  ;;  %v13453_v30 = vpop.f32.mrf.mxu0  ;;  %v17939_v15 = vld [vmem:[#allocation10 + $0x48c] ss:$16 sps:$4 sm:$0xff]  }
 0x7ca   :  { %15367 = vmatprep.subr.bf16.mxu0 %v17828_v11  ;;  %v13364_v11 = vadd.f32 %v13363_v13, %v7166_v38  ;;  %v17919_v13 = vld [vmem:[#allocation10 + $0x4e8] ss:$16 sps:$4 sm:$0xff]  }
 0x7cb   :  { %15409 = vmatpush2.bf16.msra.mxu1 %v17922_v37  ;;  %v13496_v37 = vpop.f32.mrf.mxu1 }
 0x7cc   :  { %15410 = vmatprep.subr.bf16.mxu1 %v17930_v33  ;;  %v17901_v33 = vld [vmem:[#allocation10 + $0x148] ss:$16 sps:$4 sm:$0xff]  }
 0x7cd   :  { %15368 = vmatpush2.bf16.msra.mxu0 %v17826_v24  ;;  %v13362_v24 = vadd.f32 %v13361_v55, %v7162_v22 }
 0x7ce   :  { %15369 = vmatprep.subr.bf16.mxu0 %v17831_v42 }
 0x7cf   :  { %15411 = vmatpush2.bf16.msra.mxu1 %v17928_v2  ;;  %v17909_v2 = vld [vmem:[#allocation10 + $0x12c] ss:$16 sps:$4 sm:$0xff]  }
 0x7d0   :  { %15412 = vmatprep.subr.bf16.mxu1 %v17936_v63  ;;  %v13366_v63 = vadd.f32 %v13365_v56, %v7162_v22 }
 0x7d1   :  { %15370 = vmatpush2.bf16.msra.mxu0 %v17829_v48 }
 0x7d2   :  { %15425 = vmatprep.subr.bf16.mxu0 %v17834_v8  ;;  %v13407_v8 = vadd.f32 %v13406_v5, %v13364_v11 }
 0x7d3   :  { %15413 = vmatpush2.bf16.msra.mxu1 %v17934_v9  ;;  %v13368_v9 = vadd.f32 %v13367_v47, %v7166_v38 }
 0x7d4   :  { %15372 = vmatmul.mubr.bf16.vlgmr.msra.gmra.mxu0 %v18942_v46  ;;  %15468 = vmatprep.subr.bf16.mxu1 %v17942_v6  ;;  %v13533_v42 = vpop.f32.mrf.mxu0  ;;  %v17907_v6 = vld [vmem:[#allocation10 + $0x128] ss:$16 sps:$4 sm:$0xff]  }
 0x7d5   :  { %15426 = vmatpush1.bf16.msra.mxu0 %v17832_v51  ;;  %15457 = vmatprep.mubr.bf16.mxu0 %v18982_v45  ;;  %v17859_v45 = vld [vmem:[#allocation10 + $0x28] ss:$16 sps:$4 sm:$0xff]   ;;  %v13576_v48 = vpop.f32.mrf.mxu1  ;;  %v13405_v51 = vadd.f32 %v13404_v25, %v13362_v24 }
 0x7d6   :  { %15427 = vmatprep.subr.bf16.mxu0 %v17837_v35  ;;  %v13535_v35 = vpop.f32.mrf.mxu0 }
 0x7d9   :  { %15428 = vmatpush1.bf16.msra.mxu0 %v17835_v29  ;;  %v13409_v29 = vadd.f32 %v13408_v62, %v13366_v63 }
 0x7da   :  { %15429 = vmatprep.subr.bf16.mxu0 %v17840_v32  ;;  %v13450_v32 = vadd.f32 %v13449_v44, %v13407_v8 }
 0x7dd   :  { %15430 = vmatpush1.bf16.msra.mxu0 %v17838_v27  ;;  %v13578_v27 = vpop.f32.mrf.mxu1 }
 0x7de   :  { %15431 = vmatprep.subr.bf16.mxu0 %v17843_v58  ;;  %v13448_v58 = vadd.f32 %v13447_v12, %v13405_v51  ;;  %v17925_v12 = vld [vmem:[#allocation10 + $0x4c8] ss:$16 sps:$4 sm:$0xff]  }
 0x7df   :  { %v13580_v55 = vpop.f32.mrf.mxu1  ;;  %v17943_v51 = vld [vmem:[#allocation10 + $0x468] ss:$16 sps:$4 sm:$0xff]  }
 0x7e1   :  { %15432 = vmatpush1.bf16.msra.mxu0 %v17841_v60  ;;  %v13411_v60 = vadd.f32 %v13410_v3, %v13368_v9  ;;  %v13582_v62 = vpop.f32.mrf.mxu1  ;;  %v17940_v9 = vld [vmem:[#allocation10 + $0x2e8] ss:$16 sps:$4 sm:$0xff]  }
 0x7e2   :  { %15433 = vmatprep.subr.bf16.mxu0 %v17849_v7  ;;  %v13452_v7 = vadd.f32 %v13451_v50, %v13409_v29  ;;  %v17946_v29 = vld [vmem:[#allocation10 + $0x2c8] ss:$16 sps:$4 sm:$0xff]  }
 0x7e5   :  { %15434 = vmatpush1.bf16.msra.mxu0 %v17847_v21  ;;  %v17913_v21 = vld [vmem:[#allocation10 + $0x108] ss:$16 sps:$4 sm:$0xff]  }
 0x7e6   :  { %15435 = vmatprep.subr.bf16.mxu0 %v17855_v54  ;;  %v13537_v54 = vpop.f32.mrf.mxu0 }
 0x7e8   :  { %v13539_v5 = vpop.f32.mrf.mxu0 }
 0x7e9   :  { %15436 = vmatpush1.bf16.msra.mxu0 %v17853_v43  ;;  %v17921_v43 = vld [vmem:[#allocation10 + $0x4ec] ss:$16 sps:$4 sm:$0xff]  }
 0x7ea   :  { %15437 = vmatprep.subr.bf16.mxu0 %v17861_v17  ;;  %v13493_v17 = vadd.f32 %v13492_v14, %v13450_v32  ;;  %v17949_v32 = vld [vmem:[#allocation10 + $0x448] ss:$16 sps:$4 sm:$0xff]  }
 0x7ec   :  { %v13536_v25 = vadd.f32 %v13535_v35, %v13493_v17  ;;  %v17948_v35 = vld [vmem:[#allocation10 + $0x2cc] ss:$16 sps:$4 sm:$0xff]  }
 0x7ed   :  { %15438 = vmatpush1.bf16.msra.mxu0 %v17859_v45  ;;  %v13454_v45 = vadd.f32 %v13453_v30, %v13411_v60  ;;  %v17952_v60 = vld [vmem:[#allocation10 + $0x2a8] ss:$16 sps:$4 sm:$0xff]   ;;  %v17966_v17 = vld [vmem:[#allocation10 + $0x26c] ss:$16 sps:$4 sm:$0xff]  }
 0x7ee   :  { %15439 = vmatprep.subr.bf16.mxu0 %v17867_v19  ;;  %v13491_v19 = vadd.f32 %v13490_v31, %v13448_v58  ;;  %v13579_v47 = vadd.f32 %v13578_v27, %v13536_v25  ;;  %v17954_v27 = vld [vmem:[#allocation10 + $0x2ac] ss:$16 sps:$4 sm:$0xff]  }
 0x7ef   :  { %v13497_v56 = vadd.f32 %v13496_v37, %v13454_v45  ;;  %v17957_v58 = vld [vmem:[#allocation10 + $0x42c] ss:$16 sps:$4 sm:$0xff]  }
 0x7f0   :  { %v17969_v45 = vld [vmem:[#allocation10 + $0x5ec] ss:$16 sps:$4 sm:$0xff]  }
 0x7f1   :  { %15440 = vmatpush1.bf16.msra.mxu0 %v17865_v23  ;;  %v13495_v23 = vadd.f32 %v13494_v49, %v13452_v7  ;;  %v17955_v7 = vld [vmem:[#allocation10 + $0x428] ss:$16 sps:$4 sm:$0xff]   ;;  %v17975_v25 = vld [vmem:[#allocation10 + $0x5cc] ss:$16 sps:$4 sm:$0xff]  }
 0x7f2   :  { %15441 = vmatprep.subr.bf16.mxu0 %v17873_v61  ;;  %v13534_v61 = vadd.f32 %v13533_v42, %v13491_v19  ;;  %v17945_v42 = vld [vmem:[#allocation10 + $0x46c] ss:$16 sps:$4 sm:$0xff]   ;;  %v17967_v19 = vld [vmem:[#allocation10 + $0x5e8] ss:$16 sps:$4 sm:$0xff]  }
 0x7f4   :  { %v13577_v31 = vadd.f32 %v13576_v48, %v13534_v61  ;;  %v17973_v61 = vld [vmem:[#allocation10 + $0x5c8] ss:$16 sps:$4 sm:$0xff]  }
 0x7f5   :  { %15442 = vmatpush2.bf16.msra.mxu0 %v17871_v36  ;;  %v17927_v36 = vld [vmem:[#allocation10 + $0x4cc] ss:$16 sps:$4 sm:$0xff]  }
 0x7f6   :  { %15443 = vmatprep.subr.bf16.mxu0 %v17879_v20  ;;  %v13538_v20 = vadd.f32 %v13537_v54, %v13495_v23  ;;  %v17963_v54 = vld [vmem:[#allocation10 + $0x40c] ss:$16 sps:$4 sm:$0xff]  }
 0x7f7   :  { %v17972_v23 = vld [vmem:[#allocation10 + $0x24c] ss:$16 sps:$4 sm:$0xff]  }
 0x7f8   :  { %v13581_v44 = vadd.f32 %v13580_v55, %v13538_v20  ;;  %v17964_v55 = vld [vmem:[#allocation10 + $0x268] ss:$16 sps:$4 sm:$0xff]  }
 0x7f9   :  { %15444 = vmatpush2.bf16.msra.mxu0 %v17877_v40  ;;  %v17979_v20 = vld [vmem:[#allocation10 + $0x5a8] ss:$16 sps:$4 sm:$0xff]  }
 0x7fa   :  { %15445 = vmatprep.subr.bf16.mxu0 %v17885_v59  ;;  %v13540_v59 = vadd.f32 %v13539_v5, %v13497_v56  ;;  %v17978_v5 = vld [vmem:[#allocation10 + $0x22c] ss:$16 sps:$4 sm:$0xff]   ;;  %v17976_v56 = vld [vmem:[#allocation10 + $0x228] ss:$16 sps:$4 sm:$0xff]  }
 0x7fc   :  { %v13583_v41 = vadd.f32 %v13582_v62, %v13540_v59  ;;  %v17984_v62 = vld [vmem:[#allocation10 + $0x20c] ss:$16 sps:$4 sm:$0xff]   ;;  %v17985_v59 = vld [vmem:[#allocation10 + $0x588] ss:$16 sps:$4 sm:$0xff]  }
 0x7fd   :  { %15446 = vmatpush2.bf16.msra.mxu0 %v17883_v16 }
 0x7fe   :  { %15447 = vmatprep.subr.bf16.mxu0 %v17891_v53  ;;  %v17933_v53 = vld [vmem:[#allocation10 + $0x4ac] ss:$16 sps:$4 sm:$0xff]  }
 0x801   :  { %15448 = vmatpush2.bf16.msra.mxu0 %v17889_v52 }
 0x802   :  { %15449 = vmatprep.subr.bf16.mxu0 %v17897_v39 }
 0x805   :  { %15450 = vmatpush2.bf16.msra.mxu0 %v17895_v4 }
 0x806   :  { %15451 = vmatprep.subr.bf16.mxu0 %v17903_v34 }
 0x809   :  { %15452 = vmatpush2.bf16.msra.mxu0 %v17901_v33  ;;  %v17937_v33 = vld [vmem:[#allocation10 + $0x488] ss:$16 sps:$4 sm:$0xff]  }
 0x80a   :  { %15453 = vmatprep.subr.bf16.mxu0 %v17909_v2 }
 0x80d   :  { %15454 = vmatpush2.bf16.msra.mxu0 %v17907_v6 }
 0x80e   :  { %15455 = vmatprep.subr.bf16.mxu0 %v17915_v26  ;;  %v17951_v26 = vld [vmem:[#allocation10 + $0x44c] ss:$16 sps:$4 sm:$0xff]  }
 0x811   :  { %15456 = vmatpush2.bf16.msra.mxu0 %v17913_v21  ;;  %v17960_v21 = vld [vmem:[#allocation10 + $0x28c] ss:$16 sps:$4 sm:$0xff]  }
 0x812   :  { %15511 = vmatprep.subr.bf16.mxu0 %v17921_v43  ;;  %v17958_v43 = vld [vmem:[#allocation10 + $0x288] ss:$16 sps:$4 sm:$0xff]  }
 0x814   :  { %v13619_v40 = vpop.f32.mrf.mxu0  ;;  %15458 = vmatmul.mubr.bf16.vlgmr.msra.gmra.mxu0 %v19125_v10  ;;  %v17931_v10 = vld [vmem:[#allocation10 + $0x4a8] ss:$16 sps:$4 sm:$0xff]  }
 0x815   :  { %v13662_v3 = vpop.f32.mrf.mxu1  ;;  %15512 = vmatpush1.bf16.msra.mxu0 %v17919_v13  ;;  %15543 = vmatprep.mubr.bf16.mxu0 %v19006_v57  ;;  %v13620_v39 = vadd.f32 %v13619_v40, %v13577_v31  ;;  %v17970_v13 = vld [vmem:[#allocation10 + $0x248] ss:$16 sps:$4 sm:$0xff]   ;;  %v17987_v40 = vld [vmem:[#allocation10 + $0x58c] ss:$16 sps:$4 sm:$0xff]  }
 0x816   :  { %v13621_v16 = vpop.f32.mrf.mxu0  ;;  %15513 = vmatprep.subr.bf16.mxu0 %v17927_v36  ;;  %v17981_v36 = vld [vmem:[#allocation10 + $0x5ac] ss:$16 sps:$4 sm:$0xff]   ;;  %v17988_v31 = vld [vmem:[#allocation10 + $0x3e8] ss:$16 sps:$4 sm:$0xff]  }
 0x817   :  { %v13622_v14 = vadd.f32 %v13621_v16, %v13579_v47  ;;  %v13664_v52 = vpop.f32.mrf.mxu1  ;;  %v13663_v30 = vadd.f32 %v13662_v3, %v13620_v39  ;;  %v17982_v47 = vld [vmem:[#allocation10 + $0x208] ss:$16 sps:$4 sm:$0xff]   ;;  %v17990_v3 = vld [vmem:[#allocation10 + $0x3ec] ss:$16 sps:$4 sm:$0xff]  }
 0x818   :  { %v13623_v50 = vpop.f32.mrf.mxu0  ;;  %v17991_v16 = vld [vmem:[#allocation10 + $0x568] ss:$16 sps:$4 sm:$0xff]   ;;  %v18002_v39 = vld [vmem:[#allocation10 + $0x3ac] ss:$16 sps:$4 sm:$0xff]  }
 0x819   :  { %v13624_v38 = vadd.f32 %v13623_v50, %v13581_v44  ;;  %v13666_v49 = vpop.f32.mrf.mxu1  ;;  %15514 = vmatpush1.bf16.msra.mxu0 %v17925_v12  ;;  %v13665_v22 = vadd.f32 %v13664_v52, %v13622_v14  ;;  %v13677_v48 = vmax.f32 %v13663_v30, 0.0  ;;  %v17993_v12 = vld [vmem:[#allocation10 + $0x56c] ss:$16 sps:$4 sm:$0xff]   ;;  %v17994_v14 = vld [vmem:[#allocation10 + $0x3c8] ss:$16 sps:$4 sm:$0xff]  }
 0x81a   :  { %v13625_v4 = vpop.f32.mrf.mxu0  ;;  %15515 = vmatprep.subr.bf16.mxu0 %v17933_v53  ;;  %v17996_v53 = vld [vmem:[#allocation10 + $0x3cc] ss:$16 sps:$4 sm:$0xff]   ;;  %v17997_v52 = vld [vmem:[#allocation10 + $0x548] ss:$16 sps:$4 sm:$0xff]  }
 0x81b   :  { %v13667_v57 = vadd.f32 %v13666_v49, %v13624_v38  ;;  %v13626_v34 = vadd.f32 %v13625_v4, %v13583_v41  ;;  %v13668_v11 = vpop.f32.mrf.mxu1  ;;  %v13678_v2 = vmax.f32 %v13665_v22, 0.0  ;;  %v17999_v44 = vld [vmem:[#allocation10 + $0x54c] ss:$16 sps:$4 sm:$0xff]   ;;  %v18000_v41 = vld [vmem:[#allocation10 + $0x3a8] ss:$16 sps:$4 sm:$0xff]  }
 0x81c   :  { %v18005_v50 = vld [vmem:[#allocation10 + $0x52c] ss:$16 sps:$4 sm:$0xff]   ;;  %v18003_v38 = vld [vmem:[#allocation10 + $0x528] ss:$16 sps:$4 sm:$0xff]  }
 0x81d   :  { %v13669_v37 = vadd.f32 %v13668_v11, %v13626_v34  ;;  %15516 = vmatpush1.bf16.msra.mxu0 %v17931_v10  ;;  %v13685_v24 = vmax.f32 %v13667_v57, 0.0  ;;  %v18008_v49 = vld [vmem:[#allocation10 + $0x38c] ss:$16 sps:$4 sm:$0xff]   ;;  %v18006_v4 = vld [vmem:[#allocation10 + $0x388] ss:$16 sps:$4 sm:$0xff]  }
 0x81e   :  { %15517 = vmatprep.subr.bf16.mxu0 %v17939_v15  ;;  %v18011_v10 = vld [vmem:[#allocation10 + $0x50c] ss:$16 sps:$4 sm:$0xff]   ;;  %v18009_v15 = vld [vmem:[#allocation10 + $0x508] ss:$16 sps:$4 sm:$0xff]  }
 0x81f   :  { %v13686_v63 = vmax.f32 %v13669_v37, 0.0  ;;  %v19021_v6 = vpack.c.bf16 %v13685_v24, %v13677_v48  ;;  %v18014_v22 = vld [vmem:[#allocation10 + $0x36c] ss:$16 sps:$4 sm:$0xff]   ;;  %v18012_v57 = vld [vmem:[#allocation10 + $0x368] ss:$16 sps:$4 sm:$0xff]  }
 0x820   :  { %v18017_v34 = vld [vmem:[#allocation10 + $0x34c] ss:$16 sps:$4 sm:$0xff]   ;;  %v18015_v30 = vld [vmem:[#allocation10 + $0x348] ss:$16 sps:$4 sm:$0xff]  }
 0x821   :  { %v19019_v8 = vpack.c.bf16 %v13686_v63, %v13678_v2  ;;  %15518 = vmatpush1.bf16.msra.mxu0 %v17937_v33  ;;  %v18020_v11 = vld [vmem:[#allocation10 + $0x32c] ss:$16 sps:$4 sm:$0xff]   ;;  %v18018_v37 = vld [vmem:[#allocation10 + $0x328] ss:$16 sps:$4 sm:$0xff]  }
 0x822   :  { %15519 = vmatprep.subr.bf16.mxu0 %v17945_v42  ;;  %v18023_v33 = vld [vmem:[#allocation10 + $0x30c] ss:$16 sps:$4 sm:$0xff]   ;;  %v18021_v24 = vld [vmem:[#allocation10 + $0x308] ss:$16 sps:$4 sm:$0xff]  }
 0x823   :  { %15414 = vmatprep.mubr.bf16.mxu1 %v19019_v8  ;;  %v18026_v42 = vld [vmem:[#allocation10 + $0x6ec] ss:$16 sps:$4 sm:$0xff]   ;;  %v18024_v2 = vld [vmem:[#allocation10 + $0x6e8] ss:$16 sps:$4 sm:$0xff]  }
 0x824   :  { %15415 = vmatmul.mubr.bf16.vlgmr.msra.gmra.mxu1 %v19021_v6  ;;  %v18029_v63 = vld [vmem:[#allocation10 + $0x6cc] ss:$16 sps:$4 sm:$0xff]  }
 0x825   :  { %15469 = vmatpush1.bf16.msra.mxu1 %v17940_v9  ;;  %15500 = vmatprep.mubr.bf16.mxu1 %v18985_v0  ;;  %v17961_v0 = vld [vmem:[#allocation10 + $0x408] ss:$16 sps:$4 sm:$0xff]   ;;  %v18032_v48 = vld [vmem:[#allocation10 + $0x6ac] ss:$16 sps:$4 sm:$0xff]  }
 0x826   :  { %15520 = vmatpush1.bf16.msra.mxu0 %v17943_v51  ;;  %15470 = vmatprep.subr.bf16.mxu1 %v17948_v35  ;;  %v18030_v9 = vld [vmem:[#allocation10 + $0x6a8] ss:$16 sps:$4 sm:$0xff]   ;;  %v18035_v51 = vld [vmem:[#allocation10 + $0x68c] ss:$16 sps:$4 sm:$0xff]  }
 0x827   :  { %15521 = vmatprep.subr.bf16.mxu0 %v17951_v26  ;;  %v18033_v35 = vld [vmem:[#allocation10 + $0x688] ss:$16 sps:$4 sm:$0xff]   ;;  %v18038_v26 = vld [vmem:[#allocation10 + $0x66c] ss:$16 sps:$4 sm:$0xff]  }
 0x829   :  { %15471 = vmatpush1.bf16.msra.mxu1 %v17946_v29  ;;  %v18036_v29 = vld [vmem:[#allocation10 + $0x668] ss:$16 sps:$4 sm:$0xff]  }
 0x82a   :  { %15522 = vmatpush1.bf16.msra.mxu0 %v17949_v32  ;;  %15472 = vmatprep.subr.bf16.mxu1 %v17954_v27  ;;  %v18041_v32 = vld [vmem:[#allocation10 + $0x64c] ss:$16 sps:$4 sm:$0xff]  }
 0x82b   :  { %15523 = vmatprep.subr.bf16.mxu0 %v17957_v58  ;;  %v18044_v27 = vld [vmem:[#allocation10 + $0x62c] ss:$16 sps:$4 sm:$0xff]  }
 0x82c   :  { %v18047_v58 = vld [vmem:[#allocation10 + $0x60c] ss:$16 sps:$4 sm:$0xff]  }
 0x82d   :  { %15473 = vmatpush1.bf16.msra.mxu1 %v17952_v60  ;;  %v18045_v60 = vld [vmem:[#allocation10 + $0x608] ss:$16 sps:$4 sm:$0xff]  }
 0x82e   :  { %15524 = vmatpush1.bf16.msra.mxu0 %v17955_v7  ;;  %15474 = vmatprep.subr.bf16.mxu1 %v17960_v21  ;;  %v18050_v7 = vld [vmem:[#allocation10 + $0x7ec] ss:$16 sps:$4 sm:$0xff]   ;;  %v18048_v21 = vld [vmem:[#allocation10 + $0x7e8] ss:$16 sps:$4 sm:$0xff]  }
 0x82f   :  { %15525 = vmatprep.subr.bf16.mxu0 %v17963_v54  ;;  %v18053_v54 = vld [vmem:[#allocation10 + $0x7cc] ss:$16 sps:$4 sm:$0xff]  }
 0x831   :  { %15475 = vmatpush1.bf16.msra.mxu1 %v17958_v43  ;;  %v18051_v43 = vld [vmem:[#allocation10 + $0x7c8] ss:$16 sps:$4 sm:$0xff]  }
 0x832   :  { %15526 = vmatpush1.bf16.msra.mxu0 %v17961_v0  ;;  %15476 = vmatprep.subr.bf16.mxu1 %v17966_v17  ;;  %v18056_v0 = vld [vmem:[#allocation10 + $0x7ac] ss:$16 sps:$4 sm:$0xff]   ;;  %v18054_v17 = vld [vmem:[#allocation10 + $0x7a8] ss:$16 sps:$4 sm:$0xff]  }
 0x833   :  { %15527 = vmatprep.subr.bf16.mxu0 %v17969_v45  ;;  %v18059_v45 = vld [vmem:[#allocation10 + $0x78c] ss:$16 sps:$4 sm:$0xff]  }
 0x835   :  { %15477 = vmatpush1.bf16.msra.mxu1 %v17964_v55  ;;  %v18057_v55 = vld [vmem:[#allocation10 + $0x788] ss:$16 sps:$4 sm:$0xff]  }
 0x836   :  { %15528 = vmatpush2.bf16.msra.mxu0 %v17967_v19  ;;  %15478 = vmatprep.subr.bf16.mxu1 %v17972_v23  ;;  %v18062_v19 = vld [vmem:[#allocation10 + $0x76c] ss:$16 sps:$4 sm:$0xff]   ;;  %v18060_v23 = vld [vmem:[#allocation10 + $0x768] ss:$16 sps:$4 sm:$0xff]  }
 0x837   :  { %15529 = vmatprep.subr.bf16.mxu0 %v17975_v25  ;;  %v18065_v25 = vld [vmem:[#allocation10 + $0x74c] ss:$16 sps:$4 sm:$0xff]  }
 0x839   :  { %15479 = vmatpush1.bf16.msra.mxu1 %v17970_v13  ;;  %v18063_v13 = vld [vmem:[#allocation10 + $0x748] ss:$16 sps:$4 sm:$0xff]  }
 0x83a   :  { %15530 = vmatpush2.bf16.msra.mxu0 %v17973_v61  ;;  %15480 = vmatprep.subr.bf16.mxu1 %v17978_v5  ;;  %v18068_v61 = vld [vmem:[#allocation10 + $0x72c] ss:$16 sps:$4 sm:$0xff]   ;;  %v18066_v5 = vld [vmem:[#allocation10 + $0x728] ss:$16 sps:$4 sm:$0xff]  }
 0x83b   :  { %15531 = vmatprep.subr.bf16.mxu0 %v17981_v36  ;;  %v18071_v36 = vld [vmem:[#allocation10 + $0x70c] ss:$16 sps:$4 sm:$0xff]  }
 0x83d   :  { %15481 = vmatpush1.bf16.msra.mxu1 %v17976_v56  ;;  %v18069_v56 = vld [vmem:[#allocation10 + $0x708] ss:$16 sps:$4 sm:$0xff]  }
 0x83e   :  { %15532 = vmatpush2.bf16.msra.mxu0 %v17979_v20  ;;  %15482 = vmatprep.subr.bf16.mxu1 %v17984_v62 }
 0x83f   :  { %15533 = vmatprep.subr.bf16.mxu0 %v17987_v40 }
 0x841   :  { %15483 = vmatpush1.bf16.msra.mxu1 %v17982_v47  ;;  %v13951_v47 = vld [vmem:[#allocation11] sm:$0xf] }
 0x842   :  { %15534 = vmatpush2.bf16.msra.mxu0 %v17985_v59  ;;  %15484 = vmatprep.subr.bf16.mxu1 %v17990_v3 }
 0x843   :  { %15535 = vmatprep.subr.bf16.mxu0 %v17993_v12  ;;  %v19129_v12 = vld [vmem:[#allocation17_spill] sm:$0xff] }
 0x845   :  { %15485 = vmatpush2.bf16.msra.mxu1 %v17988_v31  ;;  %v13956_v31 = vrot.slane %v13951_v47, %v19129_v12 }
 0x846   :  { %15536 = vmatpush2.bf16.msra.mxu0 %v17991_v16  ;;  %15486 = vmatprep.subr.bf16.mxu1 %v17996_v53 }
 0x847   :  { %15537 = vmatprep.subr.bf16.mxu0 %v17999_v44  ;;  %v13960_v44 = vrot.slane %v13951_v47, %v18573_v28 }
 0x849   :  { %15487 = vmatpush2.bf16.msra.mxu1 %v17994_v14 }
 0x84a   :  { %15538 = vmatpush2.bf16.msra.mxu0 %v17997_v52  ;;  %15488 = vmatprep.subr.bf16.mxu1 %v18002_v39 }
 0x84b   :  { %15539 = vmatprep.subr.bf16.mxu0 %v18005_v50 }
 0x84d   :  { %15489 = vmatpush2.bf16.msra.mxu1 %v18000_v41 }
 0x84e   :  { %15540 = vmatpush2.bf16.msra.mxu0 %v18003_v38  ;;  %15490 = vmatprep.subr.bf16.mxu1 %v18008_v49 }
 0x84f   :  { %15541 = vmatprep.subr.bf16.mxu0 %v18011_v10 }
 0x851   :  { %15491 = vmatpush2.bf16.msra.mxu1 %v18006_v4 }
 0x852   :  { %15542 = vmatpush2.bf16.msra.mxu0 %v18009_v15  ;;  %15492 = vmatprep.subr.bf16.mxu1 %v18014_v22 }
 0x854   :  { %v15287_v20 = vpop.f32.mrf.mxu0 }
 0x855   :  { %15493 = vmatpush2.bf16.msra.mxu1 %v18012_v57  ;;  %15544 = vmatmul.mubr.bf16.vlgmr.msra.gmra.mxu0 %v18942_v46  ;;  %v18027_v46 = vld [vmem:[#allocation10 + $0x6c8] ss:$16 sps:$4 sm:$0xff]   ;;  %v15330_v59 = vpop.f32.mrf.mxu1  ;;  %v15288_v14 = vadd.f32 %v15287_v20, %v13956_v31 }
 0x856   :  { %15494 = vmatprep.subr.bf16.mxu1 %v18017_v34  ;;  %v15289_v62 = vpop.f32.mrf.mxu0 }
 0x857   :  { %v15332_v16 = vpop.f32.mrf.mxu1  ;;  %v15290_v50 = vadd.f32 %v15289_v62, %v13960_v44  ;;  %v15331_v41 = vadd.f32 %v15330_v59, %v15288_v14 }
 0x858   :  { %v15291_v40 = vpop.f32.mrf.mxu0 }
 0x859   :  { %15495 = vmatpush2.bf16.msra.mxu1 %v18015_v30  ;;  %v15334_v52 = vpop.f32.mrf.mxu1  ;;  %v15292_v38 = vadd.f32 %v15291_v40, %v13956_v31  ;;  %v15333_v10 = vadd.f32 %v15332_v16, %v15290_v50 }
 0x85a   :  { %15496 = vmatprep.subr.bf16.mxu1 %v18020_v11  ;;  %v15293_v3 = vpop.f32.mrf.mxu0 }
 0x85b   :  { %v15336_v49 = vpop.f32.mrf.mxu1  ;;  %v15294_v4 = vadd.f32 %v15293_v3, %v13960_v44  ;;  %v15335_v57 = vadd.f32 %v15334_v52, %v15292_v38 }
 0x85d   :  { %15497 = vmatpush2.bf16.msra.mxu1 %v18018_v37 }
 0x85e   :  { %15498 = vmatprep.subr.bf16.mxu1 %v18023_v33  ;;  %v15337_v33 = vadd.f32 %v15336_v49, %v15294_v4 }
 0x861   :  { %15499 = vmatpush2.bf16.msra.mxu1 %v18021_v24 }
 0x862   :  { %15554 = vmatprep.subr.bf16.mxu1 %v18026_v42 }
 0x864   :  { %15501 = vmatmul.mubr.bf16.vlgmr.msra.gmra.mxu1 %v19126_v1  ;;  %v18039_v1 = vld [vmem:[#allocation10 + $0x648] ss:$16 sps:$4 sm:$0xff]  }
 0x865   :  { %15555 = vmatpush1.bf16.msra.mxu1 %v18024_v2  ;;  %15586 = vmatprep.mubr.bf16.mxu1 %v19019_v8  ;;  %v18042_v8 = vld [vmem:[#allocation10 + $0x628] ss:$16 sps:$4 sm:$0xff]  }
 0x866   :  { %15556 = vmatprep.subr.bf16.mxu1 %v18029_v63 }
 0x869   :  { %15557 = vmatpush1.bf16.msra.mxu1 %v18027_v46 }
 0x86a   :  { %15558 = vmatprep.subr.bf16.mxu1 %v18032_v48 }
 0x86d   :  { %15559 = vmatpush1.bf16.msra.mxu1 %v18030_v9 }
 0x86e   :  { %15560 = vmatprep.subr.bf16.mxu1 %v18035_v51 }
 0x871   :  { %15561 = vmatpush1.bf16.msra.mxu1 %v18033_v35 }
 0x872   :  { %15562 = vmatprep.subr.bf16.mxu1 %v18038_v26 }
 0x875   :  { %15563 = vmatpush1.bf16.msra.mxu1 %v18036_v29  ;;  %v19130_v29 = vld [vmem:[#allocation18_spill] sm:$0xff] }
 0x876   :  { %15564 = vmatprep.subr.bf16.mxu1 %v18041_v32  ;;  %v13964_v32 = vrot.slane %v13951_v47, %v19130_v29 }
 0x879   :  { %15565 = vmatpush1.bf16.msra.mxu1 %v18039_v1 }
 0x87a   :  { %15566 = vmatprep.subr.bf16.mxu1 %v18044_v27 }
 0x87d   :  { %15567 = vmatpush1.bf16.msra.mxu1 %v18042_v8  ;;  %v13968_v8 = vrot.slane %v13951_v47, %v18584_v18 }
 0x87e   :  { %15568 = vmatprep.subr.bf16.mxu1 %v18047_v58 }
 0x881   :  { %15569 = vmatpush1.bf16.msra.mxu1 %v18045_v60 }
 0x882   :  { %15570 = vmatprep.subr.bf16.mxu1 %v18050_v7 }
 0x885   :  { %15571 = vmatpush2.bf16.msra.mxu1 %v18048_v21 }
 0x886   :  { %15572 = vmatprep.subr.bf16.mxu1 %v18053_v54 }
 0x889   :  { %15573 = vmatpush2.bf16.msra.mxu1 %v18051_v43 }
 0x88a   :  { %15574 = vmatprep.subr.bf16.mxu1 %v18056_v0 }
 0x88d   :  { %15575 = vmatpush2.bf16.msra.mxu1 %v18054_v17 }
 0x88e   :  { %15576 = vmatprep.subr.bf16.mxu1 %v18059_v45 }
 0x891   :  { %15577 = vmatpush2.bf16.msra.mxu1 %v18057_v55 }
 0x892   :  { %15578 = vmatprep.subr.bf16.mxu1 %v18062_v19 }
 0x894   :  { %v15373_v53 = vpop.f32.mrf.mxu0 }
 0x895   :  { %15579 = vmatpush2.bf16.msra.mxu1 %v18060_v23  ;;  %v15374_v15 = vadd.f32 %v15373_v53, %v15331_v41 }
 0x896   :  { %15580 = vmatprep.subr.bf16.mxu1 %v18065_v25  ;;  %v15375_v39 = vpop.f32.mrf.mxu0 }
 0x897   :  { %v15376_v34 = vadd.f32 %v15375_v39, %v15333_v10 }
 0x899   :  { %15581 = vmatpush2.bf16.msra.mxu1 %v18063_v13 }
 0x89a   :  { %15582 = vmatprep.subr.bf16.mxu1 %v18068_v61 }
 0x89d   :  { %15583 = vmatpush2.bf16.msra.mxu1 %v18066_v5 }
 0x89e   :  { %15584 = vmatprep.subr.bf16.mxu1 %v18071_v36 }
 0x8a1   :  { %15585 = vmatpush2.bf16.msra.mxu1 %v18069_v56 }
 0x8a4   :  { %15587 = vmatmul.mubr.bf16.vlgmr.msra.gmra.mxu1 %v19021_v6  ;;  %v15377_v6 = vpop.f32.mrf.mxu0 }
 0x8a5   :  { %v15378_v24 = vadd.f32 %v15377_v6, %v15335_v57 }
 0x8a6   :  { %v15379_v11 = vpop.f32.mrf.mxu0 }
 0x8a7   :  { %v15380_v2 = vadd.f32 %v15379_v11, %v15337_v33 }
 0x8d4   :  { %v15459_v9 = vpop.f32.mrf.mxu0 }
 0x8d5   :  { %v15460_v60 = vadd.f32 %v15459_v9, %v13964_v32 }
 0x8d6   :  { %v15461_v51 = vpop.f32.mrf.mxu0 }
 0x8d7   :  { %v15462_v21 = vadd.f32 %v15461_v51, %v13968_v8 }
 0x8d8   :  { %v15463_v35 = vpop.f32.mrf.mxu0 }
 0x8d9   :  { %v15464_v0 = vadd.f32 %v15463_v35, %v13964_v32 }
 0x8da   :  { %v15465_v1 = vpop.f32.mrf.mxu0 }
 0x8db   :  { %v15466_v55 = vadd.f32 %v15465_v1, %v13968_v8 }
 0x8e4   :  { %v15416_v22 = vpop.f32.mrf.mxu1 }
 0x8e5   :  { %v15417_v30 = vadd.f32 %v15416_v22, %v15374_v15 }
 0x8e6   :  { %v15418_v37 = vpop.f32.mrf.mxu1 }
 0x8e7   :  { %15597 = vst [vmem:[%s19065_s7] sm:$0xff] %v15417_v30  ;;  %v15419_v28 = vadd.f32 %v15418_v37, %v15376_v34 }
 0x8e8   :  { %v15420_v42 = vpop.f32.mrf.mxu1 }
 0x8e9   :  { %15598 = vst [vmem:[%s19065_s7 + $0x8] sm:$0xff] %v15419_v28  ;;  %v15421_v63 = vadd.f32 %v15420_v42, %v15378_v24 }
 0x8ea   :  { %v15422_v46 = vpop.f32.mrf.mxu1 }
 0x8eb   :  { %15601 = vst [vmem:[%s19065_s7 + $0x20] sm:$0xff] %v15421_v63  ;;  %v15423_v48 = vadd.f32 %v15422_v46, %v15380_v2 }
 0x8ed   :  { %15602 = vst [vmem:[%s19065_s7 + $0x28] sm:$0xff] %v15423_v48 }
 0x915   :  { %v15545_v58 = vpop.f32.mrf.mxu0 }
 0x917   :  { %v15547_v43 = vpop.f32.mrf.mxu0 }
 0x919   :  { %v15549_v25 = vpop.f32.mrf.mxu0 }
 0x91b   :  { %v15551_v62 = vpop.f32.mrf.mxu0 }
 0x924   :  { %v15502_v26 = vpop.f32.mrf.mxu1 }
 0x925   :  { %v15503_v54 = vadd.f32 %v15502_v26, %v15460_v60 }
 0x926   :  { %v15504_v27 = vpop.f32.mrf.mxu1 }
 0x927   :  { %v15505_v17 = vadd.f32 %v15504_v27, %v15462_v21  ;;  %v15546_v23 = vadd.f32 %v15545_v58, %v15503_v54 }
 0x928   :  { %v15506_v7 = vpop.f32.mrf.mxu1 }
 0x929   :  { %v15507_v19 = vadd.f32 %v15506_v7, %v15464_v0  ;;  %v15548_v36 = vadd.f32 %v15547_v43, %v15505_v17 }
 0x92a   :  { %v15508_v45 = vpop.f32.mrf.mxu1 }
 0x92b   :  { %v15509_v61 = vadd.f32 %v15508_v45, %v15466_v55  ;;  %v15550_v20 = vadd.f32 %v15549_v25, %v15507_v19 }
 0x92d   :  { %v15552_v59 = vadd.f32 %v15551_v62, %v15509_v61 }
 0x964   :  { %v15588_v13 = vpop.f32.mrf.mxu1 }
 0x965   :  { %v15589_v5 = vadd.f32 %v15588_v13, %v15546_v23 }
 0x966   :  { %v15590_v56 = vpop.f32.mrf.mxu1 }
 0x967   :  { %15599 = vst [vmem:[%s19065_s7 + $0x10] sm:$0xff] %v15589_v5  ;;  %v15591_v18 = vadd.f32 %v15590_v56, %v15548_v36 }
 0x968   :  { %v15592_v40 = vpop.f32.mrf.mxu1 }
 0x969   :  { %15600 = vst [vmem:[%s19065_s7 + $0x18] sm:$0xff] %v15591_v18  ;;  %v15593_v47 = vadd.f32 %v15592_v40, %v15550_v20 }
 0x96a   :  { %v15594_v3 = vpop.f32.mrf.mxu1 }
 0x96b   :  { %15603 = vst [vmem:[%s19065_s7 + $0x30] sm:$0xff] %v15593_v47  ;;  %v15595_v12 = vadd.f32 %v15594_v3, %v15552_v59 }
 0x96d   :  { %15604 = vst [vmem:[%s19065_s7 + $0x38] sm:$0xff] %v15595_v12 }
 0x96e   :  { %15609 = vsyncpa [#allocation4], 1 }
 0x96f   :  { %15610 = vsyncpa [#allocation6], 1 }
 0x970   :  { %15611 = vsyncpa [#allocation9], 1 }
 0x971   :  { %15612 = vsyncpa [#allocation12], 1 }

</bundles_post_ra>
